<compile_context>
chip_gen: v7x
topology: tpu7x:2x2x1
jax: 0.10.0
libtpu: 0.0.40
codegen_flags: <defaults>
</compile_context>

<pallas_src>
import jax
import jax.numpy as jnp
import numpy as np
from jax import lax
from jax.experimental import pallas as pl
from jax.experimental.pallas import tpu as pltpu

_F32 = jnp.float32
_BF16 = jnp.bfloat16


# ---------------------------------------------------------------------------
# In-kernel helpers (traced inline; operands are VMEM refs / values)
# ---------------------------------------------------------------------------

def _conv_rows(x_ref, n_rows, tb, t_ref, b_ref):
    """3x3 'SAME' conv + bias + ReLU as 3 accumulating MXU dots.

    x_ref : ((H+2)*tb, Win*Cin) f32 scratch; row = hp*tb + b (hp padded row),
            lane = w*Cin + ci.  Rows [0,tb) and the last tb rows are zero pads.
    t_ref : (3, Win*Cin, Wout*Cout) bf16 banded weight slabs (one per kernel
            row); the w-direction padding is already folded into the slabs.
    b_ref : (1, Wout*Cout) f32 bias tile.
    returns (n_rows, Wout*Cout) f32 with row = h*tb + b, lane = w*Cout + co.
    """
    acc = jnp.dot(x_ref[0:n_rows, :].astype(_BF16), t_ref[0],
                  preferred_element_type=_F32)
    acc = acc + jnp.dot(x_ref[tb:tb + n_rows, :].astype(_BF16), t_ref[1],
                        preferred_element_type=_F32)
    acc = acc + jnp.dot(x_ref[2 * tb:2 * tb + n_rows, :].astype(_BF16), t_ref[2],
                        preferred_element_type=_F32)
    return jnp.maximum(acc + b_ref[...], 0.0)


def _pool2x2_into(y, h_out, w_out, c, tb, dst_ref):
    """2x2/stride-2 maxpool of y ((2*h_out*tb, 2*w_out*c), rows (h,b), lanes
    (w,ch)) written into dst_ref's interior rows [tb, (h_out+1)*tb); only the
    two tb-row padding blocks of dst_ref are zeroed (interior fully written).
    """
    # h-pairs: adjacent tb-row blocks -> tile-aligned reshape + max.
    v = y.reshape(h_out, 2 * tb, 2 * w_out * c)
    hmax = jnp.maximum(v[:, :tb, :], v[:, tb:, :]).reshape(h_out * tb, 2 * w_out * c)
    dst_ref[0:tb, :] = jnp.zeros((tb, w_out * c), _F32)
    dst_ref[(h_out + 1) * tb:(h_out + 2) * tb, :] = jnp.zeros((tb, w_out * c), _F32)
    # w-pairs: static 16/32-lane group slices, stored straight into the
    # next conv's input scratch (no concatenate, no big relayout).
    for j in range(w_out):
        dst_ref[tb:(h_out + 1) * tb, c * j:c * (j + 1)] = jnp.maximum(
            hmax[:, 2 * c * j:2 * c * j + c],
            hmax[:, 2 * c * j + c:2 * c * j + 2 * c])


# ---------------------------------------------------------------------------
# The fused network kernel (TB images per grid step)
# ---------------------------------------------------------------------------

def _circlenet_kernel(x_ref, t1_ref, b1_ref, t2_ref, b2_ref, t3_ref, b3_ref,
                      wfc1_ref, bfc1_ref, wfc2_ref, bfc2_ref,
                      o_ref, x1_ref, x2_ref, x3_ref):
    tb = o_ref.shape[0]

    # ---- stage the input tile into the (row-padded) conv1 scratch -----------
    x1_ref[0:tb, :] = jnp.zeros((tb, 28), _F32)                 # h = -1 pad rows
    x1_ref[29 * tb:30 * tb, :] = jnp.zeros((tb, 28), _F32)      # h = 28 pad rows
    # x_ref is (28, tb, 28) = (h, b, w); the (h,b) collapse is sublane-tile
    # aligned (tb == 8), so this is a straight interior store.
    x1_ref[tb:29 * tb, :] = x_ref[...].reshape(28 * tb, 28)

    # ---- conv1 + ReLU (MXU, M=28*tb) ; maxpool -> conv2 input ---------------
    y1 = _conv_rows(x1_ref, 28 * tb, tb, t1_ref, b1_ref)        # (28*tb, 28*16)
    _pool2x2_into(y1, 14, 14, 16, tb, x2_ref)

    # ---- conv2 + ReLU (M=14*tb) ; maxpool -> conv3 input --------------------
    y2 = _conv_rows(x2_ref, 14 * tb, tb, t2_ref, b2_ref)        # (14*tb, 14*32)
    _pool2x2_into(y2, 7, 7, 32, tb, x3_ref)

    # ---- conv3 + ReLU (M=7*tb); AdaptiveAvgPool2d((7,7)) == identity at 7x7 -
    y3 = _conv_rows(x3_ref, 7 * tb, tb, t3_ref, b3_ref).astype(_BF16)  # (7*tb, 7*64)

    # ---- detector: fc1 (+ReLU) as 7 accumulating dots, then fc2 -------------
    # PyTorch's (c,h,w) Flatten order is folded into wfc1 offline; no in-kernel
    # flatten / gather is needed.
    f1 = jnp.dot(y3[0:tb, :], wfc1_ref[0], preferred_element_type=_F32)
    for h in range(1, 7):
        f1 = f1 + jnp.dot(y3[h * tb:(h + 1) * tb, :], wfc1_ref[h],
                          preferred_element_type=_F32)
    f1 = jnp.maximum(f1 + bfc1_ref[...], 0.0).astype(_BF16)
    # Dropout(0.5): identity in eval/inference.
    # TODO(synk): training-mode dropout (stateful PRNG mask) is not implemented.
    o_ref[...] = jnp.dot(f1, wfc2_ref[...], preferred_element_type=_F32) + bfc2_ref[...]


# ---------------------------------------------------------------------------
# Host-side wrapper
# ---------------------------------------------------------------------------

def circlenet_forward(x_nchw, params, *, tb=8):
    """CircleNet_FP forward.  x_nchw: (N, 1, 28, 28) f32  ->  (N, 5, 3) f32.

    tb = images per grid step.  8 is safe on every generation; on v6e it can
    be raised to ~32 (re-derive VMEM).  Keep ceil(N/tb) >= 2 so both v7x
    TensorCores get work under the "parallel" grid axis.
    """
    N, C, H, W = x_nchw.shape
    assert (C, H, W) == (1, 28, 28), "kernel specialized to 28x28 inputs"
    # TODO(synk): general AdaptiveAvgPool2d((7,7)) for inputs other than 28x28
    # (at 28x28 the conv3 feature map is already 7x7, so it is the identity).
    assert tb % 8 == 0, "tb must be a multiple of 8 (sublane alignment)"

    n_pad = -(-N // tb) * tb
    x = x_nchw.reshape(N, 28, 28)
    if n_pad != N:
        x = jnp.concatenate([x, jnp.zeros((n_pad - N, 28, 28), x.dtype)], axis=0)
    # (h, b, w) staging: the kernel's (h,b)-row layout comes straight off the
    # DMA, with the Cin=1 dim gone and no in-kernel transpose.
    x_hbw = jnp.transpose(x, (1, 0, 2))                         # (28, n_pad, 28)

    def _const(shape):
        zeros = (0,) * len(shape)
        return pl.BlockSpec(shape, lambda i, _z=zeros: _z)      # weights stay VMEM-resident

    out = pl.pallas_call(
        _circlenet_kernel,
        out_shape=jax.ShapeDtypeStruct((n_pad, 128), jnp.float32),
        grid_spec=pltpu.PrefetchScalarGridSpec(
            num_scalar_prefetch=0,
            grid=(n_pad // tb,),
            in_specs=[
                pl.BlockSpec((28, tb, 28), lambda i: (0, i, 0)),   # x tile (h, b, w)
                _const((3, 28, 448)), _const((1, 448)),            # conv1 slabs + bias tile
                _const((3, 224, 448)), _const((1, 448)),           # conv2 slabs + bias tile
                _const((3, 224, 448)), _const((1, 448)),           # conv3 slabs + bias tile
                _const((7, 448, 128)), _const((1, 128)),           # fc1 per-row slabs + bias
                _const((128, 128)), _const((1, 128)),              # fc2 (padded to 128 cols) + bias
            ],
            out_specs=pl.BlockSpec((tb, 128), lambda i: (i, 0)),   # lane-dense output slab
            scratch_shapes=[
                pltpu.VMEM((30 * tb, 28), jnp.float32),    # conv1 input, rows (hp, b)
                pltpu.VMEM((16 * tb, 224), jnp.float32),   # conv2 input (14x14x16 + row pads)
                pltpu.VMEM((9 * tb, 224), jnp.float32),    # conv3 input (7x7x32 + row pads)
            ],
        ),
        compiler_params=pltpu.CompilerParams(
            dimension_semantics=("parallel",),             # v7x: 2 TCs split the batch tiles
            vmem_limit_bytes=32 * 1024 * 1024,             # explicit budget, ~4x headroom
        ),
    )(x_hbw, params['t1'], params['b1'], params['t2'], params['b2'],
      params['t3'], params['b3'], params['wfc1'], params['bfc1'],
      params['wfc2'], params['bfc2'])
    return out[:N, :15].reshape(N, 5, 3)


# ---------------------------------------------------------------------------
# Parameters: PyTorch-native layouts + one-time conversion to kernel layouts
# ---------------------------------------------------------------------------

def init_torch_params(key):
    """Random parameters in PyTorch's native layouts (OIHW convs, (out,in) Linears)."""
    ks = jax.random.split(key, 10)

    def nrm(k, shape, scale):
        return scale * jax.random.normal(k, shape, jnp.float32)

    return {
        'conv1_w': nrm(ks[0], (16, 1, 3, 3), 0.20),   'conv1_b': nrm(ks[1], (16,), 0.10),
        'conv2_w': nrm(ks[2], (32, 16, 3, 3), 0.08),  'conv2_b': nrm(ks[3], (32,), 0.10),
        'conv3_w': nrm(ks[4], (64, 32, 3, 3), 0.06),  'conv3_b': nrm(ks[5], (64,), 0.10),
        'fc1_w':   nrm(ks[6], (128, 64 * 7 * 7), 0.02), 'fc1_b': nrm(ks[7], (128,), 0.10),
        'fc2_w':   nrm(ks[8], (15, 128), 0.05),          'fc2_b': nrm(ks[9], (15,), 0.10),
    }


def convert_params(tp):
    """One-time conversion of PyTorch-style params into the kernel's layouts."""

    def toeplitz(w_oihw, win):
        # Banded "Toeplitz over w" slabs, one per kernel row kh:
        #   t[kh, wi*Cin + ci, wo*Cout + co] = w[co, ci, kh, wi - wo + 1]
        # Entries whose input column would be 'SAME' padding are left at zero,
        # so the in-kernel scratches need no padding columns.
        w = np.asarray(w_oihw, np.float32)
        o, i, _, _ = w.shape
        t = np.zeros((3, win * i, win * o), np.float32)
        for kh in range(3):
            for wo in range(win):
                for kw in range(3):
                    wi = wo + kw - 1
                    if 0 <= wi < win:
                        t[kh, wi * i:(wi + 1) * i, wo * o:(wo + 1) * o] = w[:, :, kh, kw].T
        return jnp.asarray(t, _BF16)

    def bias_tile(b, win):
        return jnp.asarray(np.tile(np.asarray(b, np.float32), win)[None, :], jnp.float32)

    # Fold PyTorch's NCHW Flatten order (c,h,w) into fc1 and split it into 7
    # per-spatial-row slabs of shape (7*64, 128) with lane order (w, c).
    wfc1 = np.asarray(tp['fc1_w'], np.float32).T                  # (3136, 128), rows (c,h,w)
    wfc1 = wfc1.reshape(64, 7, 7, 128).transpose(1, 2, 0, 3).reshape(7, 7 * 64, 128)

    # Pad fc2 to 128 output columns so the kernel's output store is lane-dense.
    wfc2 = np.zeros((128, 128), np.float32)
    wfc2[:, :15] = np.asarray(tp['fc2_w'], np.float32).T
    bfc2 = np.zeros((1, 128), np.float32)
    bfc2[0, :15] = np.asarray(tp['fc2_b'], np.float32)

    return {
        't1': toeplitz(tp['conv1_w'], 28), 'b1': bias_tile(tp['conv1_b'], 28),
        't2': toeplitz(tp['conv2_w'], 14), 'b2': bias_tile(tp['conv2_b'], 14),
        't3': toeplitz(tp['conv3_w'], 7),  'b3': bias_tile(tp['conv3_b'], 7),
        'wfc1': jnp.asarray(wfc1, _BF16),
        'bfc1': jnp.asarray(tp['fc1_b'], jnp.float32)[None, :],
        'wfc2': jnp.asarray(wfc2, _BF16),
        'bfc2': jnp.asarray(bfc2, jnp.float32),
    }


# ---------------------------------------------------------------------------
# Pure-JAX NCHW reference with PyTorch-layout parameters (numerical check)
# ---------------------------------------------------------------------------

def reference_forward(x_nchw, tp):
    def conv(x, w, b):
        y = lax.conv_general_dilated(
            x, w, window_strides=(1, 1), padding='SAME',
            dimension_numbers=('NCHW', 'OIHW', 'NCHW'))
        return jax.nn.relu(y + b[None, :, None, None])

    def pool(x):
        n, c, h, w = x.shape
        return jnp.max(x.reshape(n, c, h // 2, 2, w // 2, 2), axis=(3, 5))

    h = pool(conv(x_nchw, tp['conv1_w'], tp['conv1_b']))
    h = pool(conv(h, tp['conv2_w'], tp['conv2_b']))
    h = conv(h, tp['conv3_w'], tp['conv3_b'])
    # AdaptiveAvgPool2d((7,7)) is the identity at 7x7.
    flat = h.reshape(h.shape[0], -1)                            # NCHW flatten: (c,h,w) order
    f = jax.nn.relu(flat @ tp['fc1_w'].T + tp['fc1_b'])
    out = f @ tp['fc2_w'].T + tp['fc2_b']                       # Dropout: identity in eval
    return out.reshape(-1, 5, 3)


# ---------------------------------------------------------------------------

if __name__ == "__main__":
    key = jax.random.PRNGKey(0)
    k_x, k_p = jax.random.split(key)

    torch_params = init_torch_params(k_p)
    params = convert_params(torch_params)
    # N=16 with TB=8 -> 2 grid steps, so both v7x TensorCores get work.
    x = jax.random.normal(k_x, (16, 1, 28, 28), jnp.float32)    # NCHW, like PyTorch

    fwd = jax.jit(circlenet_forward)
    out = jax.block_until_ready(fwd(x, params))

    assert out.shape == (16, 5, 3)
    ref = reference_forward(x, torch_params)
    # Tolerance widened vs. the pure-f32 version because matmul inputs are now
    # bf16 (f32 accumulation); observed error is ~1e-3, budget 1e-2.
    np.testing.assert_allclose(np.asarray(out), np.asarray(ref),
                               rtol=1e-2, atol=1e-2)
    print("KERNEL_OK")
</pallas_src>

<mosaic_0001>
module attributes {stable_mosaic.version = 11 : i64} {
  func.func @_circlenet_kernel(%arg0: i32, %arg1: memref<28x8x28xf32, #tpu.memory_space<vmem>>, %arg2: memref<3x28x448xbf16, #tpu.memory_space<vmem>>, %arg3: memref<1x448xf32, #tpu.memory_space<vmem>>, %arg4: memref<3x224x448xbf16, #tpu.memory_space<vmem>>, %arg5: memref<1x448xf32, #tpu.memory_space<vmem>>, %arg6: memref<3x224x448xbf16, #tpu.memory_space<vmem>>, %arg7: memref<1x448xf32, #tpu.memory_space<vmem>>, %arg8: memref<7x448x128xbf16, #tpu.memory_space<vmem>>, %arg9: memref<1x128xf32, #tpu.memory_space<vmem>>, %arg10: memref<128x128xbf16, #tpu.memory_space<vmem>>, %arg11: memref<1x128xf32, #tpu.memory_space<vmem>>, %arg12: memref<8x128xf32, #tpu.memory_space<vmem>>, %arg13: memref<240x28xf32, #tpu.memory_space<vmem>>, %arg14: memref<128x224xf32, #tpu.memory_space<vmem>>, %arg15: memref<72x224xf32, #tpu.memory_space<vmem>>) attributes {dimension_semantics = [#tpu.dimension_semantics<parallel>], iteration_bounds = array<i64: 2>, scalar_prefetch = 0 : i64, scratch_operands = 3 : i64, tpu.core_type = #tpu.core_type<tc>, window_params = [{transform_indices = @transform_0, window_bounds = array<i64: 28, 8, 28>}, {pipeline_mode = #tpu.pipeline_mode<synchronous>, transform_indices = @transform_1, window_bounds = array<i64: 3, 28, 448>}, {pipeline_mode = #tpu.pipeline_mode<synchronous>, transform_indices = @transform_2, window_bounds = array<i64: 1, 448>}, {pipeline_mode = #tpu.pipeline_mode<synchronous>, transform_indices = @transform_3, window_bounds = array<i64: 3, 224, 448>}, {pipeline_mode = #tpu.pipeline_mode<synchronous>, transform_indices = @transform_4, window_bounds = array<i64: 1, 448>}, {pipeline_mode = #tpu.pipeline_mode<synchronous>, transform_indices = @transform_5, window_bounds = array<i64: 3, 224, 448>}, {pipeline_mode = #tpu.pipeline_mode<synchronous>, transform_indices = @transform_6, window_bounds = array<i64: 1, 448>}, {pipeline_mode = #tpu.pipeline_mode<synchronous>, transform_indices = @transform_7, window_bounds = array<i64: 7, 448, 128>}, {pipeline_mode = #tpu.pipeline_mode<synchronous>, transform_indices = @transform_8, window_bounds = array<i64: 1, 128>}, {pipeline_mode = #tpu.pipeline_mode<synchronous>, transform_indices = @transform_9, window_bounds = array<i64: 128, 128>}, {pipeline_mode = #tpu.pipeline_mode<synchronous>, transform_indices = @transform_10, window_bounds = array<i64: 1, 128>}, {transform_indices = @transform_11, window_bounds = array<i64: 8, 128>}]} {
    %cst = arith.constant 0.000000e+00 : f32
    %0 = vector.broadcast %cst : f32 to vector<8x28xf32>
    %c0 = arith.constant 0 : index
    %c0_0 = arith.constant 0 : index
    %1 = vector.load %arg13[%c0, %c0_0] : memref<240x28xf32, #tpu.memory_space<vmem>>, vector<8x28xf32>
    tpu.vector_store %arg13[%c0, %c0_0], %0 {strides = array<i32>} : memref<240x28xf32, #tpu.memory_space<vmem>>, vector<8x28xf32>,
    %cst_1 = arith.constant 0.000000e+00 : f32
    %2 = vector.broadcast %cst_1 : f32 to vector<8x28xf32>
    %c232 = arith.constant 232 : index
    %c0_2 = arith.constant 0 : index
    %3 = vector.load %arg13[%c232, %c0_2] : memref<240x28xf32, #tpu.memory_space<vmem>>, vector<8x28xf32>
    tpu.vector_store %arg13[%c232, %c0_2], %2 {strides = array<i32>} : memref<240x28xf32, #tpu.memory_space<vmem>>, vector<8x28xf32>,
    %c0_3 = arith.constant 0 : index
    %c0_4 = arith.constant 0 : index
    %c0_5 = arith.constant 0 : index
    %4 = vector.load %arg1[%c0_3, %c0_4, %c0_5] : memref<28x8x28xf32, #tpu.memory_space<vmem>>, vector<28x8x28xf32>
    %5 = vector.shape_cast %4 : vector<28x8x28xf32> to vector<224x28xf32>
    %c8 = arith.constant 8 : index
    %c0_6 = arith.constant 0 : index
    %6 = vector.load %arg13[%c8, %c0_6] : memref<240x28xf32, #tpu.memory_space<vmem>>, vector<224x28xf32>
    tpu.vector_store %arg13[%c8, %c0_6], %5 {strides = array<i32>} : memref<240x28xf32, #tpu.memory_space<vmem>>, vector<224x28xf32>,
    %c0_7 = arith.constant 0 : index
    %c0_8 = arith.constant 0 : index
    %7 = vector.load %arg13[%c0_7, %c0_8] : memref<240x28xf32, #tpu.memory_space<vmem>>, vector<224x28xf32>
    %8 = arith.truncf %7 : vector<224x28xf32> to vector<224x28xbf16>
    %c0_9 = arith.constant 0 : index
    %c0_10 = arith.constant 0 : index
    %c0_11 = arith.constant 0 : index
    %9 = vector.load %arg2[%c0_9, %c0_10, %c0_11] : memref<3x28x448xbf16, #tpu.memory_space<vmem>>, vector<1x28x448xbf16>
    %10 = vector.shape_cast %9 : vector<1x28x448xbf16> to vector<28x448xbf16>
    %cst_12 = arith.constant dense<0.000000e+00> : vector<224x448xf32>
    %11 = tpu.matmul %8, %10, %cst_12 {dimension_numbers = #tpu.dot_dimension_numbers<[1], [0], [0], [1], [0, 0, 1, 1], [], []>} : vector<224x28xbf16>, vector<28x448xbf16>, vector<224x448xf32> -> vector<224x448xf32>
    %c8_13 = arith.constant 8 : index
    %c0_14 = arith.constant 0 : index
    %12 = vector.load %arg13[%c8_13, %c0_14] : memref<240x28xf32, #tpu.memory_space<vmem>>, vector<224x28xf32>
    %13 = arith.truncf %12 : vector<224x28xf32> to vector<224x28xbf16>
    %c1 = arith.constant 1 : index
    %c0_15 = arith.constant 0 : index
    %c0_16 = arith.constant 0 : index
    %14 = vector.load %arg2[%c1, %c0_15, %c0_16] : memref<3x28x448xbf16, #tpu.memory_space<vmem>>, vector<1x28x448xbf16>
    %15 = vector.shape_cast %14 : vector<1x28x448xbf16> to vector<28x448xbf16>
    %cst_17 = arith.constant dense<0.000000e+00> : vector<224x448xf32>
    %16 = tpu.matmul %13, %15, %cst_17 {dimension_numbers = #tpu.dot_dimension_numbers<[1], [0], [0], [1], [0, 0, 1, 1], [], []>} : vector<224x28xbf16>, vector<28x448xbf16>, vector<224x448xf32> -> vector<224x448xf32>
    %17 = arith.addf %11, %16 : vector<224x448xf32>
    %c16 = arith.constant 16 : index
    %c0_18 = arith.constant 0 : index
    %18 = vector.load %arg13[%c16, %c0_18] : memref<240x28xf32, #tpu.memory_space<vmem>>, vector<224x28xf32>
    %19 = arith.truncf %18 : vector<224x28xf32> to vector<224x28xbf16>
    %c2 = arith.constant 2 : index
    %c0_19 = arith.constant 0 : index
    %c0_20 = arith.constant 0 : index
    %20 = vector.load %arg2[%c2, %c0_19, %c0_20] : memref<3x28x448xbf16, #tpu.memory_space<vmem>>, vector<1x28x448xbf16>
    %21 = vector.shape_cast %20 : vector<1x28x448xbf16> to vector<28x448xbf16>
    %cst_21 = arith.constant dense<0.000000e+00> : vector<224x448xf32>
    %22 = tpu.matmul %19, %21, %cst_21 {dimension_numbers = #tpu.dot_dimension_numbers<[1], [0], [0], [1], [0, 0, 1, 1], [], []>} : vector<224x28xbf16>, vector<28x448xbf16>, vector<224x448xf32> -> vector<224x448xf32>
    %23 = arith.addf %17, %22 : vector<224x448xf32>
    %c0_22 = arith.constant 0 : index
    %c0_23 = arith.constant 0 : index
    %24 = vector.load %arg3[%c0_22, %c0_23] : memref<1x448xf32, #tpu.memory_space<vmem>>, vector<1x448xf32>
    %25 = vector.broadcast %24 : vector<1x448xf32> to vector<224x448xf32>
    %26 = arith.addf %23, %25 : vector<224x448xf32>
    %cst_24 = arith.constant 0.000000e+00 : f32
    %27 = vector.broadcast %cst_24 : f32 to vector<224x448xf32>
    %28 = arith.maximumf %26, %27 : vector<224x448xf32>
    %29 = vector.shape_cast %28 : vector<224x448xf32> to vector<14x16x448xf32>
    %30 = vector.extract_strided_slice %29 {offsets = [0, 0, 0], sizes = [14, 8, 448], strides = [1, 1, 1]} : vector<14x16x448xf32> to vector<14x8x448xf32>
    %31 = vector.extract_strided_slice %29 {offsets = [0, 8, 0], sizes = [14, 8, 448], strides = [1, 1, 1]} : vector<14x16x448xf32> to vector<14x8x448xf32>
    %32 = arith.maximumf %30, %31 : vector<14x8x448xf32>
    %33 = vector.shape_cast %32 : vector<14x8x448xf32> to vector<112x448xf32>
    %cst_25 = arith.constant 0.000000e+00 : f32
    %34 = vector.broadcast %cst_25 : f32 to vector<8x224xf32>
    %c0_26 = arith.constant 0 : index
    %c0_27 = arith.constant 0 : index
    %35 = vector.load %arg14[%c0_26, %c0_27] : memref<128x224xf32, #tpu.memory_space<vmem>>, vector<8x224xf32>
    tpu.vector_store %arg14[%c0_26, %c0_27], %34 {strides = array<i32>} : memref<128x224xf32, #tpu.memory_space<vmem>>, vector<8x224xf32>,
    %cst_28 = arith.constant 0.000000e+00 : f32
    %36 = vector.broadcast %cst_28 : f32 to vector<8x224xf32>
    %c120 = arith.constant 120 : index
    %c0_29 = arith.constant 0 : index
    %37 = vector.load %arg14[%c120, %c0_29] : memref<128x224xf32, #tpu.memory_space<vmem>>, vector<8x224xf32>
    tpu.vector_store %arg14[%c120, %c0_29], %36 {strides = array<i32>} : memref<128x224xf32, #tpu.memory_space<vmem>>, vector<8x224xf32>,
    %38 = vector.extract_strided_slice %33 {offsets = [0, 0], sizes = [112, 16], strides = [1, 1]} : vector<112x448xf32> to vector<112x16xf32>
    %39 = vector.extract_strided_slice %33 {offsets = [0, 16], sizes = [112, 16], strides = [1, 1]} : vector<112x448xf32> to vector<112x16xf32>
    %40 = arith.maximumf %38, %39 : vector<112x16xf32>
    %c8_30 = arith.constant 8 : index
    %c0_31 = arith.constant 0 : index
    %41 = vector.load %arg14[%c8_30, %c0_31] : memref<128x224xf32, #tpu.memory_space<vmem>>, vector<112x16xf32>
    tpu.vector_store %arg14[%c8_30, %c0_31], %40 {strides = array<i32>} : memref<128x224xf32, #tpu.memory_space<vmem>>, vector<112x16xf32>,
    %42 = vector.extract_strided_slice %33 {offsets = [0, 32], sizes = [112, 16], strides = [1, 1]} : vector<112x448xf32> to vector<112x16xf32>
    %43 = vector.extract_strided_slice %33 {offsets = [0, 48], sizes = [112, 16], strides = [1, 1]} : vector<112x448xf32> to vector<112x16xf32>
    %44 = arith.maximumf %42, %43 : vector<112x16xf32>
    %c8_32 = arith.constant 8 : index
    %c16_33 = arith.constant 16 : index
    %45 = vector.load %arg14[%c8_32, %c16_33] : memref<128x224xf32, #tpu.memory_space<vmem>>, vector<112x16xf32>
    tpu.vector_store %arg14[%c8_32, %c16_33], %44 {strides = array<i32>} : memref<128x224xf32, #tpu.memory_space<vmem>>, vector<112x16xf32>,
    %46 = vector.extract_strided_slice %33 {offsets = [0, 64], sizes = [112, 16], strides = [1, 1]} : vector<112x448xf32> to vector<112x16xf32>
    %47 = vector.extract_strided_slice %33 {offsets = [0, 80], sizes = [112, 16], strides = [1, 1]} : vector<112x448xf32> to vector<112x16xf32>
    %48 = arith.maximumf %46, %47 : vector<112x16xf32>
    %c8_34 = arith.constant 8 : index
    %c32 = arith.constant 32 : index
    %49 = vector.load %arg14[%c8_34, %c32] : memref<128x224xf32, #tpu.memory_space<vmem>>, vector<112x16xf32>
    tpu.vector_store %arg14[%c8_34, %c32], %48 {strides = array<i32>} : memref<128x224xf32, #tpu.memory_space<vmem>>, vector<112x16xf32>,
    %50 = vector.extract_strided_slice %33 {offsets = [0, 96], sizes = [112, 16], strides = [1, 1]} : vector<112x448xf32> to vector<112x16xf32>
    %51 = vector.extract_strided_slice %33 {offsets = [0, 112], sizes = [112, 16], strides = [1, 1]} : vector<112x448xf32> to vector<112x16xf32>
    %52 = arith.maximumf %50, %51 : vector<112x16xf32>
    %c8_35 = arith.constant 8 : index
    %c48 = arith.constant 48 : index
    %53 = vector.load %arg14[%c8_35, %c48] : memref<128x224xf32, #tpu.memory_space<vmem>>, vector<112x16xf32>
    tpu.vector_store %arg14[%c8_35, %c48], %52 {strides = array<i32>} : memref<128x224xf32, #tpu.memory_space<vmem>>, vector<112x16xf32>,
    %54 = vector.extract_strided_slice %33 {offsets = [0, 128], sizes = [112, 16], strides = [1, 1]} : vector<112x448xf32> to vector<112x16xf32>
    %55 = vector.extract_strided_slice %33 {offsets = [0, 144], sizes = [112, 16], strides = [1, 1]} : vector<112x448xf32> to vector<112x16xf32>
    %56 = arith.maximumf %54, %55 : vector<112x16xf32>
    %c8_36 = arith.constant 8 : index
    %c64 = arith.constant 64 : index
    %57 = vector.load %arg14[%c8_36, %c64] : memref<128x224xf32, #tpu.memory_space<vmem>>, vector<112x16xf32>
    tpu.vector_store %arg14[%c8_36, %c64], %56 {strides = array<i32>} : memref<128x224xf32, #tpu.memory_space<vmem>>, vector<112x16xf32>,
    %58 = vector.extract_strided_slice %33 {offsets = [0, 160], sizes = [112, 16], strides = [1, 1]} : vector<112x448xf32> to vector<112x16xf32>
    %59 = vector.extract_strided_slice %33 {offsets = [0, 176], sizes = [112, 16], strides = [1, 1]} : vector<112x448xf32> to vector<112x16xf32>
    %60 = arith.maximumf %58, %59 : vector<112x16xf32>
    %c8_37 = arith.constant 8 : index
    %c80 = arith.constant 80 : index
    %61 = vector.load %arg14[%c8_37, %c80] : memref<128x224xf32, #tpu.memory_space<vmem>>, vector<112x16xf32>
    tpu.vector_store %arg14[%c8_37, %c80], %60 {strides = array<i32>} : memref<128x224xf32, #tpu.memory_space<vmem>>, vector<112x16xf32>,
    %62 = vector.extract_strided_slice %33 {offsets = [0, 192], sizes = [112, 16], strides = [1, 1]} : vector<112x448xf32> to vector<112x16xf32>
    %63 = vector.extract_strided_slice %33 {offsets = [0, 208], sizes = [112, 16], strides = [1, 1]} : vector<112x448xf32> to vector<112x16xf32>
    %64 = arith.maximumf %62, %63 : vector<112x16xf32>
    %c8_38 = arith.constant 8 : index
    %c96 = arith.constant 96 : index
    %65 = vector.load %arg14[%c8_38, %c96] : memref<128x224xf32, #tpu.memory_space<vmem>>, vector<112x16xf32>
    tpu.vector_store %arg14[%c8_38, %c96], %64 {strides = array<i32>} : memref<128x224xf32, #tpu.memory_space<vmem>>, vector<112x16xf32>,
    %66 = vector.extract_strided_slice %33 {offsets = [0, 224], sizes = [112, 16], strides = [1, 1]} : vector<112x448xf32> to vector<112x16xf32>
    %67 = vector.extract_strided_slice %33 {offsets = [0, 240], sizes = [112, 16], strides = [1, 1]} : vector<112x448xf32> to vector<112x16xf32>
    %68 = arith.maximumf %66, %67 : vector<112x16xf32>
    %c8_39 = arith.constant 8 : index
    %c112 = arith.constant 112 : index
    %69 = vector.load %arg14[%c8_39, %c112] : memref<128x224xf32, #tpu.memory_space<vmem>>, vector<112x16xf32>
    tpu.vector_store %arg14[%c8_39, %c112], %68 {strides = array<i32>} : memref<128x224xf32, #tpu.memory_space<vmem>>, vector<112x16xf32>,
    %70 = vector.extract_strided_slice %33 {offsets = [0, 256], sizes = [112, 16], strides = [1, 1]} : vector<112x448xf32> to vector<112x16xf32>
    %71 = vector.extract_strided_slice %33 {offsets = [0, 272], sizes = [112, 16], strides = [1, 1]} : vector<112x448xf32> to vector<112x16xf32>
    %72 = arith.maximumf %70, %71 : vector<112x16xf32>
    %c8_40 = arith.constant 8 : index
    %c128 = arith.constant 128 : index
    %73 = vector.load %arg14[%c8_40, %c128] : memref<128x224xf32, #tpu.memory_space<vmem>>, vector<112x16xf32>
    tpu.vector_store %arg14[%c8_40, %c128], %72 {strides = array<i32>} : memref<128x224xf32, #tpu.memory_space<vmem>>, vector<112x16xf32>,
    %74 = vector.extract_strided_slice %33 {offsets = [0, 288], sizes = [112, 16], strides = [1, 1]} : vector<112x448xf32> to vector<112x16xf32>
    %75 = vector.extract_strided_slice %33 {offsets = [0, 304], sizes = [112, 16], strides = [1, 1]} : vector<112x448xf32> to vector<112x16xf32>
    %76 = arith.maximumf %74, %75 : vector<112x16xf32>
    %c8_41 = arith.constant 8 : index
    %c144 = arith.constant 144 : index
    %77 = vector.load %arg14[%c8_41, %c144] : memref<128x224xf32, #tpu.memory_space<vmem>>, vector<112x16xf32>
    tpu.vector_store %arg14[%c8_41, %c144], %76 {strides = array<i32>} : memref<128x224xf32, #tpu.memory_space<vmem>>, vector<112x16xf32>,
    %78 = vector.extract_strided_slice %33 {offsets = [0, 320], sizes = [112, 16], strides = [1, 1]} : vector<112x448xf32> to vector<112x16xf32>
    %79 = vector.extract_strided_slice %33 {offsets = [0, 336], sizes = [112, 16], strides = [1, 1]} : vector<112x448xf32> to vector<112x16xf32>
    %80 = arith.maximumf %78, %79 : vector<112x16xf32>
    %c8_42 = arith.constant 8 : index
    %c160 = arith.constant 160 : index
    %81 = vector.load %arg14[%c8_42, %c160] : memref<128x224xf32, #tpu.memory_space<vmem>>, vector<112x16xf32>
    tpu.vector_store %arg14[%c8_42, %c160], %80 {strides = array<i32>} : memref<128x224xf32, #tpu.memory_space<vmem>>, vector<112x16xf32>,
    %82 = vector.extract_strided_slice %33 {offsets = [0, 352], sizes = [112, 16], strides = [1, 1]} : vector<112x448xf32> to vector<112x16xf32>
    %83 = vector.extract_strided_slice %33 {offsets = [0, 368], sizes = [112, 16], strides = [1, 1]} : vector<112x448xf32> to vector<112x16xf32>
    %84 = arith.maximumf %82, %83 : vector<112x16xf32>
    %c8_43 = arith.constant 8 : index
    %c176 = arith.constant 176 : index
    %85 = vector.load %arg14[%c8_43, %c176] : memref<128x224xf32, #tpu.memory_space<vmem>>, vector<112x16xf32>
    tpu.vector_store %arg14[%c8_43, %c176], %84 {strides = array<i32>} : memref<128x224xf32, #tpu.memory_space<vmem>>, vector<112x16xf32>,
    %86 = vector.extract_strided_slice %33 {offsets = [0, 384], sizes = [112, 16], strides = [1, 1]} : vector<112x448xf32> to vector<112x16xf32>
    %87 = vector.extract_strided_slice %33 {offsets = [0, 400], sizes = [112, 16], strides = [1, 1]} : vector<112x448xf32> to vector<112x16xf32>
    %88 = arith.maximumf %86, %87 : vector<112x16xf32>
    %c8_44 = arith.constant 8 : index
    %c192 = arith.constant 192 : index
    %89 = vector.load %arg14[%c8_44, %c192] : memref<128x224xf32, #tpu.memory_space<vmem>>, vector<112x16xf32>
    tpu.vector_store %arg14[%c8_44, %c192], %88 {strides = array<i32>} : memref<128x224xf32, #tpu.memory_space<vmem>>, vector<112x16xf32>,
    %90 = vector.extract_strided_slice %33 {offsets = [0, 416], sizes = [112, 16], strides = [1, 1]} : vector<112x448xf32> to vector<112x16xf32>
    %91 = vector.extract_strided_slice %33 {offsets = [0, 432], sizes = [112, 16], strides = [1, 1]} : vector<112x448xf32> to vector<112x16xf32>
    %92 = arith.maximumf %90, %91 : vector<112x16xf32>
    %c8_45 = arith.constant 8 : index
    %c208 = arith.constant 208 : index
    %93 = vector.load %arg14[%c8_45, %c208] : memref<128x224xf32, #tpu.memory_space<vmem>>, vector<112x16xf32>
    tpu.vector_store %arg14[%c8_45, %c208], %92 {strides = array<i32>} : memref<128x224xf32, #tpu.memory_space<vmem>>, vector<112x16xf32>,
    %c0_46 = arith.constant 0 : index
    %c0_47 = arith.constant 0 : index
    %94 = vector.load %arg14[%c0_46, %c0_47] : memref<128x224xf32, #tpu.memory_space<vmem>>, vector<112x224xf32>
    %95 = arith.truncf %94 : vector<112x224xf32> to vector<112x224xbf16>
    %c0_48 = arith.constant 0 : index
    %c0_49 = arith.constant 0 : index
    %c0_50 = arith.constant 0 : index
    %96 = vector.load %arg4[%c0_48, %c0_49, %c0_50] : memref<3x224x448xbf16, #tpu.memory_space<vmem>>, vector<1x224x448xbf16>
    %97 = vector.shape_cast %96 : vector<1x224x448xbf16> to vector<224x448xbf16>
    %cst_51 = arith.constant dense<0.000000e+00> : vector<112x448xf32>
    %98 = tpu.matmul %95, %97, %cst_51 {dimension_numbers = #tpu.dot_dimension_numbers<[1], [0], [0], [1], [0, 0, 1, 1], [], []>} : vector<112x224xbf16>, vector<224x448xbf16>, vector<112x448xf32> -> vector<112x448xf32>
    %c8_52 = arith.constant 8 : index
    %c0_53 = arith.constant 0 : index
    %99 = vector.load %arg14[%c8_52, %c0_53] : memref<128x224xf32, #tpu.memory_space<vmem>>, vector<112x224xf32>
    %100 = arith.truncf %99 : vector<112x224xf32> to vector<112x224xbf16>
    %c1_54 = arith.constant 1 : index
    %c0_55 = arith.constant 0 : index
    %c0_56 = arith.constant 0 : index
    %101 = vector.load %arg4[%c1_54, %c0_55, %c0_56] : memref<3x224x448xbf16, #tpu.memory_space<vmem>>, vector<1x224x448xbf16>
    %102 = vector.shape_cast %101 : vector<1x224x448xbf16> to vector<224x448xbf16>
    %cst_57 = arith.constant dense<0.000000e+00> : vector<112x448xf32>
    %103 = tpu.matmul %100, %102, %cst_57 {dimension_numbers = #tpu.dot_dimension_numbers<[1], [0], [0], [1], [0, 0, 1, 1], [], []>} : vector<112x224xbf16>, vector<224x448xbf16>, vector<112x448xf32> -> vector<112x448xf32>
    %104 = arith.addf %98, %103 : vector<112x448xf32>
    %c16_58 = arith.constant 16 : index
    %c0_59 = arith.constant 0 : index
    %105 = vector.load %arg14[%c16_58, %c0_59] : memref<128x224xf32, #tpu.memory_space<vmem>>, vector<112x224xf32>
    %106 = arith.truncf %105 : vector<112x224xf32> to vector<112x224xbf16>
    %c2_60 = arith.constant 2 : index
    %c0_61 = arith.constant 0 : index
    %c0_62 = arith.constant 0 : index
    %107 = vector.load %arg4[%c2_60, %c0_61, %c0_62] : memref<3x224x448xbf16, #tpu.memory_space<vmem>>, vector<1x224x448xbf16>
    %108 = vector.shape_cast %107 : vector<1x224x448xbf16> to vector<224x448xbf16>
    %cst_63 = arith.constant dense<0.000000e+00> : vector<112x448xf32>
    %109 = tpu.matmul %106, %108, %cst_63 {dimension_numbers = #tpu.dot_dimension_numbers<[1], [0], [0], [1], [0, 0, 1, 1], [], []>} : vector<112x224xbf16>, vector<224x448xbf16>, vector<112x448xf32> -> vector<112x448xf32>
    %110 = arith.addf %104, %109 : vector<112x448xf32>
    %c0_64 = arith.constant 0 : index
    %c0_65 = arith.constant 0 : index
    %111 = vector.load %arg5[%c0_64, %c0_65] : memref<1x448xf32, #tpu.memory_space<vmem>>, vector<1x448xf32>
    %112 = vector.broadcast %111 : vector<1x448xf32> to vector<112x448xf32>
    %113 = arith.addf %110, %112 : vector<112x448xf32>
    %cst_66 = arith.constant 0.000000e+00 : f32
    %114 = vector.broadcast %cst_66 : f32 to vector<112x448xf32>
    %115 = arith.maximumf %113, %114 : vector<112x448xf32>
    %116 = vector.shape_cast %115 : vector<112x448xf32> to vector<7x16x448xf32>
    %117 = vector.extract_strided_slice %116 {offsets = [0, 0, 0], sizes = [7, 8, 448], strides = [1, 1, 1]} : vector<7x16x448xf32> to vector<7x8x448xf32>
    %118 = vector.extract_strided_slice %116 {offsets = [0, 8, 0], sizes = [7, 8, 448], strides = [1, 1, 1]} : vector<7x16x448xf32> to vector<7x8x448xf32>
    %119 = arith.maximumf %117, %118 : vector<7x8x448xf32>
    %120 = vector.shape_cast %119 : vector<7x8x448xf32> to vector<56x448xf32>
    %cst_67 = arith.constant 0.000000e+00 : f32
    %121 = vector.broadcast %cst_67 : f32 to vector<8x224xf32>
    %c0_68 = arith.constant 0 : index
    %c0_69 = arith.constant 0 : index
    %122 = vector.load %arg15[%c0_68, %c0_69] : memref<72x224xf32, #tpu.memory_space<vmem>>, vector<8x224xf32>
    tpu.vector_store %arg15[%c0_68, %c0_69], %121 {strides = array<i32>} : memref<72x224xf32, #tpu.memory_space<vmem>>, vector<8x224xf32>,
    %cst_70 = arith.constant 0.000000e+00 : f32
    %123 = vector.broadcast %cst_70 : f32 to vector<8x224xf32>
    %c64_71 = arith.constant 64 : index
    %c0_72 = arith.constant 0 : index
    %124 = vector.load %arg15[%c64_71, %c0_72] : memref<72x224xf32, #tpu.memory_space<vmem>>, vector<8x224xf32>
    tpu.vector_store %arg15[%c64_71, %c0_72], %123 {strides = array<i32>} : memref<72x224xf32, #tpu.memory_space<vmem>>, vector<8x224xf32>,
    %125 = vector.extract_strided_slice %120 {offsets = [0, 0], sizes = [56, 32], strides = [1, 1]} : vector<56x448xf32> to vector<56x32xf32>
    %126 = vector.extract_strided_slice %120 {offsets = [0, 32], sizes = [56, 32], strides = [1, 1]} : vector<56x448xf32> to vector<56x32xf32>
    %127 = arith.maximumf %125, %126 : vector<56x32xf32>
    %c8_73 = arith.constant 8 : index
    %c0_74 = arith.constant 0 : index
    %128 = vector.load %arg15[%c8_73, %c0_74] : memref<72x224xf32, #tpu.memory_space<vmem>>, vector<56x32xf32>
    tpu.vector_store %arg15[%c8_73, %c0_74], %127 {strides = array<i32>} : memref<72x224xf32, #tpu.memory_space<vmem>>, vector<56x32xf32>,
    %129 = vector.extract_strided_slice %120 {offsets = [0, 64], sizes = [56, 32], strides = [1, 1]} : vector<56x448xf32> to vector<56x32xf32>
    %130 = vector.extract_strided_slice %120 {offsets = [0, 96], sizes = [56, 32], strides = [1, 1]} : vector<56x448xf32> to vector<56x32xf32>
    %131 = arith.maximumf %129, %130 : vector<56x32xf32>
    %c8_75 = arith.constant 8 : index
    %c32_76 = arith.constant 32 : index
    %132 = vector.load %arg15[%c8_75, %c32_76] : memref<72x224xf32, #tpu.memory_space<vmem>>, vector<56x32xf32>
    tpu.vector_store %arg15[%c8_75, %c32_76], %131 {strides = array<i32>} : memref<72x224xf32, #tpu.memory_space<vmem>>, vector<56x32xf32>,
    %133 = vector.extract_strided_slice %120 {offsets = [0, 128], sizes = [56, 32], strides = [1, 1]} : vector<56x448xf32> to vector<56x32xf32>
    %134 = vector.extract_strided_slice %120 {offsets = [0, 160], sizes = [56, 32], strides = [1, 1]} : vector<56x448xf32> to vector<56x32xf32>
    %135 = arith.maximumf %133, %134 : vector<56x32xf32>
    %c8_77 = arith.constant 8 : index
    %c64_78 = arith.constant 64 : index
    %136 = vector.load %arg15[%c8_77, %c64_78] : memref<72x224xf32, #tpu.memory_space<vmem>>, vector<56x32xf32>
    tpu.vector_store %arg15[%c8_77, %c64_78], %135 {strides = array<i32>} : memref<72x224xf32, #tpu.memory_space<vmem>>, vector<56x32xf32>,
    %137 = vector.extract_strided_slice %120 {offsets = [0, 192], sizes = [56, 32], strides = [1, 1]} : vector<56x448xf32> to vector<56x32xf32>
    %138 = vector.extract_strided_slice %120 {offsets = [0, 224], sizes = [56, 32], strides = [1, 1]} : vector<56x448xf32> to vector<56x32xf32>
    %139 = arith.maximumf %137, %138 : vector<56x32xf32>
    %c8_79 = arith.constant 8 : index
    %c96_80 = arith.constant 96 : index
    %140 = vector.load %arg15[%c8_79, %c96_80] : memref<72x224xf32, #tpu.memory_space<vmem>>, vector<56x32xf32>
    tpu.vector_store %arg15[%c8_79, %c96_80], %139 {strides = array<i32>} : memref<72x224xf32, #tpu.memory_space<vmem>>, vector<56x32xf32>,
    %141 = vector.extract_strided_slice %120 {offsets = [0, 256], sizes = [56, 32], strides = [1, 1]} : vector<56x448xf32> to vector<56x32xf32>
    %142 = vector.extract_strided_slice %120 {offsets = [0, 288], sizes = [56, 32], strides = [1, 1]} : vector<56x448xf32> to vector<56x32xf32>
    %143 = arith.maximumf %141, %142 : vector<56x32xf32>
    %c8_81 = arith.constant 8 : index
    %c128_82 = arith.constant 128 : index
    %144 = vector.load %arg15[%c8_81, %c128_82] : memref<72x224xf32, #tpu.memory_space<vmem>>, vector<56x32xf32>
    tpu.vector_store %arg15[%c8_81, %c128_82], %143 {strides = array<i32>} : memref<72x224xf32, #tpu.memory_space<vmem>>, vector<56x32xf32>,
    %145 = vector.extract_strided_slice %120 {offsets = [0, 320], sizes = [56, 32], strides = [1, 1]} : vector<56x448xf32> to vector<56x32xf32>
    %146 = vector.extract_strided_slice %120 {offsets = [0, 352], sizes = [56, 32], strides = [1, 1]} : vector<56x448xf32> to vector<56x32xf32>
    %147 = arith.maximumf %145, %146 : vector<56x32xf32>
    %c8_83 = arith.constant 8 : index
    %c160_84 = arith.constant 160 : index
    %148 = vector.load %arg15[%c8_83, %c160_84] : memref<72x224xf32, #tpu.memory_space<vmem>>, vector<56x32xf32>
    tpu.vector_store %arg15[%c8_83, %c160_84], %147 {strides = array<i32>} : memref<72x224xf32, #tpu.memory_space<vmem>>, vector<56x32xf32>,
    %149 = vector.extract_strided_slice %120 {offsets = [0, 384], sizes = [56, 32], strides = [1, 1]} : vector<56x448xf32> to vector<56x32xf32>
    %150 = vector.extract_strided_slice %120 {offsets = [0, 416], sizes = [56, 32], strides = [1, 1]} : vector<56x448xf32> to vector<56x32xf32>
    %151 = arith.maximumf %149, %150 : vector<56x32xf32>
    %c8_85 = arith.constant 8 : index
    %c192_86 = arith.constant 192 : index
    %152 = vector.load %arg15[%c8_85, %c192_86] : memref<72x224xf32, #tpu.memory_space<vmem>>, vector<56x32xf32>
    tpu.vector_store %arg15[%c8_85, %c192_86], %151 {strides = array<i32>} : memref<72x224xf32, #tpu.memory_space<vmem>>, vector<56x32xf32>,
    %c0_87 = arith.constant 0 : index
    %c0_88 = arith.constant 0 : index
    %153 = vector.load %arg15[%c0_87, %c0_88] : memref<72x224xf32, #tpu.memory_space<vmem>>, vector<56x224xf32>
    %154 = arith.truncf %153 : vector<56x224xf32> to vector<56x224xbf16>
    %c0_89 = arith.constant 0 : index
    %c0_90 = arith.constant 0 : index
    %c0_91 = arith.constant 0 : index
    %155 = vector.load %arg6[%c0_89, %c0_90, %c0_91] : memref<3x224x448xbf16, #tpu.memory_space<vmem>>, vector<1x224x448xbf16>
    %156 = vector.shape_cast %155 : vector<1x224x448xbf16> to vector<224x448xbf16>
    %cst_92 = arith.constant dense<0.000000e+00> : vector<56x448xf32>
    %157 = tpu.matmul %154, %156, %cst_92 {dimension_numbers = #tpu.dot_dimension_numbers<[1], [0], [0], [1], [0, 0, 1, 1], [], []>} : vector<56x224xbf16>, vector<224x448xbf16>, vector<56x448xf32> -> vector<56x448xf32>
    %c8_93 = arith.constant 8 : index
    %c0_94 = arith.constant 0 : index
    %158 = vector.load %arg15[%c8_93, %c0_94] : memref<72x224xf32, #tpu.memory_space<vmem>>, vector<56x224xf32>
    %159 = arith.truncf %158 : vector<56x224xf32> to vector<56x224xbf16>
    %c1_95 = arith.constant 1 : index
    %c0_96 = arith.constant 0 : index
    %c0_97 = arith.constant 0 : index
    %160 = vector.load %arg6[%c1_95, %c0_96, %c0_97] : memref<3x224x448xbf16, #tpu.memory_space<vmem>>, vector<1x224x448xbf16>
    %161 = vector.shape_cast %160 : vector<1x224x448xbf16> to vector<224x448xbf16>
    %cst_98 = arith.constant dense<0.000000e+00> : vector<56x448xf32>
    %162 = tpu.matmul %159, %161, %cst_98 {dimension_numbers = #tpu.dot_dimension_numbers<[1], [0], [0], [1], [0, 0, 1, 1], [], []>} : vector<56x224xbf16>, vector<224x448xbf16>, vector<56x448xf32> -> vector<56x448xf32>
    %163 = arith.addf %157, %162 : vector<56x448xf32>
    %c16_99 = arith.constant 16 : index
    %c0_100 = arith.constant 0 : index
    %164 = vector.load %arg15[%c16_99, %c0_100] : memref<72x224xf32, #tpu.memory_space<vmem>>, vector<56x224xf32>
    %165 = arith.truncf %164 : vector<56x224xf32> to vector<56x224xbf16>
    %c2_101 = arith.constant 2 : index
    %c0_102 = arith.constant 0 : index
    %c0_103 = arith.constant 0 : index
    %166 = vector.load %arg6[%c2_101, %c0_102, %c0_103] : memref<3x224x448xbf16, #tpu.memory_space<vmem>>, vector<1x224x448xbf16>
    %167 = vector.shape_cast %166 : vector<1x224x448xbf16> to vector<224x448xbf16>
    %cst_104 = arith.constant dense<0.000000e+00> : vector<56x448xf32>
    %168 = tpu.matmul %165, %167, %cst_104 {dimension_numbers = #tpu.dot_dimension_numbers<[1], [0], [0], [1], [0, 0, 1, 1], [], []>} : vector<56x224xbf16>, vector<224x448xbf16>, vector<56x448xf32> -> vector<56x448xf32>
    %169 = arith.addf %163, %168 : vector<56x448xf32>
    %c0_105 = arith.constant 0 : index
    %c0_106 = arith.constant 0 : index
    %170 = vector.load %arg7[%c0_105, %c0_106] : memref<1x448xf32, #tpu.memory_space<vmem>>, vector<1x448xf32>
    %171 = vector.broadcast %170 : vector<1x448xf32> to vector<56x448xf32>
    %172 = arith.addf %169, %171 : vector<56x448xf32>
    %cst_107 = arith.constant 0.000000e+00 : f32
    %173 = vector.broadcast %cst_107 : f32 to vector<56x448xf32>
    %174 = arith.maximumf %172, %173 : vector<56x448xf32>
    %175 = arith.truncf %174 : vector<56x448xf32> to vector<56x448xbf16>
    %176 = vector.extract_strided_slice %175 {offsets = [0, 0], sizes = [8, 448], strides = [1, 1]} : vector<56x448xbf16> to vector<8x448xbf16>
    %c0_108 = arith.constant 0 : index
    %c0_109 = arith.constant 0 : index
    %c0_110 = arith.constant 0 : index
    %177 = vector.load %arg8[%c0_108, %c0_109, %c0_110] : memref<7x448x128xbf16, #tpu.memory_space<vmem>>, vector<1x448x128xbf16>
    %178 = vector.shape_cast %177 : vector<1x448x128xbf16> to vector<448x128xbf16>
    %cst_111 = arith.constant dense<0.000000e+00> : vector<8x128xf32>
    %179 = tpu.matmul %176, %178, %cst_111 {dimension_numbers = #tpu.dot_dimension_numbers<[1], [0], [0], [1], [0, 0, 1, 1], [], []>} : vector<8x448xbf16>, vector<448x128xbf16>, vector<8x128xf32> -> vector<8x128xf32>
    %180 = vector.extract_strided_slice %175 {offsets = [8, 0], sizes = [8, 448], strides = [1, 1]} : vector<56x448xbf16> to vector<8x448xbf16>
    %c1_112 = arith.constant 1 : index
    %c0_113 = arith.constant 0 : index
    %c0_114 = arith.constant 0 : index
    %181 = vector.load %arg8[%c1_112, %c0_113, %c0_114] : memref<7x448x128xbf16, #tpu.memory_space<vmem>>, vector<1x448x128xbf16>
    %182 = vector.shape_cast %181 : vector<1x448x128xbf16> to vector<448x128xbf16>
    %cst_115 = arith.constant dense<0.000000e+00> : vector<8x128xf32>
    %183 = tpu.matmul %180, %182, %cst_115 {dimension_numbers = #tpu.dot_dimension_numbers<[1], [0], [0], [1], [0, 0, 1, 1], [], []>} : vector<8x448xbf16>, vector<448x128xbf16>, vector<8x128xf32> -> vector<8x128xf32>
    %184 = arith.addf %179, %183 : vector<8x128xf32>
    %185 = vector.extract_strided_slice %175 {offsets = [16, 0], sizes = [8, 448], strides = [1, 1]} : vector<56x448xbf16> to vector<8x448xbf16>
    %c2_116 = arith.constant 2 : index
    %c0_117 = arith.constant 0 : index
    %c0_118 = arith.constant 0 : index
    %186 = vector.load %arg8[%c2_116, %c0_117, %c0_118] : memref<7x448x128xbf16, #tpu.memory_space<vmem>>, vector<1x448x128xbf16>
    %187 = vector.shape_cast %186 : vector<1x448x128xbf16> to vector<448x128xbf16>
    %cst_119 = arith.constant dense<0.000000e+00> : vector<8x128xf32>
    %188 = tpu.matmul %185, %187, %cst_119 {dimension_numbers = #tpu.dot_dimension_numbers<[1], [0], [0], [1], [0, 0, 1, 1], [], []>} : vector<8x448xbf16>, vector<448x128xbf16>, vector<8x128xf32> -> vector<8x128xf32>
    %189 = arith.addf %184, %188 : vector<8x128xf32>
    %190 = vector.extract_strided_slice %175 {offsets = [24, 0], sizes = [8, 448], strides = [1, 1]} : vector<56x448xbf16> to vector<8x448xbf16>
    %c3 = arith.constant 3 : index
    %c0_120 = arith.constant 0 : index
    %c0_121 = arith.constant 0 : index
    %191 = vector.load %arg8[%c3, %c0_120, %c0_121] : memref<7x448x128xbf16, #tpu.memory_space<vmem>>, vector<1x448x128xbf16>
    %192 = vector.shape_cast %191 : vector<1x448x128xbf16> to vector<448x128xbf16>
    %cst_122 = arith.constant dense<0.000000e+00> : vector<8x128xf32>
    %193 = tpu.matmul %190, %192, %cst_122 {dimension_numbers = #tpu.dot_dimension_numbers<[1], [0], [0], [1], [0, 0, 1, 1], [], []>} : vector<8x448xbf16>, vector<448x128xbf16>, vector<8x128xf32> -> vector<8x128xf32>
    %194 = arith.addf %189, %193 : vector<8x128xf32>
    %195 = vector.extract_strided_slice %175 {offsets = [32, 0], sizes = [8, 448], strides = [1, 1]} : vector<56x448xbf16> to vector<8x448xbf16>
    %c4 = arith.constant 4 : index
    %c0_123 = arith.constant 0 : index
    %c0_124 = arith.constant 0 : index
    %196 = vector.load %arg8[%c4, %c0_123, %c0_124] : memref<7x448x128xbf16, #tpu.memory_space<vmem>>, vector<1x448x128xbf16>
    %197 = vector.shape_cast %196 : vector<1x448x128xbf16> to vector<448x128xbf16>
    %cst_125 = arith.constant dense<0.000000e+00> : vector<8x128xf32>
    %198 = tpu.matmul %195, %197, %cst_125 {dimension_numbers = #tpu.dot_dimension_numbers<[1], [0], [0], [1], [0, 0, 1, 1], [], []>} : vector<8x448xbf16>, vector<448x128xbf16>, vector<8x128xf32> -> vector<8x128xf32>
    %199 = arith.addf %194, %198 : vector<8x128xf32>
    %200 = vector.extract_strided_slice %175 {offsets = [40, 0], sizes = [8, 448], strides = [1, 1]} : vector<56x448xbf16> to vector<8x448xbf16>
    %c5 = arith.constant 5 : index
    %c0_126 = arith.constant 0 : index
    %c0_127 = arith.constant 0 : index
    %201 = vector.load %arg8[%c5, %c0_126, %c0_127] : memref<7x448x128xbf16, #tpu.memory_space<vmem>>, vector<1x448x128xbf16>
    %202 = vector.shape_cast %201 : vector<1x448x128xbf16> to vector<448x128xbf16>
    %cst_128 = arith.constant dense<0.000000e+00> : vector<8x128xf32>
    %203 = tpu.matmul %200, %202, %cst_128 {dimension_numbers = #tpu.dot_dimension_numbers<[1], [0], [0], [1], [0, 0, 1, 1], [], []>} : vector<8x448xbf16>, vector<448x128xbf16>, vector<8x128xf32> -> vector<8x128xf32>
    %204 = arith.addf %199, %203 : vector<8x128xf32>
    %205 = vector.extract_strided_slice %175 {offsets = [48, 0], sizes = [8, 448], strides = [1, 1]} : vector<56x448xbf16> to vector<8x448xbf16>
    %c6 = arith.constant 6 : index
    %c0_129 = arith.constant 0 : index
    %c0_130 = arith.constant 0 : index
    %206 = vector.load %arg8[%c6, %c0_129, %c0_130] : memref<7x448x128xbf16, #tpu.memory_space<vmem>>, vector<1x448x128xbf16>
    %207 = vector.shape_cast %206 : vector<1x448x128xbf16> to vector<448x128xbf16>
    %cst_131 = arith.constant dense<0.000000e+00> : vector<8x128xf32>
    %208 = tpu.matmul %205, %207, %cst_131 {dimension_numbers = #tpu.dot_dimension_numbers<[1], [0], [0], [1], [0, 0, 1, 1], [], []>} : vector<8x448xbf16>, vector<448x128xbf16>, vector<8x128xf32> -> vector<8x128xf32>
    %209 = arith.addf %204, %208 : vector<8x128xf32>
    %c0_132 = arith.constant 0 : index
    %c0_133 = arith.constant 0 : index
    %210 = vector.load %arg9[%c0_132, %c0_133] : memref<1x128xf32, #tpu.memory_space<vmem>>, vector<1x128xf32>
    %211 = vector.broadcast %210 : vector<1x128xf32> to vector<8x128xf32>
    %212 = arith.addf %209, %211 : vector<8x128xf32>
    %cst_134 = arith.constant 0.000000e+00 : f32
    %213 = vector.broadcast %cst_134 : f32 to vector<8x128xf32>
    %214 = arith.maximumf %212, %213 : vector<8x128xf32>
    %215 = arith.truncf %214 : vector<8x128xf32> to vector<8x128xbf16>
    %c0_135 = arith.constant 0 : index
    %c0_136 = arith.constant 0 : index
    %216 = vector.load %arg10[%c0_135, %c0_136] : memref<128x128xbf16, #tpu.memory_space<vmem>>, vector<128x128xbf16>
    %cst_137 = arith.constant dense<0.000000e+00> : vector<8x128xf32>
    %217 = tpu.matmul %215, %216, %cst_137 {dimension_numbers = #tpu.dot_dimension_numbers<[1], [0], [0], [1], [0, 0, 1, 1], [], []>} : vector<8x128xbf16>, vector<128x128xbf16>, vector<8x128xf32> -> vector<8x128xf32>
    %c0_138 = arith.constant 0 : index
    %c0_139 = arith.constant 0 : index
    %218 = vector.load %arg11[%c0_138, %c0_139] : memref<1x128xf32, #tpu.memory_space<vmem>>, vector<1x128xf32>
    %219 = vector.broadcast %218 : vector<1x128xf32> to vector<8x128xf32>
    %220 = arith.addf %217, %219 : vector<8x128xf32>
    %c0_140 = arith.constant 0 : index
    %c0_141 = arith.constant 0 : index
    %221 = vector.load %arg12[%c0_140, %c0_141] : memref<8x128xf32, #tpu.memory_space<vmem>>, vector<8x128xf32>
    tpu.vector_store %arg12[%c0_140, %c0_141], %220 {strides = array<i32>} : memref<8x128xf32, #tpu.memory_space<vmem>>, vector<8x128xf32>,
    return
  }
  func.func @transform_0(%arg0: i32) -> (i32, i32, i32) {
    %c0_i32 = arith.constant 0 : i32
    %c0_i32_0 = arith.constant 0 : i32
    %c0_i32_1 = arith.constant 0 : i32
    return %c0_i32, %arg0, %c0_i32_0 : i32, i32, i32
  }
  func.func @transform_1(%arg0: i32) -> (i32, i32, i32) {
    %c0_i32 = arith.constant 0 : i32
    %c0_i32_0 = arith.constant 0 : i32
    %c0_i32_1 = arith.constant 0 : i32
    %c0_i32_2 = arith.constant 0 : i32
    return %c0_i32, %c0_i32_0, %c0_i32_1 : i32, i32, i32
  }
  func.func @transform_2(%arg0: i32) -> (i32, i32) {
    %c0_i32 = arith.constant 0 : i32
    %c0_i32_0 = arith.constant 0 : i32
    %c0_i32_1 = arith.constant 0 : i32
    return %c0_i32, %c0_i32_0 : i32, i32
  }
  func.func @transform_3(%arg0: i32) -> (i32, i32, i32) {
    %c0_i32 = arith.constant 0 : i32
    %c0_i32_0 = arith.constant 0 : i32
    %c0_i32_1 = arith.constant 0 : i32
    %c0_i32_2 = arith.constant 0 : i32
    return %c0_i32, %c0_i32_0, %c0_i32_1 : i32, i32, i32
  }
  func.func @transform_4(%arg0: i32) -> (i32, i32) {
    %c0_i32 = arith.constant 0 : i32
    %c0_i32_0 = arith.constant 0 : i32
    %c0_i32_1 = arith.constant 0 : i32
    return %c0_i32, %c0_i32_0 : i32, i32
  }
  func.func @transform_5(%arg0: i32) -> (i32, i32, i32) {
    %c0_i32 = arith.constant 0 : i32
    %c0_i32_0 = arith.constant 0 : i32
    %c0_i32_1 = arith.constant 0 : i32
    %c0_i32_2 = arith.constant 0 : i32
    return %c0_i32, %c0_i32_0, %c0_i32_1 : i32, i32, i32
  }
  func.func @transform_6(%arg0: i32) -> (i32, i32) {
    %c0_i32 = arith.constant 0 : i32
    %c0_i32_0 = arith.constant 0 : i32
    %c0_i32_1 = arith.constant 0 : i32
    return %c0_i32, %c0_i32_0 : i32, i32
  }
  func.func @transform_7(%arg0: i32) -> (i32, i32, i32) {
    %c0_i32 = arith.constant 0 : i32
    %c0_i32_0 = arith.constant 0 : i32
    %c0_i32_1 = arith.constant 0 : i32
    %c0_i32_2 = arith.constant 0 : i32
    return %c0_i32, %c0_i32_0, %c0_i32_1 : i32, i32, i32
  }
  func.func @transform_8(%arg0: i32) -> (i32, i32) {
    %c0_i32 = arith.constant 0 : i32
    %c0_i32_0 = arith.constant 0 : i32
    %c0_i32_1 = arith.constant 0 : i32
    return %c0_i32, %c0_i32_0 : i32, i32
  }
  func.func @transform_9(%arg0: i32) -> (i32, i32) {
    %c0_i32 = arith.constant 0 : i32
    %c0_i32_0 = arith.constant 0 : i32
    %c0_i32_1 = arith.constant 0 : i32
    return %c0_i32, %c0_i32_0 : i32, i32
  }
  func.func @transform_10(%arg0: i32) -> (i32, i32) {
    %c0_i32 = arith.constant 0 : i32
    %c0_i32_0 = arith.constant 0 : i32
    %c0_i32_1 = arith.constant 0 : i32
    return %c0_i32, %c0_i32_0 : i32, i32
  }
  func.func @transform_11(%arg0: i32) -> (i32, i32) {
    %c0_i32 = arith.constant 0 : i32
    %c0_i32_0 = arith.constant 0 : i32
    return %arg0, %c0_i32 : i32, i32
  }
}

</mosaic_0001>

<bundles_post_ra>
// kernel: circlenet_forward.1
= control target key start
LH: loop header
LB: loop body
LE: loop exit
PB: predicated region body
PF: predicated region fallthrough
CT: control target
= control target key end

     0   :  { %s14750_s0 = inlined_call_operand.vmem [shape: f32[28,16,28], index: 0, kind: input, shape index: {}]   ;;  %s14751_s1 = inlined_call_operand.vmem [shape: bf16[3,28,448], index: 1, kind: input, shape index: {}]   ;;  %s14752_s2 = inlined_call_operand.vmem [shape: f32[1,448], index: 2, kind: input, shape index: {}]   ;;  %s14753_s3 = inlined_call_operand.hbm [shape: bf16[3,224,448], index: 3, kind: input, shape index: {}]   ;;  %s14754_s4 = inlined_call_operand.vmem [shape: f32[1,448], index: 4, kind: input, shape index: {}]   ;;  %s14755_s5 = inlined_call_operand.hbm [shape: bf16[3,224,448], index: 5, kind: input, shape index: {}]   ;;  %s14756_s6 = inlined_call_operand.vmem [shape: f32[1,448], index: 6, kind: input, shape index: {}]   ;;  %s14757_s7 = inlined_call_operand.hbm [shape: bf16[7,448,128], index: 7, kind: input, shape index: {}]   ;;  %s14758_s8 = inlined_call_operand.vmem [shape: f32[1,128], index: 8, kind: input, shape index: {}]   ;;  %s14759_s9 = inlined_call_operand.vmem [shape: bf16[128,128], index: 9, kind: input, shape index: {}]   ;;  %s14760_s10 = inlined_call_operand.vmem [shape: f32[1,128], index: 10, kind: input, shape index: {}]   ;;  %s14761_s11 = inlined_call_operand.vmem [shape: f32[16,128], index: 11, kind: output, shape index: {}]  }
   0x1   :  { %14784 = sst [smem:[#allocation27_spill]] %s14758_s8 }
   0x2   :  { %14785 = sst [smem:[#allocation28_spill]] %s14760_s10 }
   0x3   :  { %14786 = sst [smem:[#allocation29_spill]] %s14761_s11 }
   0x4   :  { %16 = vsyncpa [#allocation7], 0 }
   0x5   :  { %17 = vsyncpa [#allocation9], 0  ;;  %s12267_s17 = smov 0   ;;  %s12269_s18 = smov 0  }
   0x6   :  { %s12271_s19 = smov 0  }
   0x7 LB: > { %s12283_s20 = sadd.s32 4294967295, %s12188_s19   ;;  %s12286_s21 = sadd.s32 1, %s12188_s19   ;;  %s12188_s19 = sphi %s12271_s19, %s14827_s19   ;;  %s12184_s18 = sphi %s12269_s18, %s14830_s18   ;;  %s12180_s17 = sphi %s12267_s17, %s14829_s17  }
   0x8   : > { %14787 = sst [smem:[#allocation13_spill]] %s12286_s21  ;;  %s27_s22 = ssub.s32 %s12188_s19, %s12286_s21 }
   0x9   : > { %s30_s23 = sadd.s32 1, %s12184_s18  ;;  %p28_p0 = scmp.eq.s32.totalorder %s27_s22, 0 }
   0xa   : > { %p37_p1 = scmp.ne.s32.totalorder %s12184_s18, %s12180_s17  ;;  %p38_p2 = scmp.eq.s32.totalorder %s12188_s19, 0 }
   0xb   : > { %p9923_p3 = scmp.ge.s32.totalorder %s12188_s19, 1  ;;  %p290_p5 = scmp.lt.s32.totalorder %s12188_s19, 3 }
   0xc   : > { %s12296_s24 = scalar_select %p28_p0, %s12184_s18, %s30_s23  }
   0xd   : > { %p12298_p4 = por %p38_p2, %p37_p1  ;;  %p14762_p6 = scmp.eq.s32.totalorder %s12283_s20, 0 }
   0xe   : > { %14788 = sst [smem:[#allocation14_spill]] %s12296_s24  ;;  %p12304_p7 = pnand %p9923_p3, %p290_p5 }
   0xf   : > { %s14789_s25 = scalar_select %p12298_p4, 1, 0 }
  0x10   : > { %s14790_s26 = scalar_select %p12304_p7, 1, 0 }
  0x11   : > { %p11266_p8 = pneg %p12304_p7  ;;  %s12190_s27 = smov [#allocation8]  }
  0x12   : > { %s324_s28 = sshll.u32 %s12190_s27, 4  ;;  %s12191_s30 = smov [#allocation6]   ;;  %s12310_s28 = int_to_ptr.vmem [resolvable:$true] %s324_s28 }
  0x13   : > { %p12314_p9 = pnand %p14762_p6, %p11266_p8  ;;  %s308_s12 = sshll.u32 %s12191_s30, 4  ;;  %s12318_s12 = int_to_ptr.vmem [resolvable:$true] %s308_s12 }
  0x14   : > { %s12192_s13 = smov [#allocation10]   ;;  %s12074_s22 = scalar_lea.hbm %s14755_s5, 21504 }
  0x15   : > { %s12320_s14 = sshll.u32 %s12192_s13, 4  ;;  %p12075_p10 = scmp.ne.s32.totalorder %s14755_s5, %s12074_s22  ;;  %s341_s14 = int_to_ptr.vmem [resolvable:$true] %s12320_s14 }
  0x16   : > { %p12330_p11 = pneg %p12314_p9  ;;  %p12081_p0 = scmp.lt.u32.totalorder %s12074_s22, %s14755_s5 }
  0x18   : > { %p12077_p12 = pnand %p12330_p11, %p12075_p10 }
  0x1a   : > { %p12078_p13 = pneg %p12077_p12 }
  0x1c   : > { %p12083_p1 = pnand %p12081_p0, %p12078_p13 }
  0x1e   : > { %12086 = shalt.err (!%p12083_p1)
}
  0x1f   : > { %s12087_s15 = scalar_lea.vmem %s12310_s28, 21504  ;;  %p12095_p8 = scmp.lt.s32.totalorder %s12310_s28, %s12310_s28 }
  0x20   : > { %p12088_p2 = scmp.ne.s32.totalorder %s12310_s28, %s12087_s15  ;;  %p12096_p6 = scmp.lt.s32.totalorder %s12087_s15, %s12087_s15 }
  0x22   : > { %p12090_p3 = pnand %p12088_p2, %p12330_p11  ;;  %p12097_p10 = por %p12096_p6, %p12095_p8 }
  0x24   : > { %p12091_p5 = pneg %p12090_p3 }
  0x26   : > { %p12098_p12 = pnand %p12097_p10, %p12091_p5 }
  0x28   : > { %12101 = shalt.err (!%p12098_p12)
}
  0x29   : > { %s12193_s16 = smov 256   ;;  %s12194_s22 = smov 16  }
  0x2a   : > { %11272 = dma.hbm_to_vmem [thread:$0]  (!%p12314_p9), %s14755_s5, 21504, %s12310_s28, [#allocation9], %s12193_s16, %s12193_s16, %s12194_s22  }
  0x2b   : > { %s12102_s21 = scalar_lea.hbm %s14753_s3, 21504 }
  0x2c   : > { %p12103_p6 = scmp.ne.s32.totalorder %s14753_s3, %s12102_s21  ;;  %p12109_p1 = scmp.lt.u32.totalorder %s12102_s21, %s14753_s3 }
  0x2e   : > { %p12105_p13 = pnand %p12103_p6, %p12330_p11 }
  0x30   : > { %p12106_p0 = pneg %p12105_p13 }
  0x32   : > { %p12111_p2 = pnand %p12109_p1, %p12106_p0 }
  0x34   : > { %12114 = shalt.err (!%p12111_p2)
}
  0x35   : > { %s12115_s28 = scalar_lea.vmem %s12318_s12, 21504  ;;  %p12123_p10 = scmp.lt.s32.totalorder %s12318_s12, %s12318_s12 }
  0x36   : > { %p12116_p3 = scmp.ne.s32.totalorder %s12318_s12, %s12115_s28  ;;  %p12124_p12 = scmp.lt.s32.totalorder %s12115_s28, %s12115_s28 }
  0x38   : > { %p12118_p5 = pnand %p12116_p3, %p12330_p11  ;;  %p12125_p6 = por %p12124_p12, %p12123_p10 }
  0x3a   : > { %p12119_p8 = pneg %p12118_p5 }
  0x3c   : > { %p12126_p13 = pnand %p12125_p6, %p12119_p8 }
  0x3e   : > { %12129 = shalt.err (!%p12126_p13)
}
  0x3f   : > { %11269 = dma.hbm_to_vmem [thread:$0]  (!%p12314_p9), %s14753_s3, 21504, %s12318_s12, [#allocation7], %s12193_s16, %s12193_s16, %s12194_s22  }
  0x40   : > { %s12130_s23 = scalar_lea.hbm %s14757_s7, 25088 }
  0x41   : > { %p12131_p0 = scmp.ne.s32.totalorder %s14757_s7, %s12130_s23  ;;  %p12137_p3 = scmp.lt.u32.totalorder %s12130_s23, %s14757_s7 }
  0x43   : > { %p12133_p1 = pnand %p12131_p0, %p12330_p11 }
  0x45   : > { %p12134_p2 = pneg %p12133_p1 }
  0x47   : > { %p12139_p5 = pnand %p12137_p3, %p12134_p2 }
  0x49   : > { %12142 = shalt.err (!%p12139_p5)
}
  0x4a   : > { %s12143_s28 = scalar_lea.vmem %s341_s14, 25088  ;;  %p12151_p6 = scmp.lt.s32.totalorder %s341_s14, %s341_s14 }
  0x4b   : > { %p12144_p8 = scmp.ne.s32.totalorder %s341_s14, %s12143_s28  ;;  %p12152_p13 = scmp.lt.s32.totalorder %s12143_s28, %s12143_s28 }
  0x4d   : > { %p12146_p10 = pnand %p12144_p8, %p12330_p11  ;;  %p12153_p7 = por %p12152_p13, %p12151_p6 }
  0x4f   : > { %p12147_p12 = pneg %p12146_p10 }
  0x51   : > { %p12154_p4 = pnand %p12153_p7, %p12147_p12 }
  0x53   : > { %12157 = shalt.err (!%p12154_p4)
}
  0x54   : > { %s12195_s12 = smov 64   ;;  %s12196_s16 = smov 4  }
  0x55   : > { %11275 = dma.hbm_to_vmem [thread:$0]  (!%p12314_p9), %s14757_s7, 25088, %s341_s14, [#allocation9], %s12195_s12, %s12195_s12, %s12196_s16  }
  0x56   : > { %p9927_p0 = scmp.ge.s32.totalorder %s12188_s19, 2 }
  0x57   : > { %p14793_p1 = scmp.ne.s32.totalorder (!%p9927_p0), %s14789_s25, 0 }
  0x58   : > { %359 = sbr.rel (%p9927_p0) target bundleno = 113 (0x71), region = 56 }
  0x5f   : > { %362 = sbr.rel (!%p14793_p1) target bundleno = 113 (0x71), region = 60  ;;  %s364_s24 = sand.u32 (%p14793_p1), 1, %s12184_s18  }
  0x60   : > { %s9928_s10 = sshll.u32 (%p14793_p1), %s12188_s19, 3  ;;  %s11252_s11 = smul.u32 (%p14793_p1), 224, %s364_s24 }
  0x61   : > { %s12401_s27 = scalar_lea.vmem (%p14793_p1), %s14750_s0, %s9928_s10 }
  0x62   : > { %v450_v0 = vld [vmem:[%s12401_s27] sm:$0xff] (%p14793_p1)  ;;  %v452_v1 = vld [vmem:[%s12401_s27 + $0x10] sm:$0xff] (%p14793_p1)  ;;  %s12409_s19 = scalar_lea.vmem (%p14793_p1), [#allocation5], %s11252_s11 }
  0x63   : > { %v454_v2 = vld [vmem:[%s12401_s27 + $0x20] sm:$0xff] (%p14793_p1)  ;;  %v456_v3 = vld [vmem:[%s12401_s27 + $0x30] sm:$0xff] (%p14793_p1)  ;;  %451 = vst [vmem:[%s12409_s19] sm:$0xff] (%p14793_p1), %v450_v0  ;;  %453 = vst [vmem:[%s12409_s19 + $0x8] sm:$0xff] (%p14793_p1), %v452_v1 }
  0x64   : > { %v458_v4 = vld [vmem:[%s12401_s27 + $0x40] sm:$0xff] (%p14793_p1)  ;;  %v460_v5 = vld [vmem:[%s12401_s27 + $0x50] sm:$0xff] (%p14793_p1)  ;;  %455 = vst [vmem:[%s12409_s19 + $0x10] sm:$0xff] (%p14793_p1), %v454_v2  ;;  %457 = vst [vmem:[%s12409_s19 + $0x18] sm:$0xff] (%p14793_p1), %v456_v3 }
  0x65   : > { %459 = vst [vmem:[%s12409_s19 + $0x20] sm:$0xff] (%p14793_p1), %v458_v4  ;;  %461 = vst [vmem:[%s12409_s19 + $0x28] sm:$0xff] (%p14793_p1), %v460_v5  ;;  %v462_v6 = vld [vmem:[%s12401_s27 + $0x60] sm:$0xff] (%p14793_p1)  ;;  %v464_v7 = vld [vmem:[%s12401_s27 + $0x70] sm:$0xff] (%p14793_p1) }
  0x66   : > { %v466_v8 = vld [vmem:[%s12401_s27 + $0x80] sm:$0xff]  ;;  %463 = vst [vmem:[%s12409_s19 + $0x30] sm:$0xff] %v462_v6  ;;  %465 = vst [vmem:[%s12409_s19 + $0x38] sm:$0xff] %v464_v7  ;;  %v468_v9 = vld [vmem:[%s12401_s27 + $0x90] sm:$0xff] }
  0x67   : > { %467 = vst [vmem:[%s12409_s19 + $0x40] sm:$0xff] %v466_v8  ;;  %v470_v10 = vld [vmem:[%s12401_s27 + $0xa0] sm:$0xff]  ;;  %v472_v11 = vld [vmem:[%s12401_s27 + $0xb0] sm:$0xff]  ;;  %469 = vst [vmem:[%s12409_s19 + $0x48] sm:$0xff] %v468_v9 }
  0x68   : > { %471 = vst [vmem:[%s12409_s19 + $0x50] sm:$0xff] %v470_v10  ;;  %473 = vst [vmem:[%s12409_s19 + $0x58] sm:$0xff] %v472_v11  ;;  %v474_v12 = vld [vmem:[%s12401_s27 + $0xc0] sm:$0xff]  ;;  %v476_v13 = vld [vmem:[%s12401_s27 + $0xd0] sm:$0xff] }
  0x69   : > { %v478_v14 = vld [vmem:[%s12401_s27 + $0xe0] sm:$0xff]  ;;  %475 = vst [vmem:[%s12409_s19 + $0x60] sm:$0xff] %v474_v12  ;;  %477 = vst [vmem:[%s12409_s19 + $0x68] sm:$0xff] %v476_v13  ;;  %v480_v15 = vld [vmem:[%s12401_s27 + $0xf0] sm:$0xff] }
  0x6a   : > { %479 = vst [vmem:[%s12409_s19 + $0x70] sm:$0xff] %v478_v14  ;;  %v482_v16 = vld [vmem:[%s12401_s27 + $0x100] sm:$0xff]  ;;  %v484_v17 = vld [vmem:[%s12401_s27 + $0x110] sm:$0xff]  ;;  %481 = vst [vmem:[%s12409_s19 + $0x78] sm:$0xff] %v480_v15 }
  0x6b   : > { %483 = vst [vmem:[%s12409_s19 + $0x80] sm:$0xff] %v482_v16  ;;  %485 = vst [vmem:[%s12409_s19 + $0x88] sm:$0xff] %v484_v17  ;;  %v486_v18 = vld [vmem:[%s12401_s27 + $0x120] sm:$0xff]  ;;  %v488_v19 = vld [vmem:[%s12401_s27 + $0x130] sm:$0xff] }
  0x6c   : > { %v490_v20 = vld [vmem:[%s12401_s27 + $0x140] sm:$0xff]  ;;  %487 = vst [vmem:[%s12409_s19 + $0x90] sm:$0xff] %v486_v18  ;;  %489 = vst [vmem:[%s12409_s19 + $0x98] sm:$0xff] %v488_v19  ;;  %v492_v21 = vld [vmem:[%s12401_s27 + $0x150] sm:$0xff] }
  0x6d   : > { %491 = vst [vmem:[%s12409_s19 + $0xa0] sm:$0xff] %v490_v20  ;;  %v494_v22 = vld [vmem:[%s12401_s27 + $0x160] sm:$0xff]  ;;  %v496_v23 = vld [vmem:[%s12401_s27 + $0x170] sm:$0xff]  ;;  %493 = vst [vmem:[%s12409_s19 + $0xa8] sm:$0xff] %v492_v21 }
  0x6e   : > { %495 = vst [vmem:[%s12409_s19 + $0xb0] sm:$0xff] %v494_v22  ;;  %497 = vst [vmem:[%s12409_s19 + $0xb8] sm:$0xff] %v496_v23  ;;  %v498_v24 = vld [vmem:[%s12401_s27 + $0x180] sm:$0xff]  ;;  %v500_v25 = vld [vmem:[%s12401_s27 + $0x190] sm:$0xff] }
  0x6f   : > { %v502_v26 = vld [vmem:[%s12401_s27 + $0x1a0] sm:$0xff]  ;;  %499 = vst [vmem:[%s12409_s19 + $0xc0] sm:$0xff] %v498_v24  ;;  %501 = vst [vmem:[%s12409_s19 + $0xc8] sm:$0xff] %v500_v25  ;;  %v504_v27 = vld [vmem:[%s12401_s27 + $0x1b0] sm:$0xff] }
  0x70   : > { %503 = vst [vmem:[%s12409_s19 + $0xd0] sm:$0xff] %v502_v26  ;;  %505 = vst [vmem:[%s12409_s19 + $0xd8] sm:$0xff] %v504_v27 }
  0x71 PF: > { %p14794_p4 = scmp.ne.s32.totalorder %s14790_s26, 0 }
  0x73   : > { %514 = sbr.rel (%p14794_p4) target bundleno = 2763 (0xacb), region = 98 }
  0x7a   : > { %s517_s25 = sand.u32 1, %s12180_s17   ;;  %p14795_p7 = scmp.eq.s32.totalorder %s12283_s20, 0 }
  0x7b   : > { %s11253_s29 = smul.u32 224, %s517_s25 }
  0x7d   : > { %s12464_s14 = scalar_lea.vmem [#allocation5], %s11253_s29 }
  0x7e   : > { %12171 = dma.done.wait (%p14795_p7), [#allocation7], 21504   ;;  %p14796_p9 = pmov %p14795_p7 }
  0x7f   : > { %p14797_p11 = pmov %p14795_p7 }
  0x80   : > { %12173 = vsyncadd (%p14796_p9), [#allocation7], 4294945792 }
  0x81   : > { %12175 = dma.done.wait (%p14797_p11), [#allocation9], 46592   ;;  %p14798_p2 = pmov %p14795_p7 }
  0x82   : > { %vm572_vm0 = vcmask 228352   ;;  %v14766_v28 = vmov 0   ;;  %v12198_v29 = vmov 0.0   ;;  %v11323_v30 = vld [vmem:[%s14751_s1 + $0x44] ss:$16 sps:$4 sm:$0xff]   ;;  %vm783_vm1 = vcmask 1045504  }
  0x83   : > { %12177 = vsyncadd (%p14798_p2), [#allocation9], 4294920704  ;;  %828 = vmatprep.mubr.bf16.mxu0 %v14766_v28  ;;  %958 = vmatprep.mubr.bf16.mxu1 %v14766_v28  ;;  %573 = vst.msk [vmem:[#allocation2] sm:$0xff] %vm572_vm0, %v12198_v29  ;;  %v11325_v31 = vld [vmem:[%s14751_s1 + $0x40] ss:$16 sps:$4 sm:$0xff]   ;;  %v576_v35 = vld [vmem:[%s12464_s14 + $0x8] sm:$0xff] }
  0x84   : > { %574 = vst.msk [vmem:[#allocation2 + $0xe8] sm:$0xff] %vm572_vm0, %v12198_v29  ;;  %2479 = vst [vmem:[#allocation3] sm:$0xff] %v12198_v29  ;;  %796 = vmatprep.subr.bf16.mxu0 %v11323_v30  ;;  %10864 = vmatprep.subr.bf16.mxu1 %v11323_v30  ;;  %v11326_v32 = vld [vmem:[%s14751_s1 + $0x64] ss:$16 sps:$4 sm:$0x3f]   ;;  %v602_v38 = vld [vmem:[%s12464_s14 + $0xd8] sm:$0xff] }
  0x85   : > { %v11328_v33 = vld [vmem:[%s14751_s1 + $0x60] ss:$16 sps:$4 sm:$0x3f]   ;;  %797 = vmatpush1.bf16.msra.mxu0 %v11325_v31  ;;  %10866 = vmatpush1.bf16.msra.mxu1 %v11325_v31  ;;  %604 = vst.msk [vmem:[#allocation2 + $0x10] sm:$0xff] %vm572_vm0, %v576_v35  ;;  %630 = vst.msk [vmem:[#allocation2 + $0xe0] sm:$0xff] %vm572_vm0, %v602_v38  ;;  %v578_v42 = vld [vmem:[%s12464_s14 + $0x18] sm:$0xff] }
  0x86   : > { %v575_v34 = vld [vmem:[%s12464_s14] sm:$0xff]  ;;  %9950 = vmatprep.subr.msk.bf16.mxu0 %vm783_vm1, %v11326_v32  ;;  %10865 = vmatprep.subr.msk.bf16.mxu1 %vm783_vm1, %v11326_v32  ;;  %v785_v36 = vsel %vm783_vm1, %v11328_v33, 0  ;;  %v601_v37 = vld [vmem:[%s12464_s14 + $0xd0] sm:$0xff]  ;;  %v11331_v39 = vld [vmem:[%s14751_s1 + $0x4c] ss:$16 sps:$4 sm:$0xff]   ;;  %606 = vst.msk [vmem:[#allocation2 + $0x20] sm:$0xff] %vm572_vm0, %v578_v42 }
  0x87   : > { %603 = vst.msk [vmem:[#allocation2 + $0x8] sm:$0xff] %vm572_vm0, %v575_v34  ;;  %629 = vst.msk [vmem:[#allocation2 + $0xd8] sm:$0xff] %vm572_vm0, %v601_v37  ;;  %v11334_v40 = vld [vmem:[%s14751_s1 + $0x4] ss:$16 sps:$4 sm:$0xff]   ;;  %v11329_v43 = vld [vmem:[%s14751_s1 + $0x48] ss:$16 sps:$4 sm:$0xff]  }
  0x88   : > { %v577_v41 = vld [vmem:[%s12464_s14 + $0x10] sm:$0xff]  ;;  %v11335_v47 = vld [vmem:[%s14751_s1 + $0x6c] ss:$16 sps:$4 sm:$0x3f]   ;;  %v579_v49 = vld [vmem:[%s12464_s14 + $0x20] sm:$0xff]  ;;  %s12199_s21 = smov 112  }
  0x89   : > { %799 = vmatpush1.bf16.msra.mxu0 %v785_v36  ;;  %10867 = vmatpush1.bf16.msra.mxu1 %v785_v36  ;;  %v11332_v44 = vld [vmem:[%s14751_s1] ss:$16 sps:$4 sm:$0xff]   ;;  %605 = vst.msk [vmem:[#allocation2 + $0x18] sm:$0xff] %vm572_vm0, %v577_v41  ;;  %v11337_v48 = vld [vmem:[%s14751_s1 + $0x68] ss:$16 sps:$4 sm:$0x3f]  }
  0x8a   : > { %969 = vmatprep.subr.bf16.mxu1 %v11331_v39  ;;  %1232 = vmatprep.subr.bf16.mxu0 %v11334_v40  ;;  %v580_v53 = vld [vmem:[%s12464_s14 + $0x28] sm:$0xff]  ;;  %607 = vst.msk [vmem:[#allocation2 + $0x28] sm:$0xff] %vm572_vm0, %v579_v49  ;;  %v581_v55 = vld [vmem:[%s12464_s14 + $0x30] sm:$0xff]  ;;  %v582_v56 = vld [vmem:[%s12464_s14 + $0x38] sm:$0xff]  ;;  %v791_v4 = vsel %vm783_vm1, %v11337_v48, 0  ;;  %vm2554_vm2 = vcmask 130048  }
  0x8b   : > { %608 = vst.msk [vmem:[#allocation2 + $0x30] sm:$0xff] %vm572_vm0, %v580_v53  ;;  %v583_v57 = vld [vmem:[%s12464_s14 + $0x40] sm:$0xff]  ;;  %609 = vst.msk [vmem:[#allocation2 + $0x38] sm:$0xff] %vm572_vm0, %v581_v55  ;;  %v584_v58 = vld [vmem:[%s12464_s14 + $0x48] sm:$0xff]  ;;  %s12200_s23 = smov 96   ;;  %s12201_s27 = smov 80  }
  0x8c   : > { %v633_v46 = vld [vmem:[#allocation2 + $0x10] sm:$0xff]  ;;  %v681_v52 = vld [vmem:[#allocation2 + $0xe0] sm:$0xff]  ;;  %610 = vst.msk [vmem:[#allocation2 + $0x40] sm:$0xff] %vm572_vm0, %v582_v56  ;;  %611 = vst.msk [vmem:[#allocation2 + $0x48] sm:$0xff] %vm572_vm0, %v583_v57  ;;  %s12202_s19 = smov 64   ;;  %s12203_s25 = smov 48  }
  0x8d   : > { %v585_v59 = vld [vmem:[%s12464_s14 + $0x50] sm:$0xff]  ;;  %v586_v60 = vld [vmem:[%s12464_s14 + $0x58] sm:$0xff]  ;;  %612 = vst.msk [vmem:[#allocation2 + $0x50] sm:$0xff] %vm572_vm0, %v584_v58  ;;  %v587_v62 = vld [vmem:[%s12464_s14 + $0x60] sm:$0xff]  ;;  %s12204_s29 = smov 32   ;;  %vm2480_vm3 = vcmask 785408  }
  0x8e   : > { %v12517_v45 = vld [vmem:[#allocation2 + $0x8] sm:$0xff]  ;;  %v658_v51 = vld [vmem:[#allocation2 + $0xd8] sm:$0xff]  ;;  %613 = vst.msk [vmem:[#allocation2 + $0x58] sm:$0xff] %vm572_vm0, %v585_v59  ;;  %614 = vst.msk [vmem:[#allocation2 + $0x60] sm:$0xff] %vm572_vm0, %v586_v60  ;;  %vm2625_vm4 = vcmask 261248   ;;  %vm2682_vm5 = vcmask 392448  }
  0x8f   : > { %v12527_v50 = vpack.c.bf16 %v633_v46, %v12517_v45  ;;  %v12531_v54 = vpack.c.bf16 %v681_v52, %v658_v51  ;;  %v11340_v61 = vld [vmem:[%s14751_s1 + $0xc] ss:$16 sps:$4 sm:$0xff]   ;;  %v677_v0 = vld [vmem:[%s14751_s1 + $0x20] sm:$0xff]  ;;  %615 = vst.msk [vmem:[#allocation2 + $0x68] sm:$0xff] %vm572_vm0, %v587_v62  ;;  %v679_v1 = vld [vmem:[%s14751_s1 + $0x30] sm:$0x33] }
  0x90   : > { %v588_v63 = vld [vmem:[%s12464_s14 + $0x68] sm:$0xff]  ;;  %v11341_v2 = vld [vmem:[%s14751_s1 + $0x24] ss:$16 sps:$4 sm:$0x3f]   ;;  %v634_v5 = vld [vmem:[#allocation2 + $0x18] sm:$0xff]  ;;  %v9984_v8 = vcombine.low %v677_v0, %v679_v1  ;;  %vm2739_vm6 = vcmask 523648  }
  0x91   : > { %9951 = vmatmul.mubr.msk.bf16.vlgmr.msra.gmra.mrb[0].mxu0 %vm572_vm0, %v12527_v50  ;;  %9964 = vmatmul.mubr.msk.bf16.vlgmr.msra.gmra.mrb[0].mxu1 %vm572_vm0, %v12531_v54  ;;  %616 = vst.msk [vmem:[#allocation2 + $0x70] sm:$0xff] %vm572_vm0, %v588_v63  ;;  %v589_v3 = vld [vmem:[%s12464_s14 + $0x70] sm:$0xff]  ;;  %v635_v6 = vld [vmem:[#allocation2 + $0x20] sm:$0xff]  ;;  %v590_v7 = vld [vmem:[%s12464_s14 + $0x78] sm:$0xff]  ;;  %v12580_v13 = vpack.c.bf16 %v634_v5, %v633_v46  ;;  %vm2880_vm7 = vcmask 654848   ;;  %vm2937_vm8 = vcmask 786048  }
  0x92   : > { %1233 = vmatpush1.bf16.msra.mxu0 %v11332_v44  ;;  %970 = vmatpush1.bf16.msra.mxu1 %v11329_v43  ;;  %617 = vst.msk [vmem:[#allocation2 + $0x78] sm:$0xff] %vm572_vm0, %v589_v3  ;;  %v683_v9 = vpack.c.bf16 %v635_v6, %v634_v5  ;;  %v11338_v10 = vld [vmem:[%s14751_s1 + $0x8] ss:$16 sps:$4 sm:$0xff]   ;;  %618 = vst.msk [vmem:[#allocation2 + $0x80] sm:$0xff] %vm572_vm0, %v590_v7  ;;  %v591_v11 = vld [vmem:[%s12464_s14 + $0x80] sm:$0xff]  ;;  %v1221_v15 = vsel %vm783_vm1, %v9984_v8, 0 }
  0x93   : > { %838 = vmatprep.mubr.bf16.mxu0 %v14766_v28  ;;  %9965 = vmatprep.subr.msk.bf16.mxu1 %vm783_vm1, %v11335_v47  ;;  %v592_v12 = vld [vmem:[%s12464_s14 + $0x88] sm:$0xff]  ;;  %619 = vst.msk [vmem:[#allocation2 + $0x88] sm:$0xff] %vm572_vm0, %v591_v11  ;;  %v593_v16 = vld [vmem:[%s12464_s14 + $0x90] sm:$0xff]  ;;  %v594_v19 = vld [vmem:[%s12464_s14 + $0x98] sm:$0xff]  ;;  %vm2994_vm9 = vcmask 917248   ;;  %vm3051_vm10 = vcmask 1048448  }
  0x94   : > { %1001 = vmatprep.mubr.bf16.mxu1 %v14766_v28  ;;  %9988 = vmatprep.subr.msk.bf16.mxu0 %vm783_vm1, %v11341_v2  ;;  %v636_v14 = vld [vmem:[#allocation2 + $0x28] sm:$0xff]  ;;  %620 = vst.msk [vmem:[#allocation2 + $0x90] sm:$0xff] %vm572_vm0, %v592_v12  ;;  %v637_v17 = vld [vmem:[#allocation2 + $0x30] sm:$0xff]  ;;  %621 = vst.msk [vmem:[#allocation2 + $0x98] sm:$0xff] %vm572_vm0, %v593_v16  ;;  %vm5576_vm11 = vcmask 261120   ;;  %vm5612_vm12 = vcmask 523520  }
  0x95   : > { %v11343_v18 = vld [vmem:[%s14751_s1 + $0x2c] ss:$16 sps:$4 sm:$0x3f]   ;;  %v12591_v20 = vpack.c.bf16 %v636_v14, %v635_v6  ;;  %v639_v22 = vld [vmem:[#allocation2 + $0x40] sm:$0xff]  ;;  %622 = vst.msk [vmem:[#allocation2 + $0xa0] sm:$0xff] %vm572_vm0, %v594_v19  ;;  %v641_v26 = vld [vmem:[#allocation2 + $0x50] sm:$0xff]  ;;  %v684_v36 = vpack.c.bf16 %v637_v17, %v636_v14 }
  0x96   : > { %972 = vmatpush1.bf16.msra.mxu1 %v791_v4  ;;  %1235 = vmatpush1.bf16.msra.mxu0 %v1221_v15  ;;  %v638_v21 = vld [vmem:[#allocation2 + $0x38] sm:$0xff]  ;;  %v640_v23 = vld [vmem:[#allocation2 + $0x48] sm:$0xff]  ;;  %v595_v30 = vld [vmem:[%s12464_s14 + $0xa0] sm:$0xff]  ;;  %vm5683_vm13 = vcmask 785920   ;;  %vm5712_vm14 = vcmask 1048320   ;;  %vm7807_vm15 = vcmask 523264  }
  0x97   : > { %1405 = vmatprep.subr.bf16.mxu1 %v11340_v61  ;;  %v12595_v24 = vpack.c.bf16 %v638_v21, %v637_v17  ;;  %v12597_v25 = vpack.c.bf16 %v640_v23, %v639_v22  ;;  %v642_v27 = vld [vmem:[#allocation2 + $0x58] sm:$0xff]  ;;  %v596_v31 = vld [vmem:[%s12464_s14 + $0xa8] sm:$0xff]  ;;  %623 = vst.msk [vmem:[#allocation2 + $0xa8] sm:$0xff] %vm572_vm0, %v595_v30  ;;  %v597_v34 = vld [vmem:[%s12464_s14 + $0xb0] sm:$0xff]  ;;  %v685_v44 = vpack.c.bf16 %v639_v22, %v638_v21  ;;  %s14824_s30 = sld [smem:[#allocation27_spill]]  ;;  %p567_p3 = scmp.lt.s32.totalorder %s12283_s20, 1 }
  0x98   : > { %v11345_v29 = vld [vmem:[%s14751_s1 + $0x28] ss:$16 sps:$4 sm:$0x3f]   ;;  %v12608_v32 = vpack.c.bf16 %v642_v27, %v641_v26  ;;  %624 = vst.msk [vmem:[#allocation2 + $0xb0] sm:$0xff] %vm572_vm0, %v596_v31  ;;  %625 = vst.msk [vmem:[#allocation2 + $0xb8] sm:$0xff] %vm572_vm0, %v597_v34  ;;  %v599_v37 = vld [vmem:[%s12464_s14 + $0xc0] sm:$0xff]  ;;  %v686_v49 = vpack.c.bf16 %v641_v26, %v640_v23 }
  0x99   : > { %9952 = vmatmul.mubr.msk.bf16.gmra.mrb[4].mxu0 %vm572_vm0, %v683_v9  ;;  %9966 = vmatmul.mubr.msk.bf16.vlgmr.msra.gmra.mrb[4].mxu1 %vm572_vm0, %v12527_v50  ;;  %v1227_v33 = vsel %vm783_vm1, %v11345_v29, 0  ;;  %v598_v35 = vld [vmem:[%s12464_s14 + $0xb8] sm:$0xff]  ;;  %v600_v38 = vld [vmem:[%s12464_s14 + $0xc8] sm:$0xff]  ;;  %627 = vst.msk [vmem:[#allocation2 + $0xc8] sm:$0xff] %vm572_vm0, %v599_v37  ;;  %v643_v39 = vld [vmem:[#allocation2 + $0x60] sm:$0xff]  ;;  %s12205_s14 = smov 16  }
  0x9a   : > { %848 = vmatprep.mubr.bf16.mxu0 %v14766_v28  ;;  %1406 = vmatpush1.bf16.msra.mxu1 %v11338_v10  ;;  %626 = vst.msk [vmem:[#allocation2 + $0xc0] sm:$0xff] %vm572_vm0, %v598_v35  ;;  %628 = vst.msk [vmem:[#allocation2 + $0xd0] sm:$0xff] %vm572_vm0, %v600_v38  ;;  %v11348_v40 = vld [vmem:[%s14751_s1 + $0x84] ss:$16 sps:$4 sm:$0xff]   ;;  %v644_v41 = vld [vmem:[#allocation2 + $0x68] sm:$0xff]  ;;  %v687_v53 = vpack.c.bf16 %v643_v39, %v642_v27  ;;  %s14832_s20 = smov (!%p567_p3, %s12283_s20), 1 }
  0x9b   : > { %1011 = vmatprep.mubr.bf16.mxu1 %v14766_v28  ;;  %10003 = vmatprep.subr.msk.bf16.mxu1 %vm783_vm1, %v11343_v18  ;;  %v11351_v42 = vld [vmem:[%s14751_s1 + $0x8c] ss:$16 sps:$4 sm:$0xff]   ;;  %v12632_v43 = vpack.c.bf16 %v644_v41, %v643_v39  ;;  %v645_v46 = vld [vmem:[#allocation2 + $0x70] sm:$0xff]  ;;  %v647_v50 = vld [vmem:[#allocation2 + $0x80] sm:$0xff]  ;;  %s9933_s13 = sshll.u32 %s14832_s20, 3  ;;  %s14825_s12 = sld [smem:[#allocation28_spill]] }
  0x9c   : > { %1719 = vmatprep.subr.bf16.mxu0 %v11348_v40  ;;  %v646_v47 = vld [vmem:[#allocation2 + $0x78] sm:$0xff]  ;;  %v648_v51 = vld [vmem:[#allocation2 + $0x88] sm:$0xff]  ;;  %v649_v55 = vld [vmem:[#allocation2 + $0x90] sm:$0xff]  ;;  %v688_v58 = vpack.c.bf16 %v645_v46, %v644_v41  ;;  %s14826_s8 = sld [smem:[#allocation29_spill]] }
  0x9d   : > { %v12638_v48 = vpack.c.bf16 %v646_v47, %v645_v46  ;;  %v12644_v52 = vpack.c.bf16 %v648_v51, %v647_v50  ;;  %v650_v56 = vld [vmem:[#allocation2 + $0x98] sm:$0xff]  ;;  %v651_v59 = vld [vmem:[#allocation2 + $0xa0] sm:$0xff]  ;;  %v689_v62 = vpack.c.bf16 %v647_v50, %v646_v47  ;;  %v690_v2 = vpack.c.bf16 %v649_v55, %v648_v51 }
  0x9e   : > { %1408 = vmatpush1.bf16.msra.mxu1 %v1227_v33  ;;  %v12650_v57 = vpack.c.bf16 %v650_v56, %v649_v55  ;;  %v652_v60 = vld [vmem:[#allocation2 + $0xa8] sm:$0xff]  ;;  %v691_v6 = vpack.c.bf16 %v651_v59, %v650_v56  ;;  %v631_v11 = vld [vmem:[#allocation2] sm:$0xff]  ;;  %v12066_v21 = vld [vmem:[#allocation2 + $0xd8] sm:$0xff] }
  0x9f   : > { %1892 = vmatprep.subr.bf16.mxu1 %v11351_v42  ;;  %v12656_v61 = vpack.c.bf16 %v652_v60, %v651_v59  ;;  %v653_v63 = vld [vmem:[#allocation2 + $0xb0] sm:$0xff]  ;;  %v654_v0 = vld [vmem:[#allocation2 + $0xb8] sm:$0xff]  ;;  %v659_v14 = vpack.c.bf16 %v12517_v45, %v631_v11 }
  0xa0   : > { %v12662_v1 = vpack.c.bf16 %v654_v0, %v653_v63  ;;  %v656_v4 = vld [vmem:[#allocation2 + $0xc8] sm:$0xff]  ;;  %v692_v7 = vpack.c.bf16 %v653_v63, %v652_v60  ;;  %v11346_v12 = vld [vmem:[%s14751_s1 + $0x80] ss:$16 sps:$4 sm:$0xff]   ;;  %v11352_v16 = vld [vmem:[%s14751_s1 + $0xa4] ss:$16 sps:$4 sm:$0x3f]  }
  0xa1   : > { %9953 = vmatmul.mubr.msk.bf16.gmra.mrb[8].mxu0 %vm572_vm0, %v684_v36  ;;  %9967 = vmatmul.mubr.msk.bf16.gmra.mrb[8].mxu1 %vm572_vm0, %v683_v9  ;;  %v655_v3 = vld [vmem:[#allocation2 + $0xc0] sm:$0xff]  ;;  %v12678_v9 = vld [vmem:[#allocation2 + $0xd0] sm:$0xff]  ;;  %v11349_v45 = vld [vmem:[%s14751_s1 + $0x88] ss:$16 sps:$4 sm:$0xff]  }
  0xa2   : > { %858 = vmatprep.mubr.bf16.mxu0 %v14766_v28  ;;  %1021 = vmatprep.mubr.bf16.mxu1 %v14766_v28  ;;  %v12668_v5 = vpack.c.bf16 %v656_v4, %v655_v3  ;;  %v693_v8 = vpack.c.bf16 %v655_v3, %v654_v0  ;;  %v694_v10 = vpack.c.bf16 %v12678_v9, %v656_v4  ;;  %v11354_v15 = vld [vmem:[%s14751_s1 + $0xa0] ss:$16 sps:$4 sm:$0x3f]   ;;  %v11355_v18 = vld [vmem:[%s14751_s1 + $0xac] ss:$16 sps:$4 sm:$0x3f]   ;;  %s570_s24 = scalar_lea.vmem %s14826_s8, %s9933_s13 }
  0xa3   : > { %v1708_v17 = vsel %vm783_vm1, %v11354_v15, 0  ;;  %v11357_v19 = vld [vmem:[%s14751_s1 + $0xa8] ss:$16 sps:$4 sm:$0x3f]   ;;  %v12788_v22 = vpack.c.bf16 %v12066_v21, %v12678_v9 }
  0xa9   : > { %9954 = vmatmul.mubr.msk.bf16.gmra.mrb[12].mxu0 %vm572_vm0, %v685_v44  ;;  %9968 = vmatmul.mubr.msk.bf16.gmra.mrb[12].mxu1 %vm572_vm0, %v684_v36 }
  0xaa   : > { %868 = vmatprep.mubr.bf16.mxu0 %v14766_v28  ;;  %1031 = vmatprep.mubr.bf16.mxu1 %v14766_v28 }
  0xb1   : > { %9955 = vmatmul.mubr.msk.bf16.gmra.mrb[16].mxu0 %vm572_vm0, %v686_v49  ;;  %9969 = vmatmul.mubr.msk.bf16.gmra.mrb[16].mxu1 %vm572_vm0, %v685_v44 }
  0xb2   : > { %878 = vmatprep.mubr.bf16.mxu0 %v14766_v28  ;;  %1041 = vmatprep.mubr.bf16.mxu1 %v14766_v28 }
  0xb9   : > { %9956 = vmatmul.mubr.msk.bf16.gmra.mrb[20].mxu0 %vm572_vm0, %v687_v53  ;;  %9970 = vmatmul.mubr.msk.bf16.gmra.mrb[20].mxu1 %vm572_vm0, %v686_v49 }
  0xba   : > { %888 = vmatprep.mubr.bf16.mxu0 %v14766_v28  ;;  %1051 = vmatprep.mubr.bf16.mxu1 %v14766_v28 }
  0xc1   : > { %9957 = vmatmul.mubr.msk.bf16.gmra.mrb[24].mxu0 %vm572_vm0, %v688_v58  ;;  %9971 = vmatmul.mubr.msk.bf16.gmra.mrb[24].mxu1 %vm572_vm0, %v687_v53 }
  0xc2   : > { %898 = vmatprep.mubr.bf16.mxu0 %v14766_v28  ;;  %1061 = vmatprep.mubr.bf16.mxu1 %v14766_v28 }
  0xc9   : > { %9958 = vmatmul.mubr.msk.bf16.gmra.mrb[28].mxu0 %vm572_vm0, %v689_v62  ;;  %9972 = vmatmul.mubr.msk.bf16.gmra.mrb[28].mxu1 %vm572_vm0, %v688_v58 }
  0xca   : > { %908 = vmatprep.mubr.bf16.mxu0 %v14766_v28  ;;  %1071 = vmatprep.mubr.bf16.mxu1 %v14766_v28 }
  0xd1   : > { %9959 = vmatmul.mubr.msk.bf16.gmra.mrb[32].mxu0 %vm572_vm0, %v690_v2  ;;  %9973 = vmatmul.mubr.msk.bf16.gmra.mrb[32].mxu1 %vm572_vm0, %v689_v62 }
  0xd2   : > { %918 = vmatprep.mubr.bf16.mxu0 %v14766_v28  ;;  %1081 = vmatprep.mubr.bf16.mxu1 %v14766_v28 }
  0xd9   : > { %9960 = vmatmul.mubr.msk.bf16.gmra.mrb[36].mxu0 %vm572_vm0, %v691_v6  ;;  %9974 = vmatmul.mubr.msk.bf16.gmra.mrb[36].mxu1 %vm572_vm0, %v690_v2 }
  0xda   : > { %928 = vmatprep.mubr.bf16.mxu0 %v14766_v28  ;;  %1091 = vmatprep.mubr.bf16.mxu1 %v14766_v28 }
  0xe1   : > { %9961 = vmatmul.mubr.msk.bf16.gmra.mrb[40].mxu0 %vm572_vm0, %v692_v7  ;;  %9975 = vmatmul.mubr.msk.bf16.gmra.mrb[40].mxu1 %vm572_vm0, %v691_v6 }
  0xe2   : > { %938 = vmatprep.mubr.bf16.mxu0 %v14766_v28  ;;  %1101 = vmatprep.mubr.bf16.mxu1 %v14766_v28 }
  0xe9   : > { %9962 = vmatmul.mubr.msk.bf16.gmra.mrb[44].mxu0 %vm572_vm0, %v693_v8  ;;  %9976 = vmatmul.mubr.msk.bf16.gmra.mrb[44].mxu1 %vm572_vm0, %v692_v7 }
  0xea   : > { %948 = vmatprep.mubr.bf16.mxu0 %v14766_v28  ;;  %1111 = vmatprep.mubr.bf16.mxu1 %v14766_v28 }
  0xf1   : > { %9963 = vmatmul.mubr.msk.bf16.gmra.mrb[48].mxu0 %vm572_vm0, %v694_v10  ;;  %9977 = vmatmul.mubr.msk.bf16.gmra.mrb[48].mxu1 %vm572_vm0, %v693_v8 }
  0xf2   : > { %1264 = vmatprep.mubr.bf16.mxu0 %v14766_v28  ;;  %1121 = vmatprep.mubr.bf16.mxu1 %v14766_v28 }
  0xf9   : > { %9989 = vmatmul.mubr.msk.bf16.vlgmr.msra.gmra.mrb[0].mxu0 %vm572_vm0, %v659_v14  ;;  %9978 = vmatmul.mubr.msk.bf16.gmra.mrb[52].mxu1 %vm572_vm0, %v694_v10 }
  0xfa   : > { %1720 = vmatpush1.bf16.msra.mxu0 %v11346_v12  ;;  %1131 = vmatprep.mubr.bf16.mxu1 %v14766_v28 }
  0xfb   : > { %1274 = vmatprep.mubr.bf16.mxu0 %v14766_v28  ;;  %10034 = vmatprep.subr.msk.bf16.mxu0 %vm783_vm1, %v11352_v16 }
  0xfe   : > { %1722 = vmatpush1.bf16.msra.mxu0 %v1708_v17 }
 0x101   : > { %9990 = vmatmul.mubr.msk.bf16.gmra.mrb[4].mxu0 %vm572_vm0, %v12580_v13  ;;  %9979 = vmatmul.mubr.msk.bf16.gmra.mrb[56].mxu1 %vm572_vm0, %v12531_v54  ;;  %v1714_v54 = vsel %vm783_vm1, %v11357_v19, 0 }
 0x102   : > { %1284 = vmatprep.mubr.bf16.mxu0 %v14766_v28  ;;  %1437 = vmatprep.mubr.bf16.mxu1 %v14766_v28 }
 0x109   : > { %9991 = vmatmul.mubr.msk.bf16.gmra.mrb[8].mxu0 %vm572_vm0, %v12591_v20  ;;  %10004 = vmatmul.mubr.msk.bf16.vlgmr.msra.gmra.mrb[4].mxu1 %vm572_vm0, %v659_v14 }
 0x10a   : > { %1294 = vmatprep.mubr.bf16.mxu0 %v14766_v28  ;;  %1893 = vmatpush1.bf16.msra.mxu1 %v11349_v45 }
 0x10b   : > { %1447 = vmatprep.mubr.bf16.mxu1 %v14766_v28  ;;  %10049 = vmatprep.subr.msk.bf16.mxu1 %vm783_vm1, %v11355_v18 }
 0x10e   : > { %1895 = vmatpush1.bf16.msra.mxu1 %v1714_v54 }
 0x111   : > { %9992 = vmatmul.mubr.msk.bf16.gmra.mrb[12].mxu0 %vm572_vm0, %v12595_v24  ;;  %10005 = vmatmul.mubr.msk.bf16.gmra.mrb[8].mxu1 %vm572_vm0, %v12580_v13 }
 0x112   : > { %1304 = vmatprep.mubr.bf16.mxu0 %v14766_v28  ;;  %1457 = vmatprep.mubr.bf16.mxu1 %v14766_v28 }
 0x119   : > { %9993 = vmatmul.mubr.msk.bf16.gmra.mrb[16].mxu0 %vm572_vm0, %v12597_v25  ;;  %10006 = vmatmul.mubr.msk.bf16.gmra.mrb[12].mxu1 %vm572_vm0, %v12591_v20 }
 0x11a   : > { %1314 = vmatprep.mubr.bf16.mxu0 %v14766_v28  ;;  %1467 = vmatprep.mubr.bf16.mxu1 %v14766_v28 }
 0x121   : > { %9994 = vmatmul.mubr.msk.bf16.gmra.mrb[20].mxu0 %vm572_vm0, %v12608_v32  ;;  %10007 = vmatmul.mubr.msk.bf16.gmra.mrb[16].mxu1 %vm572_vm0, %v12595_v24 }
 0x122   : > { %1324 = vmatprep.mubr.bf16.mxu0 %v14766_v28  ;;  %1477 = vmatprep.mubr.bf16.mxu1 %v14766_v28 }
 0x129   : > { %9995 = vmatmul.mubr.msk.bf16.gmra.mrb[24].mxu0 %vm572_vm0, %v12632_v43  ;;  %10008 = vmatmul.mubr.msk.bf16.gmra.mrb[20].mxu1 %vm572_vm0, %v12597_v25 }
 0x12a   : > { %1334 = vmatprep.mubr.bf16.mxu0 %v14766_v28  ;;  %1487 = vmatprep.mubr.bf16.mxu1 %v14766_v28 }
 0x131   : > { %9996 = vmatmul.mubr.msk.bf16.gmra.mrb[28].mxu0 %vm572_vm0, %v12638_v48  ;;  %10009 = vmatmul.mubr.msk.bf16.gmra.mrb[24].mxu1 %vm572_vm0, %v12608_v32 }
 0x132   : > { %1344 = vmatprep.mubr.bf16.mxu0 %v14766_v28  ;;  %1497 = vmatprep.mubr.bf16.mxu1 %v14766_v28 }
 0x139   : > { %9997 = vmatmul.mubr.msk.bf16.gmra.mrb[32].mxu0 %vm572_vm0, %v12644_v52  ;;  %10010 = vmatmul.mubr.msk.bf16.gmra.mrb[28].mxu1 %vm572_vm0, %v12632_v43 }
 0x13a   : > { %1354 = vmatprep.mubr.bf16.mxu0 %v14766_v28  ;;  %1507 = vmatprep.mubr.bf16.mxu1 %v14766_v28 }
 0x141   : > { %9998 = vmatmul.mubr.msk.bf16.gmra.mrb[36].mxu0 %vm572_vm0, %v12650_v57  ;;  %10011 = vmatmul.mubr.msk.bf16.gmra.mrb[32].mxu1 %vm572_vm0, %v12638_v48 }
 0x142   : > { %1364 = vmatprep.mubr.bf16.mxu0 %v14766_v28  ;;  %1517 = vmatprep.mubr.bf16.mxu1 %v14766_v28 }
 0x149   : > { %9999 = vmatmul.mubr.msk.bf16.gmra.mrb[40].mxu0 %vm572_vm0, %v12656_v61  ;;  %10012 = vmatmul.mubr.msk.bf16.gmra.mrb[36].mxu1 %vm572_vm0, %v12644_v52 }
 0x14a   : > { %1374 = vmatprep.mubr.bf16.mxu0 %v14766_v28  ;;  %1527 = vmatprep.mubr.bf16.mxu1 %v14766_v28 }
 0x151   : > { %10000 = vmatmul.mubr.msk.bf16.gmra.mrb[44].mxu0 %vm572_vm0, %v12662_v1  ;;  %10013 = vmatmul.mubr.msk.bf16.gmra.mrb[40].mxu1 %vm572_vm0, %v12650_v57 }
 0x152   : > { %1384 = vmatprep.mubr.bf16.mxu0 %v14766_v28  ;;  %1537 = vmatprep.mubr.bf16.mxu1 %v14766_v28 }
 0x159   : > { %10001 = vmatmul.mubr.msk.bf16.gmra.mrb[48].mxu0 %vm572_vm0, %v12668_v5  ;;  %10014 = vmatmul.mubr.msk.bf16.gmra.mrb[44].mxu1 %vm572_vm0, %v12656_v61 }
 0x15a   : > { %1394 = vmatprep.mubr.bf16.mxu0 %v14766_v28  ;;  %1547 = vmatprep.mubr.bf16.mxu1 %v14766_v28 }
 0x161   : > { %10002 = vmatmul.mubr.msk.bf16.gmra.mrb[52].mxu0 %vm572_vm0, %v12788_v22  ;;  %10015 = vmatmul.mubr.msk.bf16.gmra.mrb[48].mxu1 %vm572_vm0, %v12662_v1 }
 0x162   : > { %1751 = vmatprep.mubr.bf16.mxu0 %v14766_v28  ;;  %1557 = vmatprep.mubr.bf16.mxu1 %v14766_v28 }
 0x164   : > { %v12796_v23 = vpop.f32.mrb[0].mxu1 }
 0x165   : > { %v12798_v26 = vpop.f32.mrb[1].mxu1 }
 0x166   : > { %v12800_v27 = vpop.f32.mrb[2].mxu1 }
 0x167   : > { %v12802_v29 = vpop.f32.mrb[3].mxu1 }
 0x169   : > { %10035 = vmatmul.mubr.msk.bf16.vlgmr.msra.gmra.mrb[0].mxu0 %vm572_vm0, %v12580_v13  ;;  %10016 = vmatmul.mubr.msk.bf16.gmra.mrb[52].mxu1 %vm572_vm0, %v12668_v5 }
 0x16a   : > { %1761 = vmatprep.mubr.bf16.mxu0 %v14766_v28  ;;  %1567 = vmatprep.mubr.bf16.mxu1 %v14766_v28 }
 0x171   : > { %10036 = vmatmul.mubr.msk.bf16.gmra.mrb[4].mxu0 %vm572_vm0, %v12591_v20  ;;  %10017 = vmatmul.mubr.msk.bf16.gmra.mrb[56].mxu1 %vm572_vm0, %v12788_v22 }
 0x172   : > { %1771 = vmatprep.mubr.bf16.mxu0 %v14766_v28  ;;  %1924 = vmatprep.mubr.bf16.mxu1 %v14766_v28 }
 0x179   : > { %10037 = vmatmul.mubr.msk.bf16.gmra.mrb[8].mxu0 %vm572_vm0, %v12595_v24  ;;  %10050 = vmatmul.mubr.msk.bf16.vlgmr.msra.gmra.mrb[4].mxu1 %vm572_vm0, %v12580_v13  ;;  %v1605_v13 = vld [vmem:[#allocation2 + $0xe8] sm:$0xff] }
 0x17a   : > { %1781 = vmatprep.mubr.bf16.mxu0 %v14766_v28  ;;  %1934 = vmatprep.mubr.bf16.mxu1 %v14766_v28 }
 0x181   : > { %10038 = vmatmul.mubr.msk.bf16.gmra.mrb[12].mxu0 %vm572_vm0, %v12597_v25  ;;  %10051 = vmatmul.mubr.msk.bf16.gmra.mrb[8].mxu1 %vm572_vm0, %v12591_v20  ;;  %v12067_v20 = vld [vmem:[#allocation2 + $0xe0] sm:$0xff] }
 0x182   : > { %1791 = vmatprep.mubr.bf16.mxu0 %v14766_v28  ;;  %1944 = vmatprep.mubr.bf16.mxu1 %v14766_v28 }
 0x189   : > { %10039 = vmatmul.mubr.msk.bf16.gmra.mrb[16].mxu0 %vm572_vm0, %v12608_v32  ;;  %10052 = vmatmul.mubr.msk.bf16.gmra.mrb[12].mxu1 %vm572_vm0, %v12595_v24  ;;  %v1619_v24 = vpack.c.bf16 %v1605_v13, %v12067_v20 }
 0x18a   : > { %1801 = vmatprep.mubr.bf16.mxu0 %v14766_v28  ;;  %1954 = vmatprep.mubr.bf16.mxu1 %v14766_v28 }
 0x191   : > { %10040 = vmatmul.mubr.msk.bf16.gmra.mrb[20].mxu0 %vm572_vm0, %v12632_v43  ;;  %10053 = vmatmul.mubr.msk.bf16.gmra.mrb[16].mxu1 %vm572_vm0, %v12597_v25  ;;  %v2179_v25 = vlaneseq }
 0x192   : > { %1811 = vmatprep.mubr.bf16.mxu0 %v14766_v28  ;;  %1964 = vmatprep.mubr.bf16.mxu1 %v14766_v28 }
 0x193   : > { %v2180_v30 = vshrl.u32 %v2179_v25, 7 }
 0x195   : > { %v12890_v31 = vsub.s32 0, %v2180_v30  ;;  %v12895_v33 = vsub.s32 1, %v2180_v30  ;;  %v12918_v60 = vsub.s32 3, %v2180_v30 }
 0x197   : > { %14799 = vst [vmem:[#allocation15_spill] sm:$0xff] %v12890_v31  ;;  %14800 = vst [vmem:[#allocation16_spill] sm:$0xff] %v12895_v33 }
 0x198   : > { %14802 = vst [vmem:[#allocation18_spill] sm:$0xff] %v12918_v60 }
 0x199   : > { %10041 = vmatmul.mubr.msk.bf16.gmra.mrb[24].mxu0 %vm572_vm0, %v12638_v48  ;;  %10054 = vmatmul.mubr.msk.bf16.gmra.mrb[20].mxu1 %vm572_vm0, %v12608_v32  ;;  %v2177_v32 = vld [vmem:[%s14752_s2] sm:$0xf] }
 0x19a   : > { %1821 = vmatprep.mubr.bf16.mxu0 %v14766_v28  ;;  %1974 = vmatprep.mubr.bf16.mxu1 %v14766_v28  ;;  %v12898_v34 = vrot.slane %v2177_v32, %v12890_v31  ;;  %v12901_v35 = vrot.slane %v2177_v32, %v12895_v33  ;;  %v12929_v4 = vrot.slane %v2177_v32, %v12918_v60 }
 0x1a1   : > { %10042 = vmatmul.mubr.msk.bf16.gmra.mrb[28].mxu0 %vm572_vm0, %v12644_v52  ;;  %10055 = vmatmul.mubr.msk.bf16.gmra.mrb[24].mxu1 %vm572_vm0, %v12632_v43 }
 0x1a2   : > { %1831 = vmatprep.mubr.bf16.mxu0 %v14766_v28  ;;  %1984 = vmatprep.mubr.bf16.mxu1 %v14766_v28 }
 0x1a9   : > { %10043 = vmatmul.mubr.msk.bf16.gmra.mrb[32].mxu0 %vm572_vm0, %v12650_v57  ;;  %10056 = vmatmul.mubr.msk.bf16.gmra.mrb[28].mxu1 %vm572_vm0, %v12638_v48 }
 0x1aa   : > { %1841 = vmatprep.mubr.bf16.mxu0 %v14766_v28  ;;  %1994 = vmatprep.mubr.bf16.mxu1 %v14766_v28 }
 0x1b1   : > { %10044 = vmatmul.mubr.msk.bf16.gmra.mrb[36].mxu0 %vm572_vm0, %v12656_v61  ;;  %10057 = vmatmul.mubr.msk.bf16.gmra.mrb[32].mxu1 %vm572_vm0, %v12644_v52 }
 0x1b2   : > { %1851 = vmatprep.mubr.bf16.mxu0 %v14766_v28  ;;  %2004 = vmatprep.mubr.bf16.mxu1 %v14766_v28 }
 0x1b9   : > { %10045 = vmatmul.mubr.msk.bf16.gmra.mrb[40].mxu0 %vm572_vm0, %v12662_v1  ;;  %10058 = vmatmul.mubr.msk.bf16.gmra.mrb[36].mxu1 %vm572_vm0, %v12650_v57  ;;  %v12915_v57 = vsub.s32 2, %v2180_v30 }
 0x1ba   : > { %1861 = vmatprep.mubr.bf16.mxu0 %v14766_v28  ;;  %2014 = vmatprep.mubr.bf16.mxu1 %v14766_v28 }
 0x1bb   : > { %14801 = vst [vmem:[#allocation17_spill] sm:$0xff] %v12915_v57  ;;  %v12924_v2 = vrot.slane %v2177_v32, %v12915_v57 }
 0x1c1   : > { %10046 = vmatmul.mubr.msk.bf16.gmra.mrb[44].mxu0 %vm572_vm0, %v12668_v5  ;;  %10059 = vmatmul.mubr.msk.bf16.gmra.mrb[40].mxu1 %vm572_vm0, %v12656_v61 }
 0x1c2   : > { %1871 = vmatprep.mubr.bf16.mxu0 %v14766_v28  ;;  %2024 = vmatprep.mubr.bf16.mxu1 %v14766_v28 }
 0x1c9   : > { %10047 = vmatmul.mubr.msk.bf16.gmra.mrb[48].mxu0 %vm572_vm0, %v12788_v22  ;;  %10060 = vmatmul.mubr.msk.bf16.gmra.mrb[44].mxu1 %vm572_vm0, %v12662_v1 }
 0x1ca   : > { %1881 = vmatprep.mubr.bf16.mxu0 %v14766_v28  ;;  %2034 = vmatprep.mubr.bf16.mxu1 %v14766_v28 }
 0x1d1   : > { %10048 = vmatmul.mubr.msk.bf16.gmra.mrb[52].mxu0 %vm572_vm0, %v1619_v24  ;;  %10061 = vmatmul.mubr.msk.bf16.gmra.mrb[48].mxu1 %vm572_vm0, %v12668_v5 }
 0x1d2   : > { %2044 = vmatprep.mubr.bf16.mxu1 %v14766_v28 }
 0x1d9   : > { %10062 = vmatmul.mubr.msk.bf16.gmra.mrb[52].mxu1 %vm572_vm0, %v12788_v22 }
 0x1da   : > { %2054 = vmatprep.mubr.bf16.mxu1 %v14766_v28 }
 0x1e1   : > { %10063 = vmatmul.mubr.msk.bf16.gmra.mrb[56].mxu1 %vm572_vm0, %v1619_v24  ;;  %vm12206_vm0 = vmmov 0  }
 0x23c   : > { %v1753_v36 = vpop.f32.mrb[0].mxu0 }
 0x23d   : > { %v2199_v37 = vadd.f32 %v12898_v34, %v1753_v36  ;;  %v1755_v38 = vpop.f32.mrb[1].mxu0 }
 0x23e   : > { %v2200_v39 = vadd.f32 %v12901_v35, %v1755_v38  ;;  %v1757_v40 = vpop.f32.mrb[2].mxu0 }
 0x23f   : > { %v2203_v41 = vadd.f32 %v12898_v34, %v1757_v40  ;;  %v1759_v42 = vpop.f32.mrb[3].mxu0  ;;  %v2311_v44 = vmax.f32 %v2199_v37, 0.0 }
 0x240   : > { %v2204_v43 = vadd.f32 %v12901_v35, %v1759_v42  ;;  %v2312_v47 = vmax.f32 %v2200_v39, 0.0 }
 0x241   : > { %v2315_v46 = vmax.f32 %v2203_v41, 0.0 }
 0x242   : > { %v2316_v48 = vmax.f32 %v2204_v43, 0.0 }
 0x243   : > { %v12907_v49 = vmax.f32 %v2311_v44, %v2315_v46 }
 0x244   : > { %v12909_v50 = vmax.f32 %v2312_v47, %v2316_v48  ;;  %v1763_v51 = vpop.f32.mrb[4].mxu0 }
 0x245   : > { %v2207_v52 = vadd.f32 %v12898_v34, %v1763_v51  ;;  %2498 = vrot.lane.b32.xlu0 %v12907_v49, %s12199_s21  ;;  %v1765_v53 = vpop.f32.mrb[5].mxu0 }
 0x246   : > { %v2208_v55 = vadd.f32 %v12901_v35, %v1765_v53  ;;  %v1767_v56 = vpop.f32.mrb[6].mxu0 }
 0x247   : > { %v2211_v58 = vadd.f32 %v12898_v34, %v1767_v56  ;;  %v1769_v59 = vpop.f32.mrb[7].mxu0  ;;  %v2319_v62 = vmax.f32 %v2207_v52, 0.0 }
 0x248   : > { %v2212_v61 = vadd.f32 %v12901_v35, %v1769_v59  ;;  %v2320_v0 = vmax.f32 %v2208_v55, 0.0 }
 0x249   : > { %v2323_v63 = vmax.f32 %v2211_v58, 0.0  ;;  %2768 = vrot.lane.b32.xlu0 %v12909_v50, %s12199_s21 }
 0x24a   : > { %v2324_v1 = vmax.f32 %v2212_v61, 0.0 }
 0x24b   : > { %v12926_v3 = vmax.f32 %v2319_v62, %v2323_v63 }
 0x24c   : > { %v1773_v5 = vpop.f32.mrb[8].mxu0  ;;  %v12931_v6 = vmax.f32 %v2320_v0, %v2324_v1  ;;  %v1926_v8 = vpop.f32.mrb[4].mxu1 }
 0x24d   : > { %v2215_v7 = vadd.f32 %v12898_v34, %v1773_v5  ;;  %2500 = vrot.lane.b32.xlu0 %v12926_v3, %s12199_s21  ;;  %v1775_v9 = vpop.f32.mrb[9].mxu0  ;;  %v2201_v10 = vadd.f32 %v12924_v2, %v1926_v8  ;;  %v1928_v11 = vpop.f32.mrb[5].mxu1 }
 0x24e   : > { %v2216_v12 = vadd.f32 %v12901_v35, %v1775_v9  ;;  %2770 = vrot.lane.b32.xlu1 %v12931_v6, %s12199_s21  ;;  %v1777_v14 = vpop.f32.mrb[10].mxu0  ;;  %v2202_v15 = vadd.f32 %v12929_v4, %v1928_v11  ;;  %v1930_v16 = vpop.f32.mrb[6].mxu1 }
 0x24f   : > { %v2219_v17 = vadd.f32 %v12898_v34, %v1777_v14  ;;  %v1779_v45 = vpop.f32.mrb[11].mxu0  ;;  %v2205_v18 = vadd.f32 %v12924_v2, %v1930_v16  ;;  %v1932_v54 = vpop.f32.mrb[7].mxu1  ;;  %v2327_v21 = vmax.f32 %v2215_v7, 0.0  ;;  %v2313_v20 = vmax.f32 %v2201_v10, 0.0 }
 0x250   : > { %v2220_v19 = vadd.f32 %v12901_v35, %v1779_v45  ;;  %v2206_v13 = vadd.f32 %v12929_v4, %v1932_v54  ;;  %v2328_v24 = vmax.f32 %v2216_v12, 0.0  ;;  %v2314_v32 = vmax.f32 %v2202_v15, 0.0 }
 0x251   : > { %v2331_v22 = vmax.f32 %v2219_v17, 0.0  ;;  %v2317_v25 = vmax.f32 %v2205_v18, 0.0 }
 0x252   : > { %v2332_v30 = vmax.f32 %v2220_v19, 0.0  ;;  %v2318_v37 = vmax.f32 %v2206_v13, 0.0 }
 0x253   : > { %v12945_v36 = vmax.f32 %v2327_v21, %v2331_v22  ;;  %v12947_v38 = vmax.f32 %v2313_v20, %v2317_v25 }
 0x254   : > { %v12949_v39 = vmax.f32 %v2328_v24, %v2332_v30  ;;  %v1783_v40 = vpop.f32.mrb[12].mxu0  ;;  %v12951_v41 = vmax.f32 %v2314_v32, %v2318_v37  ;;  %v1936_v43 = vpop.f32.mrb[8].mxu1 }
 0x255   : > { %v2223_v42 = vadd.f32 %v12898_v34, %v1783_v40  ;;  %2502 = vrot.lane.b32.xlu0 %v12945_v36, %s12199_s21  ;;  %v1785_v44 = vpop.f32.mrb[13].mxu0  ;;  %v2209_v46 = vadd.f32 %v12924_v2, %v1936_v43  ;;  %v1938_v47 = vpop.f32.mrb[9].mxu1  ;;  %3080 = vrot.lane.b32.xlu1 %v12947_v38, %s12199_s21 }
 0x256   : > { %v2224_v48 = vadd.f32 %v12901_v35, %v1785_v44  ;;  %v1787_v51 = vpop.f32.mrb[14].mxu0  ;;  %v2210_v52 = vadd.f32 %v12929_v4, %v1938_v47  ;;  %v1940_v55 = vpop.f32.mrb[10].mxu1 }
 0x257   : > { %v2227_v53 = vadd.f32 %v12898_v34, %v1787_v51  ;;  %v1789_v56 = vpop.f32.mrb[15].mxu0  ;;  %v2213_v58 = vadd.f32 %v12924_v2, %v1940_v55  ;;  %v1942_v61 = vpop.f32.mrb[11].mxu1  ;;  %v2335_v62 = vmax.f32 %v2223_v42, 0.0  ;;  %v2321_v1 = vmax.f32 %v2209_v46, 0.0 }
 0x258   : > { %v2228_v59 = vadd.f32 %v12901_v35, %v1789_v56  ;;  %v2214_v0 = vadd.f32 %v12929_v4, %v1942_v61  ;;  %v2336_v5 = vmax.f32 %v2224_v48, 0.0  ;;  %v2322_v9 = vmax.f32 %v2210_v52, 0.0 }
 0x259   : > { %v2339_v63 = vmax.f32 %v2227_v53, 0.0  ;;  %3346 = vrot.lane.b32.xlu0 %v12951_v41, %s12199_s21  ;;  %v2325_v7 = vmax.f32 %v2213_v58, 0.0 }
 0x25a   : > { %v2340_v8 = vmax.f32 %v2228_v59, 0.0  ;;  %v2326_v11 = vmax.f32 %v2214_v0, 0.0 }
 0x25b   : > { %v12967_v10 = vmax.f32 %v2335_v62, %v2339_v63  ;;  %v12969_v12 = vmax.f32 %v2321_v1, %v2325_v7 }
 0x25c   : > { %v12971_v14 = vmax.f32 %v2336_v5, %v2340_v8  ;;  %v1793_v15 = vpop.f32.mrb[16].mxu0  ;;  %v12973_v16 = vmax.f32 %v2322_v9, %v2326_v11  ;;  %v1946_v45 = vpop.f32.mrb[12].mxu1 }
 0x25d   : > { %v2231_v17 = vadd.f32 %v12898_v34, %v1793_v15  ;;  %2772 = vrot.lane.b32.xlu0 %v12949_v39, %s12199_s21  ;;  %v1795_v18 = vpop.f32.mrb[17].mxu0  ;;  %v2217_v19 = vadd.f32 %v12924_v2, %v1946_v45  ;;  %v1948_v54 = vpop.f32.mrb[13].mxu1  ;;  %3082 = vrot.lane.b32.xlu1 %v12969_v12, %s12199_s21 }
 0x25e   : > { %v2232_v21 = vadd.f32 %v12901_v35, %v1795_v18  ;;  %v1797_v22 = vpop.f32.mrb[18].mxu0  ;;  %v2218_v13 = vadd.f32 %v12929_v4, %v1948_v54  ;;  %v1950_v24 = vpop.f32.mrb[14].mxu1 }
 0x25f   : > { %v2235_v20 = vadd.f32 %v12898_v34, %v1797_v22  ;;  %v1799_v25 = vpop.f32.mrb[19].mxu0  ;;  %v2221_v30 = vadd.f32 %v12924_v2, %v1950_v24  ;;  %v1952_v37 = vpop.f32.mrb[15].mxu1  ;;  %v2343_v40 = vmax.f32 %v2231_v17, 0.0  ;;  %v2329_v44 = vmax.f32 %v2217_v19, 0.0 }
 0x260   : > { %v2236_v32 = vadd.f32 %v12901_v35, %v1799_v25  ;;  %v2222_v43 = vadd.f32 %v12929_v4, %v1952_v37  ;;  %v2344_v46 = vmax.f32 %v2232_v21, 0.0  ;;  %v2330_v51 = vmax.f32 %v2218_v13, 0.0 }
 0x261   : > { %v2347_v42 = vmax.f32 %v2235_v20, 0.0  ;;  %v2333_v47 = vmax.f32 %v2221_v30, 0.0  ;;  %2504 = vrot.lane.b32.xlu1 %v12967_v10, %s12199_s21 }
 0x262   : > { %v2348_v48 = vmax.f32 %v2236_v32, 0.0  ;;  %v2334_v53 = vmax.f32 %v2222_v43, 0.0 }
 0x263   : > { %v12989_v52 = vmax.f32 %v2343_v40, %v2347_v42  ;;  %v12991_v55 = vmax.f32 %v2329_v44, %v2333_v47 }
 0x264   : > { %v12993_v56 = vmax.f32 %v2344_v46, %v2348_v48  ;;  %v1803_v58 = vpop.f32.mrb[20].mxu0  ;;  %v12995_v59 = vmax.f32 %v2330_v51, %v2334_v53  ;;  %v1956_v62 = vpop.f32.mrb[16].mxu1 }
 0x265   : > { %v2239_v61 = vadd.f32 %v12898_v34, %v1803_v58  ;;  %v1805_v63 = vpop.f32.mrb[21].mxu0  ;;  %v2225_v0 = vadd.f32 %v12924_v2, %v1956_v62  ;;  %v1958_v1 = vpop.f32.mrb[17].mxu1  ;;  %3084 = vrot.lane.b32.xlu0 %v12991_v55, %s12199_s21  ;;  %3348 = vrot.lane.b32.xlu1 %v12973_v16, %s12199_s21 }
 0x266   : > { %v2240_v5 = vadd.f32 %v12901_v35, %v1805_v63  ;;  %v1807_v7 = vpop.f32.mrb[22].mxu0  ;;  %v2226_v8 = vadd.f32 %v12929_v4, %v1958_v1  ;;  %v1960_v11 = vpop.f32.mrb[18].mxu1 }
 0x267   : > { %v2243_v9 = vadd.f32 %v12898_v34, %v1807_v7  ;;  %v1809_v15 = vpop.f32.mrb[23].mxu0  ;;  %v2229_v17 = vadd.f32 %v12924_v2, %v1960_v11  ;;  %v1962_v18 = vpop.f32.mrb[19].mxu1  ;;  %v2351_v19 = vmax.f32 %v2239_v61, 0.0  ;;  %v2337_v22 = vmax.f32 %v2225_v0, 0.0 }
 0x268   : > { %v2244_v45 = vadd.f32 %v12901_v35, %v1809_v15  ;;  %v2230_v21 = vadd.f32 %v12929_v4, %v1962_v18  ;;  %v2352_v13 = vmax.f32 %v2240_v5, 0.0  ;;  %v2338_v25 = vmax.f32 %v2226_v8, 0.0 }
 0x269   : > { %v2355_v54 = vmax.f32 %v2243_v9, 0.0  ;;  %v2341_v20 = vmax.f32 %v2229_v17, 0.0  ;;  %2774 = vrot.lane.b32.xlu1 %v12971_v14, %s12199_s21  ;;  %2506 = vrot.lane.b32.xlu0 %v12989_v52, %s12199_s21 }
 0x26a   : > { %v2356_v24 = vmax.f32 %v2244_v45, 0.0  ;;  %v2342_v32 = vmax.f32 %v2230_v21, 0.0 }
 0x26b   : > { %v13013_v30 = vmax.f32 %v2351_v19, %v2355_v54  ;;  %v13015_v37 = vmax.f32 %v2337_v22, %v2341_v20 }
 0x26c   : > { %v13017_v40 = vmax.f32 %v2352_v13, %v2356_v24  ;;  %v1813_v42 = vpop.f32.mrb[24].mxu0  ;;  %v13019_v43 = vmax.f32 %v2338_v25, %v2342_v32  ;;  %v1966_v46 = vpop.f32.mrb[20].mxu1 }
 0x26d   : > { %v2247_v44 = vadd.f32 %v12898_v34, %v1813_v42  ;;  %v1815_v47 = vpop.f32.mrb[25].mxu0  ;;  %v2233_v48 = vadd.f32 %v12924_v2, %v1966_v46  ;;  %v1968_v51 = vpop.f32.mrb[21].mxu1  ;;  %3086 = vrot.lane.b32.xlu1 %v13015_v37, %s12199_s21  ;;  %3350 = vrot.lane.b32.xlu0 %v12995_v59, %s12199_s21 }
 0x26e   : > { %v2248_v53 = vadd.f32 %v12901_v35, %v1815_v47  ;;  %v1817_v58 = vpop.f32.mrb[26].mxu0  ;;  %v2234_v61 = vadd.f32 %v12929_v4, %v1968_v51  ;;  %v1970_v63 = vpop.f32.mrb[22].mxu1 }
 0x26f   : > { %v2251_v62 = vadd.f32 %v12898_v34, %v1817_v58  ;;  %v1819_v0 = vpop.f32.mrb[27].mxu0  ;;  %v2237_v1 = vadd.f32 %v12924_v2, %v1970_v63  ;;  %v1972_v7 = vpop.f32.mrb[23].mxu1  ;;  %v2359_v8 = vmax.f32 %v2247_v44, 0.0  ;;  %v2345_v15 = vmax.f32 %v2233_v48, 0.0 }
 0x270   : > { %v2252_v5 = vadd.f32 %v12901_v35, %v1819_v0  ;;  %v2238_v11 = vadd.f32 %v12929_v4, %v1972_v7  ;;  %v2360_v17 = vmax.f32 %v2248_v53, 0.0  ;;  %v2346_v19 = vmax.f32 %v2234_v61, 0.0 }
 0x271   : > { %v2363_v9 = vmax.f32 %v2251_v62, 0.0  ;;  %v2349_v45 = vmax.f32 %v2237_v1, 0.0  ;;  %2776 = vrot.lane.b32.xlu0 %v12993_v56, %s12199_s21  ;;  %2508 = vrot.lane.b32.xlu1 %v13013_v30, %s12199_s21 }
 0x272   : > { %v2364_v18 = vmax.f32 %v2252_v5, 0.0  ;;  %v2350_v21 = vmax.f32 %v2238_v11, 0.0 }
 0x273   : > { %v13037_v54 = vmax.f32 %v2359_v8, %v2363_v9  ;;  %v13039_v22 = vmax.f32 %v2345_v15, %v2349_v45 }
 0x274   : > { %v13041_v13 = vmax.f32 %v2360_v17, %v2364_v18  ;;  %v1823_v20 = vpop.f32.mrb[28].mxu0  ;;  %v13043_v24 = vmax.f32 %v2346_v19, %v2350_v21  ;;  %v1976_v32 = vpop.f32.mrb[24].mxu1 }
 0x275   : > { %v2255_v25 = vadd.f32 %v12898_v34, %v1823_v20  ;;  %v1825_v42 = vpop.f32.mrb[29].mxu0  ;;  %v2241_v44 = vadd.f32 %v12924_v2, %v1976_v32  ;;  %v1978_v46 = vpop.f32.mrb[25].mxu1  ;;  %3088 = vrot.lane.b32.xlu0 %v13039_v22, %s12199_s21  ;;  %3352 = vrot.lane.b32.xlu1 %v13019_v43, %s12199_s21 }
 0x276   : > { %v2256_v47 = vadd.f32 %v12901_v35, %v1825_v42  ;;  %v1827_v48 = vpop.f32.mrb[30].mxu0  ;;  %v2242_v51 = vadd.f32 %v12929_v4, %v1978_v46  ;;  %v1980_v58 = vpop.f32.mrb[26].mxu1 }
 0x277   : > { %v2259_v53 = vadd.f32 %v12898_v34, %v1827_v48  ;;  %v1829_v61 = vpop.f32.mrb[31].mxu0  ;;  %v2245_v62 = vadd.f32 %v12924_v2, %v1980_v58  ;;  %v1982_v0 = vpop.f32.mrb[27].mxu1  ;;  %v2367_v1 = vmax.f32 %v2255_v25, 0.0  ;;  %v2353_v8 = vmax.f32 %v2241_v44, 0.0 }
 0x278   : > { %v2260_v63 = vadd.f32 %v12901_v35, %v1829_v61  ;;  %v2246_v7 = vadd.f32 %v12929_v4, %v1982_v0  ;;  %v2368_v9 = vmax.f32 %v2256_v47, 0.0  ;;  %v2354_v17 = vmax.f32 %v2242_v51, 0.0 }
 0x279   : > { %v2371_v5 = vmax.f32 %v2259_v53, 0.0  ;;  %v2357_v11 = vmax.f32 %v2245_v62, 0.0  ;;  %2778 = vrot.lane.b32.xlu1 %v13017_v40, %s12199_s21  ;;  %2510 = vrot.lane.b32.xlu0 %v13037_v54, %s12199_s21 }
 0x27a   : > { %v2372_v15 = vmax.f32 %v2260_v63, 0.0  ;;  %v2358_v18 = vmax.f32 %v2246_v7, 0.0 }
 0x27b   : > { %v13061_v45 = vmax.f32 %v2367_v1, %v2371_v5  ;;  %v13063_v19 = vmax.f32 %v2353_v8, %v2357_v11 }
 0x27c   : > { %v13065_v21 = vmax.f32 %v2368_v9, %v2372_v15  ;;  %v1833_v20 = vpop.f32.mrb[32].mxu0  ;;  %v13067_v25 = vmax.f32 %v2354_v17, %v2358_v18  ;;  %v1986_v42 = vpop.f32.mrb[28].mxu1 }
 0x27d   : > { %v2263_v32 = vadd.f32 %v12898_v34, %v1833_v20  ;;  %v1835_v44 = vpop.f32.mrb[33].mxu0  ;;  %v2249_v46 = vadd.f32 %v12924_v2, %v1986_v42  ;;  %v1988_v47 = vpop.f32.mrb[29].mxu1  ;;  %3090 = vrot.lane.b32.xlu1 %v13063_v19, %s12199_s21  ;;  %3354 = vrot.lane.b32.xlu0 %v13043_v24, %s12199_s21 }
 0x27e   : > { %14803 = vst [vmem:[#allocation19_spill] sm:$0xff] %v13065_v21  ;;  %14804 = vst [vmem:[#allocation20_spill] sm:$0xff] %v13067_v25  ;;  %v2264_v48 = vadd.f32 %v12901_v35, %v1835_v44  ;;  %v1837_v51 = vpop.f32.mrb[34].mxu0  ;;  %v2250_v53 = vadd.f32 %v12929_v4, %v1988_v47  ;;  %v1990_v61 = vpop.f32.mrb[30].mxu1 }
 0x27f   : > { %v2267_v58 = vadd.f32 %v12898_v34, %v1837_v51  ;;  %v1839_v62 = vpop.f32.mrb[35].mxu0  ;;  %v2253_v63 = vadd.f32 %v12924_v2, %v1990_v61  ;;  %v1992_v1 = vpop.f32.mrb[31].mxu1  ;;  %v2375_v5 = vmax.f32 %v2263_v32, 0.0  ;;  %v2361_v9 = vmax.f32 %v2249_v46, 0.0 }
 0x280   : > { %v2268_v0 = vadd.f32 %v12901_v35, %v1839_v62  ;;  %v2254_v8 = vadd.f32 %v12929_v4, %v1992_v1  ;;  %v2376_v11 = vmax.f32 %v2264_v48, 0.0  ;;  %v2362_v18 = vmax.f32 %v2250_v53, 0.0 }
 0x281   : > { %v2379_v7 = vmax.f32 %v2267_v58, 0.0  ;;  %v2365_v15 = vmax.f32 %v2253_v63, 0.0  ;;  %2780 = vrot.lane.b32.xlu0 %v13041_v13, %s12199_s21  ;;  %2512 = vrot.lane.b32.xlu1 %v13061_v45, %s12199_s21 }
 0x282   : > { %v2380_v17 = vmax.f32 %v2268_v0, 0.0  ;;  %v2366_v42 = vmax.f32 %v2254_v8, 0.0 }
 0x283   : > { %v13085_v20 = vmax.f32 %v2375_v5, %v2379_v7  ;;  %v13087_v44 = vmax.f32 %v2361_v9, %v2365_v15 }
 0x284   : > { %v13089_v32 = vmax.f32 %v2376_v11, %v2380_v17  ;;  %v1843_v47 = vpop.f32.mrb[36].mxu0  ;;  %v13091_v51 = vmax.f32 %v2362_v18, %v2366_v42  ;;  %v1996_v48 = vpop.f32.mrb[32].mxu1 }
 0x285   : > { %v2271_v46 = vadd.f32 %v12898_v34, %v1843_v47  ;;  %v1845_v58 = vpop.f32.mrb[37].mxu0  ;;  %v2257_v61 = vadd.f32 %v12924_v2, %v1996_v48  ;;  %v1998_v62 = vpop.f32.mrb[33].mxu1  ;;  %3092 = vrot.lane.b32.xlu0 %v13087_v44, %s12199_s21  ;;  %3356 = vrot.lane.b32.xlu1 %v13067_v25, %s12199_s21 }
 0x286   : > { %14805 = vst [vmem:[#allocation21_spill] sm:$0xff] %v13089_v32  ;;  %14806 = vst [vmem:[#allocation22_spill] sm:$0xff] %v13091_v51  ;;  %v2272_v53 = vadd.f32 %v12901_v35, %v1845_v58  ;;  %v1847_v63 = vpop.f32.mrb[38].mxu0  ;;  %v2258_v0 = vadd.f32 %v12929_v4, %v1998_v62  ;;  %v2000_v5 = vpop.f32.mrb[34].mxu1 }
 0x287   : > { %v2275_v1 = vadd.f32 %v12898_v34, %v1847_v63  ;;  %v1849_v7 = vpop.f32.mrb[39].mxu0  ;;  %v2261_v8 = vadd.f32 %v12924_v2, %v2000_v5  ;;  %v2002_v11 = vpop.f32.mrb[35].mxu1  ;;  %v2383_v15 = vmax.f32 %v2271_v46, 0.0  ;;  %v2369_v42 = vmax.f32 %v2257_v61, 0.0 }
 0x288   : > { %v2276_v9 = vadd.f32 %v12901_v35, %v1849_v7  ;;  %v2262_v18 = vadd.f32 %v12929_v4, %v2002_v11  ;;  %v2384_v47 = vmax.f32 %v2272_v53, 0.0  ;;  %v2370_v62 = vmax.f32 %v2258_v0, 0.0 }
 0x289   : > { %v2387_v17 = vmax.f32 %v2275_v1, 0.0  ;;  %v2373_v48 = vmax.f32 %v2261_v8, 0.0  ;;  %2782 = vrot.lane.b32.xlu1 %v13065_v21, %s12199_s21  ;;  %2514 = vrot.lane.b32.xlu0 %v13085_v20, %s12199_s21 }
 0x28a   : > { %v2388_v58 = vmax.f32 %v2276_v9, 0.0  ;;  %v2374_v5 = vmax.f32 %v2262_v18, 0.0 }
 0x28b   : > { %v13109_v63 = vmax.f32 %v2383_v15, %v2387_v17  ;;  %v13111_v7 = vmax.f32 %v2369_v42, %v2373_v48 }
 0x28c   : > { %v13113_v46 = vmax.f32 %v2384_v47, %v2388_v58  ;;  %v1853_v1 = vpop.f32.mrb[40].mxu0  ;;  %v13115_v11 = vmax.f32 %v2370_v62, %v2374_v5  ;;  %v2006_v53 = vpop.f32.mrb[36].mxu1 }
 0x28d   : > { %v2279_v61 = vadd.f32 %v12898_v34, %v1853_v1  ;;  %v1855_v8 = vpop.f32.mrb[41].mxu0  ;;  %v2265_v9 = vadd.f32 %v12924_v2, %v2006_v53  ;;  %v2008_v28 = vpop.f32.mrb[37].mxu1  ;;  %3094 = vrot.lane.b32.xlu1 %v13111_v7, %s12199_s21  ;;  %3358 = vrot.lane.b32.xlu0 %v13091_v51, %s12199_s21 }
 0x28e   : > { %14807 = vst [vmem:[#allocation23_spill] sm:$0xff] %v13113_v46  ;;  %14808 = vst [vmem:[#allocation24_spill] sm:$0xff] %v13115_v11  ;;  %v2280_v0 = vadd.f32 %v12901_v35, %v1855_v8  ;;  %v1857_v15 = vpop.f32.mrb[42].mxu0  ;;  %v2266_v17 = vadd.f32 %v12929_v4, %v2008_v28  ;;  %v2010_v42 = vpop.f32.mrb[38].mxu1 }
 0x28f   : > { %v2283_v18 = vadd.f32 %v12898_v34, %v1857_v15  ;;  %v1859_v47 = vpop.f32.mrb[43].mxu0  ;;  %v2269_v48 = vadd.f32 %v12924_v2, %v2010_v42  ;;  %v2012_v62 = vpop.f32.mrb[39].mxu1  ;;  %v2391_v5 = vmax.f32 %v2279_v61, 0.0  ;;  %v2377_v60 = vmax.f32 %v2265_v9, 0.0 }
 0x290   : > { %v2284_v58 = vadd.f32 %v12901_v35, %v1859_v47  ;;  %v2270_v53 = vadd.f32 %v12929_v4, %v2012_v62  ;;  %v2392_v33 = vmax.f32 %v2280_v0, 0.0  ;;  %v2378_v28 = vmax.f32 %v2266_v17, 0.0 }
 0x291   : > { %v2395_v1 = vmax.f32 %v2283_v18, 0.0  ;;  %v2381_v57 = vmax.f32 %v2269_v48, 0.0  ;;  %2784 = vrot.lane.b32.xlu0 %v13089_v32, %s12199_s21  ;;  %2516 = vrot.lane.b32.xlu1 %v13109_v63, %s12199_s21 }
 0x292   : > { %v2396_v8 = vmax.f32 %v2284_v58, 0.0  ;;  %v2382_v42 = vmax.f32 %v2270_v53, 0.0 }
 0x293   : > { %v13133_v15 = vmax.f32 %v2391_v5, %v2395_v1  ;;  %v13135_v47 = vmax.f32 %v2377_v60, %v2381_v57 }
 0x294   : > { %v13137_v61 = vmax.f32 %v2392_v33, %v2396_v8  ;;  %v1863_v18 = vpop.f32.mrb[44].mxu0  ;;  %v13139_v62 = vmax.f32 %v2378_v28, %v2382_v42  ;;  %v2016_v0 = vpop.f32.mrb[40].mxu1 }
 0x295   : > { %v2287_v9 = vadd.f32 %v12898_v34, %v1863_v18  ;;  %v1865_v48 = vpop.f32.mrb[45].mxu0  ;;  %v2273_v58 = vadd.f32 %v12924_v2, %v2016_v0  ;;  %v2018_v31 = vpop.f32.mrb[41].mxu1  ;;  %3096 = vrot.lane.b32.xlu0 %v13135_v47, %s12199_s21  ;;  %3360 = vrot.lane.b32.xlu1 %v13115_v11, %s12199_s21 }
 0x296   : > { %14809 = vst [vmem:[#allocation25_spill] sm:$0xff] %v13137_v61  ;;  %14810 = vst [vmem:[#allocation26_spill] sm:$0xff] %v13139_v62  ;;  %v2288_v57 = vadd.f32 %v12901_v35, %v1865_v48  ;;  %v1867_v33 = vpop.f32.mrb[46].mxu0  ;;  %v2274_v60 = vadd.f32 %v12929_v4, %v2018_v31  ;;  %v2020_v5 = vpop.f32.mrb[42].mxu1 }
 0x297   : > { %v2291_v17 = vadd.f32 %v12898_v34, %v1867_v33  ;;  %v1869_v1 = vpop.f32.mrb[47].mxu0  ;;  %v2277_v53 = vadd.f32 %v12924_v2, %v2020_v5  ;;  %v2022_v28 = vpop.f32.mrb[43].mxu1  ;;  %v2399_v42 = vmax.f32 %v2287_v9, 0.0  ;;  %v2385_v32 = vmax.f32 %v2273_v58, 0.0 }
 0x298   : > { %v2292_v8 = vadd.f32 %v12901_v35, %v1869_v1  ;;  %v2278_v0 = vadd.f32 %v12929_v4, %v2022_v28  ;;  %v2400_v11 = vmax.f32 %v2288_v57, 0.0  ;;  %v2386_v31 = vmax.f32 %v2274_v60, 0.0 }
 0x299   : > { %v2403_v18 = vmax.f32 %v2291_v17, 0.0  ;;  %v2389_v51 = vmax.f32 %v2277_v53, 0.0  ;;  %2786 = vrot.lane.b32.xlu1 %v13113_v46, %s12199_s21  ;;  %2518 = vrot.lane.b32.xlu0 %v13133_v15, %s12199_s21 }
 0x29a   : > { %v2404_v48 = vmax.f32 %v2292_v8, 0.0  ;;  %v2390_v5 = vmax.f32 %v2278_v0, 0.0 }
 0x29b   : > { %v13157_v33 = vmax.f32 %v2399_v42, %v2403_v18  ;;  %v13159_v1 = vmax.f32 %v2385_v32, %v2389_v51 }
 0x29c   : > { %v13161_v9 = vmax.f32 %v2400_v11, %v2404_v48  ;;  %v1873_v17 = vpop.f32.mrb[48].mxu0  ;;  %v13163_v28 = vmax.f32 %v2386_v31, %v2390_v5  ;;  %v2026_v57 = vpop.f32.mrb[44].mxu1 }
 0x29d   : > { %v2295_v58 = vadd.f32 %v12898_v34, %v1873_v17  ;;  %v1875_v53 = vpop.f32.mrb[49].mxu0  ;;  %v2281_v8 = vadd.f32 %v12924_v2, %v2026_v57  ;;  %v2028_v46 = vpop.f32.mrb[45].mxu1  ;;  %3098 = vrot.lane.b32.xlu1 %v13159_v1, %s12199_s21  ;;  %3362 = vrot.lane.b32.xlu0 %v13139_v62, %s12199_s21 }
 0x29e   : > { %v2296_v32 = vadd.f32 %v12901_v35, %v1875_v53  ;;  %v1877_v51 = vpop.f32.mrb[50].mxu0  ;;  %v2282_v11 = vadd.f32 %v12929_v4, %v2028_v46  ;;  %v2030_v42 = vpop.f32.mrb[46].mxu1 }
 0x29f   : > { %v2299_v60 = vadd.f32 %v12898_v34, %v1877_v51  ;;  %v1879_v18 = vpop.f32.mrb[51].mxu0  ;;  %v2285_v0 = vadd.f32 %v12924_v2, %v2030_v42  ;;  %v2032_v31 = vpop.f32.mrb[47].mxu1  ;;  %v2407_v5 = vmax.f32 %v2295_v58, 0.0  ;;  %v2393_v21 = vmax.f32 %v2281_v8, 0.0 }
 0x2a0   : > { %v2300_v48 = vadd.f32 %v12901_v35, %v1879_v18  ;;  %v2286_v57 = vadd.f32 %v12929_v4, %v2032_v31  ;;  %v2408_v62 = vmax.f32 %v2296_v32, 0.0  ;;  %v2394_v46 = vmax.f32 %v2282_v11, 0.0 }
 0x2a1   : > { %v2411_v17 = vmax.f32 %v2299_v60, 0.0  ;;  %v2397_v25 = vmax.f32 %v2285_v0, 0.0  ;;  %2788 = vrot.lane.b32.xlu0 %v13137_v61, %s12199_s21  ;;  %2520 = vrot.lane.b32.xlu1 %v13157_v33, %s12199_s21 }
 0x2a2   : > { %v2412_v53 = vmax.f32 %v2300_v48, 0.0  ;;  %v2398_v42 = vmax.f32 %v2286_v57, 0.0 }
 0x2a3   : > { %v13181_v51 = vmax.f32 %v2407_v5, %v2411_v17  ;;  %v13183_v18 = vmax.f32 %v2393_v21, %v2397_v25 }
 0x2a4   : > { %v13185_v58 = vmax.f32 %v2408_v62, %v2412_v53  ;;  %v1883_v60 = vpop.f32.mrb[52].mxu0  ;;  %v13187_v31 = vmax.f32 %v2394_v46, %v2398_v42  ;;  %v2036_v32 = vpop.f32.mrb[48].mxu1 }
 0x2a5   : > { %v10868_v8 = vadd.f32 %v1883_v60, %v12796_v23  ;;  %v1885_v0 = vpop.f32.mrb[53].mxu0  ;;  %v2289_v48 = vadd.f32 %v12924_v2, %v2036_v32  ;;  %v2038_v61 = vpop.f32.mrb[49].mxu1  ;;  %3100 = vrot.lane.b32.xlu0 %v13183_v18, %s12199_s21  ;;  %3364 = vrot.lane.b32.xlu1 %v13163_v28, %s12199_s21 }
 0x2a6   : > { %v10869_v21 = vadd.f32 %v1885_v0, %v12798_v26  ;;  %v1887_v25 = vpop.f32.mrb[54].mxu0  ;;  %v2290_v11 = vadd.f32 %v12929_v4, %v2038_v61  ;;  %v2040_v5 = vpop.f32.mrb[50].mxu1 }
 0x2a7   : > { %v2303_v62 = vadd.f32 %v10868_v8, %v12898_v34  ;;  %v10870_v23 = vadd.f32 %v1887_v25, %v12800_v27  ;;  %v1889_v17 = vpop.f32.mrb[55].mxu0  ;;  %v2293_v53 = vadd.f32 %v12924_v2, %v2040_v5  ;;  %v2042_v42 = vpop.f32.mrb[51].mxu1  ;;  %v2401_v32 = vmax.f32 %v2289_v48, 0.0 }
 0x2a8   : > { %v2304_v57 = vadd.f32 %v10869_v21, %v12901_v35  ;;  %v10871_v46 = vadd.f32 %v1889_v17, %v12802_v29  ;;  %v2294_v26 = vadd.f32 %v12929_v4, %v2042_v42  ;;  %v2402_v61 = vmax.f32 %v2290_v11, 0.0 }
 0x2a9   : > { %v2307_v60 = vadd.f32 %v10870_v23, %v12898_v34  ;;  %v2405_v0 = vmax.f32 %v2293_v53, 0.0  ;;  %2790 = vrot.lane.b32.xlu1 %v13161_v9, %s12199_s21  ;;  %2522 = vrot.lane.b32.xlu0 %v13181_v51, %s12199_s21  ;;  %v2415_v27 = vmax.f32 %v2303_v62, 0.0 }
 0x2aa   : > { %v2308_v8 = vadd.f32 %v10871_v46, %v12901_v35  ;;  %v2406_v25 = vmax.f32 %v2294_v26, 0.0  ;;  %v2416_v29 = vmax.f32 %v2304_v57, 0.0 }
 0x2ab   : > { %v2419_v21 = vmax.f32 %v2307_v60, 0.0  ;;  %v13209_v5 = vmax.f32 %v2401_v32, %v2405_v0 }
 0x2ac   : > { %v2420_v34 = vmax.f32 %v2308_v8, 0.0  ;;  %v13211_v23 = vmax.f32 %v2402_v61, %v2406_v25  ;;  %v2046_v48 = vpop.f32.mrb[52].mxu1 }
 0x2ad   : > { %v13213_v17 = vmax.f32 %v2415_v27, %v2419_v21  ;;  %v2297_v35 = vadd.f32 %v12924_v2, %v2046_v48  ;;  %v2048_v53 = vpop.f32.mrb[53].mxu1  ;;  %3102 = vrot.lane.b32.xlu1 %v13209_v5, %s12199_s21  ;;  %3366 = vrot.lane.b32.xlu0 %v13187_v31, %s12199_s21 }
 0x2ae   : > { %v13220_v62 = vmax.f32 %v2416_v29, %v2420_v34  ;;  %v2298_v11 = vadd.f32 %v12929_v4, %v2048_v53  ;;  %v2050_v57 = vpop.f32.mrb[54].mxu1 }
 0x2af   : > { %v2301_v46 = vadd.f32 %v12924_v2, %v2050_v57  ;;  %v2052_v42 = vpop.f32.mrb[55].mxu1  ;;  %v2409_v26 = vmax.f32 %v2297_v35, 0.0 }
 0x2b0   : > { %v2302_v60 = vadd.f32 %v12929_v4, %v2052_v42  ;;  %v2410_v0 = vmax.f32 %v2298_v11, 0.0 }
 0x2b1   : > { %v2413_v32 = vmax.f32 %v2301_v46, 0.0  ;;  %3368 = vrot.lane.b32.xlu1 %v13211_v23, %s12199_s21  ;;  %2792 = vrot.lane.b32.xlu0 %v13185_v58, %s12199_s21 }
 0x2b2   : > { %v2414_v8 = vmax.f32 %v2302_v60, 0.0 }
 0x2b3   : > { %v13229_v27 = vmax.f32 %v2409_v26, %v2413_v32 }
 0x2b4   : > { %v13231_v61 = vmax.f32 %v2410_v0, %v2414_v8  ;;  %v2056_v21 = vpop.f32.mrb[56].mxu1 }
 0x2b5   : > { %v2305_v25 = vadd.f32 %v12924_v2, %v2056_v21  ;;  %v2058_v29 = vpop.f32.mrb[57].mxu1  ;;  %3104 = vrot.lane.b32.xlu0 %v13229_v27, %s12199_s21  ;;  %2524 = vrot.lane.b32.xlu1 %v13213_v17, %s12199_s21  ;;  %v11358_v21 = vld [vmem:[#allocation6 + $0x1c0] ss:$16 sps:$4 sm:$0xff]  }
 0x2b6   : > { %v2306_v34 = vadd.f32 %v12929_v4, %v2058_v29  ;;  %v2060_v48 = vpop.f32.mrb[58].mxu1  ;;  %v11361_v29 = vld [vmem:[#allocation6 + $0x1c8] ss:$16 sps:$4 sm:$0xff]  }
 0x2b7   : > { %v2499_v35 = vpop.permute.xlu0 %2498  ;;  %v2309_v53 = vadd.f32 %v12924_v2, %v2060_v48  ;;  %v2062_v11 = vpop.f32.mrb[59].mxu1  ;;  %v2417_v42 = vmax.f32 %v2305_v25, 0.0  ;;  %v11360_v25 = vld [vmem:[#allocation6 + $0x1c4] ss:$16 sps:$4 sm:$0xff]  }
 0x2b8   : > { %v2540_v57 = vmax.f32 %v12907_v49, %v2499_v35  ;;  %v2310_v46 = vadd.f32 %v12929_v4, %v2062_v11  ;;  %v2418_v26 = vmax.f32 %v2306_v34, 0.0  ;;  %v11363_v34 = vld [vmem:[#allocation6 + $0x1cc] ss:$16 sps:$4 sm:$0xff]   ;;  %4000 = vmatprep.subr.bf16.mxu0 %v11360_v25  ;;  %v11366_v35 = vld [vmem:[#allocation6 + $0x1e4] ss:$16 sps:$4 sm:$0xff]  }
 0x2b9   : > { %v2421_v60 = vmax.f32 %v2309_v53, 0.0  ;;  %3370 = vrot.lane.b32.xlu0 %v13231_v61, %s12199_s21  ;;  %2794 = vrot.lane.b32.xlu1 %v13220_v62, %s12199_s21  ;;  %v11367_v11 = vld [vmem:[#allocation6 + $0x1e8] ss:$16 sps:$4 sm:$0xff]  }
 0x2ba   : > { %2555 = vst.msk [vmem:[#allocation3 + $0x10] sm:$0xff] %vm2554_vm2, %v2540_v57  ;;  %v2422_v32 = vmax.f32 %v2310_v46, 0.0  ;;  %4103 = vmatprep.subr.bf16.mxu1 %v11363_v34  ;;  %4001 = vmatpush1.bf16.msra.mxu0 %v11358_v21  ;;  %v11369_v46 = vld [vmem:[#allocation6 + $0x1ec] ss:$16 sps:$4 sm:$0xff]   ;;  %v11378_v21 = vld [vmem:[#allocation6 + $0x224] ss:$16 sps:$4 sm:$0xff]  }
 0x2bb   : > { %v2769_v0 = vpop.permute.xlu0 %2768  ;;  %v13247_v8 = vmax.f32 %v2417_v42, %v2421_v60  ;;  %4104 = vmatpush1.bf16.msra.mxu1 %v11361_v29  ;;  %4002 = vmatprep.subr.bf16.mxu0 %v11366_v35  ;;  %v11379_v25 = vld [vmem:[#allocation6 + $0x228] ss:$16 sps:$4 sm:$0xff]   ;;  %v11381_v29 = vld [vmem:[#allocation6 + $0x22c] ss:$16 sps:$4 sm:$0xff]  }
 0x2bc   : > { %v13249_v2 = vmax.f32 %v2418_v26, %v2422_v32  ;;  %v2810_v42 = vmax.f32 %v12909_v50, %v2769_v0  ;;  %4105 = vmatprep.subr.bf16.mxu1 %v11369_v46  ;;  %v11372_v50 = vld [vmem:[#allocation6 + $0x204] ss:$16 sps:$4 sm:$0xff]   ;;  %v11375_v0 = vld [vmem:[#allocation6 + $0x20c] ss:$16 sps:$4 sm:$0xff]  }
 0x2bd   : > { %2583 = vrot.lane.b32.xlu0 %v2540_v57, %s12199_s21  ;;  %3106 = vrot.lane.b32.xlu1 %v13247_v8, %s12199_s21 }
 0x2bf   : > { %v2501_v49 = vpop.permute.xlu0 %2500  ;;  %4106 = vmatpush1.bf16.msra.mxu1 %v11367_v11  ;;  %v11385_v11 = vld [vmem:[#allocation6 + $0x248] ss:$16 sps:$4 sm:$0xff]  }
 0x2c0   : > { %v2541_v4 = vmax.f32 %v12926_v3, %v2501_v49  ;;  %v2771_v48 = vpop.permute.xlu1 %2770  ;;  %v11364_v3 = vld [vmem:[#allocation6 + $0x1e0] ss:$16 sps:$4 sm:$0xff]   ;;  %4107 = vmatprep.subr.bf16.mxu1 %v11375_v0 }
 0x2c1   : > { %2640 = vrot.lane.b32.xlu0 %v2540_v57, %s12200_s23  ;;  %3372 = vrot.lane.b32.xlu1 %v13249_v2, %s12199_s21  ;;  %v11376_v49 = vld [vmem:[#allocation6 + $0x220] ss:$16 sps:$4 sm:$0xff]   ;;  %v2811_v34 = vmax.f32 %v12931_v6, %v2771_v48  ;;  %v11387_v6 = vld [vmem:[#allocation6 + $0x24c] ss:$16 sps:$4 sm:$0xff]  }
 0x2c2   : > { %2556 = vst.msk [vmem:[#allocation3 + $0x20] sm:$0xff] %vm2554_vm2, %v2541_v4  ;;  %4003 = vmatpush1.bf16.msra.mxu0 %v11364_v3 }
 0x2c3   : > { %4004 = vmatprep.subr.bf16.mxu0 %v11372_v50  ;;  %v11391_v50 = vld [vmem:[#allocation6 + $0x268] ss:$16 sps:$4 sm:$0xff]  }
 0x2c5   : > { %2697 = vrot.lane.b32.xlu0 %v2540_v57, %s12201_s27  ;;  %2585 = vrot.lane.b32.xlu1 %v2541_v4, %s12199_s21  ;;  %v11370_v57 = vld [vmem:[#allocation6 + $0x200] ss:$16 sps:$4 sm:$0xff]  }
 0x2c6   : > { %4005 = vmatpush1.bf16.msra.mxu0 %v11370_v57  ;;  %v11390_v57 = vld [vmem:[#allocation6 + $0x264] ss:$16 sps:$4 sm:$0xff]  }
 0x2c7   : > { %v2503_v53 = vpop.permute.xlu0 %2502  ;;  %v3081_v60 = vpop.permute.xlu1 %3080  ;;  %4006 = vmatprep.subr.bf16.mxu0 %v11378_v21  ;;  %v11396_v21 = vld [vmem:[#allocation6 + $0x284] ss:$16 sps:$4 sm:$0xff]  }
 0x2c8   : > { %v13263_v26 = vmax.f32 %v12945_v36, %v2503_v53  ;;  %v13266_v32 = vmax.f32 %v12947_v38, %v3081_v60  ;;  %v11373_v36 = vld [vmem:[#allocation6 + $0x208] ss:$16 sps:$4 sm:$0xff]   ;;  %v11384_v53 = vld [vmem:[#allocation6 + $0x244] ss:$16 sps:$4 sm:$0xff]   ;;  %v11388_v60 = vld [vmem:[#allocation6 + $0x260] ss:$16 sps:$4 sm:$0xff]  }
 0x2c9   : > { %2838 = vrot.lane.b32.xlu0 %v2810_v42, %s12202_s19  ;;  %2642 = vrot.lane.b32.xlu1 %v2541_v4, %s12200_s23 }
 0x2ca   : > { %2557 = vst.msk [vmem:[#allocation3 + $0x30] sm:$0xff] %vm2554_vm2, %v13263_v26  ;;  %3136 = vst.msk [vmem:[#allocation3 + $0x18] sm:$0xff] %vm2554_vm2, %v13266_v32  ;;  %4108 = vmatpush1.bf16.msra.mxu1 %v11373_v36  ;;  %4007 = vmatpush1.bf16.msra.mxu0 %v11376_v49  ;;  %v11393_v36 = vld [vmem:[#allocation6 + $0x26c] ss:$16 sps:$4 sm:$0xff]  }
 0x2cb   : > { %v13274_v38 = vpop.permute.xlu0 %3346  ;;  %4109 = vmatprep.subr.bf16.mxu1 %v11381_v29  ;;  %4008 = vmatprep.subr.bf16.mxu0 %v11384_v53  ;;  %v11399_v29 = vld [vmem:[#allocation6 + $0x28c] ss:$16 sps:$4 sm:$0xff]   ;;  %v11400_v53 = vld [vmem:[#allocation6 + $0x2a0] ss:$16 sps:$4 sm:$0xff]  }
 0x2cd   : > { %2895 = vrot.lane.b32.xlu0 %v2810_v42, %s12203_s25  ;;  %2699 = vrot.lane.b32.xlu1 %v2541_v4, %s12201_s27  ;;  %v11382_v4 = vld [vmem:[#allocation6 + $0x240] ss:$16 sps:$4 sm:$0xff]  }
 0x2ce   : > { %4110 = vmatpush1.bf16.msra.mxu1 %v11379_v25  ;;  %4009 = vmatpush1.bf16.msra.mxu0 %v11382_v4  ;;  %v11397_v25 = vld [vmem:[#allocation6 + $0x288] ss:$16 sps:$4 sm:$0xff]  }
 0x2cf   : > { %v3083_v3 = vpop.permute.xlu1 %3082  ;;  %v13286_v48 = vpop.permute.xlu0 %2772  ;;  %4111 = vmatprep.subr.bf16.mxu1 %v11387_v6  ;;  %4010 = vmatprep.subr.bf16.mxu0 %v11390_v57  ;;  %v11403_v6 = vld [vmem:[#allocation6 + $0x2a8] ss:$16 sps:$4 sm:$0xff]  }
 0x2d0   : > { %v13280_v35 = vmax.f32 %v12969_v12, %v3083_v3 }
 0x2d1   : > { %2952 = vrot.lane.b32.xlu0 %v2810_v42, %s12204_s29  ;;  %2840 = vrot.lane.b32.xlu1 %v2811_v34, %s12202_s19 }
 0x2d2   : > { %3137 = vst.msk [vmem:[#allocation3 + $0x28] sm:$0xff] %vm2554_vm2, %v13280_v35  ;;  %4112 = vmatpush1.bf16.msra.mxu1 %v11385_v11  ;;  %4011 = vmatpush1.bf16.msra.mxu0 %v11388_v60  ;;  %v11402_v11 = vld [vmem:[#allocation6 + $0x2a4] ss:$16 sps:$4 sm:$0xff]  }
 0x2d3   : > { %v2505_v46 = vpop.permute.xlu1 %2504  ;;  %4113 = vmatprep.subr.bf16.mxu1 %v11393_v36  ;;  %4012 = vmatprep.subr.bf16.mxu0 %v11396_v21  ;;  %v11409_v36 = vld [vmem:[#allocation6 + $0x2c8] ss:$16 sps:$4 sm:$0xff]  }
 0x2d4   : > { %v13289_v12 = vmax.f32 %v12967_v10, %v2505_v46  ;;  %v11405_v46 = vld [vmem:[#allocation6 + $0x2ac] ss:$16 sps:$4 sm:$0xff]  }
 0x2d5   : > { %3009 = vrot.lane.b32.xlu0 %v2810_v42, %s12205_s14  ;;  %2897 = vrot.lane.b32.xlu1 %v2811_v34, %s12203_s25  ;;  %v11394_v42 = vld [vmem:[#allocation6 + $0x280] ss:$16 sps:$4 sm:$0xff]  }
 0x2d6   : > { %2558 = vst.msk [vmem:[#allocation3 + $0x40] sm:$0xff] %vm2554_vm2, %v13289_v12  ;;  %4114 = vmatpush1.bf16.msra.mxu1 %v11391_v50  ;;  %4013 = vmatpush1.bf16.msra.mxu0 %v11394_v42  ;;  %v11408_v50 = vld [vmem:[#allocation6 + $0x2c4] ss:$16 sps:$4 sm:$0xff]  }
 0x2d7   : > { %v3085_v0 = vpop.permute.xlu0 %3084  ;;  %v13295_v49 = vpop.permute.xlu1 %3348  ;;  %4115 = vmatprep.subr.bf16.mxu1 %v11399_v29  ;;  %4014 = vmatprep.subr.bf16.mxu0 %v11402_v11  ;;  %v11415_v29 = vld [vmem:[#allocation6 + $0x2e8] ss:$16 sps:$4 sm:$0xff]  }
 0x2d8   : > { %v13298_v10 = vmax.f32 %v12991_v55, %v3085_v0  ;;  %v11411_v0 = vld [vmem:[#allocation6 + $0x2cc] ss:$16 sps:$4 sm:$0xff]  }
 0x2d9   : > { %3164 = vrot.lane.b32.xlu0 %v13266_v32, %s12199_s21  ;;  %2954 = vrot.lane.b32.xlu1 %v2811_v34, %s12204_s29 }
 0x2da   : > { %3138 = vst.msk [vmem:[#allocation3 + $0x38] sm:$0xff] %vm2554_vm2, %v13298_v10  ;;  %4116 = vmatpush1.bf16.msra.mxu1 %v11397_v25  ;;  %4015 = vmatpush1.bf16.msra.mxu0 %v11400_v53  ;;  %v11414_v25 = vld [vmem:[#allocation6 + $0x2e4] ss:$16 sps:$4 sm:$0xff]  }
 0x2db   : > { %v13305_v3 = vpop.permute.xlu1 %2774  ;;  %v2507_v4 = vpop.permute.xlu0 %2506  ;;  %4117 = vmatprep.subr.bf16.mxu1 %v11405_v46  ;;  %4016 = vmatprep.subr.bf16.mxu0 %v11408_v50  ;;  %v11418_v46 = vld [vmem:[#allocation6 + $0x300] ss:$16 sps:$4 sm:$0xff]  }
 0x2dc   : > { %v13308_v55 = vmax.f32 %v12989_v52, %v2507_v4  ;;  %v11417_v4 = vld [vmem:[#allocation6 + $0x2ec] ss:$16 sps:$4 sm:$0xff]  }
 0x2dd   : > { %3220 = vrot.lane.b32.xlu0 %v13266_v32, %s12200_s23  ;;  %3011 = vrot.lane.b32.xlu1 %v2811_v34, %s12205_s14  ;;  %v11406_v34 = vld [vmem:[#allocation6 + $0x2c0] ss:$16 sps:$4 sm:$0xff]  }
 0x2de   : > { %2559 = vst.msk [vmem:[#allocation3 + $0x50] sm:$0xff] %vm2554_vm2, %v13308_v55  ;;  %4118 = vmatpush1.bf16.msra.mxu1 %v11403_v6  ;;  %4017 = vmatpush1.bf16.msra.mxu0 %v11406_v34  ;;  %v12068_v6 = vld [vmem:[#allocation3] sm:$0xff]  ;;  %v11423_v34 = vld [vmem:[#allocation6 + $0x30c] ss:$16 sps:$4 sm:$0xff]  }
 0x2df   : > { %v3087_v60 = vpop.permute.xlu1 %3086  ;;  %v13315_v57 = vpop.permute.xlu0 %3350  ;;  %4119 = vmatprep.subr.bf16.mxu1 %v11411_v0  ;;  %4018 = vmatprep.subr.bf16.mxu0 %v11414_v25  ;;  %2481 = vst.msk [vmem:[#allocation3 + $0x8] sm:$0xff] %vm2480_vm3, %v12068_v6  ;;  %2483 = vst.msk [vmem:[#allocation3 + $0xf8] sm:$0xff] %vm2480_vm3, %v12068_v6  ;;  %v11429_v25 = vld [vmem:[#allocation6 + $0x32c] ss:$16 sps:$4 sm:$0xff]  }
 0x2e0   : > { %v13318_v52 = vmax.f32 %v13015_v37, %v3087_v60  ;;  %5538 = vst.msk [vmem:[#allocation4 + $0x8] sm:$0xff] %vm2480_vm3, %v12068_v6  ;;  %5540 = vst.msk [vmem:[#allocation4 + $0x88] sm:$0xff] %vm2480_vm3, %v12068_v6  ;;  %v11421_v60 = vld [vmem:[#allocation6 + $0x308] ss:$16 sps:$4 sm:$0xff]   ;;  %v11432_v6 = vld [vmem:[#allocation6 + $0x344] ss:$16 sps:$4 sm:$0xff]  }
 0x2e1   : > { %3276 = vrot.lane.b32.xlu0 %v13266_v32, %s12201_s27  ;;  %3166 = vrot.lane.b32.xlu1 %v13280_v35, %s12199_s21  ;;  %v11412_v32 = vld [vmem:[#allocation6 + $0x2e0] ss:$16 sps:$4 sm:$0xff]  }
 0x2e2   : > { %3139 = vst.msk [vmem:[#allocation3 + $0x48] sm:$0xff] %vm2554_vm2, %v13318_v52  ;;  %4120 = vmatpush1.bf16.msra.mxu1 %v11409_v36  ;;  %4019 = vmatpush1.bf16.msra.mxu0 %v11412_v32  ;;  %v11427_v32 = vld [vmem:[#allocation6 + $0x328] ss:$16 sps:$4 sm:$0xff]  }
 0x2e3   : > { %v13326_v42 = vpop.permute.xlu0 %2776  ;;  %v2509_v37 = vpop.permute.xlu1 %2508  ;;  %4121 = vmatprep.subr.bf16.mxu1 %v11417_v4 }
 0x2e4   : > { %v13329_v21 = vmax.f32 %v13013_v30, %v2509_v37  ;;  %v11426_v37 = vld [vmem:[#allocation6 + $0x324] ss:$16 sps:$4 sm:$0xff]  }
 0x2e5   : > { %2587 = vrot.lane.b32.xlu0 %v13263_v26, %s12199_s21  ;;  %3222 = vrot.lane.b32.xlu1 %v13280_v35, %s12200_s23 }
 0x2e6   : > { %2560 = vst.msk [vmem:[#allocation3 + $0x60] sm:$0xff] %vm2554_vm2, %v13329_v21  ;;  %4122 = vmatpush1.bf16.msra.mxu1 %v11415_v29 }
 0x2e7   : > { %v3089_v53 = vpop.permute.xlu0 %3088  ;;  %v13337_v11 = vpop.permute.xlu1 %3352  ;;  %4123 = vmatprep.subr.bf16.mxu1 %v11423_v34  ;;  %v11438_v34 = vld [vmem:[#allocation6 + $0x364] ss:$16 sps:$4 sm:$0xff]  }
 0x2e8   : > { %v13340_v30 = vmax.f32 %v13039_v22, %v3089_v53  ;;  %v11420_v22 = vld [vmem:[#allocation6 + $0x304] ss:$16 sps:$4 sm:$0xff]   ;;  %v11430_v53 = vld [vmem:[#allocation6 + $0x340] ss:$16 sps:$4 sm:$0xff]  }
 0x2e9   : > { %2644 = vrot.lane.b32.xlu0 %v13263_v26, %s12200_s23  ;;  %3278 = vrot.lane.b32.xlu1 %v13280_v35, %s12201_s27  ;;  %v11424_v35 = vld [vmem:[#allocation6 + $0x320] ss:$16 sps:$4 sm:$0xff]  }
 0x2ea   : > { %3140 = vst.msk [vmem:[#allocation3 + $0x58] sm:$0xff] %vm2554_vm2, %v13340_v30  ;;  %4020 = vmatprep.subr.bf16.mxu0 %v11420_v22  ;;  %4124 = vmatpush1.bf16.msra.mxu1 %v11421_v60  ;;  %v11436_v60 = vld [vmem:[#allocation6 + $0x360] ss:$16 sps:$4 sm:$0xff]  }
 0x2eb   : > { %v13352_v50 = vpop.permute.xlu1 %2778  ;;  %v2511_v36 = vpop.permute.xlu0 %2510  ;;  %4021 = vmatpush1.bf16.msra.mxu0 %v11418_v46  ;;  %4125 = vmatprep.subr.bf16.mxu1 %v11429_v25 }
 0x2ec   : > { %v13355_v0 = vmax.f32 %v13037_v54, %v2511_v36  ;;  %v3388_v54 = vmax.f32 %v12951_v41, %v13274_v38  ;;  %4022 = vmatprep.subr.bf16.mxu0 %v11426_v37  ;;  %v11433_v41 = vld [vmem:[#allocation6 + $0x348] ss:$16 sps:$4 sm:$0xff]   ;;  %v11435_v38 = vld [vmem:[#allocation6 + $0x34c] ss:$16 sps:$4 sm:$0xff]   ;;  %v2812_v37 = vmax.f32 %v12949_v39, %v13286_v48 }
 0x2ed   : > { %2701 = vrot.lane.b32.xlu0 %v13263_v26, %s12201_s27  ;;  %2589 = vrot.lane.b32.xlu1 %v13289_v12, %s12199_s21  ;;  %v11439_v36 = vld [vmem:[#allocation6 + $0x368] ss:$16 sps:$4 sm:$0xff]  }
 0x2ee   : > { %2561 = vst.msk [vmem:[#allocation3 + $0x70] sm:$0xff] %vm2554_vm2, %v13355_v0  ;;  %4126 = vmatpush1.bf16.msra.mxu1 %v11427_v32 }
 0x2ef   : > { %v3091_v29 = vpop.permute.xlu1 %3090  ;;  %v13365_v4 = vpop.permute.xlu0 %3354  ;;  %4023 = vmatpush1.bf16.msra.mxu0 %v11424_v35  ;;  %4127 = vmatprep.subr.bf16.mxu1 %v11435_v38  ;;  %v11441_v35 = vld [vmem:[#allocation6 + $0x36c] ss:$16 sps:$4 sm:$0xff]  }
 0x2f0   : > { %v13368_v26 = vmax.f32 %v13063_v19, %v3091_v29  ;;  %4024 = vmatprep.subr.bf16.mxu0 %v11432_v6 }
 0x2f1   : > { %3416 = vrot.lane.b32.xlu0 %v3388_v54, %s12202_s19  ;;  %2646 = vrot.lane.b32.xlu1 %v13289_v12, %s12200_s23 }
 0x2f2   : > { %3141 = vst.msk [vmem:[#allocation3 + $0x68] sm:$0xff] %vm2554_vm2, %v13368_v26  ;;  %4128 = vmatpush1.bf16.msra.mxu1 %v11433_v41 }
 0x2f3   : > { %v13375_v46 = vpop.permute.xlu0 %2780  ;;  %v2513_v22 = vpop.permute.xlu1 %2512  ;;  %4025 = vmatpush1.bf16.msra.mxu0 %v11430_v53  ;;  %4129 = vmatprep.subr.bf16.mxu1 %v11441_v35 }
 0x2f4   : > { %v13378_v19 = vmax.f32 %v13061_v45, %v2513_v22  ;;  %v3389_v45 = vmax.f32 %v12973_v16, %v13295_v49  ;;  %4026 = vmatprep.subr.bf16.mxu0 %v11438_v34 }
 0x2f5   : > { %3472 = vrot.lane.b32.xlu0 %v3388_v54, %s12203_s25  ;;  %2703 = vrot.lane.b32.xlu1 %v13289_v12, %s12201_s27 }
 0x2f6   : > { %2562 = vst.msk [vmem:[#allocation3 + $0x80] sm:$0xff] %vm2554_vm2, %v13378_v19  ;;  %4130 = vmatpush1.bf16.msra.mxu1 %v11439_v36 }
 0x2f7   : > { %v3093_v32 = vpop.permute.xlu0 %3092  ;;  %v13389_v25 = vpop.permute.xlu1 %3356  ;;  %4027 = vmatpush1.bf16.msra.mxu0 %v11436_v60 }
 0x2f8   : > { %v13392_v12 = vmax.f32 %v13087_v44, %v3093_v32  ;;  %v2813_v44 = vmax.f32 %v12971_v14, %v13305_v3 }
 0x2f9   : > { %2842 = vrot.lane.b32.xlu0 %v2812_v37, %s12202_s19  ;;  %3418 = vrot.lane.b32.xlu1 %v3389_v45, %s12202_s19 }
 0x2fa   : > { %3142 = vst.msk [vmem:[#allocation3 + $0x78] sm:$0xff] %vm2554_vm2, %v13392_v12 }
 0x2fb   : > { %v13398_v39 = vpop.permute.xlu1 %2782  ;;  %v2515_v16 = vpop.permute.xlu0 %2514 }
 0x2fc   : > { %v13401_v48 = vmax.f32 %v13085_v20, %v2515_v16 }
 0x2fd   : > { %2899 = vrot.lane.b32.xlu0 %v2812_v37, %s12203_s25  ;;  %3474 = vrot.lane.b32.xlu1 %v3389_v45, %s12203_s25 }
 0x2fe   : > { %2563 = vst.msk [vmem:[#allocation3 + $0x90] sm:$0xff] %vm2554_vm2, %v13401_v48 }
 0x2ff   : > { %v3095_v49 = vpop.permute.xlu1 %3094  ;;  %v13409_v54 = vpop.permute.xlu0 %3358 }
 0x300   : > { %v13412_v29 = vmax.f32 %v13111_v7, %v3095_v49 }
 0x301   : > { %2956 = vrot.lane.b32.xlu0 %v2812_v37, %s12204_s29  ;;  %2844 = vrot.lane.b32.xlu1 %v2813_v44, %s12202_s19 }
 0x302   : > { %3143 = vst.msk [vmem:[#allocation3 + $0x88] sm:$0xff] %vm2554_vm2, %v13412_v29 }
 0x303   : > { %v13418_v20 = vpop.permute.xlu0 %2784  ;;  %v2517_v53 = vpop.permute.xlu1 %2516 }
 0x304   : > { %v13421_v6 = vmax.f32 %v13109_v63, %v2517_v53 }
 0x305   : > { %3013 = vrot.lane.b32.xlu0 %v2812_v37, %s12205_s14  ;;  %2901 = vrot.lane.b32.xlu1 %v2813_v44, %s12203_s25 }
 0x306   : > { %2564 = vst.msk [vmem:[#allocation3 + $0xa0] sm:$0xff] %vm2554_vm2, %v13421_v6 }
 0x307   : > { %v3097_v14 = vpop.permute.xlu0 %3096  ;;  %v13427_v7 = vpop.permute.xlu1 %3360 }
 0x308   : > { %v13430_v3 = vmax.f32 %v13135_v47, %v3097_v14 }
 0x309   : > { %3168 = vrot.lane.b32.xlu0 %v13298_v10, %s12199_s21  ;;  %2958 = vrot.lane.b32.xlu1 %v2813_v44, %s12204_s29 }
 0x30a   : > { %3144 = vst.msk [vmem:[#allocation3 + $0x98] sm:$0xff] %vm2554_vm2, %v13430_v3 }
 0x30b   : > { %v13437_v63 = vpop.permute.xlu1 %2786  ;;  %v2519_v41 = vpop.permute.xlu0 %2518 }
 0x30c   : > { %v13440_v38 = vmax.f32 %v13133_v15, %v2519_v41 }
 0x30d   : > { %3224 = vrot.lane.b32.xlu0 %v13298_v10, %s12200_s23  ;;  %3015 = vrot.lane.b32.xlu1 %v2813_v44, %s12205_s14 }
 0x30e   : > { %2565 = vst.msk [vmem:[#allocation3 + $0xb0] sm:$0xff] %vm2554_vm2, %v13440_v38 }
 0x30f   : > { %v3099_v47 = vpop.permute.xlu1 %3098  ;;  %v13447_v22 = vpop.permute.xlu0 %3362 }
 0x310   : > { %v13450_v60 = vmax.f32 %v13159_v1, %v3099_v47 }
 0x311   : > { %3280 = vrot.lane.b32.xlu0 %v13298_v10, %s12201_s27  ;;  %3170 = vrot.lane.b32.xlu1 %v13318_v52, %s12199_s21 }
 0x312   : > { %3145 = vst.msk [vmem:[#allocation3 + $0xa8] sm:$0xff] %vm2554_vm2, %v13450_v60 }
 0x313   : > { %v13458_v15 = vpop.permute.xlu0 %2788  ;;  %v2521_v34 = vpop.permute.xlu1 %2520 }
 0x314   : > { %v13461_v36 = vmax.f32 %v13157_v33, %v2521_v34 }
 0x315   : > { %2591 = vrot.lane.b32.xlu0 %v13308_v55, %s12199_s21  ;;  %3226 = vrot.lane.b32.xlu1 %v13318_v52, %s12200_s23 }
 0x316   : > { %2566 = vst.msk [vmem:[#allocation3 + $0xc0] sm:$0xff] %vm2554_vm2, %v13461_v36 }
 0x317   : > { %v3101_v1 = vpop.permute.xlu0 %3100  ;;  %v13469_v10 = vpop.permute.xlu1 %3364 }
 0x318   : > { %v13472_v35 = vmax.f32 %v13183_v18, %v3101_v1  ;;  %v3390_v18 = vmax.f32 %v12995_v59, %v13315_v57  ;;  %v2814_v59 = vmax.f32 %v12993_v56, %v13326_v42 }
 0x319   : > { %2648 = vrot.lane.b32.xlu0 %v13308_v55, %s12200_s23  ;;  %3282 = vrot.lane.b32.xlu1 %v13318_v52, %s12201_s27 }
 0x31a   : > { %3146 = vst.msk [vmem:[#allocation3 + $0xb8] sm:$0xff] %vm2554_vm2, %v13472_v35 }
 0x31b   : > { %v13480_v33 = vpop.permute.xlu1 %2790  ;;  %v2523_v37 = vpop.permute.xlu0 %2522 }
 0x31c   : > { %v13483_v45 = vmax.f32 %v13181_v51, %v2523_v37 }
 0x31d   : > { %2705 = vrot.lane.b32.xlu0 %v13308_v55, %s12201_s27  ;;  %2593 = vrot.lane.b32.xlu1 %v13329_v21, %s12199_s21 }
 0x31e   : > { %2567 = vst.msk [vmem:[#allocation3 + $0xd0] sm:$0xff] %vm2554_vm2, %v13483_v45 }
 0x31f   : > { %v3103_v52 = vpop.permute.xlu1 %3102  ;;  %v13493_v32 = vpop.permute.xlu0 %3366 }
 0x320   : > { %v13496_v16 = vmax.f32 %v13209_v5, %v3103_v52  ;;  %v3391_v5 = vmax.f32 %v13019_v43, %v13337_v11 }
 0x321   : > { %3420 = vrot.lane.b32.xlu0 %v3390_v18, %s12202_s19  ;;  %2650 = vrot.lane.b32.xlu1 %v13329_v21, %s12200_s23 }
 0x322   : > { %3147 = vst.msk [vmem:[#allocation3 + $0xc8] sm:$0xff] %vm2554_vm2, %v13496_v16 }
 0x323   : > { %v13503_v51 = vpop.permute.xlu1 %3368  ;;  %v13505_v55 = vpop.permute.xlu0 %2792 }
 0x325   : > { %3476 = vrot.lane.b32.xlu0 %v3390_v18, %s12203_s25  ;;  %2707 = vrot.lane.b32.xlu1 %v13329_v21, %s12201_s27 }
 0x327   : > { %v3105_v57 = vpop.permute.xlu0 %3104  ;;  %v2525_v44 = vpop.permute.xlu1 %2524 }
 0x328   : > { %v13515_v49 = vmax.f32 %v13229_v27, %v3105_v57  ;;  %v13518_v53 = vmax.f32 %v13213_v17, %v2525_v44  ;;  %v2815_v17 = vmax.f32 %v13017_v40, %v13352_v50 }
 0x329   : > { %2846 = vrot.lane.b32.xlu0 %v2814_v59, %s12202_s19  ;;  %3422 = vrot.lane.b32.xlu1 %v3391_v5, %s12202_s19 }
 0x32a   : > { %2568 = vst.msk [vmem:[#allocation3 + $0xe0] sm:$0xff] %vm2554_vm2, %v13518_v53  ;;  %3148 = vst.msk [vmem:[#allocation3 + $0xd8] sm:$0xff] %vm2554_vm2, %v13515_v49 }
 0x32b   : > { %v13526_v56 = vpop.permute.xlu0 %3370  ;;  %v13528_v43 = vpop.permute.xlu1 %2794 }
 0x32d   : > { %2903 = vrot.lane.b32.xlu0 %v2814_v59, %s12203_s25  ;;  %3478 = vrot.lane.b32.xlu1 %v3391_v5, %s12203_s25  ;;  %v3392_v5 = vmax.f32 %v13043_v24, %v13365_v4  ;;  %v2816_v24 = vmax.f32 %v13041_v13, %v13375_v46  ;;  %v14812_v13 = vld [vmem:[#allocation19_spill] sm:$0xff] }
 0x32e   : > { %v2817_v46 = vmax.f32 %v14812_v13, %v13398_v39 }
 0x32f   : > { %v2584_v27 = vpop.permute.xlu0 %2583  ;;  %v3107_v42 = vpop.permute.xlu1 %3106 }
 0x330   : > { %2626 = vst.msk [vmem:[#allocation3 + $0x10] sm:$0xff] %vm2625_vm4, %v2584_v27  ;;  %v13536_v21 = vmax.f32 %v13247_v8, %v3107_v42 }
 0x331   : > { %2960 = vrot.lane.b32.xlu0 %v2814_v59, %s12204_s29  ;;  %2848 = vrot.lane.b32.xlu1 %v2815_v17, %s12202_s19 }
 0x332   : > { %3149 = vst.msk [vmem:[#allocation3 + $0xe8] sm:$0xff] %vm2554_vm2, %v13536_v21 }
 0x333   : > { %v2641_v11 = vpop.permute.xlu0 %2640  ;;  %v13542_v14 = vpop.permute.xlu1 %3372 }
 0x334   : > { %2683 = vst.msk [vmem:[#allocation3 + $0x10] sm:$0xff] %vm2682_vm5, %v2641_v11 }
 0x335   : > { %3017 = vrot.lane.b32.xlu0 %v2814_v59, %s12205_s14  ;;  %2905 = vrot.lane.b32.xlu1 %v2815_v17, %s12203_s25 }
 0x337   : > { %v2698_v40 = vpop.permute.xlu0 %2697  ;;  %v2586_v8 = vpop.permute.xlu1 %2585 }
 0x338   : > { %2740 = vst.msk [vmem:[#allocation3 + $0x10] sm:$0xff] %vm2739_vm6, %v2698_v40 }
 0x339   : > { %2627 = vst.msk [vmem:[#allocation3 + $0x20] sm:$0xff] %vm2625_vm4, %v2586_v8  ;;  %3172 = vrot.lane.b32.xlu0 %v13340_v30, %s12199_s21  ;;  %2962 = vrot.lane.b32.xlu1 %v2815_v17, %s12204_s29 }
 0x33b   : > { %v2839_v50 = vpop.permute.xlu0 %2838  ;;  %v2643_v41 = vpop.permute.xlu1 %2642 }
 0x33c   : > { %2881 = vst.msk [vmem:[#allocation3 + $0x10] sm:$0xff] %vm2880_vm7, %v2839_v50 }
 0x33d   : > { %2684 = vst.msk [vmem:[#allocation3 + $0x20] sm:$0xff] %vm2682_vm5, %v2643_v41  ;;  %3228 = vrot.lane.b32.xlu0 %v13340_v30, %s12200_s23  ;;  %3019 = vrot.lane.b32.xlu1 %v2815_v17, %s12205_s14 }
 0x33f   : > { %v2896_v47 = vpop.permute.xlu0 %2895  ;;  %v2700_v34 = vpop.permute.xlu1 %2699 }
 0x340   : > { %2938 = vst.msk [vmem:[#allocation3 + $0x10] sm:$0xff] %vm2937_vm8, %v2896_v47 }
 0x341   : > { %2741 = vst.msk [vmem:[#allocation3 + $0x20] sm:$0xff] %vm2739_vm6, %v2700_v34  ;;  %3284 = vrot.lane.b32.xlu0 %v13340_v30, %s12201_s27  ;;  %3174 = vrot.lane.b32.xlu1 %v13368_v26, %s12199_s21 }
 0x343   : > { %v2953_v1 = vpop.permute.xlu0 %2952  ;;  %v2841_v37 = vpop.permute.xlu1 %2840 }
 0x344   : > { %2995 = vst.msk [vmem:[#allocation3 + $0x10] sm:$0xff] %vm2994_vm9, %v2953_v1 }
 0x345   : > { %2882 = vst.msk [vmem:[#allocation3 + $0x20] sm:$0xff] %vm2880_vm7, %v2841_v37  ;;  %2595 = vrot.lane.b32.xlu0 %v13355_v0, %s12199_s21  ;;  %3230 = vrot.lane.b32.xlu1 %v13368_v26, %s12200_s23 }
 0x347   : > { %v3010_v18 = vpop.permute.xlu0 %3009  ;;  %v2898_v52 = vpop.permute.xlu1 %2897 }
 0x348   : > { %3052 = vst.msk [vmem:[#allocation3 + $0x10] sm:$0xff] %vm3051_vm10, %v3010_v18 }
 0x349   : > { %2939 = vst.msk [vmem:[#allocation3 + $0x20] sm:$0xff] %vm2937_vm8, %v2898_v52  ;;  %2652 = vrot.lane.b32.xlu0 %v13355_v0, %s12200_s23  ;;  %3286 = vrot.lane.b32.xlu1 %v13368_v26, %s12201_s27 }
 0x34b   : > { %v3165_v30 = vpop.permute.xlu0 %3164  ;;  %v2955_v59 = vpop.permute.xlu1 %2954 }
 0x34c   : > { %3206 = vst.msk [vmem:[#allocation3 + $0x18] sm:$0xff] %vm2625_vm4, %v3165_v30 }
 0x34d   : > { %2996 = vst.msk [vmem:[#allocation3 + $0x20] sm:$0xff] %vm2994_vm9, %v2955_v59  ;;  %2709 = vrot.lane.b32.xlu0 %v13355_v0, %s12201_s27  ;;  %2597 = vrot.lane.b32.xlu1 %v13378_v19, %s12199_s21  ;;  %v14811_v0 = vld [vmem:[#allocation20_spill] sm:$0xff] }
 0x34e   : > { %v3393_v4 = vmax.f32 %v14811_v0, %v13389_v25 }
 0x34f   : > { %v3221_v57 = vpop.permute.xlu0 %3220  ;;  %v3012_v44 = vpop.permute.xlu1 %3011 }
 0x350   : > { %3262 = vst.msk [vmem:[#allocation3 + $0x18] sm:$0xff] %vm2682_vm5, %v3221_v57 }
 0x351   : > { %3053 = vst.msk [vmem:[#allocation3 + $0x20] sm:$0xff] %vm3051_vm10, %v3012_v44  ;;  %3424 = vrot.lane.b32.xlu0 %v3392_v5, %s12202_s19  ;;  %2654 = vrot.lane.b32.xlu1 %v13378_v19, %s12200_s23 }
 0x353   : > { %v3277_v26 = vpop.permute.xlu0 %3276  ;;  %v3167_v17 = vpop.permute.xlu1 %3166 }
 0x354   : > { %3318 = vst.msk [vmem:[#allocation3 + $0x18] sm:$0xff] %vm2739_vm6, %v3277_v26  ;;  %v3530_v26 = vld [vmem:[#allocation3 + $0x10] sm:$0xff] }
 0x355   : > { %3207 = vst.msk [vmem:[#allocation3 + $0x28] sm:$0xff] %vm2625_vm4, %v3167_v17  ;;  %3480 = vrot.lane.b32.xlu0 %v3392_v5, %s12203_s25  ;;  %2711 = vrot.lane.b32.xlu1 %v13378_v19, %s12201_s27 }
 0x357   : > { %v2588_v27 = vpop.permute.xlu0 %2587  ;;  %v3223_v42 = vpop.permute.xlu1 %3222 }
 0x358   : > { %2628 = vst.msk [vmem:[#allocation3 + $0x30] sm:$0xff] %vm2625_vm4, %v2588_v27  ;;  %v3532_v30 = vld [vmem:[#allocation3 + $0x20] sm:$0xff] }
 0x359   : > { %3263 = vst.msk [vmem:[#allocation3 + $0x28] sm:$0xff] %vm2682_vm5, %v3223_v42  ;;  %2850 = vrot.lane.b32.xlu0 %v2816_v24, %s12202_s19  ;;  %3426 = vrot.lane.b32.xlu1 %v3393_v4, %s12202_s19  ;;  %v3628_v17 = vpack.c.bf16 %v3532_v30, %v3530_v26 }
 0x35b   : > { %v2645_v11 = vpop.permute.xlu0 %2644  ;;  %v3279_v40 = vpop.permute.xlu1 %3278 }
 0x35c   : > { %2685 = vst.msk [vmem:[#allocation3 + $0x30] sm:$0xff] %vm2682_vm5, %v2645_v11 }
 0x35d   : > { %3319 = vst.msk [vmem:[#allocation3 + $0x28] sm:$0xff] %vm2739_vm6, %v3279_v40  ;;  %2907 = vrot.lane.b32.xlu0 %v2816_v24, %s12203_s25  ;;  %3482 = vrot.lane.b32.xlu1 %v3393_v4, %s12203_s25 }
 0x35f   : > { %v2702_v19 = vpop.permute.xlu0 %2701  ;;  %v2590_v25 = vpop.permute.xlu1 %2589 }
 0x360   : > { %2742 = vst.msk [vmem:[#allocation3 + $0x30] sm:$0xff] %vm2739_vm6, %v2702_v19  ;;  %v14815_v19 = vld [vmem:[#allocation24_spill] sm:$0xff] }
 0x361   : > { %2629 = vst.msk [vmem:[#allocation3 + $0x40] sm:$0xff] %vm2625_vm4, %v2590_v25  ;;  %2964 = vrot.lane.b32.xlu0 %v2816_v24, %s12204_s29  ;;  %2852 = vrot.lane.b32.xlu1 %v2817_v46, %s12202_s19  ;;  %v3395_v25 = vmax.f32 %v14815_v19, %v13427_v7 }
 0x363   : > { %v3417_v8 = vpop.permute.xlu0 %3416  ;;  %v2647_v50 = vpop.permute.xlu1 %2646 }
 0x364   : > { %3458 = vst.msk [vmem:[#allocation3 + $0x18] sm:$0xff] %vm2880_vm7, %v3417_v8 }
 0x365   : > { %2686 = vst.msk [vmem:[#allocation3 + $0x40] sm:$0xff] %vm2682_vm5, %v2647_v50  ;;  %3021 = vrot.lane.b32.xlu0 %v2816_v24, %s12205_s14  ;;  %2909 = vrot.lane.b32.xlu1 %v2817_v46, %s12203_s25 }
 0x367   : > { %v3473_v39 = vpop.permute.xlu0 %3472  ;;  %v2704_v41 = vpop.permute.xlu1 %2703 }
 0x368   : > { %3514 = vst.msk [vmem:[#allocation3 + $0x18] sm:$0xff] %vm2937_vm8, %v3473_v39 }
 0x369   : > { %2743 = vst.msk [vmem:[#allocation3 + $0x40] sm:$0xff] %vm2739_vm6, %v2704_v41  ;;  %3176 = vrot.lane.b32.xlu0 %v13392_v12, %s12199_s21  ;;  %2966 = vrot.lane.b32.xlu1 %v2817_v46, %s12204_s29 }
 0x36b   : > { %v2843_v47 = vpop.permute.xlu0 %2842  ;;  %v3419_v34 = vpop.permute.xlu1 %3418 }
 0x36c   : > { %2883 = vst.msk [vmem:[#allocation3 + $0x30] sm:$0xff] %vm2880_vm7, %v2843_v47  ;;  %3459 = vst.msk [vmem:[#allocation3 + $0x28] sm:$0xff] %vm2880_vm7, %v3419_v34 }
 0x36d   : > { %3232 = vrot.lane.b32.xlu0 %v13392_v12, %s12200_s23  ;;  %3023 = vrot.lane.b32.xlu1 %v2817_v46, %s12205_s14 }
 0x36f   : > { %v2900_v1 = vpop.permute.xlu0 %2899  ;;  %v3475_v37 = vpop.permute.xlu1 %3474  ;;  %v3531_v57 = vld [vmem:[#allocation3 + $0x18] sm:$0xff] }
 0x370   : > { %2940 = vst.msk [vmem:[#allocation3 + $0x30] sm:$0xff] %vm2937_vm8, %v2900_v1  ;;  %3515 = vst.msk [vmem:[#allocation3 + $0x28] sm:$0xff] %vm2937_vm8, %v3475_v37 }
 0x371   : > { %3288 = vrot.lane.b32.xlu0 %v13392_v12, %s12201_s27  ;;  %3178 = vrot.lane.b32.xlu1 %v13412_v29, %s12199_s21 }
 0x373   : > { %v2957_v18 = vpop.permute.xlu0 %2956  ;;  %v2845_v52 = vpop.permute.xlu1 %2844 }
 0x374   : > { %2997 = vst.msk [vmem:[#allocation3 + $0x30] sm:$0xff] %vm2994_vm9, %v2957_v18 }
 0x375   : > { %2884 = vst.msk [vmem:[#allocation3 + $0x40] sm:$0xff] %vm2880_vm7, %v2845_v52  ;;  %2599 = vrot.lane.b32.xlu0 %v13401_v48, %s12199_s21  ;;  %3234 = vrot.lane.b32.xlu1 %v13412_v29, %s12200_s23 }
 0x377   : > { %v3014_v59 = vpop.permute.xlu0 %3013  ;;  %v2902_v5 = vpop.permute.xlu1 %2901  ;;  %v13637_v12 = vld [vmem:[#allocation3 + $0x28] sm:$0xff] }
 0x378   : > { %3054 = vst.msk [vmem:[#allocation3 + $0x30] sm:$0xff] %vm3051_vm10, %v3014_v59  ;;  %v3629_v44 = vpack.c.bf16 %v13637_v12, %v3531_v57 }
 0x379   : > { %2941 = vst.msk [vmem:[#allocation3 + $0x40] sm:$0xff] %vm2937_vm8, %v2902_v5  ;;  %2656 = vrot.lane.b32.xlu0 %v13401_v48, %s12200_s23  ;;  %3290 = vrot.lane.b32.xlu1 %v13412_v29, %s12201_s27  ;;  %v14813_v29 = vld [vmem:[#allocation22_spill] sm:$0xff] }
 0x37a   : > { %10120 = vmatprep.mubr.msk.bf16.mxu0 %vm2480_vm3, %v3629_v44  ;;  %10127 = vmatprep.mubr.msk.bf16.mxu1 %vm2480_vm3, %v3629_v44  ;;  %v3394_v4 = vmax.f32 %v14813_v29, %v13409_v54  ;;  %v14814_v54 = vld [vmem:[#allocation21_spill] sm:$0xff] }
 0x37b   : > { %v3169_v24 = vpop.permute.xlu0 %3168  ;;  %4033 = vmatmul.mubr.bf16.vlgmr.msra.gmra.mrb[56].mxu0 %v3628_v17  ;;  %4136 = vmatmul.mubr.bf16.vlgmr.msra.gmra.mrb[60].mxu1 %v3628_v17  ;;  %v2959_v0 = vpop.permute.xlu1 %2958  ;;  %v2818_v46 = vmax.f32 %v14814_v54, %v13418_v20  ;;  %v14816_v20 = vld [vmem:[#allocation23_spill] sm:$0xff] }
 0x37c   : > { %3208 = vst.msk [vmem:[#allocation3 + $0x38] sm:$0xff] %vm2625_vm4, %v3169_v24 }
 0x37d   : > { %2998 = vst.msk [vmem:[#allocation3 + $0x40] sm:$0xff] %vm2994_vm9, %v2959_v0  ;;  %2713 = vrot.lane.b32.xlu0 %v13401_v48, %s12201_s27  ;;  %2601 = vrot.lane.b32.xlu1 %v13421_v6, %s12199_s21 }
 0x37f   : > { %v3225_v27 = vpop.permute.xlu0 %3224  ;;  %v3016_v42 = vpop.permute.xlu1 %3015  ;;  %v13656_v11 = vld [vmem:[#allocation3 + $0x30] sm:$0xff] }
 0x380   : > { %3264 = vst.msk [vmem:[#allocation3 + $0x38] sm:$0xff] %vm2682_vm5, %v3225_v27  ;;  %v13661_v40 = vpack.c.bf16 %v13656_v11, %v3532_v30 }
 0x381   : > { %3055 = vst.msk [vmem:[#allocation3 + $0x40] sm:$0xff] %vm3051_vm10, %v3016_v42  ;;  %3428 = vrot.lane.b32.xlu0 %v3394_v4, %s12202_s19  ;;  %2658 = vrot.lane.b32.xlu1 %v13421_v6, %s12200_s23 }
 0x383   : > { %v3281_v48 = vpop.permute.xlu0 %3280  ;;  %v3171_v13 = vpop.permute.xlu1 %3170 }
 0x384   : > { %3320 = vst.msk [vmem:[#allocation3 + $0x38] sm:$0xff] %vm2739_vm6, %v3281_v48 }
 0x385   : > { %3209 = vst.msk [vmem:[#allocation3 + $0x48] sm:$0xff] %vm2625_vm4, %v3171_v13  ;;  %3484 = vrot.lane.b32.xlu0 %v3394_v4, %s12203_s25  ;;  %2715 = vrot.lane.b32.xlu1 %v13421_v6, %s12201_s27  ;;  %v2819_v6 = vmax.f32 %v14816_v20, %v13437_v63 }
 0x387   : > { %v2592_v8 = vpop.permute.xlu0 %2591  ;;  %v3227_v50 = vpop.permute.xlu1 %3226 }
 0x388   : > { %2630 = vst.msk [vmem:[#allocation3 + $0x50] sm:$0xff] %vm2625_vm4, %v2592_v8 }
 0x389   : > { %3265 = vst.msk [vmem:[#allocation3 + $0x48] sm:$0xff] %vm2682_vm5, %v3227_v50  ;;  %2854 = vrot.lane.b32.xlu0 %v2818_v46, %s12202_s19  ;;  %3430 = vrot.lane.b32.xlu1 %v3395_v25, %s12202_s19 }
 0x38b   : > { %v2649_v39 = vpop.permute.xlu0 %2648  ;;  %v3283_v41 = vpop.permute.xlu1 %3282 }
 0x38c   : > { %2687 = vst.msk [vmem:[#allocation3 + $0x50] sm:$0xff] %vm2682_vm5, %v2649_v39 }
 0x38d   : > { %3321 = vst.msk [vmem:[#allocation3 + $0x48] sm:$0xff] %vm2739_vm6, %v3283_v41  ;;  %2911 = vrot.lane.b32.xlu0 %v2818_v46, %s12203_s25  ;;  %3486 = vrot.lane.b32.xlu1 %v3395_v25, %s12203_s25  ;;  %v3397_v25 = vmax.f32 %v13163_v28, %v13469_v10  ;;  %v2821_v28 = vmax.f32 %v13161_v9, %v13480_v33 }
 0x38f   : > { %v2706_v7 = vpop.permute.xlu0 %2705  ;;  %v2594_v47 = vpop.permute.xlu1 %2593 }
 0x390   : > { %2744 = vst.msk [vmem:[#allocation3 + $0x50] sm:$0xff] %vm2739_vm6, %v2706_v7 }
 0x391   : > { %2631 = vst.msk [vmem:[#allocation3 + $0x60] sm:$0xff] %vm2625_vm4, %v2594_v47  ;;  %2968 = vrot.lane.b32.xlu0 %v2818_v46, %s12204_s29  ;;  %2856 = vrot.lane.b32.xlu1 %v2819_v6, %s12202_s19 }
 0x393   : > { %v3421_v34 = vpop.permute.xlu0 %3420  ;;  %v2651_v1 = vpop.permute.xlu1 %2650 }
 0x394   : > { %3460 = vst.msk [vmem:[#allocation3 + $0x38] sm:$0xff] %vm2880_vm7, %v3421_v34 }
 0x395   : > { %2688 = vst.msk [vmem:[#allocation3 + $0x60] sm:$0xff] %vm2682_vm5, %v2651_v1  ;;  %3025 = vrot.lane.b32.xlu0 %v2818_v46, %s12205_s14  ;;  %2913 = vrot.lane.b32.xlu1 %v2819_v6, %s12203_s25 }
 0x397   : > { %v3477_v63 = vpop.permute.xlu0 %3476  ;;  %v2708_v37 = vpop.permute.xlu1 %2707 }
 0x398   : > { %3516 = vst.msk [vmem:[#allocation3 + $0x38] sm:$0xff] %vm2937_vm8, %v3477_v63 }
 0x399   : > { %2745 = vst.msk [vmem:[#allocation3 + $0x60] sm:$0xff] %vm2739_vm6, %v2708_v37  ;;  %3180 = vrot.lane.b32.xlu0 %v13430_v3, %s12199_s21  ;;  %2970 = vrot.lane.b32.xlu1 %v2819_v6, %s12204_s29 }
 0x39b   : > { %v2847_v18 = vpop.permute.xlu0 %2846  ;;  %v3423_v52 = vpop.permute.xlu1 %3422 }
 0x39c   : > { %2885 = vst.msk [vmem:[#allocation3 + $0x50] sm:$0xff] %vm2880_vm7, %v2847_v18  ;;  %3461 = vst.msk [vmem:[#allocation3 + $0x48] sm:$0xff] %vm2880_vm7, %v3423_v52 }
 0x39d   : > { %3236 = vrot.lane.b32.xlu0 %v13430_v3, %s12200_s23  ;;  %3027 = vrot.lane.b32.xlu1 %v2819_v6, %s12205_s14 }
 0x39f   : > { %v2904_v30 = vpop.permute.xlu0 %2903  ;;  %v3479_v59 = vpop.permute.xlu1 %3478  ;;  %v3535_v5 = vld [vmem:[#allocation3 + $0x38] sm:$0xff] }
 0x3a0   : > { %2942 = vst.msk [vmem:[#allocation3 + $0x50] sm:$0xff] %vm2937_vm8, %v2904_v30  ;;  %3517 = vst.msk [vmem:[#allocation3 + $0x48] sm:$0xff] %vm2937_vm8, %v3479_v59  ;;  %v13706_v57 = vpack.c.bf16 %v3535_v5, %v13637_v12  ;;  %v3536_v12 = vld [vmem:[#allocation3 + $0x40] sm:$0xff] }
 0x3a1   : > { %3292 = vrot.lane.b32.xlu0 %v13430_v3, %s12201_s27  ;;  %3182 = vrot.lane.b32.xlu1 %v13450_v60, %s12199_s21  ;;  %v3630_v29 = vpack.c.bf16 %v3536_v12, %v13656_v11 }
 0x3a3   : > { %v2961_v44 = vpop.permute.xlu0 %2960  ;;  %v2849_v26 = vpop.permute.xlu1 %2848 }
 0x3a4   : > { %2999 = vst.msk [vmem:[#allocation3 + $0x50] sm:$0xff] %vm2994_vm9, %v2961_v44 }
 0x3a5   : > { %2886 = vst.msk [vmem:[#allocation3 + $0x60] sm:$0xff] %vm2880_vm7, %v2849_v26  ;;  %2603 = vrot.lane.b32.xlu0 %v13440_v38, %s12199_s21  ;;  %3238 = vrot.lane.b32.xlu1 %v13450_v60, %s12200_s23  ;;  %v3399_v26 = vmax.f32 %v13211_v23, %v13503_v51  ;;  %v3398_v23 = vmax.f32 %v13187_v31, %v13493_v32  ;;  %v11448_v31 = vld [vmem:[#allocation6 + $0x20] ss:$16 sps:$4 sm:$0xff]   ;;  %v11451_v32 = vld [vmem:[#allocation6 + $0x28] ss:$16 sps:$4 sm:$0xff]  }
 0x3a7   : > { %v3018_v17 = vpop.permute.xlu0 %3017  ;;  %v2906_v24 = vpop.permute.xlu1 %2905  ;;  %v13718_v0 = vld [vmem:[#allocation3 + $0x48] sm:$0xff] }
 0x3a8   : > { %3056 = vst.msk [vmem:[#allocation3 + $0x50] sm:$0xff] %vm3051_vm10, %v3018_v17  ;;  %v3631_v3 = vpack.c.bf16 %v13718_v0, %v3535_v5 }
 0x3a9   : > { %2943 = vst.msk [vmem:[#allocation3 + $0x60] sm:$0xff] %vm2937_vm8, %v2906_v24  ;;  %2660 = vrot.lane.b32.xlu0 %v13440_v38, %s12200_s23  ;;  %3294 = vrot.lane.b32.xlu1 %v13450_v60, %s12201_s27  ;;  %v14817_v60 = vld [vmem:[#allocation26_spill] sm:$0xff]  ;;  %v11442_v24 = vld [vmem:[#allocation6] ss:$16 sps:$4 sm:$0xff]  }
 0x3aa   : > { %10121 = vmatprep.mubr.msk.bf16.mxu0 %vm2480_vm3, %v3631_v3  ;;  %10128 = vmatprep.mubr.msk.bf16.mxu1 %vm2480_vm3, %v3631_v3  ;;  %v3396_v42 = vmax.f32 %v14817_v60, %v13447_v22  ;;  %v14818_v22 = vld [vmem:[#allocation25_spill] sm:$0xff]  ;;  %v11447_v3 = vld [vmem:[#allocation6 + $0xc] ss:$16 sps:$4 sm:$0xff]  }
 0x3ab   : > { %v3173_v4 = vpop.permute.xlu0 %3172  ;;  %4043 = vmatmul.mubr.bf16.gmra.mrb[60].mxu0 %v3630_v29  ;;  %4146 = vmatmul.mubr.bf16.gmra.mrb[64].mxu1 %v3630_v29  ;;  %v2963_v27 = vpop.permute.xlu1 %2962  ;;  %v2820_v19 = vmax.f32 %v14818_v22, %v13458_v15  ;;  %v13837_v22 = vmax.f32 %v13185_v58, %v13505_v55  ;;  %v11465_v58 = vld [vmem:[#allocation6 + $0x6c] ss:$16 sps:$4 sm:$0xff]  }
 0x3ac   : > { %3210 = vst.msk [vmem:[#allocation3 + $0x58] sm:$0xff] %vm2625_vm4, %v3173_v4  ;;  %4610 = vmatprep.subr.bf16.mxu1 %v11447_v3  ;;  %v11495_v3 = vld [vmem:[#allocation6 + $0x10c] ss:$16 sps:$4 sm:$0xff]  }
 0x3ad   : > { %3000 = vst.msk [vmem:[#allocation3 + $0x60] sm:$0xff] %vm2994_vm9, %v2963_v27  ;;  %2717 = vrot.lane.b32.xlu0 %v13440_v38, %s12201_s27  ;;  %2605 = vrot.lane.b32.xlu1 %v13461_v36, %s12199_s21  ;;  %v11450_v27 = vld [vmem:[#allocation6 + $0x24] ss:$16 sps:$4 sm:$0xff]  }
 0x3af   : > { %v3229_v11 = vpop.permute.xlu0 %3228  ;;  %v3020_v48 = vpop.permute.xlu1 %3019  ;;  %v13738_v13 = vld [vmem:[#allocation3 + $0x50] sm:$0xff] }
 0x3b0   : > { %3266 = vst.msk [vmem:[#allocation3 + $0x58] sm:$0xff] %vm2682_vm5, %v3229_v11  ;;  %v13743_v54 = vpack.c.bf16 %v13738_v13, %v3536_v12 }
 0x3b1   : > { %3057 = vst.msk [vmem:[#allocation3 + $0x60] sm:$0xff] %vm3051_vm10, %v3020_v48  ;;  %3432 = vrot.lane.b32.xlu0 %v3396_v42, %s12202_s19  ;;  %2662 = vrot.lane.b32.xlu1 %v13461_v36, %s12200_s23  ;;  %v11454_v48 = vld [vmem:[#allocation6 + $0x40] ss:$16 sps:$4 sm:$0xff]  }
 0x3b3   : > { %v3285_v38 = vpop.permute.xlu0 %3284  ;;  %v3175_v46 = vpop.permute.xlu1 %3174 }
 0x3b4   : > { %3322 = vst.msk [vmem:[#allocation3 + $0x58] sm:$0xff] %vm2739_vm6, %v3285_v38  ;;  %v11457_v38 = vld [vmem:[#allocation6 + $0x48] ss:$16 sps:$4 sm:$0xff]  }
 0x3b5   : > { %3211 = vst.msk [vmem:[#allocation3 + $0x68] sm:$0xff] %vm2625_vm4, %v3175_v46  ;;  %3488 = vrot.lane.b32.xlu0 %v3396_v42, %s12203_s25  ;;  %2719 = vrot.lane.b32.xlu1 %v13461_v36, %s12201_s27  ;;  %v11459_v46 = vld [vmem:[#allocation6 + $0x4c] ss:$16 sps:$4 sm:$0xff]  }
 0x3b7   : > { %v2596_v8 = vpop.permute.xlu0 %2595  ;;  %v3231_v50 = vpop.permute.xlu1 %3230 }
 0x3b8   : > { %2632 = vst.msk [vmem:[#allocation3 + $0x70] sm:$0xff] %vm2625_vm4, %v2596_v8  ;;  %v3540_v52 = vld [vmem:[#allocation3 + $0x60] sm:$0xff] }
 0x3b9   : > { %3267 = vst.msk [vmem:[#allocation3 + $0x68] sm:$0xff] %vm2682_vm5, %v3231_v50  ;;  %2858 = vrot.lane.b32.xlu0 %v2820_v19, %s12202_s19  ;;  %3434 = vrot.lane.b32.xlu1 %v3397_v25, %s12202_s19  ;;  %v3632_v44 = vpack.c.bf16 %v3540_v52, %v13738_v13  ;;  %v11456_v13 = vld [vmem:[#allocation6 + $0x44] ss:$16 sps:$4 sm:$0xff]   ;;  %v11460_v8 = vld [vmem:[#allocation6 + $0x60] ss:$16 sps:$4 sm:$0xff]  }
 0x3ba   : > { %v11462_v50 = vld [vmem:[#allocation6 + $0x64] ss:$16 sps:$4 sm:$0xff]  }
 0x3bb   : > { %v2653_v39 = vpop.permute.xlu0 %2652  ;;  %v3287_v41 = vpop.permute.xlu1 %3286 }
 0x3bc   : > { %2689 = vst.msk [vmem:[#allocation3 + $0x70] sm:$0xff] %vm2682_vm5, %v2653_v39  ;;  %v11463_v39 = vld [vmem:[#allocation6 + $0x68] ss:$16 sps:$4 sm:$0xff]  }
 0x3bd   : > { %3323 = vst.msk [vmem:[#allocation3 + $0x68] sm:$0xff] %vm2739_vm6, %v3287_v41  ;;  %2915 = vrot.lane.b32.xlu0 %v2820_v19, %s12203_s25  ;;  %3490 = vrot.lane.b32.xlu1 %v3397_v25, %s12203_s25 }
 0x3bf   : > { %v2710_v15 = vpop.permute.xlu0 %2709  ;;  %v2598_v36 = vpop.permute.xlu1 %2597 }
 0x3c0   : > { %2746 = vst.msk [vmem:[#allocation3 + $0x70] sm:$0xff] %vm2739_vm6, %v2710_v15  ;;  %v11468_v15 = vld [vmem:[#allocation6 + $0x84] ss:$16 sps:$4 sm:$0xff]  }
 0x3c1   : > { %2633 = vst.msk [vmem:[#allocation3 + $0x80] sm:$0xff] %vm2625_vm4, %v2598_v36  ;;  %2972 = vrot.lane.b32.xlu0 %v2820_v19, %s12204_s29  ;;  %2860 = vrot.lane.b32.xlu1 %v2821_v28, %s12202_s19  ;;  %v11469_v36 = vld [vmem:[#allocation6 + $0x88] ss:$16 sps:$4 sm:$0xff]  }
 0x3c3   : > { %v3425_v10 = vpop.permute.xlu0 %3424  ;;  %v2655_v20 = vpop.permute.xlu1 %2654 }
 0x3c4   : > { %3462 = vst.msk [vmem:[#allocation3 + $0x58] sm:$0xff] %vm2880_vm7, %v3425_v10  ;;  %v11471_v10 = vld [vmem:[#allocation6 + $0x8c] ss:$16 sps:$4 sm:$0xff]  }
 0x3c5   : > { %2690 = vst.msk [vmem:[#allocation3 + $0x80] sm:$0xff] %vm2682_vm5, %v2655_v20  ;;  %3029 = vrot.lane.b32.xlu0 %v2820_v19, %s12205_s14  ;;  %2917 = vrot.lane.b32.xlu1 %v2821_v28, %s12203_s25  ;;  %v13853_v20 = vmax.f32 %v13220_v62, %v13528_v43  ;;  %v11477_v62 = vld [vmem:[#allocation6 + $0xac] ss:$16 sps:$4 sm:$0xff]  }
 0x3c7   : > { %v3481_v9 = vpop.permute.xlu0 %3480  ;;  %v2712_v33 = vpop.permute.xlu1 %2711 }
 0x3c8   : > { %3518 = vst.msk [vmem:[#allocation3 + $0x58] sm:$0xff] %vm2937_vm8, %v3481_v9 }
 0x3c9   : > { %2747 = vst.msk [vmem:[#allocation3 + $0x80] sm:$0xff] %vm2739_vm6, %v2712_v33  ;;  %3184 = vrot.lane.b32.xlu0 %v13472_v35, %s12199_s21  ;;  %2974 = vrot.lane.b32.xlu1 %v2821_v28, %s12204_s29 }
 0x3cb   : > { %v2851_v6 = vpop.permute.xlu0 %2850  ;;  %v3427_v7 = vpop.permute.xlu1 %3426 }
 0x3cc   : > { %2887 = vst.msk [vmem:[#allocation3 + $0x70] sm:$0xff] %vm2880_vm7, %v2851_v6  ;;  %3463 = vst.msk [vmem:[#allocation3 + $0x68] sm:$0xff] %vm2880_vm7, %v3427_v7  ;;  %v11472_v6 = vld [vmem:[#allocation6 + $0xa0] ss:$16 sps:$4 sm:$0xff]   ;;  %v11474_v7 = vld [vmem:[#allocation6 + $0xa4] ss:$16 sps:$4 sm:$0xff]  }
 0x3cd   : > { %3240 = vrot.lane.b32.xlu0 %v13472_v35, %s12200_s23  ;;  %3031 = vrot.lane.b32.xlu1 %v2821_v28, %s12205_s14  ;;  %v11466_v28 = vld [vmem:[#allocation6 + $0x80] ss:$16 sps:$4 sm:$0xff]  }
 0x3cf   : > { %v2908_v47 = vpop.permute.xlu0 %2907  ;;  %v3483_v34 = vpop.permute.xlu1 %3482  ;;  %v3539_v1 = vld [vmem:[#allocation3 + $0x58] sm:$0xff] }
 0x3d0   : > { %2944 = vst.msk [vmem:[#allocation3 + $0x70] sm:$0xff] %vm2937_vm8, %v2908_v47  ;;  %3519 = vst.msk [vmem:[#allocation3 + $0x68] sm:$0xff] %vm2937_vm8, %v3483_v34  ;;  %v13788_v63 = vpack.c.bf16 %v3539_v1, %v13718_v0  ;;  %v11444_v0 = vld [vmem:[#allocation6 + $0x4] ss:$16 sps:$4 sm:$0xff]   ;;  %v11475_v47 = vld [vmem:[#allocation6 + $0xa8] ss:$16 sps:$4 sm:$0xff]  }
 0x3d1   : > { %3296 = vrot.lane.b32.xlu0 %v13472_v35, %s12201_s27  ;;  %3186 = vrot.lane.b32.xlu1 %v13496_v16, %s12199_s21  ;;  %v11478_v34 = vld [vmem:[#allocation6 + $0xc0] ss:$16 sps:$4 sm:$0xff]  }
 0x3d2   : > { %4507 = vmatprep.subr.bf16.mxu0 %v11444_v0  ;;  %v11492_v0 = vld [vmem:[#allocation6 + $0x104] ss:$16 sps:$4 sm:$0xff]  }
 0x3d3   : > { %v2965_v37 = vpop.permute.xlu0 %2964  ;;  %v2853_v18 = vpop.permute.xlu1 %2852  ;;  %4508 = vmatpush1.bf16.msra.mxu0 %v11442_v24  ;;  %v11490_v24 = vld [vmem:[#allocation6 + $0x100] ss:$16 sps:$4 sm:$0xff]  }
 0x3d4   : > { %3001 = vst.msk [vmem:[#allocation3 + $0x70] sm:$0xff] %vm2994_vm9, %v2965_v37  ;;  %4509 = vmatprep.subr.bf16.mxu0 %v11450_v27  ;;  %v11481_v37 = vld [vmem:[#allocation6 + $0xc8] ss:$16 sps:$4 sm:$0xff]  }
 0x3d5   : > { %2888 = vst.msk [vmem:[#allocation3 + $0x80] sm:$0xff] %vm2880_vm7, %v2853_v18  ;;  %2607 = vrot.lane.b32.xlu0 %v13483_v45, %s12199_s21  ;;  %3242 = vrot.lane.b32.xlu1 %v13496_v16, %s12200_s23  ;;  %v11483_v18 = vld [vmem:[#allocation6 + $0xcc] ss:$16 sps:$4 sm:$0xff]  }
 0x3d7   : > { %v3022_v30 = vpop.permute.xlu0 %3021  ;;  %v2910_v59 = vpop.permute.xlu1 %2909  ;;  %v13800_v5 = vld [vmem:[#allocation3 + $0x68] sm:$0xff]  ;;  %4510 = vmatpush1.bf16.msra.mxu0 %v11448_v31 }
 0x3d8   : > { %3058 = vst.msk [vmem:[#allocation3 + $0x70] sm:$0xff] %vm3051_vm10, %v3022_v30  ;;  %v3633_v35 = vpack.c.bf16 %v13800_v5, %v3539_v1  ;;  %4511 = vmatprep.subr.bf16.mxu0 %v11456_v13  ;;  %v11480_v1 = vld [vmem:[#allocation6 + $0xc4] ss:$16 sps:$4 sm:$0xff]   ;;  %v11499_v31 = vld [vmem:[#allocation6 + $0x128] ss:$16 sps:$4 sm:$0xff]  }
 0x3d9   : > { %2945 = vst.msk [vmem:[#allocation3 + $0x80] sm:$0xff] %vm2937_vm8, %v2910_v59  ;;  %2664 = vrot.lane.b32.xlu0 %v13483_v45, %s12200_s23  ;;  %3298 = vrot.lane.b32.xlu1 %v13496_v16, %s12201_s27  ;;  %v11445_v16 = vld [vmem:[#allocation6 + $0x8] ss:$16 sps:$4 sm:$0xff]   ;;  %v11484_v59 = vld [vmem:[#allocation6 + $0xe0] ss:$16 sps:$4 sm:$0xff]  }
 0x3da   : > { %10122 = vmatprep.mubr.msk.bf16.mxu0 %vm2480_vm3, %v3633_v35  ;;  %10129 = vmatprep.mubr.msk.bf16.mxu1 %vm2480_vm3, %v3633_v35  ;;  %v11486_v35 = vld [vmem:[#allocation6 + $0xe4] ss:$16 sps:$4 sm:$0xff]   ;;  %v11507_v13 = vld [vmem:[#allocation6 + $0x14c] ss:$16 sps:$4 sm:$0xff]  }
 0x3db   : > { %v3177_v12 = vpop.permute.xlu0 %3176  ;;  %4053 = vmatmul.mubr.bf16.gmra.mrb[64].mxu0 %v3632_v44  ;;  %4156 = vmatmul.mubr.bf16.gmra.mrb[68].mxu1 %v3632_v44  ;;  %v2967_v17 = vpop.permute.xlu1 %2966  ;;  %v11487_v44 = vld [vmem:[#allocation6 + $0xe8] ss:$16 sps:$4 sm:$0xff]  }
 0x3dc   : > { %3212 = vst.msk [vmem:[#allocation3 + $0x78] sm:$0xff] %vm2625_vm4, %v3177_v12  ;;  %4611 = vmatpush1.bf16.msra.mxu1 %v11445_v16  ;;  %4512 = vmatpush1.bf16.msra.mxu0 %v11454_v48  ;;  %v11493_v16 = vld [vmem:[#allocation6 + $0x108] ss:$16 sps:$4 sm:$0xff]   ;;  %v11504_v48 = vld [vmem:[#allocation6 + $0x144] ss:$16 sps:$4 sm:$0xff]  }
 0x3dd   : > { %3002 = vst.msk [vmem:[#allocation3 + $0x80] sm:$0xff] %vm2994_vm9, %v2967_v17  ;;  %2721 = vrot.lane.b32.xlu0 %v13483_v45, %s12201_s27  ;;  %3438 = vrot.lane.b32.xlu1 %v3399_v26, %s12202_s19  ;;  %v11453_v45 = vld [vmem:[#allocation6 + $0x2c] ss:$16 sps:$4 sm:$0xff]  }
 0x3de   : > { %4612 = vmatprep.subr.bf16.mxu1 %v11453_v45  ;;  %4513 = vmatprep.subr.bf16.mxu0 %v11462_v50  ;;  %v11496_v45 = vld [vmem:[#allocation6 + $0x120] ss:$16 sps:$4 sm:$0xff]  }
 0x3df   : > { %v3233_v51 = vpop.permute.xlu0 %3232  ;;  %v3024_v29 = vpop.permute.xlu1 %3023  ;;  %v13821_v4 = vld [vmem:[#allocation3 + $0x70] sm:$0xff] }
 0x3e0   : > { %3268 = vst.msk [vmem:[#allocation3 + $0x78] sm:$0xff] %vm2682_vm5, %v3233_v51  ;;  %v13826_v60 = vpack.c.bf16 %v13821_v4, %v3540_v52  ;;  %4613 = vmatpush1.bf16.msra.mxu1 %v11451_v32  ;;  %4514 = vmatpush1.bf16.msra.mxu0 %v11460_v8 }
 0x3e1   : > { %3059 = vst.msk [vmem:[#allocation3 + $0x80] sm:$0xff] %vm3051_vm10, %v3024_v29  ;;  %3436 = vrot.lane.b32.xlu0 %v3398_v23, %s12202_s19  ;;  %3494 = vrot.lane.b32.xlu1 %v3399_v26, %s12203_s25  ;;  %v11489_v26 = vld [vmem:[#allocation6 + $0xec] ss:$16 sps:$4 sm:$0xff]  }
 0x3e2   : > { %4614 = vmatprep.subr.bf16.mxu1 %v11459_v46  ;;  %4515 = vmatprep.subr.bf16.mxu0 %v11468_v15  ;;  %v3401_v46 = vmax.f32 %v13249_v2, %v13542_v14  ;;  %v11508_v14 = vld [vmem:[#allocation6 + $0x160] ss:$16 sps:$4 sm:$0xff]   ;;  %v11517_v15 = vld [vmem:[#allocation6 + $0x188] ss:$16 sps:$4 sm:$0xff]  }
 0x3e3   : > { %v3289_v42 = vpop.permute.xlu0 %3288  ;;  %v3179_v11 = vpop.permute.xlu1 %3178 }
 0x3e4   : > { %3324 = vst.msk [vmem:[#allocation3 + $0x78] sm:$0xff] %vm2739_vm6, %v3289_v42  ;;  %4615 = vmatpush1.bf16.msra.mxu1 %v11457_v38  ;;  %4516 = vmatpush1.bf16.msra.mxu0 %v11466_v28  ;;  %v11519_v28 = vld [vmem:[#allocation6 + $0x18c] ss:$16 sps:$4 sm:$0xff]  }
 0x3e5   : > { %3213 = vst.msk [vmem:[#allocation3 + $0x88] sm:$0xff] %vm2625_vm4, %v3179_v11  ;;  %3492 = vrot.lane.b32.xlu0 %v3398_v23, %s12203_s25  ;;  %2609 = vrot.lane.b32.xlu1 %v13518_v53, %s12199_s21  ;;  %v3400_v23 = vmax.f32 %v13231_v61, %v13526_v56  ;;  %v11501_v61 = vld [vmem:[#allocation6 + $0x12c] ss:$16 sps:$4 sm:$0xff]   ;;  %v11502_v11 = vld [vmem:[#allocation6 + $0x140] ss:$16 sps:$4 sm:$0xff]  }
 0x3e6   : > { %4616 = vmatprep.subr.bf16.mxu1 %v11465_v58  ;;  %4517 = vmatprep.subr.bf16.mxu0 %v11474_v7  ;;  %v11511_v58 = vld [vmem:[#allocation6 + $0x168] ss:$16 sps:$4 sm:$0xff]  }
 0x3e7   : > { %v2600_v19 = vpop.permute.xlu0 %2599  ;;  %v3235_v25 = vpop.permute.xlu1 %3234 }
 0x3e8   : > { %2634 = vst.msk [vmem:[#allocation3 + $0x90] sm:$0xff] %vm2625_vm4, %v2600_v19  ;;  %4617 = vmatpush1.bf16.msra.mxu1 %v11463_v39  ;;  %4518 = vmatpush1.bf16.msra.mxu0 %v11472_v6  ;;  %v3544_v38 = vld [vmem:[#allocation3 + $0x80] sm:$0xff]  ;;  %v11513_v39 = vld [vmem:[#allocation6 + $0x16c] ss:$16 sps:$4 sm:$0xff]  }
 0x3e9   : > { %3269 = vst.msk [vmem:[#allocation3 + $0x88] sm:$0xff] %vm2682_vm5, %v3235_v25  ;;  %2862 = vrot.lane.b32.xlu0 %v13837_v22, %s12202_s19  ;;  %2666 = vrot.lane.b32.xlu1 %v13518_v53, %s12200_s23  ;;  %v3634_v2 = vpack.c.bf16 %v3544_v38, %v13821_v4  ;;  %v11514_v4 = vld [vmem:[#allocation6 + $0x180] ss:$16 sps:$4 sm:$0xff]   ;;  %v11525_v6 = vld [vmem:[#allocation6 + $0x1ac] ss:$16 sps:$4 sm:$0xff]  }
 0x3ea   : > { %4618 = vmatprep.subr.bf16.mxu1 %v11471_v10  ;;  %4519 = vmatprep.subr.bf16.mxu0 %v11480_v1  ;;  %v11531_v1 = vld [vmem:[#allocation6 + $0x38c] ss:$16 sps:$4 sm:$0xff]  }
 0x3eb   : > { %v2657_v55 = vpop.permute.xlu0 %2656  ;;  %v3291_v41 = vpop.permute.xlu1 %3290 }
 0x3ec   : > { %2691 = vst.msk [vmem:[#allocation3 + $0x90] sm:$0xff] %vm2682_vm5, %v2657_v55  ;;  %4619 = vmatpush1.bf16.msra.mxu1 %v11469_v36  ;;  %4520 = vmatpush1.bf16.msra.mxu0 %v11478_v34  ;;  %v11528_v34 = vld [vmem:[#allocation6 + $0x384] ss:$16 sps:$4 sm:$0xff]  }
 0x3ed   : > { %3325 = vst.msk [vmem:[#allocation3 + $0x88] sm:$0xff] %vm2739_vm6, %v3291_v41  ;;  %2919 = vrot.lane.b32.xlu0 %v13837_v22, %s12203_s25  ;;  %2723 = vrot.lane.b32.xlu1 %v13518_v53, %s12201_s27 }
 0x3ee   : > { %4620 = vmatprep.subr.bf16.mxu1 %v11477_v62  ;;  %4521 = vmatprep.subr.bf16.mxu0 %v11486_v35  ;;  %v11523_v62 = vld [vmem:[#allocation6 + $0x1a8] ss:$16 sps:$4 sm:$0xff]  }
 0x3ef   : > { %v2714_v9 = vpop.permute.xlu0 %2713  ;;  %v2602_v33 = vpop.permute.xlu1 %2601 }
 0x3f0   : > { %2748 = vst.msk [vmem:[#allocation3 + $0x90] sm:$0xff] %vm2739_vm6, %v2714_v9  ;;  %4621 = vmatpush1.bf16.msra.mxu1 %v11475_v47  ;;  %4522 = vmatpush1.bf16.msra.mxu0 %v11484_v59  ;;  %v11520_v47 = vld [vmem:[#allocation6 + $0x1a0] ss:$16 sps:$4 sm:$0xff]  }
 0x3f1   : > { %2635 = vst.msk [vmem:[#allocation3 + $0xa0] sm:$0xff] %vm2625_vm4, %v2602_v33  ;;  %2976 = vrot.lane.b32.xlu0 %v13837_v22, %s12204_s29  ;;  %2864 = vrot.lane.b32.xlu1 %v13853_v20, %s12202_s19  ;;  %v11522_v33 = vld [vmem:[#allocation6 + $0x1a4] ss:$16 sps:$4 sm:$0xff]  }
 0x3f2   : > { %4622 = vmatprep.subr.bf16.mxu1 %v11483_v18  ;;  %4523 = vmatprep.subr.bf16.mxu0 %v11492_v0 }
 0x3f3   : > { %v3429_v53 = vpop.permute.xlu0 %3428  ;;  %v2659_v43 = vpop.permute.xlu1 %2658 }
 0x3f4   : > { %3464 = vst.msk [vmem:[#allocation3 + $0x78] sm:$0xff] %vm2880_vm7, %v3429_v53  ;;  %4623 = vmatpush1.bf16.msra.mxu1 %v11481_v37  ;;  %4524 = vmatpush1.bf16.msra.mxu0 %v11490_v24 }
 0x3f5   : > { %2692 = vst.msk [vmem:[#allocation3 + $0xa0] sm:$0xff] %vm2682_vm5, %v2659_v43  ;;  %3188 = vrot.lane.b32.xlu0 %v13515_v49, %s12199_s21  ;;  %2921 = vrot.lane.b32.xlu1 %v13853_v20, %s12203_s25 }
 0x3f6   : > { %4624 = vmatprep.subr.bf16.mxu1 %v11489_v26 }
 0x3f7   : > { %v3485_v52 = vpop.permute.xlu0 %3484  ;;  %v2716_v30 = vpop.permute.xlu1 %2715 }
 0x3f8   : > { %3520 = vst.msk [vmem:[#allocation3 + $0x78] sm:$0xff] %vm2937_vm8, %v3485_v52  ;;  %4625 = vmatpush1.bf16.msra.mxu1 %v11487_v44 }
 0x3f9   : > { %2749 = vst.msk [vmem:[#allocation3 + $0xa0] sm:$0xff] %vm2739_vm6, %v2716_v30  ;;  %3244 = vrot.lane.b32.xlu0 %v13515_v49, %s12200_s23  ;;  %2978 = vrot.lane.b32.xlu1 %v13853_v20, %s12204_s29 }
 0x3fa   : > { %4626 = vmatprep.subr.bf16.mxu1 %v11495_v3 }
 0x3fb   : > { %v2855_v12 = vpop.permute.xlu0 %2854  ;;  %v3431_v17 = vpop.permute.xlu1 %3430 }
 0x3fc   : > { %2889 = vst.msk [vmem:[#allocation3 + $0x90] sm:$0xff] %vm2880_vm7, %v2855_v12  ;;  %3465 = vst.msk [vmem:[#allocation3 + $0x88] sm:$0xff] %vm2880_vm7, %v3431_v17  ;;  %4627 = vmatpush1.bf16.msra.mxu1 %v11493_v16 }
 0x3fd   : > { %3300 = vrot.lane.b32.xlu0 %v13515_v49, %s12201_s27  ;;  %3190 = vrot.lane.b32.xlu1 %v13536_v21, %s12199_s21  ;;  %v11498_v49 = vld [vmem:[#allocation6 + $0x124] ss:$16 sps:$4 sm:$0xff]  }
 0x3fe   : > { %4525 = vmatprep.subr.bf16.mxu0 %v11498_v49  ;;  %4628 = vmatprep.subr.bf16.mxu1 %v11501_v61 }
 0x3ff   : > { %v2912_v51 = vpop.permute.xlu0 %2911  ;;  %v3487_v29 = vpop.permute.xlu1 %3486  ;;  %v3543_v27 = vld [vmem:[#allocation3 + $0x78] sm:$0xff]  ;;  %4526 = vmatpush1.bf16.msra.mxu0 %v11496_v45 }
 0x400   : > { %2946 = vst.msk [vmem:[#allocation3 + $0x90] sm:$0xff] %vm2937_vm8, %v2912_v51  ;;  %3521 = vst.msk [vmem:[#allocation3 + $0x88] sm:$0xff] %vm2937_vm8, %v3487_v29  ;;  %v13884_v32 = vpack.c.bf16 %v3543_v27, %v13800_v5  ;;  %4629 = vmatpush1.bf16.msra.mxu1 %v11499_v31  ;;  %v11505_v5 = vld [vmem:[#allocation6 + $0x148] ss:$16 sps:$4 sm:$0xff]   ;;  %4527 = vmatprep.subr.bf16.mxu0 %v11504_v48 }
 0x401   : > { %3440 = vrot.lane.b32.xlu0 %v3400_v23, %s12202_s19  ;;  %3246 = vrot.lane.b32.xlu1 %v13536_v21, %s12200_s23 }
 0x402   : > { %4630 = vmatprep.subr.bf16.mxu1 %v11507_v13 }
 0x403   : > { %v2969_v56 = vpop.permute.xlu0 %2968  ;;  %v2857_v42 = vpop.permute.xlu1 %2856  ;;  %4528 = vmatpush1.bf16.msra.mxu0 %v11502_v11 }
 0x404   : > { %3003 = vst.msk [vmem:[#allocation3 + $0x90] sm:$0xff] %vm2994_vm9, %v2969_v56  ;;  %4631 = vmatpush1.bf16.msra.mxu1 %v11505_v5 }
 0x405   : > { %2890 = vst.msk [vmem:[#allocation3 + $0xa0] sm:$0xff] %vm2880_vm7, %v2857_v42  ;;  %3496 = vrot.lane.b32.xlu0 %v3400_v23, %s12203_s25  ;;  %3302 = vrot.lane.b32.xlu1 %v13536_v21, %s12201_s27  ;;  %v11510_v21 = vld [vmem:[#allocation6 + $0x164] ss:$16 sps:$4 sm:$0xff]  }
 0x406   : > { %4529 = vmatprep.subr.bf16.mxu0 %v11510_v21  ;;  %4632 = vmatprep.subr.bf16.mxu1 %v11513_v39 }
 0x407   : > { %v3026_v19 = vpop.permute.xlu0 %3025  ;;  %v2914_v25 = vpop.permute.xlu1 %2913  ;;  %v13896_v8 = vld [vmem:[#allocation3 + $0x88] sm:$0xff]  ;;  %4530 = vmatpush1.bf16.msra.mxu0 %v11508_v14 }
 0x408   : > { %3060 = vst.msk [vmem:[#allocation3 + $0x90] sm:$0xff] %vm3051_vm10, %v3026_v19  ;;  %v3635_v50 = vpack.c.bf16 %v13896_v8, %v3543_v27  ;;  %4633 = vmatpush1.bf16.msra.mxu1 %v11511_v58 }
 0x409   : > { %2947 = vst.msk [vmem:[#allocation3 + $0xa0] sm:$0xff] %vm2937_vm8, %v2914_v25  ;;  %3033 = vrot.lane.b32.xlu0 %v13837_v22, %s12205_s14  ;;  %3442 = vrot.lane.b32.xlu1 %v3401_v46, %s12202_s19  ;;  %v11516_v22 = vld [vmem:[#allocation6 + $0x184] ss:$16 sps:$4 sm:$0xff]  }
 0x40a   : > { %10123 = vmatprep.mubr.msk.bf16.mxu0 %vm2480_vm3, %v3635_v50  ;;  %10130 = vmatprep.mubr.msk.bf16.mxu1 %vm2480_vm3, %v3635_v50 }
 0x40b   : > { %v3181_v55 = vpop.permute.xlu0 %3180  ;;  %4063 = vmatmul.mubr.bf16.gmra.mrb[68].mxu0 %v3634_v2  ;;  %4166 = vmatmul.mubr.bf16.gmra.mrb[72].mxu1 %v3634_v2  ;;  %v2971_v41 = vpop.permute.xlu1 %2970 }
 0x40c   : > { %3214 = vst.msk [vmem:[#allocation3 + $0x98] sm:$0xff] %vm2625_vm4, %v3181_v55  ;;  %4531 = vmatprep.subr.bf16.mxu0 %v11516_v22  ;;  %4634 = vmatprep.subr.bf16.mxu1 %v11519_v28 }
 0x40d   : > { %3004 = vst.msk [vmem:[#allocation3 + $0xa0] sm:$0xff] %vm2994_vm9, %v2971_v41  ;;  %3498 = vrot.lane.b32.xlu1 %v3401_v46, %s12203_s25  ;;  %4532 = vmatpush1.bf16.msra.mxu0 %v11514_v4 }
 0x40e   : > { %4635 = vmatpush1.bf16.msra.mxu1 %v11517_v15  ;;  %4533 = vmatprep.subr.bf16.mxu0 %v11522_v33 }
 0x40f   : > { %v3237_v36 = vpop.permute.xlu0 %3236  ;;  %v3028_v10 = vpop.permute.xlu1 %3027  ;;  %v13910_v9 = vld [vmem:[#allocation3 + $0x90] sm:$0xff]  ;;  %4636 = vmatprep.subr.bf16.mxu1 %v11525_v6 }
 0x410   : > { %3270 = vst.msk [vmem:[#allocation3 + $0x98] sm:$0xff] %vm2682_vm5, %v3237_v36  ;;  %v13915_v7 = vpack.c.bf16 %v13910_v9, %v3544_v38 }
 0x411   : > { %3061 = vst.msk [vmem:[#allocation3 + $0xa0] sm:$0xff] %vm3051_vm10, %v3028_v10  ;;  %3035 = vrot.lane.b32.xlu1 %v13853_v20, %s12205_s14  ;;  %4534 = vmatpush1.bf16.msra.mxu0 %v11520_v47 }
 0x412   : > { %4637 = vmatpush1.bf16.msra.mxu1 %v11523_v62  ;;  %5113 = vmatprep.subr.bf16.mxu0 %v11528_v34 }
 0x413   : > { %v3293_v53 = vpop.permute.xlu0 %3292  ;;  %v3183_v43 = vpop.permute.xlu1 %3182  ;;  %5216 = vmatprep.subr.bf16.mxu1 %v11531_v1 }
 0x414   : > { %3326 = vst.msk [vmem:[#allocation3 + $0x98] sm:$0xff] %vm2739_vm6, %v3293_v53 }
 0x415   : > { %3215 = vst.msk [vmem:[#allocation3 + $0xa8] sm:$0xff] %vm2625_vm4, %v3183_v43 }
 0x417   : > { %v2604_v37 = vpop.permute.xlu0 %2603  ;;  %v3239_v18 = vpop.permute.xlu1 %3238 }
 0x418   : > { %2636 = vst.msk [vmem:[#allocation3 + $0xb0] sm:$0xff] %vm2625_vm4, %v2604_v37  ;;  %v3548_v27 = vld [vmem:[#allocation3 + $0xa0] sm:$0xff] }
 0x419   : > { %3271 = vst.msk [vmem:[#allocation3 + $0xa8] sm:$0xff] %vm2682_vm5, %v3239_v18  ;;  %v3636_v56 = vpack.c.bf16 %v3548_v27, %v13910_v9 }
 0x41b   : > { %v2661_v20 = vpop.permute.xlu0 %2660  ;;  %v3295_v52 = vpop.permute.xlu1 %3294 }
 0x41c   : > { %2693 = vst.msk [vmem:[#allocation3 + $0xb0] sm:$0xff] %vm2682_vm5, %v2661_v20 }
 0x41d   : > { %3327 = vst.msk [vmem:[#allocation3 + $0xa8] sm:$0xff] %vm2739_vm6, %v3295_v52 }
 0x41f   : > { %v2718_v30 = vpop.permute.xlu0 %2717  ;;  %v2606_v59 = vpop.permute.xlu1 %2605 }
 0x420   : > { %2750 = vst.msk [vmem:[#allocation3 + $0xb0] sm:$0xff] %vm2739_vm6, %v2718_v30 }
 0x421   : > { %2637 = vst.msk [vmem:[#allocation3 + $0xc0] sm:$0xff] %vm2625_vm4, %v2606_v59 }
 0x423   : > { %v3433_v35 = vpop.permute.xlu0 %3432  ;;  %v2663_v44 = vpop.permute.xlu1 %2662 }
 0x424   : > { %3466 = vst.msk [vmem:[#allocation3 + $0x98] sm:$0xff] %vm2880_vm7, %v3433_v35 }
 0x425   : > { %2694 = vst.msk [vmem:[#allocation3 + $0xc0] sm:$0xff] %vm2682_vm5, %v2663_v44 }
 0x427   : > { %v3489_v26 = vpop.permute.xlu0 %3488  ;;  %v2720_v12 = vpop.permute.xlu1 %2719 }
 0x428   : > { %3522 = vst.msk [vmem:[#allocation3 + $0x98] sm:$0xff] %vm2937_vm8, %v3489_v26 }
 0x429   : > { %2751 = vst.msk [vmem:[#allocation3 + $0xc0] sm:$0xff] %vm2739_vm6, %v2720_v12 }
 0x42b   : > { %v2859_v17 = vpop.permute.xlu0 %2858  ;;  %v3435_v24 = vpop.permute.xlu1 %3434 }
 0x42c   : > { %2891 = vst.msk [vmem:[#allocation3 + $0xb0] sm:$0xff] %vm2880_vm7, %v2859_v17  ;;  %3467 = vst.msk [vmem:[#allocation3 + $0xa8] sm:$0xff] %vm2880_vm7, %v3435_v24 }
 0x42f   : > { %v2916_v0 = vpop.permute.xlu0 %2915  ;;  %v3491_v16 = vpop.permute.xlu1 %3490  ;;  %v3547_v3 = vld [vmem:[#allocation3 + $0x98] sm:$0xff] }
 0x430   : > { %2948 = vst.msk [vmem:[#allocation3 + $0xb0] sm:$0xff] %vm2937_vm8, %v2916_v0  ;;  %3523 = vst.msk [vmem:[#allocation3 + $0xa8] sm:$0xff] %vm2937_vm8, %v3491_v16  ;;  %v13936_v23 = vpack.c.bf16 %v3547_v3, %v13896_v8 }
 0x433   : > { %v2973_v51 = vpop.permute.xlu0 %2972  ;;  %v2861_v29 = vpop.permute.xlu1 %2860 }
 0x434   : > { %3005 = vst.msk [vmem:[#allocation3 + $0xb0] sm:$0xff] %vm2994_vm9, %v2973_v51  ;;  %v3529_v51 = vld [vmem:[#allocation3 + $0x8] sm:$0xff] }
 0x435   : > { %2892 = vst.msk [vmem:[#allocation3 + $0xc0] sm:$0xff] %vm2880_vm7, %v2861_v29 }
 0x437   : > { %v3030_v45 = vpop.permute.xlu0 %3029  ;;  %v2918_v49 = vpop.permute.xlu1 %2917  ;;  %v3549_v31 = vld [vmem:[#allocation3 + $0xa8] sm:$0xff] }
 0x438   : > { %3062 = vst.msk [vmem:[#allocation3 + $0xb0] sm:$0xff] %vm3051_vm10, %v3030_v45  ;;  %v3637_v61 = vpack.c.bf16 %v3549_v31, %v3547_v3 }
 0x439   : > { %2949 = vst.msk [vmem:[#allocation3 + $0xc0] sm:$0xff] %vm2937_vm8, %v2918_v49  ;;  %v12069_v49 = vld [vmem:[#allocation3 + $0x18] sm:$0xff] }
 0x43a   : > { %10124 = vmatprep.mubr.msk.bf16.mxu0 %vm2480_vm3, %v3637_v61  ;;  %10131 = vmatprep.mubr.msk.bf16.mxu1 %vm2480_vm3, %v3637_v61  ;;  %v14017_v61 = vld [vmem:[#allocation3] sm:$0xff] }
 0x43b   : > { %v3185_v42 = vpop.permute.xlu0 %3184  ;;  %4073 = vmatmul.mubr.bf16.gmra.mrb[72].mxu0 %v3636_v56  ;;  %4176 = vmatmul.mubr.bf16.gmra.mrb[76].mxu1 %v3636_v56  ;;  %v2975_v11 = vpop.permute.xlu1 %2974  ;;  %v12071_v56 = vld [vmem:[#allocation3 + $0x10] sm:$0xff] }
 0x43c   : > { %3216 = vst.msk [vmem:[#allocation3 + $0xb8] sm:$0xff] %vm2625_vm4, %v3185_v42  ;;  %v3556_v42 = vpack.c.bf16 %v12071_v56, %v14017_v61 }
 0x43d   : > { %3006 = vst.msk [vmem:[#allocation3 + $0xc0] sm:$0xff] %vm2994_vm9, %v2975_v11  ;;  %v11526_v11 = vld [vmem:[#allocation6 + $0x380] ss:$16 sps:$4 sm:$0xff]  }
 0x43f   : > { %v3241_v48 = vpop.permute.xlu0 %3240  ;;  %v3032_v5 = vpop.permute.xlu1 %3031  ;;  %v13947_v13 = vld [vmem:[#allocation3 + $0xb0] sm:$0xff] }
 0x440   : > { %3272 = vst.msk [vmem:[#allocation3 + $0xb8] sm:$0xff] %vm2682_vm5, %v3241_v48  ;;  %v13952_v38 = vpack.c.bf16 %v13947_v13, %v3548_v27  ;;  %v11529_v48 = vld [vmem:[#allocation6 + $0x388] ss:$16 sps:$4 sm:$0xff]  }
 0x441   : > { %3063 = vst.msk [vmem:[#allocation3 + $0xc0] sm:$0xff] %vm3051_vm10, %v3032_v5  ;;  %v11534_v5 = vld [vmem:[#allocation6 + $0x3a4] ss:$16 sps:$4 sm:$0xff]  }
 0x443   : > { %v3297_v46 = vpop.permute.xlu0 %3296  ;;  %v3187_v19 = vpop.permute.xlu1 %3186 }
 0x444   : > { %3328 = vst.msk [vmem:[#allocation3 + $0xb8] sm:$0xff] %vm2739_vm6, %v3297_v46  ;;  %v11537_v46 = vld [vmem:[#allocation6 + $0x3ac] ss:$16 sps:$4 sm:$0xff]  }
 0x445   : > { %3217 = vst.msk [vmem:[#allocation3 + $0xc8] sm:$0xff] %vm2625_vm4, %v3187_v19  ;;  %v11532_v19 = vld [vmem:[#allocation6 + $0x3a0] ss:$16 sps:$4 sm:$0xff]  }
 0x447   : > { %v2608_v25 = vpop.permute.xlu0 %2607  ;;  %v3243_v8 = vpop.permute.xlu1 %3242 }
 0x448   : > { %2638 = vst.msk [vmem:[#allocation3 + $0xd0] sm:$0xff] %vm2625_vm4, %v2608_v25  ;;  %v13968_v4 = vld [vmem:[#allocation3 + $0xc0] sm:$0xff]  ;;  %v11535_v25 = vld [vmem:[#allocation6 + $0x3a8] ss:$16 sps:$4 sm:$0xff]  }
 0x449   : > { %3273 = vst.msk [vmem:[#allocation3 + $0xc8] sm:$0xff] %vm2682_vm5, %v3243_v8  ;;  %v3638_v62 = vpack.c.bf16 %v13968_v4, %v13947_v13  ;;  %v11540_v8 = vld [vmem:[#allocation6 + $0x3c4] ss:$16 sps:$4 sm:$0xff]  }
 0x44b   : > { %v2665_v50 = vpop.permute.xlu0 %2664  ;;  %v3299_v21 = vpop.permute.xlu1 %3298 }
 0x44c   : > { %2695 = vst.msk [vmem:[#allocation3 + $0xd0] sm:$0xff] %vm2682_vm5, %v2665_v50  ;;  %v11543_v50 = vld [vmem:[#allocation6 + $0x3cc] ss:$16 sps:$4 sm:$0xff]  }
 0x44d   : > { %3329 = vst.msk [vmem:[#allocation3 + $0xc8] sm:$0xff] %vm2739_vm6, %v3299_v21  ;;  %v11538_v21 = vld [vmem:[#allocation6 + $0x3c0] ss:$16 sps:$4 sm:$0xff]  }
 0x44f   : > { %v2722_v39 = vpop.permute.xlu0 %2721  ;;  %v3439_v2 = vpop.permute.xlu1 %3438 }
 0x450   : > { %2752 = vst.msk [vmem:[#allocation3 + $0xd0] sm:$0xff] %vm2739_vm6, %v2722_v39  ;;  %v11541_v39 = vld [vmem:[#allocation6 + $0x3c8] ss:$16 sps:$4 sm:$0xff]  }
 0x451   : > { %3469 = vst.msk [vmem:[#allocation3 + $0xc8] sm:$0xff] %vm2880_vm7, %v3439_v2  ;;  %v11546_v2 = vld [vmem:[#allocation6 + $0x3e4] ss:$16 sps:$4 sm:$0xff]  }
 0x453   : > { %v3437_v14 = vpop.permute.xlu0 %3436  ;;  %v3495_v58 = vpop.permute.xlu1 %3494 }
 0x454   : > { %3468 = vst.msk [vmem:[#allocation3 + $0xb8] sm:$0xff] %vm2880_vm7, %v3437_v14  ;;  %v11549_v14 = vld [vmem:[#allocation6 + $0x3ec] ss:$16 sps:$4 sm:$0xff]  }
 0x455   : > { %3525 = vst.msk [vmem:[#allocation3 + $0xc8] sm:$0xff] %vm2937_vm8, %v3495_v58  ;;  %v11547_v58 = vld [vmem:[#allocation6 + $0x3e8] ss:$16 sps:$4 sm:$0xff]  }
 0x457   : > { %v3493_v55 = vpop.permute.xlu0 %3492  ;;  %v2610_v41 = vpop.permute.xlu1 %2609 }
 0x458   : > { %3524 = vst.msk [vmem:[#allocation3 + $0xb8] sm:$0xff] %vm2937_vm8, %v3493_v55  ;;  %v11552_v55 = vld [vmem:[#allocation6 + $0x404] ss:$16 sps:$4 sm:$0xff]  }
 0x459   : > { %2639 = vst.msk [vmem:[#allocation3 + $0xe0] sm:$0xff] %vm2625_vm4, %v2610_v41  ;;  %v11555_v41 = vld [vmem:[#allocation6 + $0x40c] ss:$16 sps:$4 sm:$0xff]  }
 0x45b   : > { %v2863_v22 = vpop.permute.xlu0 %2862  ;;  %v2667_v28 = vpop.permute.xlu1 %2666 }
 0x45c   : > { %2893 = vst.msk [vmem:[#allocation3 + $0xd0] sm:$0xff] %vm2880_vm7, %v2863_v22  ;;  %v13972_v33 = vld [vmem:[#allocation3 + $0xc8] sm:$0xff]  ;;  %v11550_v22 = vld [vmem:[#allocation6 + $0x400] ss:$16 sps:$4 sm:$0xff]  }
 0x45d   : > { %2696 = vst.msk [vmem:[#allocation3 + $0xe0] sm:$0xff] %vm2682_vm5, %v2667_v28  ;;  %v11553_v28 = vld [vmem:[#allocation6 + $0x408] ss:$16 sps:$4 sm:$0xff]  }
 0x45f   : > { %v2920_v15 = vpop.permute.xlu0 %2919  ;;  %v2724_v36 = vpop.permute.xlu1 %2723  ;;  %v13970_v10 = vld [vmem:[#allocation3 + $0xb8] sm:$0xff] }
 0x460   : > { %2950 = vst.msk [vmem:[#allocation3 + $0xd0] sm:$0xff] %vm2937_vm8, %v2920_v15  ;;  %v3639_v6 = vpack.c.bf16 %v13972_v33, %v13970_v10  ;;  %v13979_v47 = vpack.c.bf16 %v13970_v10, %v3549_v31  ;;  %v3557_v31 = vpack.c.bf16 %v12069_v49, %v3529_v51  ;;  %v11561_v15 = vld [vmem:[#allocation6 + $0x42c] ss:$16 sps:$4 sm:$0xff]   ;;  %v11601_v49 = vld [vmem:[#allocation6 + $0x508] ss:$16 sps:$4 sm:$0xff]  }
 0x461   : > { %2753 = vst.msk [vmem:[#allocation3 + $0xe0] sm:$0xff] %vm2739_vm6, %v2724_v36  ;;  %v11559_v36 = vld [vmem:[#allocation6 + $0x428] ss:$16 sps:$4 sm:$0xff]  }
 0x462   : > { %10125 = vmatprep.mubr.msk.bf16.mxu0 %vm2480_vm3, %v3639_v6  ;;  %10132 = vmatprep.mubr.msk.bf16.mxu1 %vm2480_vm3, %v3639_v6  ;;  %v11564_v6 = vld [vmem:[#allocation6 + $0x444] ss:$16 sps:$4 sm:$0xff]   ;;  %v4716_v51 = vld [vmem:[#allocation3 + $0x38] sm:$0xff] }
 0x463   : > { %v2977_v53 = vpop.permute.xlu0 %2976  ;;  %4083 = vmatmul.mubr.bf16.gmra.mrb[76].mxu0 %v3638_v62  ;;  %4186 = vmatmul.mubr.bf16.gmra.mrb[80].mxu1 %v3638_v62  ;;  %v2865_v43 = vpop.permute.xlu1 %2864  ;;  %v11567_v62 = vld [vmem:[#allocation6 + $0x44c] ss:$16 sps:$4 sm:$0xff]  }
 0x464   : > { %3007 = vst.msk [vmem:[#allocation3 + $0xd0] sm:$0xff] %vm2994_vm9, %v2977_v53  ;;  %v11562_v53 = vld [vmem:[#allocation6 + $0x440] ss:$16 sps:$4 sm:$0xff]  }
 0x465   : > { %2894 = vst.msk [vmem:[#allocation3 + $0xe0] sm:$0xff] %vm2880_vm7, %v2865_v43  ;;  %v11565_v43 = vld [vmem:[#allocation6 + $0x448] ss:$16 sps:$4 sm:$0xff]  }
 0x467   : > { %v3189_v34 = vpop.permute.xlu0 %3188  ;;  %v2922_v1 = vpop.permute.xlu1 %2921 }
 0x468   : > { %3218 = vst.msk [vmem:[#allocation3 + $0xd8] sm:$0xff] %vm2625_vm4, %v3189_v34  ;;  %v11573_v34 = vld [vmem:[#allocation6 + $0x46c] ss:$16 sps:$4 sm:$0xff]  }
 0x469   : > { %2951 = vst.msk [vmem:[#allocation3 + $0xe0] sm:$0xff] %vm2937_vm8, %v2922_v1  ;;  %v11571_v1 = vld [vmem:[#allocation6 + $0x468] ss:$16 sps:$4 sm:$0xff]  }
 0x46b   : > { %v3245_v37 = vpop.permute.xlu0 %3244  ;;  %v2979_v18 = vpop.permute.xlu1 %2978 }
 0x46c   : > { %3274 = vst.msk [vmem:[#allocation3 + $0xd8] sm:$0xff] %vm2682_vm5, %v3245_v37  ;;  %v11576_v37 = vld [vmem:[#allocation6 + $0x484] ss:$16 sps:$4 sm:$0xff]  }
 0x46d   : > { %3008 = vst.msk [vmem:[#allocation3 + $0xe0] sm:$0xff] %vm2994_vm9, %v2979_v18  ;;  %v11579_v18 = vld [vmem:[#allocation6 + $0x48c] ss:$16 sps:$4 sm:$0xff]  }
 0x46f   : > { %v3301_v20 = vpop.permute.xlu0 %3300  ;;  %v3191_v52 = vpop.permute.xlu1 %3190 }
 0x470   : > { %3330 = vst.msk [vmem:[#allocation3 + $0xd8] sm:$0xff] %vm2739_vm6, %v3301_v20  ;;  %v11574_v20 = vld [vmem:[#allocation6 + $0x480] ss:$16 sps:$4 sm:$0xff]  }
 0x471   : > { %3219 = vst.msk [vmem:[#allocation3 + $0xe8] sm:$0xff] %vm2625_vm4, %v3191_v52  ;;  %v11577_v52 = vld [vmem:[#allocation6 + $0x488] ss:$16 sps:$4 sm:$0xff]  }
 0x473   : > { %v3441_v30 = vpop.permute.xlu0 %3440  ;;  %v3247_v59 = vpop.permute.xlu1 %3246 }
 0x474   : > { %3470 = vst.msk [vmem:[#allocation3 + $0xd8] sm:$0xff] %vm2880_vm7, %v3441_v30  ;;  %v11585_v30 = vld [vmem:[#allocation6 + $0x4ac] ss:$16 sps:$4 sm:$0xff]  }
 0x475   : > { %3275 = vst.msk [vmem:[#allocation3 + $0xe8] sm:$0xff] %vm2682_vm5, %v3247_v59  ;;  %v11583_v59 = vld [vmem:[#allocation6 + $0x4a8] ss:$16 sps:$4 sm:$0xff]  }
 0x477   : > { %v3497_v35 = vpop.permute.xlu0 %3496  ;;  %v3303_v44 = vpop.permute.xlu1 %3302 }
 0x478   : > { %3526 = vst.msk [vmem:[#allocation3 + $0xd8] sm:$0xff] %vm2937_vm8, %v3497_v35  ;;  %v11588_v35 = vld [vmem:[#allocation6 + $0x4c4] ss:$16 sps:$4 sm:$0xff]  }
 0x479   : > { %3331 = vst.msk [vmem:[#allocation3 + $0xe8] sm:$0xff] %vm2739_vm6, %v3303_v44  ;;  %v11591_v44 = vld [vmem:[#allocation6 + $0x4cc] ss:$16 sps:$4 sm:$0xff]  }
 0x47b   : > { %v3034_v26 = vpop.permute.xlu0 %3033  ;;  %v3443_v12 = vpop.permute.xlu1 %3442 }
 0x47c   : > { %3064 = vst.msk [vmem:[#allocation3 + $0xd0] sm:$0xff] %vm3051_vm10, %v3034_v26  ;;  %v11586_v26 = vld [vmem:[#allocation6 + $0x4c0] ss:$16 sps:$4 sm:$0xff]  }
 0x47d   : > { %3471 = vst.msk [vmem:[#allocation3 + $0xe8] sm:$0xff] %vm2880_vm7, %v3443_v12  ;;  %v11589_v12 = vld [vmem:[#allocation6 + $0x4c8] ss:$16 sps:$4 sm:$0xff]  }
 0x47f   : > { %v3499_v17 = vpop.permute.xlu1 %3498  ;;  %v14001_v0 = vld [vmem:[#allocation3 + $0xd8] sm:$0xff] }
 0x480   : > { %3527 = vst.msk [vmem:[#allocation3 + $0xe8] sm:$0xff] %vm2937_vm8, %v3499_v17  ;;  %v11594_v17 = vld [vmem:[#allocation6 + $0x4e4] ss:$16 sps:$4 sm:$0xff]  }
 0x483   : > { %v3036_v24 = vpop.permute.xlu1 %3035  ;;  %v14009_v29 = vld [vmem:[#allocation3 + $0xd0] sm:$0xff] }
 0x484   : > { %3065 = vst.msk [vmem:[#allocation3 + $0xe0] sm:$0xff] %vm3051_vm10, %v3036_v24  ;;  %v11592_v24 = vld [vmem:[#allocation6 + $0x4e0] ss:$16 sps:$4 sm:$0xff]  }
 0x487   : > { %v14003_v16 = vld [vmem:[#allocation3 + $0xe8] sm:$0xff] }
 0x488   : > { %v3641_v3 = vpack.c.bf16 %v14003_v16, %v14001_v0 }
 0x48a   : > { %10126 = vmatprep.mubr.msk.bf16.mxu0 %vm2480_vm3, %v3641_v3  ;;  %10133 = vmatprep.mubr.msk.bf16.mxu1 %vm2480_vm3, %v3641_v3  ;;  %v11595_v3 = vld [vmem:[#allocation6 + $0x4e8] ss:$16 sps:$4 sm:$0xff]  }
 0x48b   : > { %v14011_v27 = vld [vmem:[#allocation3 + $0xe0] sm:$0xff] }
 0x48c   : > { %v3640_v45 = vpack.c.bf16 %v14011_v27, %v14009_v29 }
 0x48e   : > { %4093 = vmatmul.mubr.bf16.gmra.mrb[80].mxu0 %v3640_v45  ;;  %4196 = vmatmul.mubr.bf16.gmra.mrb[84].mxu1 %v3640_v45  ;;  %v11598_v45 = vld [vmem:[#allocation6 + $0x500] ss:$16 sps:$4 sm:$0xff]  }
 0x48f   : > { %10190 = vmatprep.mubr.msk.bf16.mxu0 %vm2480_vm3, %v3557_v31  ;;  %10197 = vmatprep.mubr.msk.bf16.mxu1 %vm2480_vm3, %v3557_v31  ;;  %v4714_v31 = vld [vmem:[#allocation3 + $0x28] sm:$0xff] }
 0x490   : > { %v4742_v56 = vpack.c.bf16 %v4716_v51, %v4714_v31 }
 0x496   : > { %4540 = vmatmul.mubr.bf16.vlgmr.msra.gmra.mrb[56].mxu0 %v3556_v42  ;;  %4643 = vmatmul.mubr.bf16.vlgmr.msra.gmra.mrb[60].mxu1 %v3556_v42  ;;  %v11606_v42 = vld [vmem:[#allocation6 + $0x524] ss:$16 sps:$4 sm:$0xff]  }
 0x497   : > { %10191 = vmatprep.mubr.msk.bf16.mxu0 %vm2480_vm3, %v13706_v57  ;;  %10198 = vmatprep.mubr.msk.bf16.mxu1 %vm2480_vm3, %v13706_v57  ;;  %v11544_v57 = vld [vmem:[#allocation6 + $0x3e0] ss:$16 sps:$4 sm:$0xff]  }
 0x498   : > { %5114 = vmatpush1.bf16.msra.mxu0 %v11526_v11  ;;  %5217 = vmatpush1.bf16.msra.mxu1 %v11529_v48  ;;  %v11609_v11 = vld [vmem:[#allocation6 + $0x52c] ss:$16 sps:$4 sm:$0xff]   ;;  %v4715_v48 = vld [vmem:[#allocation3 + $0x30] sm:$0xff] }
 0x499   : > { %5115 = vmatprep.subr.bf16.mxu0 %v11534_v5  ;;  %5218 = vmatprep.subr.bf16.mxu1 %v11537_v46  ;;  %v4720_v5 = vld [vmem:[#allocation3 + $0x58] sm:$0xff]  ;;  %v4713_v46 = vld [vmem:[#allocation3 + $0x20] sm:$0xff] }
 0x49c   : > { %5116 = vmatpush1.bf16.msra.mxu0 %v11532_v19  ;;  %5219 = vmatpush1.bf16.msra.mxu1 %v11535_v25  ;;  %v4741_v19 = vpack.c.bf16 %v4715_v48, %v4713_v46  ;;  %v4718_v25 = vld [vmem:[#allocation3 + $0x48] sm:$0xff] }
 0x49d   : > { %5117 = vmatprep.subr.bf16.mxu0 %v11540_v8  ;;  %5220 = vmatprep.subr.bf16.mxu1 %v11543_v50  ;;  %v4744_v8 = vpack.c.bf16 %v4720_v5, %v4718_v25  ;;  %v4719_v50 = vld [vmem:[#allocation3 + $0x50] sm:$0xff] }
 0x49e   : > { %4550 = vmatmul.mubr.bf16.gmra.mrb[60].mxu0 %v13661_v40  ;;  %4653 = vmatmul.mubr.bf16.gmra.mrb[64].mxu1 %v13661_v40  ;;  %v11558_v40 = vld [vmem:[#allocation6 + $0x424] ss:$16 sps:$4 sm:$0xff]  }
 0x49f   : > { %10192 = vmatprep.mubr.msk.bf16.mxu0 %vm2480_vm3, %v13788_v63  ;;  %10199 = vmatprep.mubr.msk.bf16.mxu1 %vm2480_vm3, %v13788_v63  ;;  %v11556_v63 = vld [vmem:[#allocation6 + $0x420] ss:$16 sps:$4 sm:$0xff]  }
 0x4a0   : > { %5118 = vmatpush1.bf16.msra.mxu0 %v11538_v21  ;;  %5221 = vmatpush1.bf16.msra.mxu1 %v11541_v39  ;;  %v4724_v21 = vld [vmem:[#allocation3 + $0x78] sm:$0xff]  ;;  %v4717_v39 = vld [vmem:[#allocation3 + $0x40] sm:$0xff] }
 0x4a1   : > { %5119 = vmatprep.subr.bf16.mxu0 %v11546_v2  ;;  %5222 = vmatprep.subr.bf16.mxu1 %v11549_v14  ;;  %v4743_v2 = vpack.c.bf16 %v4719_v50, %v4717_v39  ;;  %v4722_v14 = vld [vmem:[#allocation3 + $0x68] sm:$0xff] }
 0x4a4   : > { %5120 = vmatpush1.bf16.msra.mxu0 %v11544_v57  ;;  %5223 = vmatpush1.bf16.msra.mxu1 %v11547_v58  ;;  %v4746_v57 = vpack.c.bf16 %v4724_v21, %v4722_v14  ;;  %v4723_v58 = vld [vmem:[#allocation3 + $0x70] sm:$0xff] }
 0x4a5   : > { %5121 = vmatprep.subr.bf16.mxu0 %v11552_v55  ;;  %5224 = vmatprep.subr.bf16.mxu1 %v11555_v41  ;;  %v4728_v55 = vld [vmem:[#allocation3 + $0x98] sm:$0xff]  ;;  %v4721_v41 = vld [vmem:[#allocation3 + $0x60] sm:$0xff] }
 0x4a6   : > { %4560 = vmatmul.mubr.bf16.gmra.mrb[64].mxu0 %v13743_v54  ;;  %4663 = vmatmul.mubr.bf16.gmra.mrb[68].mxu1 %v13743_v54  ;;  %v11570_v54 = vld [vmem:[#allocation6 + $0x464] ss:$16 sps:$4 sm:$0xff]  }
 0x4a7   : > { %10193 = vmatprep.mubr.msk.bf16.mxu0 %vm2480_vm3, %v13884_v32  ;;  %10200 = vmatprep.mubr.msk.bf16.mxu1 %vm2480_vm3, %v13884_v32  ;;  %v11568_v32 = vld [vmem:[#allocation6 + $0x460] ss:$16 sps:$4 sm:$0xff]  }
 0x4a8   : > { %5122 = vmatpush1.bf16.msra.mxu0 %v11550_v22  ;;  %5225 = vmatpush1.bf16.msra.mxu1 %v11553_v28  ;;  %v4745_v22 = vpack.c.bf16 %v4723_v58, %v4721_v41  ;;  %v4726_v28 = vld [vmem:[#allocation3 + $0x88] sm:$0xff] }
 0x4a9   : > { %5123 = vmatprep.subr.bf16.mxu0 %v11558_v40  ;;  %5226 = vmatprep.subr.bf16.mxu1 %v11561_v15  ;;  %v4748_v40 = vpack.c.bf16 %v4728_v55, %v4726_v28  ;;  %v4725_v15 = vld [vmem:[#allocation3 + $0x80] sm:$0xff] }
 0x4ac   : > { %5124 = vmatpush1.bf16.msra.mxu0 %v11556_v63  ;;  %5227 = vmatpush1.bf16.msra.mxu1 %v11559_v36  ;;  %v4747_v63 = vpack.c.bf16 %v13910_v9, %v4725_v15  ;;  %v4730_v36 = vld [vmem:[#allocation3 + $0xa8] sm:$0xff]  ;;  %v4740_v9 = vld [vmem:[#allocation3 + $0xf8] sm:$0xff] }
 0x4ad   : > { %5125 = vmatprep.subr.bf16.mxu0 %v11564_v6  ;;  %5228 = vmatprep.subr.bf16.mxu1 %v11567_v62  ;;  %v4750_v6 = vpack.c.bf16 %v13970_v10, %v4730_v36  ;;  %v4729_v62 = vld [vmem:[#allocation3 + $0xa0] sm:$0xff]  ;;  %v4754_v10 = vpack.c.bf16 %v4740_v9, %v14003_v16 }
 0x4ae   : > { %4570 = vmatmul.mubr.bf16.gmra.mrb[68].mxu0 %v13826_v60  ;;  %4673 = vmatmul.mubr.bf16.gmra.mrb[72].mxu1 %v13826_v60  ;;  %v11582_v60 = vld [vmem:[#allocation6 + $0x4a4] ss:$16 sps:$4 sm:$0xff]  }
 0x4af   : > { %10194 = vmatprep.mubr.msk.bf16.mxu0 %vm2480_vm3, %v13936_v23  ;;  %10201 = vmatprep.mubr.msk.bf16.mxu1 %vm2480_vm3, %v13936_v23  ;;  %v11580_v23 = vld [vmem:[#allocation6 + $0x4a0] ss:$16 sps:$4 sm:$0xff]  }
 0x4b0   : > { %5126 = vmatpush1.bf16.msra.mxu0 %v11562_v53  ;;  %5229 = vmatpush1.bf16.msra.mxu1 %v11565_v43  ;;  %v4749_v53 = vpack.c.bf16 %v13947_v13, %v4729_v62  ;;  %v4753_v13 = vpack.c.bf16 %v14017_v61, %v14011_v27  ;;  %v5375_v43 = vld [vmem:[%s14754_s4] sm:$0xf]  ;;  %v14820_v16 = vld [vmem:[#allocation17_spill] sm:$0xff] }
 0x4b1   : > { %5127 = vmatprep.subr.bf16.mxu0 %v11570_v54  ;;  %5230 = vmatprep.subr.bf16.mxu1 %v11573_v34  ;;  %v14819_v54 = vld [vmem:[#allocation15_spill] sm:$0xff] }
 0x4b2   : > { %v14092_v34 = vrot.slane %v5375_v43, %v14819_v54 }
 0x4b4   : > { %5128 = vmatpush1.bf16.msra.mxu0 %v11568_v32  ;;  %5231 = vmatpush1.bf16.msra.mxu1 %v11571_v1  ;;  %v14095_v32 = vrot.slane %v5375_v43, %v14820_v16  ;;  %v14821_v1 = vld [vmem:[#allocation16_spill] sm:$0xff] }
 0x4b5   : > { %5129 = vmatprep.subr.bf16.mxu0 %v11576_v37  ;;  %5232 = vmatprep.subr.bf16.mxu1 %v11579_v18  ;;  %v14098_v37 = vrot.slane %v5375_v43, %v14821_v1  ;;  %v14822_v18 = vld [vmem:[#allocation18_spill] sm:$0xff] }
 0x4b6   : > { %4580 = vmatmul.mubr.bf16.gmra.mrb[72].mxu0 %v13915_v7  ;;  %4683 = vmatmul.mubr.bf16.gmra.mrb[76].mxu1 %v13915_v7  ;;  %v14050_v7 = vpack.c.bf16 %v14001_v0, %v13972_v33  ;;  %v11600_v33 = vld [vmem:[#allocation6 + $0x504] ss:$16 sps:$4 sm:$0xff]   ;;  %v11603_v0 = vld [vmem:[#allocation6 + $0x50c] ss:$16 sps:$4 sm:$0xff]  }
 0x4b7   : > { %10195 = vmatprep.mubr.msk.bf16.mxu0 %vm2480_vm3, %v13979_v47  ;;  %10202 = vmatprep.mubr.msk.bf16.mxu1 %vm2480_vm3, %v13979_v47  ;;  %v11597_v47 = vld [vmem:[#allocation6 + $0x4ec] ss:$16 sps:$4 sm:$0xff]  }
 0x4b8   : > { %5130 = vmatpush1.bf16.msra.mxu0 %v11574_v20  ;;  %5233 = vmatpush1.bf16.msra.mxu1 %v11577_v52  ;;  %v14101_v20 = vrot.slane %v5375_v43, %v14822_v18 }
 0x4b9   : > { %5131 = vmatprep.subr.bf16.mxu0 %v11582_v60  ;;  %5234 = vmatprep.subr.bf16.mxu1 %v11585_v30 }
 0x4bc   : > { %5132 = vmatpush1.bf16.msra.mxu0 %v11580_v23  ;;  %5235 = vmatpush1.bf16.msra.mxu1 %v11583_v59 }
 0x4bd   : > { %5133 = vmatprep.subr.bf16.mxu0 %v11588_v35  ;;  %5236 = vmatprep.subr.bf16.mxu1 %v11591_v44 }
 0x4be   : > { %4590 = vmatmul.mubr.bf16.gmra.mrb[76].mxu0 %v13952_v38  ;;  %4693 = vmatmul.mubr.bf16.gmra.mrb[80].mxu1 %v13952_v38  ;;  %v14060_v38 = vpack.c.bf16 %v14009_v29, %v13968_v4  ;;  %v11604_v4 = vld [vmem:[#allocation6 + $0x520] ss:$16 sps:$4 sm:$0xff]   ;;  %v11607_v29 = vld [vmem:[#allocation6 + $0x528] ss:$16 sps:$4 sm:$0xff]  }
 0x4bf   : > { %10196 = vmatprep.mubr.msk.bf16.mxu0 %vm2480_vm3, %v14050_v7  ;;  %10203 = vmatprep.mubr.msk.bf16.mxu1 %vm2480_vm3, %v14050_v7 }
 0x4c0   : > { %5134 = vmatpush1.bf16.msra.mxu0 %v11586_v26  ;;  %5237 = vmatpush1.bf16.msra.mxu1 %v11589_v12 }
 0x4c1   : > { %5135 = vmatprep.subr.bf16.mxu0 %v11594_v17  ;;  %5238 = vmatprep.subr.bf16.mxu1 %v11597_v47 }
 0x4c4   : > { %5136 = vmatpush1.bf16.msra.mxu0 %v11592_v24  ;;  %5239 = vmatpush1.bf16.msra.mxu1 %v11595_v3 }
 0x4c5   : > { %5137 = vmatprep.subr.bf16.mxu0 %v11600_v33  ;;  %5240 = vmatprep.subr.bf16.mxu1 %v11603_v0 }
 0x4c6   : > { %4600 = vmatmul.mubr.bf16.gmra.mrb[80].mxu0 %v14060_v38  ;;  %4703 = vmatmul.mubr.bf16.gmra.mrb[84].mxu1 %v14060_v38 }
 0x4c7   : > { %10260 = vmatprep.mubr.msk.bf16.mxu0 %vm2480_vm3, %v4742_v56  ;;  %10267 = vmatprep.mubr.msk.bf16.mxu1 %vm2480_vm3, %v4742_v56 }
 0x4c8   : > { %5138 = vmatpush1.bf16.msra.mxu0 %v11598_v45  ;;  %5241 = vmatpush1.bf16.msra.mxu1 %v11601_v49 }
 0x4c9   : > { %5139 = vmatprep.subr.bf16.mxu0 %v11606_v42  ;;  %5242 = vmatprep.subr.bf16.mxu1 %v11609_v11 }
 0x4cc   : > { %5140 = vmatpush1.bf16.msra.mxu0 %v11604_v4  ;;  %5243 = vmatpush1.bf16.msra.mxu1 %v11607_v29 }
 0x4cf   : > { %5146 = vmatmul.mubr.bf16.vlgmr.msra.gmra.mrb[56].mxu0 %v4741_v19  ;;  %5249 = vmatmul.mubr.bf16.vlgmr.msra.gmra.mrb[60].mxu1 %v4741_v19 }
 0x4d0   : > { %10261 = vmatprep.mubr.msk.bf16.mxu0 %vm2480_vm3, %v4744_v8  ;;  %10268 = vmatprep.mubr.msk.bf16.mxu1 %vm2480_vm3, %v4744_v8 }
 0x4d7   : > { %5156 = vmatmul.mubr.bf16.gmra.mrb[60].mxu0 %v4743_v2  ;;  %5259 = vmatmul.mubr.bf16.gmra.mrb[64].mxu1 %v4743_v2 }
 0x4d8   : > { %10262 = vmatprep.mubr.msk.bf16.mxu0 %vm2480_vm3, %v4746_v57  ;;  %10269 = vmatprep.mubr.msk.bf16.mxu1 %vm2480_vm3, %v4746_v57 }
 0x4df   : > { %5166 = vmatmul.mubr.bf16.gmra.mrb[64].mxu0 %v4745_v22  ;;  %5269 = vmatmul.mubr.bf16.gmra.mrb[68].mxu1 %v4745_v22 }
 0x4e0   : > { %10263 = vmatprep.mubr.msk.bf16.mxu0 %vm2480_vm3, %v4748_v40  ;;  %10270 = vmatprep.mubr.msk.bf16.mxu1 %vm2480_vm3, %v4748_v40 }
 0x4e7   : > { %5176 = vmatmul.mubr.bf16.gmra.mrb[68].mxu0 %v4747_v63  ;;  %5279 = vmatmul.mubr.bf16.gmra.mrb[72].mxu1 %v4747_v63 }
 0x4e8   : > { %10264 = vmatprep.mubr.msk.bf16.mxu0 %vm2480_vm3, %v4750_v6  ;;  %10271 = vmatprep.mubr.msk.bf16.mxu1 %vm2480_vm3, %v4750_v6 }
 0x4ef   : > { %5186 = vmatmul.mubr.bf16.gmra.mrb[72].mxu0 %v4749_v53  ;;  %5289 = vmatmul.mubr.bf16.gmra.mrb[76].mxu1 %v4749_v53 }
 0x4f0   : > { %10265 = vmatprep.mubr.msk.bf16.mxu0 %vm2480_vm3, %v14050_v7  ;;  %10272 = vmatprep.mubr.msk.bf16.mxu1 %vm2480_vm3, %v14050_v7 }
 0x4f7   : > { %5196 = vmatmul.mubr.bf16.gmra.mrb[76].mxu0 %v14060_v38  ;;  %5299 = vmatmul.mubr.bf16.gmra.mrb[80].mxu1 %v14060_v38 }
 0x4f8   : > { %10266 = vmatprep.mubr.msk.bf16.mxu0 %vm2480_vm3, %v4754_v10  ;;  %10273 = vmatprep.mubr.msk.bf16.mxu1 %vm2480_vm3, %v4754_v10 }
 0x4ff   : > { %5206 = vmatmul.mubr.bf16.gmra.mrb[80].mxu0 %v4753_v13  ;;  %5309 = vmatmul.mubr.bf16.gmra.mrb[84].mxu1 %v4753_v13 }
 0x5a2   : > { %v5147_v52 = vpop.f32.mrb[56].mxu0  ;;  %v5250_v27 = vpop.f32.mrb[60].mxu1 }
 0x5a3   : > { %v5397_v61 = vadd.f32 %v14092_v34, %v5147_v52  ;;  %v5399_v60 = vadd.f32 %v14095_v32, %v5250_v27  ;;  %v5149_v30 = vpop.f32.mrb[57].mxu0  ;;  %v5252_v23 = vpop.f32.mrb[61].mxu1 }
 0x5a4   : > { %v5398_v59 = vadd.f32 %v14098_v37, %v5149_v30  ;;  %v5400_v35 = vadd.f32 %v14101_v20, %v5252_v23  ;;  %v5151_v44 = vpop.f32.mrb[58].mxu0  ;;  %v5254_v26 = vpop.f32.mrb[62].mxu1 }
 0x5a5   : > { %v5401_v12 = vadd.f32 %v14092_v34, %v5151_v44  ;;  %v5403_v7 = vadd.f32 %v14095_v32, %v5254_v26  ;;  %v5153_v17 = vpop.f32.mrb[59].mxu0  ;;  %v5256_v47 = vpop.f32.mrb[63].mxu1  ;;  %v5453_v33 = vmax.f32 %v5397_v61, 0.0  ;;  %v5455_v0 = vmax.f32 %v5399_v60, 0.0 }
 0x5a6   : > { %v5402_v24 = vadd.f32 %v14098_v37, %v5153_v17  ;;  %v5404_v3 = vadd.f32 %v14101_v20, %v5256_v47  ;;  %v5454_v45 = vmax.f32 %v5398_v59, 0.0  ;;  %v5456_v49 = vmax.f32 %v5400_v35, 0.0 }
 0x5a7   : > { %v5457_v51 = vmax.f32 %v5401_v12, 0.0  ;;  %v5459_v38 = vmax.f32 %v5403_v7, 0.0 }
 0x5a8   : > { %v5458_v31 = vmax.f32 %v5402_v24, 0.0  ;;  %v5460_v56 = vmax.f32 %v5404_v3, 0.0 }
 0x5a9   : > { %v14111_v42 = vmax.f32 %v5453_v33, %v5457_v51  ;;  %v14113_v11 = vmax.f32 %v5455_v0, %v5459_v38 }
 0x5aa   : > { %v14115_v4 = vmax.f32 %v5454_v45, %v5458_v31  ;;  %v14117_v29 = vmax.f32 %v5456_v49, %v5460_v56  ;;  %v5157_v48 = vpop.f32.mrb[60].mxu0  ;;  %v5260_v5 = vpop.f32.mrb[64].mxu1 }
 0x5ab   : > { %v5405_v46 = vadd.f32 %v14092_v34, %v5157_v48  ;;  %v5407_v19 = vadd.f32 %v14095_v32, %v5260_v5  ;;  %v5262_v25 = vpop.f32.mrb[65].mxu1  ;;  %5548 = vrot.lane.b32.xlu0 %v14111_v42, %s12200_s23  ;;  %v5159_v8 = vpop.f32.mrb[61].mxu0 }
 0x5ac   : > { %v5408_v50 = vadd.f32 %v14101_v20, %v5262_v25  ;;  %v5406_v21 = vadd.f32 %v14098_v37, %v5159_v8  ;;  %v5161_v39 = vpop.f32.mrb[62].mxu0  ;;  %v5264_v2 = vpop.f32.mrb[66].mxu1 }
 0x5ad   : > { %v5409_v14 = vadd.f32 %v14092_v34, %v5161_v39  ;;  %v5411_v57 = vadd.f32 %v14095_v32, %v5264_v2  ;;  %v5163_v58 = vpop.f32.mrb[63].mxu0  ;;  %v5266_v55 = vpop.f32.mrb[67].mxu1  ;;  %v5461_v28 = vmax.f32 %v5405_v46, 0.0  ;;  %v5463_v40 = vmax.f32 %v5407_v19, 0.0 }
 0x5ae   : > { %v5410_v41 = vadd.f32 %v14098_v37, %v5163_v58  ;;  %v5412_v22 = vadd.f32 %v14101_v20, %v5266_v55  ;;  %v5464_v36 = vmax.f32 %v5408_v50, 0.0  ;;  %v5462_v6 = vmax.f32 %v5406_v21, 0.0 }
 0x5af   : > { %v5465_v15 = vmax.f32 %v5409_v14, 0.0  ;;  %v5467_v63 = vmax.f32 %v5411_v57, 0.0  ;;  %5727 = vrot.lane.b32.xlu0 %v14113_v11, %s12200_s23 }
 0x5b0   : > { %v5466_v62 = vmax.f32 %v5410_v41, 0.0  ;;  %v5468_v53 = vmax.f32 %v5412_v22, 0.0 }
 0x5b1   : > { %v14131_v9 = vmax.f32 %v5461_v28, %v5465_v15  ;;  %v14133_v10 = vmax.f32 %v5463_v40, %v5467_v63 }
 0x5b2   : > { %v14135_v13 = vmax.f32 %v5462_v6, %v5466_v62  ;;  %v14137_v43 = vmax.f32 %v5464_v36, %v5468_v53  ;;  %v5167_v52 = vpop.f32.mrb[64].mxu0  ;;  %v5270_v27 = vpop.f32.mrb[68].mxu1 }
 0x5b3   : > { %v5413_v61 = vadd.f32 %v14092_v34, %v5167_v52  ;;  %v5415_v60 = vadd.f32 %v14095_v32, %v5270_v27  ;;  %v5272_v30 = vpop.f32.mrb[69].mxu1  ;;  %5627 = vrot.lane.b32.xlu0 %v14115_v4, %s12200_s23  ;;  %5550 = vrot.lane.b32.xlu1 %v14131_v9, %s12200_s23  ;;  %v5169_v23 = vpop.f32.mrb[65].mxu0 }
 0x5b4   : > { %v5416_v59 = vadd.f32 %v14101_v20, %v5272_v30  ;;  %v5414_v35 = vadd.f32 %v14098_v37, %v5169_v23  ;;  %v5171_v44 = vpop.f32.mrb[66].mxu0  ;;  %v5274_v26 = vpop.f32.mrb[70].mxu1 }
 0x5b5   : > { %v5417_v12 = vadd.f32 %v14092_v34, %v5171_v44  ;;  %v5419_v7 = vadd.f32 %v14095_v32, %v5274_v26  ;;  %v5173_v17 = vpop.f32.mrb[67].mxu0  ;;  %v5276_v47 = vpop.f32.mrb[71].mxu1  ;;  %v5469_v33 = vmax.f32 %v5413_v61, 0.0  ;;  %v5471_v0 = vmax.f32 %v5415_v60, 0.0 }
 0x5b6   : > { %v5418_v24 = vadd.f32 %v14098_v37, %v5173_v17  ;;  %v5420_v3 = vadd.f32 %v14101_v20, %v5276_v47  ;;  %v5472_v45 = vmax.f32 %v5416_v59, 0.0  ;;  %v5470_v49 = vmax.f32 %v5414_v35, 0.0 }
 0x5b7   : > { %v5473_v51 = vmax.f32 %v5417_v12, 0.0  ;;  %v5475_v38 = vmax.f32 %v5419_v7, 0.0  ;;  %5804 = vrot.lane.b32.xlu0 %v14117_v29, %s12200_s23  ;;  %5729 = vrot.lane.b32.xlu1 %v14133_v10, %s12200_s23 }
 0x5b8   : > { %v5474_v31 = vmax.f32 %v5418_v24, 0.0  ;;  %v5476_v56 = vmax.f32 %v5420_v3, 0.0 }
 0x5b9   : > { %v14155_v48 = vmax.f32 %v5469_v33, %v5473_v51  ;;  %v14157_v5 = vmax.f32 %v5471_v0, %v5475_v38 }
 0x5ba   : > { %v14159_v46 = vmax.f32 %v5470_v49, %v5474_v31  ;;  %v14161_v19 = vmax.f32 %v5472_v45, %v5476_v56  ;;  %v5177_v25 = vpop.f32.mrb[68].mxu0  ;;  %v5280_v8 = vpop.f32.mrb[72].mxu1 }
 0x5bb   : > { %v5421_v50 = vadd.f32 %v14092_v34, %v5177_v25  ;;  %v5423_v21 = vadd.f32 %v14095_v32, %v5280_v8  ;;  %v5282_v39 = vpop.f32.mrb[73].mxu1  ;;  %5629 = vrot.lane.b32.xlu1 %v14135_v13, %s12200_s23  ;;  %5552 = vrot.lane.b32.xlu0 %v14155_v48, %s12200_s23  ;;  %v5179_v2 = vpop.f32.mrb[69].mxu0 }
 0x5bc   : > { %v5424_v14 = vadd.f32 %v14101_v20, %v5282_v39  ;;  %v5422_v57 = vadd.f32 %v14098_v37, %v5179_v2  ;;  %v5181_v58 = vpop.f32.mrb[70].mxu0  ;;  %v5284_v55 = vpop.f32.mrb[74].mxu1 }
 0x5bd   : > { %v5425_v41 = vadd.f32 %v14092_v34, %v5181_v58  ;;  %v5427_v22 = vadd.f32 %v14095_v32, %v5284_v55  ;;  %v5183_v28 = vpop.f32.mrb[71].mxu0  ;;  %v5286_v40 = vpop.f32.mrb[75].mxu1  ;;  %v5477_v36 = vmax.f32 %v5421_v50, 0.0  ;;  %v5479_v6 = vmax.f32 %v5423_v21, 0.0 }
 0x5be   : > { %v5426_v15 = vadd.f32 %v14098_v37, %v5183_v28  ;;  %v5428_v63 = vadd.f32 %v14101_v20, %v5286_v40  ;;  %v5480_v52 = vmax.f32 %v5424_v14, 0.0  ;;  %v5478_v27 = vmax.f32 %v5422_v57, 0.0 }
 0x5bf   : > { %v5481_v62 = vmax.f32 %v5425_v41, 0.0  ;;  %v5483_v53 = vmax.f32 %v5427_v22, 0.0  ;;  %5806 = vrot.lane.b32.xlu1 %v14137_v43, %s12200_s23  ;;  %5731 = vrot.lane.b32.xlu0 %v14157_v5, %s12200_s23 }
 0x5c0   : > { %v5482_v61 = vmax.f32 %v5426_v15, 0.0  ;;  %v5484_v60 = vmax.f32 %v5428_v63, 0.0 }
 0x5c1   : > { %v14179_v30 = vmax.f32 %v5477_v36, %v5481_v62  ;;  %v14181_v23 = vmax.f32 %v5479_v6, %v5483_v53 }
 0x5c2   : > { %v14183_v59 = vmax.f32 %v5478_v27, %v5482_v61  ;;  %v14185_v35 = vmax.f32 %v5480_v52, %v5484_v60  ;;  %v5187_v44 = vpop.f32.mrb[72].mxu0  ;;  %v5290_v26 = vpop.f32.mrb[76].mxu1 }
 0x5c3   : > { %v5429_v12 = vadd.f32 %v14092_v34, %v5187_v44  ;;  %v5431_v7 = vadd.f32 %v14095_v32, %v5290_v26  ;;  %v5292_v17 = vpop.f32.mrb[77].mxu1  ;;  %5631 = vrot.lane.b32.xlu0 %v14159_v46, %s12200_s23  ;;  %5554 = vrot.lane.b32.xlu1 %v14179_v30, %s12200_s23  ;;  %v5189_v47 = vpop.f32.mrb[73].mxu0 }
 0x5c4   : > { %v5432_v24 = vadd.f32 %v14101_v20, %v5292_v17  ;;  %v5430_v3 = vadd.f32 %v14098_v37, %v5189_v47  ;;  %v5191_v33 = vpop.f32.mrb[74].mxu0  ;;  %v5294_v0 = vpop.f32.mrb[78].mxu1 }
 0x5c5   : > { %v5433_v51 = vadd.f32 %v14092_v34, %v5191_v33  ;;  %v5435_v38 = vadd.f32 %v14095_v32, %v5294_v0  ;;  %v5193_v45 = vpop.f32.mrb[75].mxu0  ;;  %v5296_v49 = vpop.f32.mrb[79].mxu1  ;;  %v5485_v25 = vmax.f32 %v5429_v12, 0.0  ;;  %v5487_v8 = vmax.f32 %v5431_v7, 0.0 }
 0x5c6   : > { %v5434_v31 = vadd.f32 %v14098_v37, %v5193_v45  ;;  %v5436_v56 = vadd.f32 %v14101_v20, %v5296_v49  ;;  %v5488_v39 = vmax.f32 %v5432_v24, 0.0  ;;  %v5486_v2 = vmax.f32 %v5430_v3, 0.0 }
 0x5c7   : > { %v5489_v50 = vmax.f32 %v5433_v51, 0.0  ;;  %v5491_v21 = vmax.f32 %v5435_v38, 0.0  ;;  %5808 = vrot.lane.b32.xlu0 %v14161_v19, %s12200_s23  ;;  %5733 = vrot.lane.b32.xlu1 %v14181_v23, %s12200_s23 }
 0x5c8   : > { %v5490_v14 = vmax.f32 %v5434_v31, 0.0  ;;  %v5492_v57 = vmax.f32 %v5436_v56, 0.0 }
 0x5c9   : > { %v14203_v58 = vmax.f32 %v5485_v25, %v5489_v50  ;;  %v14205_v55 = vmax.f32 %v5487_v8, %v5491_v21 }
 0x5ca   : > { %v14207_v41 = vmax.f32 %v5486_v2, %v5490_v14  ;;  %v14209_v22 = vmax.f32 %v5488_v39, %v5492_v57  ;;  %v5197_v28 = vpop.f32.mrb[76].mxu0  ;;  %v5300_v40 = vpop.f32.mrb[80].mxu1 }
 0x5cb   : > { %v5437_v15 = vadd.f32 %v14092_v34, %v5197_v28  ;;  %v5439_v63 = vadd.f32 %v14095_v32, %v5300_v40  ;;  %v5302_v36 = vpop.f32.mrb[81].mxu1  ;;  %5633 = vrot.lane.b32.xlu1 %v14183_v59, %s12200_s23  ;;  %5556 = vrot.lane.b32.xlu0 %v14203_v58, %s12200_s23  ;;  %v5199_v6 = vpop.f32.mrb[77].mxu0 }
 0x5cc   : > { %v5440_v62 = vadd.f32 %v14101_v20, %v5302_v36  ;;  %v5438_v53 = vadd.f32 %v14098_v37, %v5199_v6  ;;  %v5201_v52 = vpop.f32.mrb[78].mxu0  ;;  %v5304_v27 = vpop.f32.mrb[82].mxu1 }
 0x5cd   : > { %v5441_v61 = vadd.f32 %v14092_v34, %v5201_v52  ;;  %v5443_v60 = vadd.f32 %v14095_v32, %v5304_v27  ;;  %v5203_v44 = vpop.f32.mrb[79].mxu0  ;;  %v5306_v26 = vpop.f32.mrb[83].mxu1  ;;  %v5493_v17 = vmax.f32 %v5437_v15, 0.0  ;;  %v5495_v47 = vmax.f32 %v5439_v63, 0.0 }
 0x5ce   : > { %v5442_v12 = vadd.f32 %v14098_v37, %v5203_v44  ;;  %v5444_v7 = vadd.f32 %v14101_v20, %v5306_v26  ;;  %v5496_v33 = vmax.f32 %v5440_v62, 0.0  ;;  %v5494_v0 = vmax.f32 %v5438_v53, 0.0 }
 0x5cf   : > { %v5497_v24 = vmax.f32 %v5441_v61, 0.0  ;;  %v5499_v3 = vmax.f32 %v5443_v60, 0.0  ;;  %5810 = vrot.lane.b32.xlu1 %v14185_v35, %s12200_s23  ;;  %5735 = vrot.lane.b32.xlu0 %v14205_v55, %s12200_s23 }
 0x5d0   : > { %v5498_v51 = vmax.f32 %v5442_v12, 0.0  ;;  %v5500_v38 = vmax.f32 %v5444_v7, 0.0 }
 0x5d1   : > { %v14227_v45 = vmax.f32 %v5493_v17, %v5497_v24  ;;  %v14229_v49 = vmax.f32 %v5495_v47, %v5499_v3  ;;  %v11610_v17 = vld [vmem:[#allocation8 + $0x1c0] ss:$16 sps:$4 sm:$0xff]   ;;  %v11612_v47 = vld [vmem:[#allocation8 + $0x1c4] ss:$16 sps:$4 sm:$0xff]   ;;  %v11613_v24 = vld [vmem:[#allocation8 + $0x1c8] ss:$16 sps:$4 sm:$0xff]  }
 0x5d2   : > { %v14231_v31 = vmax.f32 %v5494_v0, %v5498_v51  ;;  %v14233_v56 = vmax.f32 %v5496_v33, %v5500_v38  ;;  %v5207_v25 = vpop.f32.mrb[80].mxu0  ;;  %v5310_v8 = vpop.f32.mrb[84].mxu1  ;;  %v11615_v3 = vld [vmem:[#allocation8 + $0x1cc] ss:$16 sps:$4 sm:$0xff]   ;;  %v11618_v33 = vld [vmem:[#allocation8 + $0x1e4] ss:$16 sps:$4 sm:$0xff]   ;;  %6304 = vmatprep.subr.bf16.mxu0 %v11612_v47 }
 0x5d3   : > { %v5445_v50 = vadd.f32 %v14092_v34, %v5207_v25  ;;  %v5447_v21 = vadd.f32 %v14095_v32, %v5310_v8  ;;  %v5312_v39 = vpop.f32.mrb[85].mxu1  ;;  %5635 = vrot.lane.b32.xlu0 %v14207_v41, %s12200_s23  ;;  %5558 = vrot.lane.b32.xlu1 %v14227_v45, %s12200_s23  ;;  %v5209_v2 = vpop.f32.mrb[81].mxu0  ;;  %v11621_v0 = vld [vmem:[#allocation8 + $0x1ec] ss:$16 sps:$4 sm:$0xff]   ;;  %v11616_v51 = vld [vmem:[#allocation8 + $0x1e0] ss:$16 sps:$4 sm:$0xff]  }
 0x5d4   : > { %v5448_v14 = vadd.f32 %v14101_v20, %v5312_v39  ;;  %v5446_v57 = vadd.f32 %v14098_v37, %v5209_v2  ;;  %v5211_v28 = vpop.f32.mrb[82].mxu0  ;;  %v5314_v40 = vpop.f32.mrb[86].mxu1  ;;  %6375 = vmatprep.subr.bf16.mxu1 %v11615_v3  ;;  %6305 = vmatpush1.bf16.msra.mxu0 %v11610_v17  ;;  %v11619_v38 = vld [vmem:[#allocation8 + $0x1e8] ss:$16 sps:$4 sm:$0xff]   ;;  %v11624_v25 = vld [vmem:[#allocation8 + $0x204] ss:$16 sps:$4 sm:$0xff]  }
 0x5d5   : > { %v5449_v15 = vadd.f32 %v14092_v34, %v5211_v28  ;;  %v5451_v63 = vadd.f32 %v14095_v32, %v5314_v40  ;;  %v5213_v36 = vpop.f32.mrb[83].mxu0  ;;  %v5316_v6 = vpop.f32.mrb[87].mxu1  ;;  %v5501_v52 = vmax.f32 %v5445_v50, 0.0  ;;  %v5503_v27 = vmax.f32 %v5447_v21, 0.0  ;;  %6376 = vmatpush1.bf16.msra.mxu1 %v11613_v24  ;;  %6306 = vmatprep.subr.bf16.mxu0 %v11618_v33  ;;  %v11627_v8 = vld [vmem:[#allocation8 + $0x20c] ss:$16 sps:$4 sm:$0xff]  }
 0x5d6   : > { %v5450_v62 = vadd.f32 %v14098_v37, %v5213_v36  ;;  %v5452_v53 = vadd.f32 %v14101_v20, %v5316_v6  ;;  %v5504_v44 = vmax.f32 %v5448_v14, 0.0  ;;  %v5502_v34 = vmax.f32 %v5446_v57, 0.0  ;;  %6377 = vmatprep.subr.bf16.mxu1 %v11621_v0  ;;  %v11622_v50 = vld [vmem:[#allocation8 + $0x200] ss:$16 sps:$4 sm:$0xff]   ;;  %v11625_v21 = vld [vmem:[#allocation8 + $0x208] ss:$16 sps:$4 sm:$0xff]  }
 0x5d7   : > { %v5505_v61 = vmax.f32 %v5449_v15, 0.0  ;;  %v5507_v60 = vmax.f32 %v5451_v63, 0.0  ;;  %5812 = vrot.lane.b32.xlu0 %v14209_v22, %s12200_s23  ;;  %5737 = vrot.lane.b32.xlu1 %v14229_v49, %s12200_s23  ;;  %v11630_v39 = vld [vmem:[#allocation8 + $0x224] ss:$16 sps:$4 sm:$0xff]   ;;  %v11633_v2 = vld [vmem:[#allocation8 + $0x22c] ss:$16 sps:$4 sm:$0xff]  }
 0x5d8   : > { %v5506_v26 = vmax.f32 %v5450_v62, 0.0  ;;  %v5508_v32 = vmax.f32 %v5452_v53, 0.0  ;;  %6307 = vmatpush1.bf16.msra.mxu0 %v11616_v51  ;;  %v11628_v14 = vld [vmem:[#allocation8 + $0x220] ss:$16 sps:$4 sm:$0xff]   ;;  %v11631_v57 = vld [vmem:[#allocation8 + $0x228] ss:$16 sps:$4 sm:$0xff]  }
 0x5d9   : > { %v14251_v12 = vmax.f32 %v5501_v52, %v5505_v61  ;;  %v14253_v7 = vmax.f32 %v5503_v27, %v5507_v60  ;;  %6378 = vmatpush1.bf16.msra.mxu1 %v11619_v38  ;;  %6308 = vmatprep.subr.bf16.mxu0 %v11624_v25  ;;  %v11636_v28 = vld [vmem:[#allocation8 + $0x244] ss:$16 sps:$4 sm:$0xff]   ;;  %v11639_v40 = vld [vmem:[#allocation8 + $0x24c] ss:$16 sps:$4 sm:$0xff]   ;;  %v11634_v15 = vld [vmem:[#allocation8 + $0x240] ss:$16 sps:$4 sm:$0xff]  }
 0x5da   : > { %v14255_v37 = vmax.f32 %v5502_v34, %v5506_v26  ;;  %v14257_v20 = vmax.f32 %v5504_v44, %v5508_v32  ;;  %6379 = vmatprep.subr.bf16.mxu1 %v11627_v8  ;;  %v11637_v63 = vld [vmem:[#allocation8 + $0x248] ss:$16 sps:$4 sm:$0xff]   ;;  %v11642_v36 = vld [vmem:[#allocation8 + $0x264] ss:$16 sps:$4 sm:$0xff]   ;;  %v11645_v6 = vld [vmem:[#allocation8 + $0x26c] ss:$16 sps:$4 sm:$0xff]  }
 0x5db   : > { %5637 = vrot.lane.b32.xlu1 %v14231_v31, %s12200_s23  ;;  %5560 = vrot.lane.b32.xlu0 %v14251_v12, %s12200_s23  ;;  %v11640_v62 = vld [vmem:[#allocation8 + $0x260] ss:$16 sps:$4 sm:$0xff]   ;;  %v11643_v53 = vld [vmem:[#allocation8 + $0x268] ss:$16 sps:$4 sm:$0xff]   ;;  %v11648_v27 = vld [vmem:[#allocation8 + $0x284] ss:$16 sps:$4 sm:$0xff]  }
 0x5dc   : > { %6309 = vmatpush1.bf16.msra.mxu0 %v11622_v50  ;;  %v11646_v52 = vld [vmem:[#allocation8 + $0x280] ss:$16 sps:$4 sm:$0xff]   ;;  %v11649_v61 = vld [vmem:[#allocation8 + $0x288] ss:$16 sps:$4 sm:$0xff]   ;;  %v11651_v60 = vld [vmem:[#allocation8 + $0x28c] ss:$16 sps:$4 sm:$0xff]  }
 0x5dd   : > { %6380 = vmatpush1.bf16.msra.mxu1 %v11625_v21  ;;  %6310 = vmatprep.subr.bf16.mxu0 %v11630_v39  ;;  %v11652_v44 = vld [vmem:[#allocation8 + $0x2a0] ss:$16 sps:$4 sm:$0xff]   ;;  %v11654_v34 = vld [vmem:[#allocation8 + $0x2a4] ss:$16 sps:$4 sm:$0xff]   ;;  %v11655_v26 = vld [vmem:[#allocation8 + $0x2a8] ss:$16 sps:$4 sm:$0xff]  }
 0x5de   : > { %6381 = vmatprep.subr.bf16.mxu1 %v11633_v2  ;;  %v11657_v32 = vld [vmem:[#allocation8 + $0x2ac] ss:$16 sps:$4 sm:$0xff]   ;;  %v11658_v17 = vld [vmem:[#allocation8 + $0x2c0] ss:$16 sps:$4 sm:$0xff]   ;;  %v11660_v47 = vld [vmem:[#allocation8 + $0x2c4] ss:$16 sps:$4 sm:$0xff]  }
 0x5df   : > { %5814 = vrot.lane.b32.xlu1 %v14233_v56, %s12200_s23  ;;  %5639 = vrot.lane.b32.xlu0 %v14255_v37, %s12200_s23  ;;  %v11661_v24 = vld [vmem:[#allocation8 + $0x2c8] ss:$16 sps:$4 sm:$0xff]   ;;  %v11663_v3 = vld [vmem:[#allocation8 + $0x2cc] ss:$16 sps:$4 sm:$0xff]   ;;  %v11664_v51 = vld [vmem:[#allocation8 + $0x2e0] ss:$16 sps:$4 sm:$0xff]  }
 0x5e0   : > { %6311 = vmatpush1.bf16.msra.mxu0 %v11628_v14  ;;  %v11666_v38 = vld [vmem:[#allocation8 + $0x2e4] ss:$16 sps:$4 sm:$0xff]   ;;  %v11667_v25 = vld [vmem:[#allocation8 + $0x2e8] ss:$16 sps:$4 sm:$0xff]   ;;  %v11669_v8 = vld [vmem:[#allocation8 + $0x2ec] ss:$16 sps:$4 sm:$0xff]  }
 0x5e1   : > { %6382 = vmatpush1.bf16.msra.mxu1 %v11631_v57  ;;  %6312 = vmatprep.subr.bf16.mxu0 %v11636_v28  ;;  %v11670_v39 = vld [vmem:[#allocation8 + $0x300] ss:$16 sps:$4 sm:$0xff]   ;;  %v11673_v2 = vld [vmem:[#allocation8 + $0x308] ss:$16 sps:$4 sm:$0xff]   ;;  %v11675_v14 = vld [vmem:[#allocation8 + $0x30c] ss:$16 sps:$4 sm:$0xff]  }
 0x5e2   : > { %6383 = vmatprep.subr.bf16.mxu1 %v11639_v40 }
 0x5e3   : > { %5739 = vrot.lane.b32.xlu1 %v14253_v7, %s12200_s23 }
 0x5e4   : > { %6313 = vmatpush1.bf16.msra.mxu0 %v11634_v15 }
 0x5e5   : > { %6384 = vmatpush1.bf16.msra.mxu1 %v11637_v63  ;;  %6314 = vmatprep.subr.bf16.mxu0 %v11642_v36  ;;  %v11678_v63 = vld [vmem:[#allocation8 + $0x324] ss:$16 sps:$4 sm:$0xff]   ;;  %v11679_v36 = vld [vmem:[#allocation8 + $0x328] ss:$16 sps:$4 sm:$0xff]  }
 0x5e6   : > { %6385 = vmatprep.subr.bf16.mxu1 %v11645_v6  ;;  %v11681_v6 = vld [vmem:[#allocation8 + $0x32c] ss:$16 sps:$4 sm:$0xff]  }
 0x5e7   : > { %5816 = vrot.lane.b32.xlu1 %v14257_v20, %s12200_s23 }
 0x5e8   : > { %6315 = vmatpush1.bf16.msra.mxu0 %v11640_v62 }
 0x5e9   : > { %6386 = vmatpush1.bf16.msra.mxu1 %v11643_v53  ;;  %6316 = vmatprep.subr.bf16.mxu0 %v11648_v27  ;;  %v11684_v27 = vld [vmem:[#allocation8 + $0x344] ss:$16 sps:$4 sm:$0xff]  }
 0x5ea   : > { %6387 = vmatprep.subr.bf16.mxu1 %v11651_v60  ;;  %v11687_v60 = vld [vmem:[#allocation8 + $0x34c] ss:$16 sps:$4 sm:$0xff]  }
 0x5ec   : > { %6317 = vmatpush1.bf16.msra.mxu0 %v11646_v52  ;;  %v11682_v52 = vld [vmem:[#allocation8 + $0x340] ss:$16 sps:$4 sm:$0xff]  }
 0x5ed   : > { %6388 = vmatpush1.bf16.msra.mxu1 %v11649_v61  ;;  %6318 = vmatprep.subr.bf16.mxu0 %v11654_v34  ;;  %v11685_v61 = vld [vmem:[#allocation8 + $0x348] ss:$16 sps:$4 sm:$0xff]  }
 0x5ee   : > { %6389 = vmatprep.subr.bf16.mxu1 %v11657_v32  ;;  %v11690_v32 = vld [vmem:[#allocation8 + $0x364] ss:$16 sps:$4 sm:$0xff]  }
 0x5f0   : > { %6319 = vmatpush1.bf16.msra.mxu0 %v11652_v44 }
 0x5f1   : > { %6390 = vmatpush1.bf16.msra.mxu1 %v11655_v26  ;;  %6320 = vmatprep.subr.bf16.mxu0 %v11660_v47  ;;  %v11688_v26 = vld [vmem:[#allocation8 + $0x360] ss:$16 sps:$4 sm:$0xff]   ;;  %v11691_v47 = vld [vmem:[#allocation8 + $0x368] ss:$16 sps:$4 sm:$0xff]  }
 0x5f2   : > { %6391 = vmatprep.subr.bf16.mxu1 %v11663_v3 }
 0x5f4   : > { %6321 = vmatpush1.bf16.msra.mxu0 %v11658_v17  ;;  %v11693_v17 = vld [vmem:[#allocation8 + $0x36c] ss:$16 sps:$4 sm:$0xff]  }
 0x5f5   : > { %6392 = vmatpush1.bf16.msra.mxu1 %v11661_v24  ;;  %6322 = vmatprep.subr.bf16.mxu0 %v11666_v38 }
 0x5f6   : > { %6393 = vmatprep.subr.bf16.mxu1 %v11669_v8 }
 0x5f8   : > { %6323 = vmatpush1.bf16.msra.mxu0 %v11664_v51 }
 0x5f9   : > { %6394 = vmatpush1.bf16.msra.mxu1 %v11667_v25 }
 0x5fa   : > { %6395 = vmatprep.subr.bf16.mxu1 %v11675_v14 }
 0x5fd   : > { %6396 = vmatpush1.bf16.msra.mxu1 %v11673_v2 }
 0x5fe   : > { %6397 = vmatprep.subr.bf16.mxu1 %v11681_v6 }
 0x601   : > { %6398 = vmatpush1.bf16.msra.mxu1 %v11679_v36 }
 0x602   : > { %6399 = vmatprep.subr.bf16.mxu1 %v11687_v60 }
 0x605   : > { %6400 = vmatpush1.bf16.msra.mxu1 %v11685_v61 }
 0x606   : > { %6401 = vmatprep.subr.bf16.mxu1 %v11693_v17 }
 0x609   : > { %6402 = vmatpush1.bf16.msra.mxu1 %v11691_v47  ;;  %v11694_v47 = vld [vmem:[#allocation8] ss:$16 sps:$4 sm:$0xff]  }
 0x61d   : > { %v5549_v33 = vpop.permute.xlu0 %5548 }
 0x61e   : > { %v5569_v0 = vmax.f32 %v14111_v42, %v5549_v33  ;;  %v11672_v42 = vld [vmem:[#allocation8 + $0x304] ss:$16 sps:$4 sm:$0xff]  }
 0x61f   : > { %6324 = vmatprep.subr.bf16.mxu0 %v11672_v42  ;;  %v11696_v33 = vld [vmem:[#allocation8 + $0x4] ss:$16 sps:$4 sm:$0xff]  }
 0x620   : > { %5577 = vst.msk [vmem:[#allocation4 + $0x10] sm:$0xff] %vm5576_vm11, %v5569_v0  ;;  %5591 = vrot.lane.b32.xlu0 %v5569_v0, %s12200_s23  ;;  %6325 = vmatpush1.bf16.msra.mxu0 %v11670_v39  ;;  %v11699_v0 = vld [vmem:[#allocation8 + $0xc] ss:$16 sps:$4 sm:$0xff]  }
 0x621   : > { %v5728_v50 = vpop.permute.xlu0 %5727  ;;  %6326 = vmatprep.subr.bf16.mxu0 %v11678_v63  ;;  %6809 = vmatprep.subr.bf16.mxu1 %v11699_v0 }
 0x622   : > { %v5748_v21 = vmax.f32 %v14113_v11, %v5728_v50  ;;  %v11676_v11 = vld [vmem:[#allocation8 + $0x320] ss:$16 sps:$4 sm:$0xff]  }
 0x624   : > { %5755 = vst.msk [vmem:[#allocation4 + $0x18] sm:$0xff] %vm5576_vm11, %v5748_v21  ;;  %5769 = vrot.lane.b32.xlu0 %v5748_v21, %s12200_s23  ;;  %6327 = vmatpush1.bf16.msra.mxu0 %v11676_v11 }
 0x625   : > { %v5628_v57 = vpop.permute.xlu0 %5627  ;;  %v5551_v28 = vpop.permute.xlu1 %5550  ;;  %6328 = vmatprep.subr.bf16.mxu0 %v11684_v27 }
 0x626   : > { %v5648_v40 = vmax.f32 %v14115_v4, %v5628_v57  ;;  %v5570_v15 = vmax.f32 %v14131_v9, %v5551_v28 }
 0x628   : > { %5578 = vst.msk [vmem:[#allocation4 + $0x20] sm:$0xff] %vm5576_vm11, %v5570_v15  ;;  %5593 = vrot.lane.b32.xlu1 %v5570_v15, %s12200_s23  ;;  %5662 = vrot.lane.b32.xlu0 %v5648_v40, %s12202_s19 }
 0x629   : > { %v5805_v62 = vpop.permute.xlu0 %5804  ;;  %v5730_v53 = vpop.permute.xlu1 %5729  ;;  %6329 = vmatpush1.bf16.msra.mxu0 %v11682_v52 }
 0x62a   : > { %v5825_v4 = vmax.f32 %v14117_v29, %v5805_v62  ;;  %v5749_v9 = vmax.f32 %v14133_v10, %v5730_v53  ;;  %6330 = vmatprep.subr.bf16.mxu0 %v11690_v32 }
 0x62c   : > { %5756 = vst.msk [vmem:[#allocation4 + $0x28] sm:$0xff] %vm5576_vm11, %v5749_v9  ;;  %5771 = vrot.lane.b32.xlu1 %v5749_v9, %s12200_s23  ;;  %5839 = vrot.lane.b32.xlu0 %v5825_v4, %s12202_s19 }
 0x62d   : > { %v5630_v44 = vpop.permute.xlu1 %5629  ;;  %v5553_v34 = vpop.permute.xlu0 %5552  ;;  %6331 = vmatpush1.bf16.msra.mxu0 %v11688_v26 }
 0x62e   : > { %v5649_v29 = vmax.f32 %v14135_v13, %v5630_v44  ;;  %v5571_v10 = vmax.f32 %v14155_v48, %v5553_v34  ;;  %6738 = vmatprep.subr.bf16.mxu0 %v11696_v33  ;;  %v11697_v33 = vld [vmem:[#allocation8 + $0x8] ss:$16 sps:$4 sm:$0xff]  }
 0x630   : > { %5579 = vst.msk [vmem:[#allocation4 + $0x30] sm:$0xff] %vm5576_vm11, %v5571_v10  ;;  %5664 = vrot.lane.b32.xlu1 %v5649_v29, %s12202_s19  ;;  %5691 = vrot.lane.b32.xlu0 %v5648_v40, %s12204_s29 }
 0x631   : > { %v5807_v24 = vpop.permute.xlu1 %5806  ;;  %v5732_v3 = vpop.permute.xlu0 %5731 }
 0x632   : > { %v5826_v13 = vmax.f32 %v14137_v43, %v5807_v24  ;;  %v5750_v48 = vmax.f32 %v14157_v5, %v5732_v3 }
 0x634   : > { %5757 = vst.msk [vmem:[#allocation4 + $0x38] sm:$0xff] %vm5576_vm11, %v5750_v48  ;;  %5841 = vrot.lane.b32.xlu1 %v5826_v13, %s12202_s19  ;;  %5595 = vrot.lane.b32.xlu0 %v5571_v10, %s12200_s23 }
 0x635   : > { %v5632_v51 = vpop.permute.xlu0 %5631  ;;  %v5555_v38 = vpop.permute.xlu1 %5554 }
 0x636   : > { %v5572_v25 = vmax.f32 %v14179_v30, %v5555_v38  ;;  %v5650_v8 = vmax.f32 %v14159_v46, %v5632_v51  ;;  %v11702_v51 = vld [vmem:[#allocation8 + $0x24] ss:$16 sps:$4 sm:$0xff]   ;;  %v11705_v38 = vld [vmem:[#allocation8 + $0x2c] ss:$16 sps:$4 sm:$0xff]  }
 0x638   : > { %5580 = vst.msk [vmem:[#allocation4 + $0x40] sm:$0xff] %vm5576_vm11, %v5572_v25  ;;  %5693 = vrot.lane.b32.xlu1 %v5649_v29, %s12204_s29  ;;  %5773 = vrot.lane.b32.xlu0 %v5750_v48, %s12200_s23 }
 0x639   : > { %v5809_v43 = vpop.permute.xlu0 %5808  ;;  %v5734_v5 = vpop.permute.xlu1 %5733 }
 0x63a   : > { %v5751_v50 = vmax.f32 %v14181_v23, %v5734_v5  ;;  %v5827_v39 = vmax.f32 %v14161_v19, %v5809_v43  ;;  %v11700_v5 = vld [vmem:[#allocation8 + $0x20] ss:$16 sps:$4 sm:$0xff]  }
 0x63c   : > { %5758 = vst.msk [vmem:[#allocation4 + $0x48] sm:$0xff] %vm5576_vm11, %v5751_v50  ;;  %5597 = vrot.lane.b32.xlu1 %v5572_v25, %s12200_s23  ;;  %5666 = vrot.lane.b32.xlu0 %v5650_v8, %s12202_s19 }
 0x63d   : > { %v5634_v21 = vpop.permute.xlu1 %5633  ;;  %v5557_v30 = vpop.permute.xlu0 %5556 }
 0x63e   : > { %v5573_v42 = vmax.f32 %v14203_v58, %v5557_v30  ;;  %v5651_v2 = vmax.f32 %v14183_v59, %v5634_v21  ;;  %v11711_v21 = vld [vmem:[#allocation8 + $0x4c] ss:$16 sps:$4 sm:$0xff]  }
 0x640   : > { %5581 = vst.msk [vmem:[#allocation4 + $0x50] sm:$0xff] %vm5576_vm11, %v5573_v42  ;;  %5775 = vrot.lane.b32.xlu1 %v5751_v50, %s12200_s23  ;;  %5843 = vrot.lane.b32.xlu0 %v5827_v39, %s12202_s19  ;;  %v11708_v50 = vld [vmem:[#allocation8 + $0x44] ss:$16 sps:$4 sm:$0xff]  }
 0x641   : > { %v5811_v46 = vpop.permute.xlu1 %5810  ;;  %v5736_v23 = vpop.permute.xlu0 %5735 }
 0x642   : > { %v5752_v14 = vmax.f32 %v14205_v55, %v5736_v23  ;;  %v5828_v57 = vmax.f32 %v14185_v35, %v5811_v46  ;;  %v11709_v46 = vld [vmem:[#allocation8 + $0x48] ss:$16 sps:$4 sm:$0xff]   ;;  %v11714_v23 = vld [vmem:[#allocation8 + $0x64] ss:$16 sps:$4 sm:$0xff]  }
 0x644   : > { %5759 = vst.msk [vmem:[#allocation4 + $0x58] sm:$0xff] %vm5576_vm11, %v5752_v14  ;;  %5668 = vrot.lane.b32.xlu1 %v5651_v2, %s12202_s19  ;;  %5695 = vrot.lane.b32.xlu0 %v5650_v8, %s12204_s29  ;;  %v11703_v8 = vld [vmem:[#allocation8 + $0x28] ss:$16 sps:$4 sm:$0xff]  }
 0x645   : > { %v5636_v19 = vpop.permute.xlu0 %5635  ;;  %v5559_v58 = vpop.permute.xlu1 %5558 }
 0x646   : > { %v5574_v28 = vmax.f32 %v14227_v45, %v5559_v58  ;;  %v5652_v45 = vmax.f32 %v14207_v41, %v5636_v19  ;;  %v11712_v58 = vld [vmem:[#allocation8 + $0x60] ss:$16 sps:$4 sm:$0xff]  }
 0x648   : > { %5582 = vst.msk [vmem:[#allocation4 + $0x60] sm:$0xff] %vm5576_vm11, %v5574_v28  ;;  %5845 = vrot.lane.b32.xlu1 %v5828_v57, %s12202_s19  ;;  %5599 = vrot.lane.b32.xlu0 %v5573_v42, %s12200_s23  ;;  %v11706_v42 = vld [vmem:[#allocation8 + $0x40] ss:$16 sps:$4 sm:$0xff]   ;;  %v11715_v57 = vld [vmem:[#allocation8 + $0x68] ss:$16 sps:$4 sm:$0xff]  }
 0x649   : > { %v5813_v59 = vpop.permute.xlu0 %5812  ;;  %v5738_v55 = vpop.permute.xlu1 %5737 }
 0x64a   : > { %v5753_v40 = vmax.f32 %v14229_v49, %v5738_v55  ;;  %v5829_v49 = vmax.f32 %v14209_v22, %v5813_v59  ;;  %v11723_v59 = vld [vmem:[#allocation8 + $0x8c] ss:$16 sps:$4 sm:$0xff]   ;;  %v11718_v55 = vld [vmem:[#allocation8 + $0x80] ss:$16 sps:$4 sm:$0xff]  }
 0x64c   : > { %5760 = vst.msk [vmem:[#allocation4 + $0x68] sm:$0xff] %vm5576_vm11, %v5753_v40  ;;  %5697 = vrot.lane.b32.xlu1 %v5651_v2, %s12204_s29  ;;  %5777 = vrot.lane.b32.xlu0 %v5752_v14, %s12200_s23  ;;  %v11717_v2 = vld [vmem:[#allocation8 + $0x6c] ss:$16 sps:$4 sm:$0xff]  }
 0x64d   : > { %v5638_v15 = vpop.permute.xlu1 %5637  ;;  %v5561_v35 = vpop.permute.xlu0 %5560 }
 0x64e   : > { %v5575_v11 = vmax.f32 %v14251_v12, %v5561_v35  ;;  %v5653_v6 = vmax.f32 %v14231_v31, %v5638_v15 }
 0x650   : > { %5583 = vst.msk [vmem:[#allocation4 + $0x70] sm:$0xff] %vm5576_vm11, %v5575_v11  ;;  %5601 = vrot.lane.b32.xlu1 %v5574_v28, %s12200_s23  ;;  %5670 = vrot.lane.b32.xlu0 %v5652_v45, %s12202_s19  ;;  %v11720_v28 = vld [vmem:[#allocation8 + $0x84] ss:$16 sps:$4 sm:$0xff]  }
 0x651   : > { %v5815_v63 = vpop.permute.xlu1 %5814  ;;  %v5640_v62 = vpop.permute.xlu0 %5639 }
 0x652   : > { %v5830_v12 = vmax.f32 %v14233_v56, %v5815_v63  ;;  %v5654_v22 = vmax.f32 %v14255_v37, %v5640_v62 }
 0x654   : > { %5779 = vrot.lane.b32.xlu1 %v5753_v40, %s12200_s23  ;;  %5847 = vrot.lane.b32.xlu0 %v5829_v49, %s12202_s19  ;;  %v11726_v49 = vld [vmem:[#allocation8 + $0xa4] ss:$16 sps:$4 sm:$0xff]  }
 0x655   : > { %v5740_v36 = vpop.permute.xlu1 %5739 }
 0x656   : > { %v5754_v41 = vmax.f32 %v14253_v7, %v5740_v36  ;;  %v11729_v36 = vld [vmem:[#allocation8 + $0xac] ss:$16 sps:$4 sm:$0xff]  }
 0x658   : > { %5761 = vst.msk [vmem:[#allocation4 + $0x78] sm:$0xff] %vm5576_vm11, %v5754_v41  ;;  %5672 = vrot.lane.b32.xlu1 %v5653_v6, %s12202_s19  ;;  %5699 = vrot.lane.b32.xlu0 %v5652_v45, %s12204_s29 }
 0x659   : > { %v5817_v31 = vpop.permute.xlu1 %5816 }
 0x65a   : > { %v5831_v7 = vmax.f32 %v14257_v20, %v5817_v31  ;;  %v11727_v31 = vld [vmem:[#allocation8 + $0xa8] ss:$16 sps:$4 sm:$0xff]  }
 0x65c   : > { %5849 = vrot.lane.b32.xlu1 %v5830_v12, %s12202_s19  ;;  %5603 = vrot.lane.b32.xlu0 %v5575_v11, %s12200_s23  ;;  %v11721_v11 = vld [vmem:[#allocation8 + $0x88] ss:$16 sps:$4 sm:$0xff]  }
 0x660   : > { %5701 = vrot.lane.b32.xlu1 %v5653_v6, %s12204_s29  ;;  %5674 = vrot.lane.b32.xlu0 %v5654_v22, %s12202_s19  ;;  %v11724_v6 = vld [vmem:[#allocation8 + $0xa0] ss:$16 sps:$4 sm:$0xff]  }
 0x664   : > { %5781 = vrot.lane.b32.xlu1 %v5754_v41, %s12200_s23  ;;  %5703 = vrot.lane.b32.xlu0 %v5654_v22, %s12204_s29 }
 0x668   : > { %5851 = vrot.lane.b32.xlu1 %v5831_v7, %s12202_s19 }
 0x692   : > { %v5592_v56 = vpop.permute.xlu0 %5591 }
 0x693   : > { %5613 = vst.msk [vmem:[#allocation4 + $0x10] sm:$0xff] %vm5612_vm12, %v5592_v56  ;;  %v11732_v56 = vld [vmem:[#allocation8 + $0xc4] ss:$16 sps:$4 sm:$0xff]  }
 0x696   : > { %v5770_v53 = vpop.permute.xlu0 %5769 }
 0x697   : > { %5790 = vst.msk [vmem:[#allocation4 + $0x18] sm:$0xff] %vm5612_vm12, %v5770_v53  ;;  %v11735_v53 = vld [vmem:[#allocation8 + $0xcc] ss:$16 sps:$4 sm:$0xff]  }
 0x69a   : > { %v5594_v37 = vpop.permute.xlu1 %5593  ;;  %v5663_v4 = vpop.permute.xlu0 %5662 }
 0x69b   : > { %5614 = vst.msk [vmem:[#allocation4 + $0x20] sm:$0xff] %vm5612_vm12, %v5594_v37 }
 0x69c   : > { %5684 = vst.msk [vmem:[#allocation4 + $0x10] sm:$0xff] %vm5683_vm13, %v5663_v4 }
 0x69e   : > { %v5772_v9 = vpop.permute.xlu1 %5771  ;;  %v5840_v52 = vpop.permute.xlu0 %5839 }
 0x69f   : > { %5791 = vst.msk [vmem:[#allocation4 + $0x28] sm:$0xff] %vm5612_vm12, %v5772_v9  ;;  %v11730_v9 = vld [vmem:[#allocation8 + $0xc0] ss:$16 sps:$4 sm:$0xff]  }
 0x6a0   : > { %5860 = vst.msk [vmem:[#allocation4 + $0x18] sm:$0xff] %vm5683_vm13, %v5840_v52  ;;  %v11733_v52 = vld [vmem:[#allocation8 + $0xc8] ss:$16 sps:$4 sm:$0xff]  }
 0x6a2   : > { %v5665_v20 = vpop.permute.xlu1 %5664  ;;  %v5692_v27 = vpop.permute.xlu0 %5691 }
 0x6a3   : > { %5685 = vst.msk [vmem:[#allocation4 + $0x20] sm:$0xff] %vm5683_vm13, %v5665_v20  ;;  %v11738_v20 = vld [vmem:[#allocation8 + $0xe4] ss:$16 sps:$4 sm:$0xff]  }
 0x6a4   : > { %5713 = vst.msk [vmem:[#allocation4 + $0x10] sm:$0xff] %vm5712_vm14, %v5692_v27  ;;  %v11741_v27 = vld [vmem:[#allocation8 + $0xec] ss:$16 sps:$4 sm:$0xff]  }
 0x6a6   : > { %v5842_v61 = vpop.permute.xlu1 %5841  ;;  %v5596_v60 = vpop.permute.xlu0 %5595 }
 0x6a7   : > { %5861 = vst.msk [vmem:[#allocation4 + $0x28] sm:$0xff] %vm5683_vm13, %v5842_v61  ;;  %v14360_v26 = vld [vmem:[#allocation4 + $0x18] sm:$0xff] }
 0x6a8   : > { %5615 = vst.msk [vmem:[#allocation4 + $0x30] sm:$0xff] %vm5612_vm12, %v5596_v60 }
 0x6aa   : > { %v5694_v44 = vpop.permute.xlu1 %5693  ;;  %v5774_v34 = vpop.permute.xlu0 %5773 }
 0x6ab   : > { %5714 = vst.msk [vmem:[#allocation4 + $0x20] sm:$0xff] %vm5712_vm14, %v5694_v44  ;;  %v14370_v13 = vld [vmem:[#allocation4 + $0x10] sm:$0xff] }
 0x6ac   : > { %5792 = vst.msk [vmem:[#allocation4 + $0x38] sm:$0xff] %vm5612_vm12, %v5774_v34  ;;  %v11736_v44 = vld [vmem:[#allocation8 + $0xe0] ss:$16 sps:$4 sm:$0xff]   ;;  %v11739_v34 = vld [vmem:[#allocation8 + $0xe8] ss:$16 sps:$4 sm:$0xff]  }
 0x6ae   : > { %v5598_v29 = vpop.permute.xlu1 %5597  ;;  %v5667_v10 = vpop.permute.xlu0 %5666  ;;  %v14362_v32 = vld [vmem:[#allocation4 + $0x28] sm:$0xff] }
 0x6af   : > { %5616 = vst.msk [vmem:[#allocation4 + $0x40] sm:$0xff] %vm5612_vm12, %v5598_v29  ;;  %v5948_v17 = vpack.c.bf16 %v14362_v32, %v14360_v26  ;;  %v11744_v29 = vld [vmem:[#allocation8 + $0x104] ss:$16 sps:$4 sm:$0xff]  }
 0x6b0   : > { %5686 = vst.msk [vmem:[#allocation4 + $0x30] sm:$0xff] %vm5683_vm13, %v5667_v10  ;;  %v11747_v10 = vld [vmem:[#allocation8 + $0x10c] ss:$16 sps:$4 sm:$0xff]  }
 0x6b1   : > { %10330 = vmatprep.mubr.msk.bf16.mxu0 %vm2480_vm3, %v5948_v17  ;;  %10334 = vmatprep.mubr.msk.bf16.mxu1 %vm2480_vm3, %v5948_v17 }
 0x6b2   : > { %v5776_v24 = vpop.permute.xlu1 %5775  ;;  %v5844_v3 = vpop.permute.xlu0 %5843  ;;  %v14372_v48 = vld [vmem:[#allocation4 + $0x20] sm:$0xff] }
 0x6b3   : > { %5793 = vst.msk [vmem:[#allocation4 + $0x48] sm:$0xff] %vm5612_vm12, %v5776_v24  ;;  %v5947_v0 = vpack.c.bf16 %v14372_v48, %v14370_v13  ;;  %v11742_v24 = vld [vmem:[#allocation8 + $0x100] ss:$16 sps:$4 sm:$0xff]  }
 0x6b4   : > { %5862 = vst.msk [vmem:[#allocation4 + $0x38] sm:$0xff] %vm5683_vm13, %v5844_v3  ;;  %v11745_v3 = vld [vmem:[#allocation8 + $0x108] ss:$16 sps:$4 sm:$0xff]  }
 0x6b5   : > { %6337 = vmatmul.mubr.bf16.vlgmr.msra.gmra.mrb[84].mxu0 %v5947_v0  ;;  %6408 = vmatmul.mubr.bf16.vlgmr.msra.gmra.mrb[88].mxu1 %v5947_v0  ;;  %v11753_v0 = vld [vmem:[#allocation8 + $0x12c] ss:$16 sps:$4 sm:$0xff]  }
 0x6b6   : > { %v5669_v25 = vpop.permute.xlu1 %5668  ;;  %6739 = vmatpush1.bf16.msra.mxu0 %v11694_v47  ;;  %6810 = vmatpush1.bf16.msra.mxu1 %v11697_v33  ;;  %v5696_v43 = vpop.permute.xlu0 %5695  ;;  %v11750_v33 = vld [vmem:[#allocation8 + $0x124] ss:$16 sps:$4 sm:$0xff]  }
 0x6b7   : > { %5687 = vst.msk [vmem:[#allocation4 + $0x40] sm:$0xff] %vm5683_vm13, %v5669_v25  ;;  %6740 = vmatprep.subr.bf16.mxu0 %v11702_v51  ;;  %6811 = vmatprep.subr.bf16.mxu1 %v11705_v38  ;;  %v11748_v51 = vld [vmem:[#allocation8 + $0x120] ss:$16 sps:$4 sm:$0xff]  }
 0x6b8   : > { %5715 = vst.msk [vmem:[#allocation4 + $0x30] sm:$0xff] %vm5712_vm14, %v5696_v43 }
 0x6ba   : > { %v5846_v30 = vpop.permute.xlu1 %5845  ;;  %6741 = vmatpush1.bf16.msra.mxu0 %v11700_v5  ;;  %6812 = vmatpush1.bf16.msra.mxu1 %v11703_v8  ;;  %v5600_v39 = vpop.permute.xlu0 %5599  ;;  %v11751_v8 = vld [vmem:[#allocation8 + $0x128] ss:$16 sps:$4 sm:$0xff]  }
 0x6bb   : > { %5863 = vst.msk [vmem:[#allocation4 + $0x48] sm:$0xff] %vm5683_vm13, %v5846_v30  ;;  %6742 = vmatprep.subr.bf16.mxu0 %v11708_v50  ;;  %6813 = vmatprep.subr.bf16.mxu1 %v11711_v21  ;;  %v14384_v35 = vld [vmem:[#allocation4 + $0x38] sm:$0xff]  ;;  %v11756_v21 = vld [vmem:[#allocation8 + $0x144] ss:$16 sps:$4 sm:$0xff]  }
 0x6bc   : > { %5617 = vst.msk [vmem:[#allocation4 + $0x50] sm:$0xff] %vm5612_vm12, %v5600_v39  ;;  %v11759_v30 = vld [vmem:[#allocation8 + $0x14c] ss:$16 sps:$4 sm:$0xff]   ;;  %v11754_v39 = vld [vmem:[#allocation8 + $0x140] ss:$16 sps:$4 sm:$0xff]  }
 0x6be   : > { %v5698_v14 = vpop.permute.xlu1 %5697  ;;  %6743 = vmatpush1.bf16.msra.mxu0 %v11706_v42  ;;  %6814 = vmatpush1.bf16.msra.mxu1 %v11709_v46  ;;  %v5778_v19 = vpop.permute.xlu0 %5777 }
 0x6bf   : > { %5716 = vst.msk [vmem:[#allocation4 + $0x40] sm:$0xff] %vm5712_vm14, %v5698_v14  ;;  %6744 = vmatprep.subr.bf16.mxu0 %v11714_v23  ;;  %6815 = vmatprep.subr.bf16.mxu1 %v11717_v2  ;;  %v14394_v62 = vld [vmem:[#allocation4 + $0x30] sm:$0xff]  ;;  %v11757_v2 = vld [vmem:[#allocation8 + $0x148] ss:$16 sps:$4 sm:$0xff]  }
 0x6c0   : > { %5794 = vst.msk [vmem:[#allocation4 + $0x58] sm:$0xff] %vm5612_vm12, %v5778_v19  ;;  %v11762_v19 = vld [vmem:[#allocation8 + $0x164] ss:$16 sps:$4 sm:$0xff]  }
 0x6c2   : > { %v5602_v40 = vpop.permute.xlu1 %5601  ;;  %6745 = vmatpush1.bf16.msra.mxu0 %v11712_v58  ;;  %6816 = vmatpush1.bf16.msra.mxu1 %v11715_v57  ;;  %v5671_v15 = vpop.permute.xlu0 %5670  ;;  %v14386_v45 = vld [vmem:[#allocation4 + $0x48] sm:$0xff]  ;;  %v11760_v57 = vld [vmem:[#allocation8 + $0x160] ss:$16 sps:$4 sm:$0xff]  }
 0x6c3   : > { %5618 = vst.msk [vmem:[#allocation4 + $0x60] sm:$0xff] %vm5612_vm12, %v5602_v40  ;;  %v5950_v63 = vpack.c.bf16 %v14386_v45, %v14384_v35  ;;  %6746 = vmatprep.subr.bf16.mxu0 %v11720_v28  ;;  %6817 = vmatprep.subr.bf16.mxu1 %v11723_v59  ;;  %v11765_v58 = vld [vmem:[#allocation8 + $0x16c] ss:$16 sps:$4 sm:$0xff]   ;;  %v11763_v28 = vld [vmem:[#allocation8 + $0x168] ss:$16 sps:$4 sm:$0xff]  }
 0x6c4   : > { %5688 = vst.msk [vmem:[#allocation4 + $0x50] sm:$0xff] %vm5683_vm13, %v5671_v15  ;;  %v11771_v40 = vld [vmem:[#allocation8 + $0x18c] ss:$16 sps:$4 sm:$0xff]  }
 0x6c5   : > { %10331 = vmatprep.mubr.msk.bf16.mxu0 %vm2480_vm3, %v5950_v63  ;;  %10335 = vmatprep.mubr.msk.bf16.mxu1 %vm2480_vm3, %v5950_v63 }
 0x6c6   : > { %v5780_v41 = vpop.permute.xlu1 %5779  ;;  %6747 = vmatpush1.bf16.msra.mxu0 %v11718_v55  ;;  %6818 = vmatpush1.bf16.msra.mxu1 %v11721_v11  ;;  %v5848_v12 = vpop.permute.xlu0 %5847  ;;  %v14396_v22 = vld [vmem:[#allocation4 + $0x40] sm:$0xff] }
 0x6c7   : > { %5795 = vst.msk [vmem:[#allocation4 + $0x68] sm:$0xff] %vm5612_vm12, %v5780_v41  ;;  %v5949_v7 = vpack.c.bf16 %v14396_v22, %v14394_v62  ;;  %6748 = vmatprep.subr.bf16.mxu0 %v11726_v49  ;;  %6819 = vmatprep.subr.bf16.mxu1 %v11729_v36  ;;  %v11768_v55 = vld [vmem:[#allocation8 + $0x184] ss:$16 sps:$4 sm:$0xff]   ;;  %v11766_v49 = vld [vmem:[#allocation8 + $0x180] ss:$16 sps:$4 sm:$0xff]  }
 0x6c8   : > { %5864 = vst.msk [vmem:[#allocation4 + $0x58] sm:$0xff] %vm5683_vm13, %v5848_v12  ;;  %v11769_v36 = vld [vmem:[#allocation8 + $0x188] ss:$16 sps:$4 sm:$0xff]  }
 0x6c9   : > { %6347 = vmatmul.mubr.bf16.gmra.mrb[88].mxu0 %v5949_v7  ;;  %6418 = vmatmul.mubr.bf16.gmra.mrb[92].mxu1 %v5949_v7  ;;  %v11777_v7 = vld [vmem:[#allocation8 + $0x1ac] ss:$16 sps:$4 sm:$0xff]  }
 0x6ca   : > { %v5673_v37 = vpop.permute.xlu1 %5672  ;;  %6749 = vmatpush1.bf16.msra.mxu0 %v11724_v6  ;;  %6820 = vmatpush1.bf16.msra.mxu1 %v11727_v31  ;;  %v5700_v4 = vpop.permute.xlu0 %5699  ;;  %v5868_v6 = vld [vmem:[#allocation4 + $0x8] sm:$0xff]  ;;  %v11774_v31 = vld [vmem:[#allocation8 + $0x1a4] ss:$16 sps:$4 sm:$0xff]  }
 0x6cb   : > { %5689 = vst.msk [vmem:[#allocation4 + $0x60] sm:$0xff] %vm5683_vm13, %v5673_v37  ;;  %6750 = vmatprep.subr.bf16.mxu0 %v11732_v56  ;;  %6821 = vmatprep.subr.bf16.mxu1 %v11735_v53  ;;  %v5882_v56 = vpack.c.bf16 %v14360_v26, %v5868_v6  ;;  %v11772_v53 = vld [vmem:[#allocation8 + $0x1a0] ss:$16 sps:$4 sm:$0xff]   ;;  %v11775_v37 = vld [vmem:[#allocation8 + $0x1a8] ss:$16 sps:$4 sm:$0xff]  }
 0x6cc   : > { %5717 = vst.msk [vmem:[#allocation4 + $0x50] sm:$0xff] %vm5712_vm14, %v5700_v4  ;;  %v11780_v4 = vld [vmem:[#allocation8 + $0x384] ss:$16 sps:$4 sm:$0xff]   ;;  %v11841_v6 = vld [vmem:[#allocation8 + $0x4c8] ss:$16 sps:$4 sm:$0xff]  }
 0x6ce   : > { %v5850_v61 = vpop.permute.xlu1 %5849  ;;  %6751 = vmatpush1.bf16.msra.mxu0 %v11730_v9  ;;  %6822 = vmatpush1.bf16.msra.mxu1 %v11733_v52  ;;  %v5604_v60 = vpop.permute.xlu0 %5603  ;;  %v11783_v9 = vld [vmem:[#allocation8 + $0x38c] ss:$16 sps:$4 sm:$0xff]   ;;  %v11778_v52 = vld [vmem:[#allocation8 + $0x380] ss:$16 sps:$4 sm:$0xff]  }
 0x6cf   : > { %5865 = vst.msk [vmem:[#allocation4 + $0x68] sm:$0xff] %vm5683_vm13, %v5850_v61  ;;  %6752 = vmatprep.subr.bf16.mxu0 %v11738_v20  ;;  %6823 = vmatprep.subr.bf16.mxu1 %v11741_v27  ;;  %v14408_v43 = vld [vmem:[#allocation4 + $0x58] sm:$0xff]  ;;  %v14436_v27 = vld [vmem:[#allocation3] sm:$0xff] }
 0x6d0   : > { %5619 = vst.msk [vmem:[#allocation4 + $0x70] sm:$0xff] %vm5612_vm12, %v5604_v60  ;;  %v11781_v20 = vld [vmem:[#allocation8 + $0x388] ss:$16 sps:$4 sm:$0xff]   ;;  %v5881_v26 = vpack.c.bf16 %v14370_v13, %v14436_v27  ;;  %v11786_v61 = vld [vmem:[#allocation8 + $0x3a4] ss:$16 sps:$4 sm:$0xff]  }
 0x6d1   : > { %v11789_v60 = vld [vmem:[#allocation8 + $0x3ac] ss:$16 sps:$4 sm:$0xff]  }
 0x6d2   : > { %v5702_v17 = vpop.permute.xlu1 %5701  ;;  %6753 = vmatpush1.bf16.msra.mxu0 %v11736_v44  ;;  %6824 = vmatpush1.bf16.msra.mxu1 %v11739_v34  ;;  %v5675_v47 = vpop.permute.xlu0 %5674  ;;  %v14442_v44 = vpack.c.bf16 %v14384_v35, %v14362_v32  ;;  %v11784_v34 = vld [vmem:[#allocation8 + $0x3a0] ss:$16 sps:$4 sm:$0xff]   ;;  %v11795_v13 = vld [vmem:[#allocation8 + $0x3cc] ss:$16 sps:$4 sm:$0xff]   ;;  %v14450_v32 = vpack.c.bf16 %v14394_v62, %v14372_v48  ;;  %v11798_v35 = vld [vmem:[#allocation8 + $0x3e4] ss:$16 sps:$4 sm:$0xff]  }
 0x6d3   : > { %5718 = vst.msk [vmem:[#allocation4 + $0x60] sm:$0xff] %vm5712_vm14, %v5702_v17  ;;  %6754 = vmatprep.subr.bf16.mxu0 %v11744_v29  ;;  %6825 = vmatprep.subr.bf16.mxu1 %v11747_v10  ;;  %v14418_v46 = vld [vmem:[#allocation4 + $0x50] sm:$0xff]  ;;  %v11787_v29 = vld [vmem:[#allocation8 + $0x3a8] ss:$16 sps:$4 sm:$0xff]   ;;  %v11807_v62 = vld [vmem:[#allocation8 + $0x40c] ss:$16 sps:$4 sm:$0xff]  }
 0x6d4   : > { %5690 = vst.msk [vmem:[#allocation4 + $0x70] sm:$0xff] %vm5683_vm13, %v5675_v47  ;;  %v11792_v10 = vld [vmem:[#allocation8 + $0x3c4] ss:$16 sps:$4 sm:$0xff]   ;;  %v11790_v17 = vld [vmem:[#allocation8 + $0x3c0] ss:$16 sps:$4 sm:$0xff]  }
 0x6d5   : > { %v11793_v47 = vld [vmem:[#allocation8 + $0x3c8] ss:$16 sps:$4 sm:$0xff]   ;;  %v11804_v48 = vld [vmem:[#allocation8 + $0x404] ss:$16 sps:$4 sm:$0xff]  }
 0x6d6   : > { %v5782_v38 = vpop.permute.xlu1 %5781  ;;  %6755 = vmatpush1.bf16.msra.mxu0 %v11742_v24  ;;  %6826 = vmatpush1.bf16.msra.mxu1 %v11745_v3  ;;  %v5704_v25 = vpop.permute.xlu0 %5703  ;;  %v14410_v5 = vld [vmem:[#allocation4 + $0x68] sm:$0xff]  ;;  %v14456_v3 = vpack.c.bf16 %v14408_v43, %v14386_v45  ;;  %v14464_v45 = vpack.c.bf16 %v14418_v46, %v14396_v22 }
 0x6d7   : > { %5796 = vst.msk [vmem:[#allocation4 + $0x78] sm:$0xff] %vm5612_vm12, %v5782_v38  ;;  %v5952_v50 = vpack.c.bf16 %v14410_v5, %v14408_v43  ;;  %6756 = vmatprep.subr.bf16.mxu0 %v11750_v33  ;;  %6827 = vmatprep.subr.bf16.mxu1 %v11753_v0  ;;  %v11801_v24 = vld [vmem:[#allocation8 + $0x3ec] ss:$16 sps:$4 sm:$0xff]   ;;  %v11796_v33 = vld [vmem:[#allocation8 + $0x3e0] ss:$16 sps:$4 sm:$0xff]  }
 0x6d8   : > { %5719 = vst.msk [vmem:[#allocation4 + $0x70] sm:$0xff] %vm5712_vm14, %v5704_v25  ;;  %v11799_v0 = vld [vmem:[#allocation8 + $0x3e8] ss:$16 sps:$4 sm:$0xff]   ;;  %v11810_v25 = vld [vmem:[#allocation8 + $0x424] ss:$16 sps:$4 sm:$0xff]  }
 0x6d9   : > { %10332 = vmatprep.mubr.msk.bf16.mxu0 %vm2480_vm3, %v5952_v50  ;;  %10336 = vmatprep.mubr.msk.bf16.mxu1 %vm2480_vm3, %v5952_v50  ;;  %v11805_v38 = vld [vmem:[#allocation8 + $0x408] ss:$16 sps:$4 sm:$0xff]   ;;  %v11813_v43 = vld [vmem:[#allocation8 + $0x42c] ss:$16 sps:$4 sm:$0xff]   ;;  %v11808_v50 = vld [vmem:[#allocation8 + $0x420] ss:$16 sps:$4 sm:$0xff]  }
 0x6da   : > { %v5852_v42 = vpop.permute.xlu1 %5851  ;;  %6757 = vmatpush1.bf16.msra.mxu0 %v11748_v51  ;;  %6828 = vmatpush1.bf16.msra.mxu1 %v11751_v8  ;;  %v14420_v23 = vld [vmem:[#allocation4 + $0x60] sm:$0xff]  ;;  %v5888_v8 = vpack.c.bf16 %v14410_v5, %v14410_v5  ;;  %v11819_v22 = vld [vmem:[#allocation8 + $0x44c] ss:$16 sps:$4 sm:$0xff]  }
 0x6db   : > { %5866 = vst.msk [vmem:[#allocation4 + $0x78] sm:$0xff] %vm5683_vm13, %v5852_v42  ;;  %v5951_v14 = vpack.c.bf16 %v14420_v23, %v14418_v46  ;;  %6758 = vmatprep.subr.bf16.mxu0 %v11756_v21  ;;  %6829 = vmatprep.subr.bf16.mxu1 %v11759_v30  ;;  %v11802_v51 = vld [vmem:[#allocation8 + $0x400] ss:$16 sps:$4 sm:$0xff]   ;;  %v11811_v21 = vld [vmem:[#allocation8 + $0x428] ss:$16 sps:$4 sm:$0xff]  }
 0x6dc   : > { %v11816_v30 = vld [vmem:[#allocation8 + $0x444] ss:$16 sps:$4 sm:$0xff]   ;;  %v11817_v42 = vld [vmem:[#allocation8 + $0x448] ss:$16 sps:$4 sm:$0xff]  }
 0x6dd   : > { %6357 = vmatmul.mubr.bf16.gmra.mrb[92].mxu0 %v5951_v14  ;;  %6428 = vmatmul.mubr.bf16.gmra.mrb[96].mxu1 %v5951_v14  ;;  %v11822_v46 = vld [vmem:[#allocation8 + $0x464] ss:$16 sps:$4 sm:$0xff]   ;;  %v11820_v14 = vld [vmem:[#allocation8 + $0x460] ss:$16 sps:$4 sm:$0xff]  }
 0x6de   : > { %6759 = vmatpush1.bf16.msra.mxu0 %v11754_v39  ;;  %6830 = vmatpush1.bf16.msra.mxu1 %v11757_v2  ;;  %v11814_v39 = vld [vmem:[#allocation8 + $0x440] ss:$16 sps:$4 sm:$0xff]   ;;  %v11825_v2 = vld [vmem:[#allocation8 + $0x46c] ss:$16 sps:$4 sm:$0xff]  }
 0x6df   : > { %v5945_v59 = vld [vmem:[#allocation4 + $0x70] sm:$0xff]  ;;  %6760 = vmatprep.subr.bf16.mxu0 %v11762_v19  ;;  %6831 = vmatprep.subr.bf16.mxu1 %v11765_v58  ;;  %v11823_v19 = vld [vmem:[#allocation8 + $0x468] ss:$16 sps:$4 sm:$0xff]  }
 0x6e0   : > { %v14426_v15 = vpack.c.bf16 %v5945_v59, %v14420_v23  ;;  %v5953_v12 = vpack.c.bf16 %v5945_v59, %v5945_v59  ;;  %v11828_v58 = vld [vmem:[#allocation8 + $0x484] ss:$16 sps:$4 sm:$0xff]  }
 0x6e1   : > { %v11834_v59 = vld [vmem:[#allocation8 + $0x4a4] ss:$16 sps:$4 sm:$0xff]  }
 0x6e2   : > { %6761 = vmatpush1.bf16.msra.mxu0 %v11760_v57  ;;  %6832 = vmatpush1.bf16.msra.mxu1 %v11763_v28  ;;  %v5946_v11 = vld [vmem:[#allocation4 + $0x78] sm:$0xff] }
 0x6e3   : > { %v5954_v63 = vpack.c.bf16 %v5946_v11, %v5946_v11  ;;  %6762 = vmatprep.subr.bf16.mxu0 %v11768_v55  ;;  %6833 = vmatprep.subr.bf16.mxu1 %v11771_v40  ;;  %v14429_v41 = vpack.c.bf16 %v5946_v11, %v14410_v5  ;;  %v5887_v5 = vpack.c.bf16 %v14420_v23, %v14420_v23  ;;  %v11831_v57 = vld [vmem:[#allocation8 + $0x48c] ss:$16 sps:$4 sm:$0xff]   ;;  %v11826_v23 = vld [vmem:[#allocation8 + $0x480] ss:$16 sps:$4 sm:$0xff]   ;;  %v11829_v28 = vld [vmem:[#allocation8 + $0x488] ss:$16 sps:$4 sm:$0xff]  }
 0x6e4   : > { %v11837_v55 = vld [vmem:[#allocation8 + $0x4ac] ss:$16 sps:$4 sm:$0xff]   ;;  %v11832_v40 = vld [vmem:[#allocation8 + $0x4a0] ss:$16 sps:$4 sm:$0xff]   ;;  %v11835_v11 = vld [vmem:[#allocation8 + $0x4a8] ss:$16 sps:$4 sm:$0xff]  }
 0x6e5   : > { %10333 = vmatprep.mubr.msk.bf16.mxu0 %vm2480_vm3, %v5954_v63  ;;  %10337 = vmatprep.mubr.msk.bf16.mxu1 %vm2480_vm3, %v5954_v63  ;;  %v11840_v63 = vld [vmem:[#allocation8 + $0x4c4] ss:$16 sps:$4 sm:$0xff]  }
 0x6e6   : > { %6367 = vmatmul.mubr.bf16.gmra.mrb[96].mxu0 %v5953_v12  ;;  %6438 = vmatmul.mubr.bf16.gmra.mrb[100].mxu1 %v5953_v12  ;;  %v11846_v12 = vld [vmem:[#allocation8 + $0x4e4] ss:$16 sps:$4 sm:$0xff]  }
 0x6e7   : > { %6763 = vmatpush1.bf16.msra.mxu0 %v11766_v49  ;;  %6834 = vmatpush1.bf16.msra.mxu1 %v11769_v36  ;;  %v11843_v49 = vld [vmem:[#allocation8 + $0x4cc] ss:$16 sps:$4 sm:$0xff]   ;;  %v11838_v36 = vld [vmem:[#allocation8 + $0x4c0] ss:$16 sps:$4 sm:$0xff]  }
 0x6e8   : > { %10394 = vmatprep.mubr.msk.bf16.mxu0 %vm2480_vm3, %v5882_v56  ;;  %10398 = vmatprep.mubr.msk.bf16.mxu1 %vm2480_vm3, %v5882_v56  ;;  %v11847_v56 = vld [vmem:[#allocation8 + $0x4e8] ss:$16 sps:$4 sm:$0xff]  }
 0x6e9   : > { %6764 = vmatprep.subr.bf16.mxu0 %v11774_v31  ;;  %6835 = vmatprep.subr.bf16.mxu1 %v11777_v7  ;;  %v11849_v31 = vld [vmem:[#allocation8 + $0x4ec] ss:$16 sps:$4 sm:$0xff]   ;;  %v11844_v7 = vld [vmem:[#allocation8 + $0x4e0] ss:$16 sps:$4 sm:$0xff]  }
 0x6eb   : > { %6765 = vmatpush1.bf16.msra.mxu0 %v11772_v53  ;;  %6836 = vmatpush1.bf16.msra.mxu1 %v11775_v37  ;;  %v11852_v53 = vld [vmem:[#allocation8 + $0x504] ss:$16 sps:$4 sm:$0xff]   ;;  %v11855_v37 = vld [vmem:[#allocation8 + $0x50c] ss:$16 sps:$4 sm:$0xff]  }
 0x6ec   : > { %7251 = vmatprep.subr.bf16.mxu0 %v11780_v4  ;;  %7322 = vmatprep.subr.bf16.mxu1 %v11783_v9  ;;  %v11850_v4 = vld [vmem:[#allocation8 + $0x500] ss:$16 sps:$4 sm:$0xff]   ;;  %v11853_v9 = vld [vmem:[#allocation8 + $0x508] ss:$16 sps:$4 sm:$0xff]  }
 0x6ee   : > { %6771 = vmatmul.mubr.bf16.vlgmr.msra.gmra.mrb[84].mxu0 %v5881_v26  ;;  %6842 = vmatmul.mubr.bf16.vlgmr.msra.gmra.mrb[88].mxu1 %v5881_v26  ;;  %v11856_v26 = vld [vmem:[#allocation8 + $0x520] ss:$16 sps:$4 sm:$0xff]  }
 0x6ef   : > { %7252 = vmatpush1.bf16.msra.mxu0 %v11778_v52  ;;  %7323 = vmatpush1.bf16.msra.mxu1 %v11781_v20  ;;  %v11858_v52 = vld [vmem:[#allocation8 + $0x524] ss:$16 sps:$4 sm:$0xff]   ;;  %v11861_v20 = vld [vmem:[#allocation8 + $0x52c] ss:$16 sps:$4 sm:$0xff]  }
 0x6f0   : > { %10395 = vmatprep.mubr.msk.bf16.mxu0 %vm2480_vm3, %v14442_v44  ;;  %10399 = vmatprep.mubr.msk.bf16.mxu1 %vm2480_vm3, %v14442_v44 }
 0x6f1   : > { %7253 = vmatprep.subr.bf16.mxu0 %v11786_v61  ;;  %7324 = vmatprep.subr.bf16.mxu1 %v11789_v60  ;;  %v11859_v61 = vld [vmem:[#allocation8 + $0x528] ss:$16 sps:$4 sm:$0xff]   ;;  %v14823_v60 = vmov 0  }
 0x6f3   : > { %7254 = vmatpush1.bf16.msra.mxu0 %v11784_v34  ;;  %7325 = vmatpush1.bf16.msra.mxu1 %v11787_v29  ;;  %v6900_v29 = vpack.c.bf16 %v14436_v27, %v14436_v27  ;;  %v11870_v27 = vld [vmem:[#allocation10 + $0xe8] sm:$0xff]  }
 0x6f4   : > { %7255 = vmatprep.subr.bf16.mxu0 %v11792_v10  ;;  %7326 = vmatprep.subr.bf16.mxu1 %v11795_v13  ;;  %v11862_v10 = vld [vmem:[#allocation10 + $0x160] sm:$0xff]   ;;  %v11864_v13 = vld [vmem:[#allocation10 + $0x170] sm:$0xff]  }
 0x6f6   : > { %6781 = vmatmul.mubr.bf16.gmra.mrb[88].mxu0 %v14450_v32  ;;  %6852 = vmatmul.mubr.bf16.gmra.mrb[92].mxu1 %v14450_v32 }
 0x6f7   : > { %7256 = vmatpush1.bf16.msra.mxu0 %v11790_v17  ;;  %7327 = vmatpush1.bf16.msra.mxu1 %v11793_v47  ;;  %v11866_v17 = vld [vmem:[#allocation10 + $0x120] sm:$0xff]   ;;  %v11869_v47 = vld [vmem:[#allocation10 + $0x128] sm:$0xff]  }
 0x6f8   : > { %10396 = vmatprep.mubr.msk.bf16.mxu0 %vm2480_vm3, %v14456_v3  ;;  %10400 = vmatprep.mubr.msk.bf16.mxu1 %vm2480_vm3, %v14456_v3 }
 0x6f9   : > { %7257 = vmatprep.subr.bf16.mxu0 %v11798_v35  ;;  %7328 = vmatprep.subr.bf16.mxu1 %v11801_v24  ;;  %v11872_v35 = vld [vmem:[#allocation10 + $0x130] sm:$0xff]   ;;  %v11868_v24 = vld [vmem:[#allocation10 + $0x180] sm:$0xff]  }
 0x6fb   : > { %7258 = vmatpush1.bf16.msra.mxu0 %v11796_v33  ;;  %7329 = vmatpush1.bf16.msra.mxu1 %v11799_v0  ;;  %v11875_v33 = vld [vmem:[#allocation10 + $0x138] sm:$0xff]   ;;  %v11871_v0 = vld [vmem:[#allocation10 + $0x188] sm:$0xff]  }
 0x6fc   : > { %7259 = vmatprep.subr.bf16.mxu0 %v11804_v48  ;;  %7330 = vmatprep.subr.bf16.mxu1 %v11807_v62  ;;  %v11876_v48 = vld [vmem:[#allocation10 + $0xf8] sm:$0xff]   ;;  %v11878_v62 = vld [vmem:[#allocation10 + $0x140] sm:$0xff]  }
 0x6fe   : > { %6791 = vmatmul.mubr.bf16.gmra.mrb[92].mxu0 %v14464_v45  ;;  %6862 = vmatmul.mubr.bf16.gmra.mrb[96].mxu1 %v14464_v45 }
 0x6ff   : > { %7260 = vmatpush1.bf16.msra.mxu0 %v11802_v51  ;;  %7331 = vmatpush1.bf16.msra.mxu1 %v11805_v38  ;;  %v11874_v51 = vld [vmem:[#allocation10 + $0x190] sm:$0xff]   ;;  %v11879_v38 = vld [vmem:[#allocation10 + $0x100] sm:$0xff]  }
 0x700   : > { %10397 = vmatprep.mubr.msk.bf16.mxu0 %vm2480_vm3, %v5888_v8  ;;  %10401 = vmatprep.mubr.msk.bf16.mxu1 %vm2480_vm3, %v5888_v8  ;;  %v11882_v8 = vld [vmem:[#allocation10 + $0x108] sm:$0xff]  }
 0x701   : > { %7261 = vmatprep.subr.bf16.mxu0 %v11810_v25  ;;  %7332 = vmatprep.subr.bf16.mxu1 %v11813_v43  ;;  %v11880_v25 = vld [vmem:[#allocation10 + $0x1a0] sm:$0xff]   ;;  %v11881_v43 = vld [vmem:[#allocation10 + $0x148] sm:$0xff]  }
 0x703   : > { %7262 = vmatpush1.bf16.msra.mxu0 %v11808_v50  ;;  %7333 = vmatpush1.bf16.msra.mxu1 %v11811_v21  ;;  %v11883_v50 = vld [vmem:[#allocation10 + $0x1a8] sm:$0xff]   ;;  %v11884_v21 = vld [vmem:[#allocation10 + $0x150] sm:$0xff]  }
 0x704   : > { %7263 = vmatprep.subr.bf16.mxu0 %v11816_v30  ;;  %7334 = vmatprep.subr.bf16.mxu1 %v11819_v22  ;;  %v11885_v30 = vld [vmem:[#allocation10 + $0x110] sm:$0xff]  }
 0x705   : > { %v11886_v22 = vld [vmem:[#allocation10 + $0x1b0] sm:$0xff]  }
 0x706   : > { %6801 = vmatmul.mubr.bf16.gmra.mrb[100].mxu0 %v5887_v5  ;;  %6872 = vmatmul.mubr.bf16.gmra.mrb[104].mxu1 %v5887_v5  ;;  %v11889_v5 = vld [vmem:[#allocation10 + $0x1b8] sm:$0xff]  }
 0x707   : > { %7264 = vmatpush1.bf16.msra.mxu0 %v11814_v39  ;;  %7335 = vmatpush1.bf16.msra.mxu1 %v11817_v42  ;;  %v11887_v39 = vld [vmem:[#allocation10 + $0x158] sm:$0xff]  }
 0x708   : > { %10458 = vmatprep.mubr.msk.bf16.mxu0 %vm2480_vm3, %v14442_v44  ;;  %10462 = vmatprep.mubr.msk.bf16.mxu1 %vm2480_vm3, %v14442_v44  ;;  %v6893_v44 = vld [vmem:[#allocation4 + $0x88] sm:$0xff] }
 0x709   : > { %7265 = vmatprep.subr.bf16.mxu0 %v11822_v46  ;;  %7336 = vmatprep.subr.bf16.mxu1 %v11825_v2  ;;  %v6901_v34 = vpack.c.bf16 %v6893_v44, %v6893_v44  ;;  %v11888_v42 = vld [vmem:[#allocation10 + $0x118] sm:$0xff]   ;;  %v11890_v46 = vld [vmem:[#allocation10 + $0x40] sm:$0xff]  }
 0x70b   : > { %7266 = vmatpush1.bf16.msra.mxu0 %v11820_v14  ;;  %7337 = vmatpush1.bf16.msra.mxu1 %v11823_v19 }
 0x70c   : > { %7267 = vmatprep.subr.bf16.mxu0 %v11828_v58  ;;  %7338 = vmatprep.subr.bf16.mxu1 %v11831_v57 }
 0x70f   : > { %7268 = vmatpush1.bf16.msra.mxu0 %v11826_v23  ;;  %7339 = vmatpush1.bf16.msra.mxu1 %v11829_v28 }
 0x710   : > { %7269 = vmatprep.subr.bf16.mxu0 %v11834_v59  ;;  %7340 = vmatprep.subr.bf16.mxu1 %v11837_v55 }
 0x713   : > { %7270 = vmatpush1.bf16.msra.mxu0 %v11832_v40  ;;  %7341 = vmatpush1.bf16.msra.mxu1 %v11835_v11 }
 0x714   : > { %7271 = vmatprep.subr.bf16.mxu0 %v11840_v63  ;;  %7342 = vmatprep.subr.bf16.mxu1 %v11843_v49 }
 0x717   : > { %7272 = vmatpush1.bf16.msra.mxu0 %v11838_v36  ;;  %7343 = vmatpush1.bf16.msra.mxu1 %v11841_v6 }
 0x718   : > { %7273 = vmatprep.subr.bf16.mxu0 %v11846_v12  ;;  %7344 = vmatprep.subr.bf16.mxu1 %v11849_v31 }
 0x71b   : > { %7274 = vmatpush1.bf16.msra.mxu0 %v11844_v7  ;;  %7345 = vmatpush1.bf16.msra.mxu1 %v11847_v56 }
 0x71c   : > { %7275 = vmatprep.subr.bf16.mxu0 %v11852_v53  ;;  %7346 = vmatprep.subr.bf16.mxu1 %v11855_v37  ;;  %v7421_v37 = vld [vmem:[%s14756_s6] sm:$0xf] }
 0x71f   : > { %7276 = vmatpush1.bf16.msra.mxu0 %v11850_v4  ;;  %7347 = vmatpush1.bf16.msra.mxu1 %v11853_v9  ;;  %v14521_v4 = vrot.slane %v7421_v37, %v14819_v54  ;;  %v14524_v9 = vrot.slane %v7421_v37, %v14820_v16 }
 0x720   : > { %7277 = vmatprep.subr.bf16.mxu0 %v11858_v52  ;;  %7348 = vmatprep.subr.bf16.mxu1 %v11861_v20  ;;  %v14527_v52 = vrot.slane %v7421_v37, %v14821_v1  ;;  %v14530_v20 = vrot.slane %v7421_v37, %v14822_v18 }
 0x723   : > { %7278 = vmatpush1.bf16.msra.mxu0 %v11856_v26  ;;  %7349 = vmatpush1.bf16.msra.mxu1 %v11859_v61 }
 0x724   : > { %7851 = vmatprep.subr.bf16.mxu1 %v14823_v60  ;;  %10681 = vmatprep.subr.bf16.mxu0 %v11866_v17 }
 0x726   : > { %7284 = vmatmul.mubr.bf16.vlgmr.msra.gmra.mrb[84].mxu0 %v14450_v32  ;;  %7355 = vmatmul.mubr.bf16.vlgmr.msra.gmra.mrb[88].mxu1 %v14450_v32  ;;  %v11865_v32 = vld [vmem:[#allocation10 + $0x178] sm:$0xff]  }
 0x727   : > { %10459 = vmatprep.mubr.msk.bf16.mxu0 %vm2480_vm3, %v14456_v3  ;;  %10463 = vmatprep.mubr.msk.bf16.mxu1 %vm2480_vm3, %v14456_v3  ;;  %v11873_v3 = vld [vmem:[#allocation10 + $0xf0] sm:$0xff]  }
 0x728   : > { %7852 = vmatpush1.bf16.msra.mxu1 %v11862_v10 }
 0x729   : > { %7853 = vmatprep.subr.bf16.mxu1 %v14823_v60 }
 0x72e   : > { %7294 = vmatmul.mubr.bf16.gmra.mrb[88].mxu0 %v14464_v45  ;;  %7365 = vmatmul.mubr.bf16.gmra.mrb[92].mxu1 %v14464_v45  ;;  %v11877_v45 = vld [vmem:[#allocation10 + $0x198] sm:$0xff]  }
 0x72f   : > { %10460 = vmatprep.mubr.msk.bf16.mxu0 %vm2480_vm3, %v14429_v41  ;;  %10464 = vmatprep.mubr.msk.bf16.mxu1 %vm2480_vm3, %v14429_v41  ;;  %v11863_v41 = vld [vmem:[#allocation10 + $0x168] sm:$0xff]  }
 0x730   : > { %7854 = vmatpush1.bf16.msra.mxu1 %v11863_v41 }
 0x731   : > { %7855 = vmatprep.subr.bf16.mxu1 %v14823_v60 }
 0x734   : > { %7856 = vmatpush1.bf16.msra.mxu1 %v11864_v13 }
 0x735   : > { %7857 = vmatprep.subr.bf16.mxu1 %v14823_v60 }
 0x736   : > { %7304 = vmatmul.mubr.bf16.gmra.mrb[92].mxu0 %v14426_v15  ;;  %7375 = vmatmul.mubr.bf16.gmra.mrb[96].mxu1 %v14426_v15  ;;  %v11867_v15 = vld [vmem:[#allocation10 + $0xe0] sm:$0xff]  }
 0x737   : > { %10461 = vmatprep.mubr.msk.bf16.mxu0 %vm2480_vm3, %v6901_v34  ;;  %10465 = vmatprep.mubr.msk.bf16.mxu1 %vm2480_vm3, %v6901_v34 }
 0x738   : > { %10682 = vmatpush3.bf16.msra.mxu0 %v11867_v15  ;;  %7858 = vmatpush1.bf16.msra.mxu1 %v11865_v32 }
 0x739   : > { %10683 = vmatprep.subr.bf16.mxu0 %v11869_v47  ;;  %7859 = vmatprep.subr.bf16.mxu1 %v14823_v60 }
 0x73c   : > { %10684 = vmatpush3.bf16.msra.mxu0 %v11870_v27  ;;  %7860 = vmatpush1.bf16.msra.mxu1 %v11868_v24 }
 0x73d   : > { %10685 = vmatprep.subr.bf16.mxu0 %v11872_v35  ;;  %7861 = vmatprep.subr.bf16.mxu1 %v14823_v60 }
 0x73e   : > { %7314 = vmatmul.mubr.bf16.gmra.mrb[104].mxu0 %v6900_v29  ;;  %7385 = vmatmul.mubr.bf16.gmra.mrb[108].mxu1 %v6900_v29 }
 0x740   : > { %10686 = vmatpush3.bf16.msra.mxu0 %v11873_v3  ;;  %7862 = vmatpush1.bf16.msra.mxu1 %v11871_v0 }
 0x741   : > { %10687 = vmatprep.subr.bf16.mxu0 %v11875_v33  ;;  %7863 = vmatprep.subr.bf16.mxu1 %v14823_v60 }
 0x744   : > { %10688 = vmatpush3.bf16.msra.mxu0 %v11876_v48  ;;  %7864 = vmatpush1.bf16.msra.mxu1 %v11874_v51 }
 0x745   : > { %10689 = vmatprep.subr.bf16.mxu0 %v11878_v62  ;;  %7865 = vmatprep.subr.bf16.mxu1 %v14823_v60 }
 0x748   : > { %10690 = vmatpush3.bf16.msra.mxu0 %v11879_v38  ;;  %7866 = vmatpush1.bf16.msra.mxu1 %v11877_v45 }
 0x749   : > { %7867 = vmatprep.subr.bf16.mxu1 %v14823_v60  ;;  %10691 = vmatprep.subr.bf16.mxu0 %v11881_v43 }
 0x74c   : > { %7868 = vmatpush1.bf16.msra.mxu1 %v11880_v25  ;;  %10692 = vmatpush3.bf16.msra.mxu0 %v11882_v8 }
 0x74d   : > { %7869 = vmatprep.subr.bf16.mxu1 %v14823_v60  ;;  %10693 = vmatprep.subr.bf16.mxu0 %v11884_v21 }
 0x750   : > { %7870 = vmatpush1.bf16.msra.mxu1 %v11883_v50  ;;  %10694 = vmatpush3.bf16.msra.mxu0 %v11885_v30 }
 0x751   : > { %7871 = vmatprep.subr.bf16.mxu1 %v14823_v60  ;;  %10695 = vmatprep.subr.bf16.mxu0 %v11887_v39 }
 0x754   : > { %7872 = vmatpush1.bf16.msra.mxu1 %v11886_v22  ;;  %10696 = vmatpush3.bf16.msra.mxu0 %v11888_v42 }
 0x755   : > { %7873 = vmatprep.subr.bf16.mxu1 %v14823_v60  ;;  %10703 = vmatprep.subr.bf16.mxu0 %v11890_v46 }
 0x758   : > { %7874 = vmatpush1.bf16.msra.mxu1 %v11889_v5 }
 0x759   : > { %8102 = vmatprep.subr.bf16.mxu1 %v14823_v60 }
 0x7b9   : > { %v6368_v2 = vpop.f32.mrb[96].mxu0  ;;  %v6439_v14 = vpop.f32.mrb[100].mxu1 }
 0x7ba   : > { %v6370_v19 = vpop.f32.mrb[97].mxu0  ;;  %v6441_v58 = vpop.f32.mrb[101].mxu1 }
 0x7bb   : > { %v6372_v57 = vpop.f32.mrb[98].mxu0  ;;  %v6443_v23 = vpop.f32.mrb[102].mxu1 }
 0x7bc   : > { %v6373_v28 = vpop.f32.mrb[99].mxu0  ;;  %v6444_v59 = vpop.f32.mrb[103].mxu1 }
 0x7d9   : > { %v6802_v55 = vpop.f32.mrb[100].mxu0  ;;  %v6873_v40 = vpop.f32.mrb[104].mxu1 }
 0x7da   : > { %v14509_v11 = vadd.f32 %v6802_v55, %v6368_v2  ;;  %v14511_v63 = vadd.f32 %v6873_v40, %v6439_v14  ;;  %v6804_v49 = vpop.f32.mrb[101].mxu0  ;;  %v6875_v36 = vpop.f32.mrb[105].mxu1 }
 0x7db   : > { %v14513_v6 = vadd.f32 %v6804_v49, %v6370_v19  ;;  %v14515_v12 = vadd.f32 %v6875_v36, %v6441_v58  ;;  %v6806_v31 = vpop.f32.mrb[102].mxu0  ;;  %v6877_v7 = vpop.f32.mrb[106].mxu1  ;;  %v11891_v19 = vld [vmem:[#allocation10] sm:$0xff]  }
 0x7dc   : > { %v6807_v56 = vpop.f32.mrb[103].mxu0  ;;  %v6878_v53 = vpop.f32.mrb[107].mxu1  ;;  %v11892_v58 = vld [vmem:[#allocation10 + $0x80] sm:$0xff]   ;;  %v11893_v31 = vld [vmem:[#allocation10 + $0x48] sm:$0xff]  }
 0x7f9   : > { %v7285_v26 = vpop.f32.mrb[84].mxu0  ;;  %v7356_v61 = vpop.f32.mrb[88].mxu1 }
 0x7fa   : > { %v7443_v44 = vadd.f32 %v14521_v4, %v7285_v26  ;;  %v7445_v34 = vadd.f32 %v14524_v9, %v7356_v61  ;;  %v7287_v29 = vpop.f32.mrb[85].mxu0  ;;  %v7358_v10 = vpop.f32.mrb[89].mxu1 }
 0x7fb   : > { %v7444_v54 = vadd.f32 %v14527_v52, %v7287_v29  ;;  %v7446_v41 = vadd.f32 %v14530_v20, %v7358_v10  ;;  %v7289_v16 = vpop.f32.mrb[86].mxu0  ;;  %v7360_v13 = vpop.f32.mrb[90].mxu1  ;;  %v11894_v29 = vld [vmem:[#allocation10 + $0x8] sm:$0xff]  }
 0x7fc   : > { %v7447_v1 = vadd.f32 %v14521_v4, %v7289_v16  ;;  %v7449_v17 = vadd.f32 %v14524_v9, %v7360_v13  ;;  %v7291_v18 = vpop.f32.mrb[87].mxu0  ;;  %v7362_v15 = vpop.f32.mrb[91].mxu1  ;;  %v7471_v27 = vmax.f32 %v7443_v44, 0.0  ;;  %v7473_v35 = vmax.f32 %v7445_v34, 0.0  ;;  %v11895_v10 = vld [vmem:[#allocation10 + $0x88] sm:$0xff]   ;;  %v11896_v16 = vld [vmem:[#allocation10 + $0x50] sm:$0xff]  }
 0x7fd   : > { %v7448_v47 = vadd.f32 %v14527_v52, %v7291_v18  ;;  %v7450_v32 = vadd.f32 %v14530_v20, %v7362_v15  ;;  %v7472_v33 = vmax.f32 %v7444_v54, 0.0  ;;  %v7474_v0 = vmax.f32 %v7446_v41, 0.0 }
 0x7fe   : > { %v7475_v24 = vmax.f32 %v7447_v1, 0.0  ;;  %v7477_v3 = vmax.f32 %v7449_v17, 0.0 }
 0x7ff   : > { %v7476_v48 = vmax.f32 %v7448_v47, 0.0  ;;  %v7478_v62 = vmax.f32 %v7450_v32, 0.0 }
 0x800   : > { %v14540_v51 = vpack.c.bf16 %v7475_v24, %v7471_v27  ;;  %v14542_v38 = vpack.c.bf16 %v7477_v3, %v7473_v35 }
 0x801   : > { %v7500_v45 = vpack.c.bf16 %v7476_v48, %v7472_v33  ;;  %v7502_v25 = vpack.c.bf16 %v7478_v62, %v7474_v0  ;;  %v7295_v43 = vpop.f32.mrb[88].mxu0  ;;  %v7366_v8 = vpop.f32.mrb[92].mxu1  ;;  %v11897_v0 = vld [vmem:[#allocation10 + $0x10] sm:$0xff]  }
 0x802   : > { %v7451_v50 = vadd.f32 %v14521_v4, %v7295_v43  ;;  %v7453_v21 = vadd.f32 %v14524_v9, %v7366_v8  ;;  %v7297_v30 = vpop.f32.mrb[89].mxu0  ;;  %v7368_v22 = vpop.f32.mrb[93].mxu1  ;;  %v7632_v57 = vrot.slane %v14540_v51, 4  ;;  %v7634_v23 = vrot.slane %v14542_v38, 4  ;;  %v11898_v48 = vld [vmem:[#allocation10 + $0x90] sm:$0xff]   ;;  %v11899_v8 = vld [vmem:[#allocation10 + $0x58] sm:$0xff]  }
 0x803   : > { %v7635_v39 = vrot.slane %v7502_v25, 4  ;;  %v7452_v42 = vadd.f32 %v14527_v52, %v7297_v30  ;;  %v7454_v5 = vadd.f32 %v14530_v20, %v7368_v22  ;;  %v7299_v46 = vpop.f32.mrb[90].mxu0  ;;  %v7370_v2 = vpop.f32.mrb[94].mxu1  ;;  %v7633_v14 = vrot.slane %v7500_v45, 4 }
 0x804   : > { %v7455_v28 = vadd.f32 %v14521_v4, %v7299_v46  ;;  %v7457_v59 = vadd.f32 %v14524_v9, %v7370_v2  ;;  %v7301_v55 = vpop.f32.mrb[91].mxu0  ;;  %v7372_v40 = vpop.f32.mrb[95].mxu1  ;;  %v7479_v7 = vmax.f32 %v7451_v50, 0.0  ;;  %v7481_v56 = vmax.f32 %v7453_v21, 0.0 }
 0x805   : > { %v7456_v49 = vadd.f32 %v14527_v52, %v7301_v55  ;;  %v7458_v36 = vadd.f32 %v14530_v20, %v7372_v40  ;;  %7843 = vmatprep.mubr.bf16.mxu0 %v7633_v14  ;;  %10494 = vmatprep.mubr.msk.bf16.mxu1 %vm7807_vm15, %v7635_v39  ;;  %v7480_v26 = vmax.f32 %v7452_v42, 0.0  ;;  %v7482_v61 = vmax.f32 %v7454_v5, 0.0 }
 0x806   : > { %v7483_v53 = vmax.f32 %v7455_v28, 0.0  ;;  %v7485_v37 = vmax.f32 %v7457_v59, 0.0  ;;  %7844 = vmatmul.mubr.bf16.vlgmr.msra.gmra.mrb[108].mxu0 %v7632_v57  ;;  %7884 = vmatmul.mubr.bf16.vlgmr.msra.gmra.mrb[112].mxu1 %v7634_v23  ;;  %v11902_v28 = vld [vmem:[#allocation10 + $0x60] sm:$0xff]  }
 0x807   : > { %v7484_v44 = vmax.f32 %v7456_v49, 0.0  ;;  %v7486_v34 = vmax.f32 %v7458_v36, 0.0  ;;  %10704 = vmatpush3.bf16.msra.mxu0 %v11891_v19  ;;  %8103 = vmatpush1.bf16.msra.mxu1 %v11892_v58  ;;  %v11900_v19 = vld [vmem:[#allocation10 + $0x18] sm:$0xff]  }
 0x808   : > { %v14555_v54 = vpack.c.bf16 %v7483_v53, %v7479_v7  ;;  %v14557_v41 = vpack.c.bf16 %v7485_v37, %v7481_v56  ;;  %8094 = vmatprep.mubr.bf16.mxu0 %v7500_v45  ;;  %10523 = vmatprep.mubr.msk.bf16.mxu1 %vm7807_vm15, %v7502_v25  ;;  %v11901_v58 = vld [vmem:[#allocation10 + $0x98] sm:$0xff]  }
 0x809   : > { %v14560_v13 = vpack.c.bf16 %v7484_v44, %v7480_v26  ;;  %v14562_v1 = vpack.c.bf16 %v7486_v34, %v7482_v61  ;;  %v7305_v17 = vpop.f32.mrb[92].mxu0  ;;  %v7376_v18 = vpop.f32.mrb[96].mxu1  ;;  %10705 = vmatprep.subr.bf16.mxu0 %v11893_v31  ;;  %8104 = vmatprep.subr.bf16.mxu1 %v14823_v60  ;;  %v11903_v26 = vld [vmem:[#allocation10 + $0x20] sm:$0xff]  }
 0x80a   : > { %v7459_v15 = vadd.f32 %v14521_v4, %v7305_v17  ;;  %v7461_v47 = vadd.f32 %v14524_v9, %v7376_v18  ;;  %v7307_v32 = vpop.f32.mrb[93].mxu0  ;;  %v7378_v27 = vpop.f32.mrb[97].mxu1  ;;  %v11904_v61 = vld [vmem:[#allocation10 + $0xa0] sm:$0xff]   ;;  %v11906_v17 = vld [vmem:[#allocation10 + $0x28] sm:$0xff]   ;;  %v11909_v18 = vld [vmem:[#allocation10 + $0x30] sm:$0xff]  }
 0x80b   : > { %v7460_v35 = vadd.f32 %v14527_v52, %v7307_v32  ;;  %v7462_v24 = vadd.f32 %v14530_v20, %v7378_v27  ;;  %10706 = vmatpush3.bf16.msra.mxu0 %v11894_v29  ;;  %8105 = vmatpush1.bf16.msra.mxu1 %v11895_v10  ;;  %v7309_v3 = vpop.f32.mrb[94].mxu0  ;;  %v7380_v33 = vpop.f32.mrb[98].mxu1  ;;  %v11914_v32 = vld [vmem:[#allocation10 + $0x200] sm:$0xff]  }
 0x80c   : > { %v7463_v62 = vadd.f32 %v14521_v4, %v7309_v3  ;;  %v7465_v45 = vadd.f32 %v14524_v9, %v7380_v33  ;;  %v7311_v25 = vpop.f32.mrb[95].mxu0  ;;  %v7382_v43 = vpop.f32.mrb[99].mxu1  ;;  %10707 = vmatprep.subr.bf16.mxu0 %v11896_v16  ;;  %8106 = vmatprep.subr.bf16.mxu1 %v14823_v60  ;;  %v7487_v30 = vmax.f32 %v7459_v15, 0.0  ;;  %v7489_v22 = vmax.f32 %v7461_v47, 0.0  ;;  %v11910_v15 = vld [vmem:[#allocation10 + $0xb0] sm:$0xff]   ;;  %v11913_v47 = vld [vmem:[#allocation10 + $0xb8] sm:$0xff]  }
 0x80d   : > { %v7464_v50 = vadd.f32 %v14527_v52, %v7311_v25  ;;  %v7466_v21 = vadd.f32 %v14530_v20, %v7382_v43  ;;  %v7488_v5 = vmax.f32 %v7460_v35, 0.0  ;;  %v7490_v46 = vmax.f32 %v7462_v24, 0.0  ;;  %v11915_v27 = vld [vmem:[#allocation10 + $0xc0] sm:$0xff]   ;;  %v11917_v24 = vld [vmem:[#allocation10 + $0x208] sm:$0xff]   ;;  %v11925_v25 = vld [vmem:[#allocation10 + $0x1d8] sm:$0xff]  }
 0x80e   : > { %v7491_v39 = vmax.f32 %v7463_v62, 0.0  ;;  %v7493_v42 = vmax.f32 %v7465_v45, 0.0  ;;  %v11916_v35 = vld [vmem:[#allocation10 + $0x1c0] sm:$0xff]   ;;  %v11918_v3 = vld [vmem:[#allocation10 + $0xc8] sm:$0xff]   ;;  %v11922_v62 = vld [vmem:[#allocation10 + $0x1d0] sm:$0xff]  }
 0x80f   : > { %v7492_v2 = vmax.f32 %v7464_v50, 0.0  ;;  %v7494_v14 = vmax.f32 %v7466_v21, 0.0  ;;  %10708 = vmatpush3.bf16.msra.mxu0 %v11897_v0  ;;  %8107 = vmatpush1.bf16.msra.mxu1 %v11898_v48  ;;  %v11919_v33 = vld [vmem:[#allocation10 + $0x1c8] sm:$0xff]   ;;  %v11920_v0 = vld [vmem:[#allocation10 + $0x210] sm:$0xff]   ;;  %v11923_v45 = vld [vmem:[#allocation10 + $0x218] sm:$0xff]  }
 0x810   : > { %v14574_v57 = vpack.c.bf16 %v7491_v39, %v7487_v30  ;;  %v14576_v23 = vpack.c.bf16 %v7493_v42, %v7489_v22  ;;  %10709 = vmatprep.subr.bf16.mxu0 %v11899_v8  ;;  %8108 = vmatprep.subr.bf16.mxu1 %v14823_v60  ;;  %v11921_v48 = vld [vmem:[#allocation10 + $0xd0] sm:$0xff]   ;;  %v11926_v43 = vld [vmem:[#allocation10 + $0x220] sm:$0xff]   ;;  %v11930_v30 = vld [vmem:[#allocation10 + $0x228] sm:$0xff]   ;;  %v8513_v39 = vrot.slane %v14560_v13, 4 }
 0x811   : > { %v14579_v59 = vpack.c.bf16 %v7492_v2, %v7488_v5  ;;  %v14581_v55 = vpack.c.bf16 %v7494_v14, %v7490_v46  ;;  %v7315_v40 = vpop.f32.mrb[104].mxu0  ;;  %v7386_v49 = vpop.f32.mrb[108].mxu1  ;;  %v11927_v8 = vld [vmem:[#allocation10 + $0x2e0] sm:$0xff]   ;;  %v11931_v22 = vld [vmem:[#allocation10 + $0x2e8] sm:$0xff]   ;;  %v11934_v46 = vld [vmem:[#allocation10 + $0x230] sm:$0xff]  }
 0x812   : > { %v7417_v36 = vadd.f32 %v7315_v40, %v14509_v11  ;;  %v7419_v31 = vadd.f32 %v7386_v49, %v14511_v63  ;;  %v7317_v7 = vpop.f32.mrb[105].mxu0  ;;  %v7388_v56 = vpop.f32.mrb[109].mxu1  ;;  %v11905_v11 = vld [vmem:[#allocation10 + $0x68] sm:$0xff]   ;;  %v11928_v50 = vld [vmem:[#allocation10 + $0x1e0] sm:$0xff]   ;;  %v11935_v2 = vld [vmem:[#allocation10 + $0x2f0] sm:$0xff]  }
 0x813   : > { %v7418_v53 = vadd.f32 %v7317_v7, %v14513_v6  ;;  %v7420_v37 = vadd.f32 %v7388_v56, %v14515_v12  ;;  %10710 = vmatpush3.bf16.msra.mxu0 %v11900_v19  ;;  %8109 = vmatpush1.bf16.msra.mxu1 %v11901_v58  ;;  %v7319_v44 = vpop.f32.mrb[106].mxu0  ;;  %v7390_v34 = vpop.f32.mrb[110].mxu1  ;;  %v11929_v21 = vld [vmem:[#allocation10 + $0x2a0] sm:$0xff]   ;;  %v11932_v42 = vld [vmem:[#allocation10 + $0x1e8] sm:$0xff]   ;;  %v11936_v14 = vld [vmem:[#allocation10 + $0x1f0] sm:$0xff]  }
 0x814   : > { %v14588_v29 = vadd.f32 %v14521_v4, %v7417_v36  ;;  %v14591_v10 = vadd.f32 %v14524_v9, %v7419_v31  ;;  %10711 = vmatprep.subr.bf16.mxu0 %v11902_v28  ;;  %8110 = vmatprep.subr.bf16.mxu1 %v14823_v60  ;;  %v7320_v63 = vpop.f32.mrb[107].mxu0  ;;  %v7391_v6 = vpop.f32.mrb[111].mxu1  ;;  %v11907_v4 = vld [vmem:[#allocation10 + $0xa8] sm:$0xff]   ;;  %v11908_v9 = vld [vmem:[#allocation10 + $0x70] sm:$0xff]   ;;  %v11938_v58 = vld [vmem:[#allocation10 + $0x238] sm:$0xff]  }
 0x815   : > { %v14595_v12 = vadd.f32 %v14527_v52, %v7418_v53  ;;  %v14598_v16 = vadd.f32 %v14530_v20, %v7420_v37  ;;  %v11911_v52 = vld [vmem:[#allocation10 + $0x78] sm:$0xff]   ;;  %v11933_v5 = vld [vmem:[#allocation10 + $0x2a8] sm:$0xff]   ;;  %v11937_v19 = vld [vmem:[#allocation10 + $0x2b0] sm:$0xff]   ;;  %v8512_v6 = vrot.slane %v14555_v54, 4 }
 0x816   : > { %v11912_v20 = vld [vmem:[#allocation10 + $0x38] sm:$0xff]   ;;  %v11942_v40 = vld [vmem:[#allocation10 + $0x300] sm:$0xff]   ;;  %v11945_v31 = vld [vmem:[#allocation10 + $0x308] sm:$0xff]  }
 0x817   : > { %10712 = vmatpush3.bf16.msra.mxu0 %v11903_v26  ;;  %8111 = vmatpush1.bf16.msra.mxu1 %v11904_v61  ;;  %v11939_v28 = vld [vmem:[#allocation10 + $0x2f8] sm:$0xff]   ;;  %v11943_v49 = vld [vmem:[#allocation10 + $0x240] sm:$0xff]   ;;  %v11946_v7 = vld [vmem:[#allocation10 + $0x248] sm:$0xff]  }
 0x818   : > { %10713 = vmatprep.subr.bf16.mxu0 %v11905_v11  ;;  %8112 = vmatprep.subr.bf16.mxu1 %v14823_v60  ;;  %v11944_v36 = vld [vmem:[#allocation10 + $0x2c0] sm:$0xff]   ;;  %v11947_v56 = vld [vmem:[#allocation10 + $0x2c8] sm:$0xff]   ;;  %v11948_v53 = vld [vmem:[#allocation10 + $0x310] sm:$0xff]  }
 0x819   : > { %v11949_v37 = vld [vmem:[#allocation10 + $0x250] sm:$0xff]   ;;  %v11951_v61 = vld [vmem:[#allocation10 + $0x318] sm:$0xff]   ;;  %v11954_v11 = vld [vmem:[#allocation10 + $0x260] sm:$0xff]  }
 0x81a   : > { %v11950_v26 = vld [vmem:[#allocation10 + $0x2d0] sm:$0xff]   ;;  %v11952_v44 = vld [vmem:[#allocation10 + $0x258] sm:$0xff]   ;;  %v11955_v63 = vld [vmem:[#allocation10 + $0x320] sm:$0xff]  }
 0x81b   : > { %10714 = vmatpush3.bf16.msra.mxu0 %v11906_v17  ;;  %8113 = vmatpush1.bf16.msra.mxu1 %v11907_v4  ;;  %v11953_v34 = vld [vmem:[#allocation10 + $0x2d8] sm:$0xff]   ;;  %v8515_v17 = vrot.slane %v14562_v1, 4  ;;  %v11956_v4 = vld [vmem:[#allocation10 + $0x268] sm:$0xff]  }
 0x81c   : > { %10715 = vmatprep.subr.bf16.mxu0 %v11908_v9  ;;  %8114 = vmatprep.subr.bf16.mxu1 %v14823_v60  ;;  %v11957_v9 = vld [vmem:[#allocation10 + $0x328] sm:$0xff]  }
 0x81f   : > { %10716 = vmatpush3.bf16.msra.mxu0 %v11909_v18  ;;  %8115 = vmatpush1.bf16.msra.mxu1 %v11910_v15  ;;  %v11958_v18 = vld [vmem:[#allocation10 + $0x270] sm:$0xff]   ;;  %v11961_v15 = vld [vmem:[#allocation10 + $0x338] sm:$0xff]  }
 0x820   : > { %10717 = vmatprep.subr.bf16.mxu0 %v11911_v52  ;;  %8116 = vmatprep.subr.bf16.mxu1 %v14823_v60  ;;  %v11962_v52 = vld [vmem:[#allocation10 + $0x280] sm:$0xff]  }
 0x823   : > { %10718 = vmatpush3.bf16.msra.mxu0 %v11912_v20  ;;  %8117 = vmatpush1.bf16.msra.mxu1 %v11913_v47  ;;  %v11963_v20 = vld [vmem:[#allocation10 + $0x340] sm:$0xff]   ;;  %v11964_v47 = vld [vmem:[#allocation10 + $0x288] sm:$0xff]  }
 0x824   : > { %8118 = vmatprep.subr.bf16.mxu1 %v14823_v60  ;;  %10725 = vmatprep.subr.bf16.mxu0 %v11914_v32  ;;  %v11965_v32 = vld [vmem:[#allocation10 + $0x348] sm:$0xff]  }
 0x826   : > { %8095 = vmatmul.mubr.bf16.vlgmr.msra.gmra.mrb[112].mxu0 %v14540_v51  ;;  %v11924_v51 = vld [vmem:[#allocation10 + $0xd8] sm:$0xff]  }
 0x827   : > { %8119 = vmatpush1.bf16.msra.mxu1 %v11915_v27  ;;  %10726 = vmatpush3.bf16.msra.mxu0 %v11916_v35  ;;  %v11966_v27 = vld [vmem:[#allocation10 + $0x290] sm:$0xff]  }
 0x828   : > { %8402 = vmatprep.mubr.bf16.mxu0 %v14560_v13  ;;  %8120 = vmatprep.subr.bf16.mxu1 %v14823_v60  ;;  %v11941_v13 = vld [vmem:[#allocation10 + $0x2b8] sm:$0xff]   ;;  %v11967_v35 = vld [vmem:[#allocation10 + $0x350] sm:$0xff]  }
 0x829   : > { %10727 = vmatprep.subr.bf16.mxu0 %v11917_v24  ;;  %v11968_v24 = vld [vmem:[#allocation10 + $0x298] sm:$0xff]  }
 0x82b   : > { %8121 = vmatpush1.bf16.msra.mxu1 %v11918_v3  ;;  %10728 = vmatpush3.bf16.msra.mxu0 %v11919_v33  ;;  %v11969_v3 = vld [vmem:[#allocation10 + $0x358] sm:$0xff]   ;;  %v11970_v33 = vld [vmem:[#allocation10 + $0x3c0] sm:$0xff]  }
 0x82c   : > { %8122 = vmatprep.subr.bf16.mxu1 %v14823_v60  ;;  %10729 = vmatprep.subr.bf16.mxu0 %v11920_v0  ;;  %v11972_v0 = vld [vmem:[#allocation10 + $0x380] sm:$0xff]  }
 0x82f   : > { %8123 = vmatpush1.bf16.msra.mxu1 %v11921_v48  ;;  %10730 = vmatpush3.bf16.msra.mxu0 %v11922_v62  ;;  %v11971_v48 = vld [vmem:[#allocation10 + $0x360] sm:$0xff]   ;;  %v11973_v62 = vld [vmem:[#allocation10 + $0x3c8] sm:$0xff]  }
 0x830   : > { %8124 = vmatprep.subr.bf16.mxu1 %v14823_v60  ;;  %10731 = vmatprep.subr.bf16.mxu0 %v11923_v45  ;;  %v11975_v45 = vld [vmem:[#allocation10 + $0x388] sm:$0xff]  }
 0x833   : > { %8125 = vmatpush1.bf16.msra.mxu1 %v11924_v51  ;;  %10732 = vmatpush3.bf16.msra.mxu0 %v11925_v25  ;;  %v11974_v51 = vld [vmem:[#allocation10 + $0x368] sm:$0xff]   ;;  %v11976_v25 = vld [vmem:[#allocation10 + $0x3d0] sm:$0xff]  }
 0x834   : > { %10733 = vmatprep.subr.bf16.mxu0 %v11926_v43  ;;  %10747 = vmatprep.subr.bf16.mxu1 %v11927_v8  ;;  %v11978_v43 = vld [vmem:[#allocation10 + $0x390] sm:$0xff]  }
 0x835   : > { %v11977_v8 = vld [vmem:[#allocation10 + $0x370] sm:$0xff]  }
 0x836   : > { %8135 = vmatmul.mubr.bf16.vlgmr.msra.gmra.mrb[116].mxu1 %v14542_v38  ;;  %v11940_v38 = vld [vmem:[#allocation10 + $0x1f8] sm:$0xff]  }
 0x837   : > { %10734 = vmatpush3.bf16.msra.mxu0 %v11928_v50  ;;  %10748 = vmatpush3.bf16.msra.mxu1 %v11929_v21  ;;  %v11979_v50 = vld [vmem:[#allocation10 + $0x3d8] sm:$0xff]  }
 0x838   : > { %8722 = vmatprep.mubr.bf16.mxu1 %v8513_v39  ;;  %10735 = vmatprep.subr.bf16.mxu0 %v11930_v30  ;;  %v11981_v21 = vld [vmem:[#allocation10 + $0x398] sm:$0xff]   ;;  %v11983_v39 = vld [vmem:[#allocation10 + $0x4a0] sm:$0xff]  }
 0x839   : > { %10749 = vmatprep.subr.bf16.mxu1 %v11931_v22  ;;  %v11980_v30 = vld [vmem:[#allocation10 + $0x378] sm:$0xff]   ;;  %v11982_v22 = vld [vmem:[#allocation10 + $0x3e0] sm:$0xff]  }
 0x83b   : > { %10736 = vmatpush3.bf16.msra.mxu0 %v11932_v42  ;;  %10750 = vmatpush3.bf16.msra.mxu1 %v11933_v5  ;;  %v11984_v42 = vld [vmem:[#allocation10 + $0x3a0] sm:$0xff]  }
 0x83c   : > { %10737 = vmatprep.subr.bf16.mxu0 %v11934_v46  ;;  %10751 = vmatprep.subr.bf16.mxu1 %v11935_v2  ;;  %v11985_v5 = vld [vmem:[#allocation10 + $0x460] sm:$0xff]   ;;  %v8514_v46 = vrot.slane %v14557_v41, 4  ;;  %v11986_v2 = vld [vmem:[#allocation10 + $0x3e8] sm:$0xff]  }
 0x83f   : > { %10738 = vmatpush3.bf16.msra.mxu0 %v11936_v14  ;;  %10752 = vmatpush3.bf16.msra.mxu1 %v11937_v19  ;;  %v11987_v14 = vld [vmem:[#allocation10 + $0x4a8] sm:$0xff]   ;;  %v9142_v19 = vrot.slane %v14579_v59, 4 }
 0x840   : > { %10739 = vmatprep.subr.bf16.mxu0 %v11938_v58  ;;  %10753 = vmatprep.subr.bf16.mxu1 %v11939_v28  ;;  %v11988_v58 = vld [vmem:[#allocation10 + $0x3a8] sm:$0xff]  }
 0x841   : > { %v11989_v28 = vld [vmem:[#allocation10 + $0x468] sm:$0xff]  }
 0x843   : > { %10740 = vmatpush3.bf16.msra.mxu0 %v11940_v38  ;;  %10754 = vmatpush3.bf16.msra.mxu1 %v11941_v13  ;;  %v11990_v38 = vld [vmem:[#allocation10 + $0x3f0] sm:$0xff]  }
 0x844   : > { %8410 = vmatprep.subr.bf16.mxu0 %v14823_v60  ;;  %10755 = vmatprep.subr.bf16.mxu1 %v11942_v40  ;;  %v11991_v13 = vld [vmem:[#allocation10 + $0x4b0] sm:$0xff]  }
 0x845   : > { %v11992_v40 = vld [vmem:[#allocation10 + $0x3b0] sm:$0xff]  }
 0x846   : > { %8403 = vmatmul.mubr.bf16.vlgmr.msra.gmra.mrb[116].mxu0 %v14555_v54  ;;  %v11959_v54 = vld [vmem:[#allocation10 + $0x330] sm:$0xff]  }
 0x847   : > { %8411 = vmatpush1.bf16.msra.mxu0 %v11943_v49  ;;  %10552 = vmatprep.mubr.msk.bf16.mxu0 %vm7807_vm15, %v14562_v1  ;;  %v11960_v1 = vld [vmem:[#allocation10 + $0x278] sm:$0xff]  }
 0x848   : > { %10756 = vmatpush3.bf16.msra.mxu1 %v11944_v36  ;;  %8412 = vmatprep.subr.bf16.mxu0 %v14823_v60  ;;  %v11994_v49 = vld [vmem:[#allocation10 + $0x3f8] sm:$0xff]  }
 0x849   : > { %10757 = vmatprep.subr.bf16.mxu1 %v11945_v31  ;;  %v11995_v36 = vld [vmem:[#allocation10 + $0x4b8] sm:$0xff]  }
 0x84a   : > { %v11997_v31 = vld [vmem:[#allocation10 + $0x478] sm:$0xff]  }
 0x84b   : > { %8413 = vmatpush1.bf16.msra.mxu0 %v11946_v7  ;;  %v11998_v7 = vld [vmem:[#allocation10 + $0x4c0] sm:$0xff]  }
 0x84c   : > { %10758 = vmatpush3.bf16.msra.mxu1 %v11947_v56  ;;  %8414 = vmatprep.subr.bf16.mxu0 %v14823_v60  ;;  %v11999_v56 = vld [vmem:[#allocation10 + $0x400] sm:$0xff]  }
 0x84d   : > { %10759 = vmatprep.subr.bf16.mxu1 %v11948_v53  ;;  %v12000_v53 = vld [vmem:[#allocation10 + $0x480] sm:$0xff]  }
 0x84f   : > { %8415 = vmatpush1.bf16.msra.mxu0 %v11949_v37  ;;  %v12001_v37 = vld [vmem:[#allocation10 + $0x4c8] sm:$0xff]  }
 0x850   : > { %10760 = vmatpush3.bf16.msra.mxu1 %v11950_v26  ;;  %8416 = vmatprep.subr.bf16.mxu0 %v14823_v60  ;;  %v12002_v26 = vld [vmem:[#allocation10 + $0x408] sm:$0xff]  }
 0x851   : > { %10761 = vmatprep.subr.bf16.mxu1 %v11951_v61  ;;  %v12003_v61 = vld [vmem:[#allocation10 + $0x488] sm:$0xff]  }
 0x853   : > { %8417 = vmatpush1.bf16.msra.mxu0 %v11952_v44  ;;  %v12004_v44 = vld [vmem:[#allocation10 + $0x4d0] sm:$0xff]  }
 0x854   : > { %10762 = vmatpush3.bf16.msra.mxu1 %v11953_v34  ;;  %8418 = vmatprep.subr.bf16.mxu0 %v14823_v60  ;;  %v12005_v34 = vld [vmem:[#allocation10 + $0x410] sm:$0xff]  }
 0x855   : > { %8730 = vmatprep.subr.bf16.mxu1 %v14823_v60 }
 0x857   : > { %8723 = vmatmul.mubr.bf16.vlgmr.msra.gmra.mrb[120].mxu1 %v8512_v6  ;;  %8419 = vmatpush1.bf16.msra.mxu0 %v11954_v11  ;;  %v12006_v11 = vld [vmem:[#allocation10 + $0x490] sm:$0xff]   ;;  %v12008_v6 = vld [vmem:[#allocation10 + $0x418] sm:$0xff]  }
 0x858   : > { %8731 = vmatpush1.bf16.msra.mxu1 %v11955_v63  ;;  %10581 = vmatprep.mubr.msk.bf16.mxu1 %vm7807_vm15, %v8515_v17  ;;  %v12007_v63 = vld [vmem:[#allocation10 + $0x4d8] sm:$0xff]  }
 0x859   : > { %8420 = vmatprep.subr.bf16.mxu0 %v14823_v60  ;;  %8732 = vmatprep.subr.bf16.mxu1 %v14823_v60  ;;  %v12009_v17 = vld [vmem:[#allocation10 + $0x498] sm:$0xff]  }
 0x85b   : > { %8421 = vmatpush1.bf16.msra.mxu0 %v11956_v4  ;;  %v12010_v4 = vld [vmem:[#allocation10 + $0x420] sm:$0xff]  }
 0x85c   : > { %8733 = vmatpush1.bf16.msra.mxu1 %v11957_v9  ;;  %8422 = vmatprep.subr.bf16.mxu0 %v14823_v60  ;;  %v12011_v9 = vld [vmem:[#allocation10 + $0x4e0] sm:$0xff]  }
 0x85d   : > { %8734 = vmatprep.subr.bf16.mxu1 %v14823_v60 }
 0x85f   : > { %8423 = vmatpush1.bf16.msra.mxu0 %v11958_v18  ;;  %v9141_v18 = vrot.slane %v14574_v57, 4 }
 0x860   : > { %8735 = vmatpush1.bf16.msra.mxu1 %v11959_v54  ;;  %8424 = vmatprep.subr.bf16.mxu0 %v14823_v60  ;;  %v9144_v54 = vrot.slane %v14581_v55, 4 }
 0x861   : > { %8736 = vmatprep.subr.bf16.mxu1 %v14823_v60 }
 0x863   : > { %8425 = vmatpush1.bf16.msra.mxu0 %v11960_v1  ;;  %v12012_v1 = vld [vmem:[#allocation10 + $0x428] sm:$0xff]  }
 0x864   : > { %8737 = vmatpush1.bf16.msra.mxu1 %v11961_v15  ;;  %8426 = vmatprep.subr.bf16.mxu0 %v14823_v60  ;;  %v12013_v15 = vld [vmem:[#allocation10 + $0x4e8] sm:$0xff]  }
 0x865   : > { %8738 = vmatprep.subr.bf16.mxu1 %v14823_v60 }
 0x867   : > { %8427 = vmatpush1.bf16.msra.mxu0 %v11962_v52  ;;  %v12014_v52 = vld [vmem:[#allocation10 + $0x430] sm:$0xff]  }
 0x868   : > { %8739 = vmatpush1.bf16.msra.mxu1 %v11963_v20  ;;  %8428 = vmatprep.subr.bf16.mxu0 %v14823_v60  ;;  %v12017_v20 = vld [vmem:[#allocation10 + $0x4f8] sm:$0xff]  }
 0x869   : > { %8740 = vmatprep.subr.bf16.mxu1 %v14823_v60 }
 0x86b   : > { %8429 = vmatpush1.bf16.msra.mxu0 %v11964_v47  ;;  %v12018_v47 = vld [vmem:[#allocation10 + $0x440] sm:$0xff]  }
 0x86c   : > { %8741 = vmatpush1.bf16.msra.mxu1 %v11965_v32  ;;  %8430 = vmatprep.subr.bf16.mxu0 %v14823_v60  ;;  %v12019_v32 = vld [vmem:[#allocation10 + $0x500] sm:$0xff]  }
 0x86d   : > { %8742 = vmatprep.subr.bf16.mxu1 %v14823_v60 }
 0x86f   : > { %8431 = vmatpush1.bf16.msra.mxu0 %v11966_v27  ;;  %v12020_v27 = vld [vmem:[#allocation10 + $0x448] sm:$0xff]  }
 0x870   : > { %8743 = vmatpush1.bf16.msra.mxu1 %v11967_v35  ;;  %8432 = vmatprep.subr.bf16.mxu0 %v14823_v60  ;;  %v12021_v35 = vld [vmem:[#allocation10 + $0x508] sm:$0xff]  }
 0x871   : > { %8744 = vmatprep.subr.bf16.mxu1 %v14823_v60 }
 0x873   : > { %8433 = vmatpush1.bf16.msra.mxu0 %v11968_v24  ;;  %v12022_v24 = vld [vmem:[#allocation10 + $0x450] sm:$0xff]  }
 0x874   : > { %8745 = vmatpush1.bf16.msra.mxu1 %v11969_v3  ;;  %10769 = vmatprep.subr.bf16.mxu0 %v11970_v33  ;;  %v12023_v3 = vld [vmem:[#allocation10 + $0x510] sm:$0xff]   ;;  %v12024_v33 = vld [vmem:[#allocation10 + $0x458] sm:$0xff]  }
 0x875   : > { %8746 = vmatprep.subr.bf16.mxu1 %v14823_v60 }
 0x876   : > { %8443 = vmatmul.mubr.bf16.vlgmr.msra.gmra.mrb[120].mxu0 %v14557_v41  ;;  %v11993_v41 = vld [vmem:[#allocation10 + $0x470] sm:$0xff]  }
 0x877   : > { %10770 = vmatpush3.bf16.msra.mxu0 %v11972_v0  ;;  %9031 = vmatprep.mubr.bf16.mxu0 %v14579_v59  ;;  %v11996_v59 = vld [vmem:[#allocation10 + $0x3b8] sm:$0xff]  }
 0x878   : > { %8747 = vmatpush1.bf16.msra.mxu1 %v11971_v48  ;;  %10771 = vmatprep.subr.bf16.mxu0 %v11973_v62  ;;  %v12025_v0 = vld [vmem:[#allocation10 + $0x518] sm:$0xff]   ;;  %v12026_v48 = vld [vmem:[#allocation10 + $0x580] sm:$0xff]   ;;  %v7496_v62 = vmax.f32 %v14595_v12, 0.0  ;;  %v12032_v12 = vld [vmem:[#allocation10 + $0x590] sm:$0xff]  }
 0x879   : > { %8748 = vmatprep.subr.bf16.mxu1 %v14823_v60 }
 0x87b   : > { %10772 = vmatpush3.bf16.msra.mxu0 %v11975_v45  ;;  %v12028_v45 = vld [vmem:[#allocation10 + $0x540] sm:$0xff]  }
 0x87c   : > { %8749 = vmatpush1.bf16.msra.mxu1 %v11974_v51  ;;  %10773 = vmatprep.subr.bf16.mxu0 %v11976_v25  ;;  %v12027_v51 = vld [vmem:[#allocation10 + $0x520] sm:$0xff]   ;;  %v12029_v25 = vld [vmem:[#allocation10 + $0x588] sm:$0xff]  }
 0x87d   : > { %8750 = vmatprep.subr.bf16.mxu1 %v14823_v60 }
 0x87f   : > { %10774 = vmatpush3.bf16.msra.mxu0 %v11978_v43  ;;  %v7512_v43 = vpack.c.bf16 %v7496_v62, %v7496_v62 }
 0x880   : > { %8751 = vmatpush1.bf16.msra.mxu1 %v11977_v8  ;;  %10775 = vmatprep.subr.bf16.mxu0 %v11979_v50  ;;  %v12031_v8 = vld [vmem:[#allocation10 + $0x548] sm:$0xff]  }
 0x881   : > { %8752 = vmatprep.subr.bf16.mxu1 %v14823_v60  ;;  %v12030_v50 = vld [vmem:[#allocation10 + $0x528] sm:$0xff]  }
 0x883   : > { %10776 = vmatpush3.bf16.msra.mxu0 %v11981_v21  ;;  %v12034_v21 = vld [vmem:[#allocation10 + $0x550] sm:$0xff]  }
 0x884   : > { %8753 = vmatpush1.bf16.msra.mxu1 %v11980_v30  ;;  %10777 = vmatprep.subr.bf16.mxu0 %v11982_v22  ;;  %v12033_v30 = vld [vmem:[#allocation10 + $0x530] sm:$0xff]   ;;  %v12035_v22 = vld [vmem:[#allocation10 + $0x598] sm:$0xff]  }
 0x885   : > { %10791 = vmatprep.subr.bf16.mxu1 %v11983_v39  ;;  %v12037_v39 = vld [vmem:[#allocation10 + $0x558] sm:$0xff]  }
 0x887   : > { %8763 = vmatmul.mubr.bf16.vlgmr.msra.gmra.mrb[124].mxu1 %v8514_v46  ;;  %10778 = vmatpush3.bf16.msra.mxu0 %v11984_v42  ;;  %v12036_v42 = vld [vmem:[#allocation10 + $0x538] sm:$0xff]   ;;  %v12039_v46 = vld [vmem:[#allocation10 + $0x560] sm:$0xff]  }
 0x888   : > { %10792 = vmatpush3.bf16.msra.mxu1 %v11985_v5  ;;  %9351 = vmatprep.mubr.bf16.mxu1 %v9142_v19  ;;  %v12038_v5 = vld [vmem:[#allocation10 + $0x5a0] sm:$0xff]   ;;  %v14678_v19 = vld [vmem:[#allocation3] sm:$0xff] }
 0x889   : > { %10779 = vmatprep.subr.bf16.mxu0 %v11986_v2  ;;  %10793 = vmatprep.subr.bf16.mxu1 %v11987_v14  ;;  %v12040_v2 = vld [vmem:[#allocation10 + $0x5a8] sm:$0xff]   ;;  %v9143_v14 = vrot.slane %v14576_v23, 4 }
 0x88b   : > { %10780 = vmatpush3.bf16.msra.mxu0 %v11988_v58  ;;  %v12041_v58 = vld [vmem:[#allocation10 + $0x568] sm:$0xff]  }
 0x88c   : > { %10794 = vmatpush3.bf16.msra.mxu1 %v11989_v28  ;;  %10781 = vmatprep.subr.bf16.mxu0 %v11990_v38  ;;  %v12042_v28 = vld [vmem:[#allocation10 + $0x5b0] sm:$0xff]  }
 0x88d   : > { %10795 = vmatprep.subr.bf16.mxu1 %v11991_v13 }
 0x88f   : > { %10782 = vmatpush3.bf16.msra.mxu0 %v11992_v40 }
 0x890   : > { %10796 = vmatpush3.bf16.msra.mxu1 %v11993_v41  ;;  %10783 = vmatprep.subr.bf16.mxu0 %v11994_v49 }
 0x891   : > { %10797 = vmatprep.subr.bf16.mxu1 %v11995_v36 }
 0x893   : > { %10784 = vmatpush3.bf16.msra.mxu0 %v11996_v59 }
 0x894   : > { %10798 = vmatpush3.bf16.msra.mxu1 %v11997_v31  ;;  %9039 = vmatprep.subr.bf16.mxu0 %v14823_v60  ;;  %v12043_v31 = vld [vmem:[#allocation10 + $0x570] sm:$0xff]  }
 0x895   : > { %10799 = vmatprep.subr.bf16.mxu1 %v11998_v7 }
 0x896   : > { %9032 = vmatmul.mubr.bf16.vlgmr.msra.gmra.mrb[124].mxu0 %v14574_v57  ;;  %v12015_v57 = vld [vmem:[#allocation10 + $0x4f0] sm:$0xff]  }
 0x897   : > { %9040 = vmatpush1.bf16.msra.mxu0 %v11999_v56  ;;  %10610 = vmatprep.mubr.msk.bf16.mxu0 %vm7807_vm15, %v14581_v55  ;;  %v12016_v55 = vld [vmem:[#allocation10 + $0x438] sm:$0xff]  }
 0x898   : > { %10800 = vmatpush3.bf16.msra.mxu1 %v12000_v53  ;;  %9041 = vmatprep.subr.bf16.mxu0 %v14823_v60  ;;  %v12044_v56 = vld [vmem:[#allocation10 + $0x5b8] sm:$0xff]  }
 0x899   : > { %10801 = vmatprep.subr.bf16.mxu1 %v12001_v37  ;;  %v12045_v37 = vld [vmem:[#allocation10 + $0x578] sm:$0xff]  }
 0x89b   : > { %9042 = vmatpush1.bf16.msra.mxu0 %v12002_v26  ;;  %v7495_v26 = vmax.f32 %v14588_v29, 0.0  ;;  %v12049_v29 = vld [vmem:[#allocation10 + $0x5d8] sm:$0xff]  }
 0x89c   : > { %10802 = vmatpush3.bf16.msra.mxu1 %v12003_v61  ;;  %9043 = vmatprep.subr.bf16.mxu0 %v14823_v60  ;;  %v7498_v61 = vmax.f32 %v14598_v16, 0.0  ;;  %v12050_v16 = vld [vmem:[#allocation10 + $0x5e0] sm:$0xff]  }
 0x89d   : > { %10803 = vmatprep.subr.bf16.mxu1 %v12004_v44  ;;  %v12046_v44 = vld [vmem:[#allocation10 + $0x5c0] sm:$0xff]  }
 0x89f   : > { %9044 = vmatpush1.bf16.msra.mxu0 %v12005_v34  ;;  %v7511_v34 = vpack.c.bf16 %v7495_v26, %v7495_v26  ;;  %v12065_v26 = vld [vmem:[%s14759_s9 + $0x38] sm:$0xff]  }
 0x8a0   : > { %10804 = vmatpush3.bf16.msra.mxu1 %v12006_v11  ;;  %9045 = vmatprep.subr.bf16.mxu0 %v14823_v60  ;;  %v7514_v11 = vpack.c.bf16 %v7498_v61, %v7498_v61 }
 0x8a1   : > { %10805 = vmatprep.subr.bf16.mxu1 %v12007_v63  ;;  %v12047_v63 = vld [vmem:[#allocation10 + $0x5c8] sm:$0xff]  }
 0x8a3   : > { %9046 = vmatpush1.bf16.msra.mxu0 %v12008_v6  ;;  %v12048_v6 = vld [vmem:[#allocation10 + $0x5d0] sm:$0xff]  }
 0x8a4   : > { %10806 = vmatpush3.bf16.msra.mxu1 %v12009_v17  ;;  %9047 = vmatprep.subr.bf16.mxu0 %v14823_v60  ;;  %v12051_v17 = vld [vmem:[#allocation10 + $0x5e8] sm:$0xff]  }
 0x8a5   : > { %9359 = vmatprep.subr.bf16.mxu1 %v14823_v60 }
 0x8a7   : > { %9352 = vmatmul.mubr.bf16.vlgmr.msra.gmra.mrb[128].mxu1 %v9141_v18  ;;  %9048 = vmatpush1.bf16.msra.mxu0 %v12010_v4 }
 0x8a8   : > { %9360 = vmatpush1.bf16.msra.mxu1 %v12011_v9  ;;  %10639 = vmatprep.mubr.msk.bf16.mxu1 %vm7807_vm15, %v9144_v54 }
 0x8a9   : > { %9049 = vmatprep.subr.bf16.mxu0 %v14823_v60  ;;  %9361 = vmatprep.subr.bf16.mxu1 %v14823_v60 }
 0x8ab   : > { %9050 = vmatpush1.bf16.msra.mxu0 %v12012_v1  ;;  %v12052_v1 = vld [vmem:[#allocation10 + $0x5f0] sm:$0xff]  }
 0x8ac   : > { %9362 = vmatpush1.bf16.msra.mxu1 %v12013_v15  ;;  %9051 = vmatprep.subr.bf16.mxu0 %v14823_v60 }
 0x8ad   : > { %9363 = vmatprep.subr.bf16.mxu1 %v14823_v60 }
 0x8af   : > { %9052 = vmatpush1.bf16.msra.mxu0 %v12014_v52 }
 0x8b0   : > { %9364 = vmatpush1.bf16.msra.mxu1 %v12015_v57  ;;  %9053 = vmatprep.subr.bf16.mxu0 %v14823_v60  ;;  %v12053_v57 = vld [vmem:[#allocation10 + $0x5f8] sm:$0xff]  }
 0x8b1   : > { %9365 = vmatprep.subr.bf16.mxu1 %v14823_v60 }
 0x8b3   : > { %9054 = vmatpush1.bf16.msra.mxu0 %v12016_v55  ;;  %v12054_v55 = vld [vmem:[#allocation10 + $0x600] sm:$0xff]  }
 0x8b4   : > { %9366 = vmatpush1.bf16.msra.mxu1 %v12017_v20  ;;  %9055 = vmatprep.subr.bf16.mxu0 %v14823_v60  ;;  %v12055_v20 = vld [vmem:[#allocation10 + $0x608] sm:$0xff]  }
 0x8b5   : > { %9367 = vmatprep.subr.bf16.mxu1 %v14823_v60 }
 0x8b7   : > { %9056 = vmatpush1.bf16.msra.mxu0 %v12018_v47 }
 0x8b8   : > { %9368 = vmatpush1.bf16.msra.mxu1 %v12019_v32  ;;  %9057 = vmatprep.subr.bf16.mxu0 %v14823_v60 }
 0x8b9   : > { %9369 = vmatprep.subr.bf16.mxu1 %v14823_v60 }
 0x8bb   : > { %9058 = vmatpush1.bf16.msra.mxu0 %v12020_v27 }
 0x8bc   : > { %9370 = vmatpush1.bf16.msra.mxu1 %v12021_v35  ;;  %9059 = vmatprep.subr.bf16.mxu0 %v14823_v60 }
 0x8bd   : > { %9371 = vmatprep.subr.bf16.mxu1 %v14823_v60 }
 0x8bf   : > { %9060 = vmatpush1.bf16.msra.mxu0 %v12022_v24  ;;  %v12056_v24 = vld [vmem:[#allocation10 + $0x610] sm:$0xff]  }
 0x8c0   : > { %9372 = vmatpush1.bf16.msra.mxu1 %v12023_v3  ;;  %9061 = vmatprep.subr.bf16.mxu0 %v14823_v60 }
 0x8c1   : > { %9373 = vmatprep.subr.bf16.mxu1 %v14823_v60 }
 0x8c3   : > { %9062 = vmatpush1.bf16.msra.mxu0 %v12024_v33  ;;  %v12057_v33 = vld [vmem:[#allocation10 + $0x618] sm:$0xff]  }
 0x8c4   : > { %9374 = vmatpush1.bf16.msra.mxu1 %v12025_v0  ;;  %10813 = vmatprep.subr.bf16.mxu0 %v12026_v48  ;;  %v7497_v0 = vmax.f32 %v14591_v10, 0.0  ;;  %v12060_v10 = vld [vmem:[%s14759_s9 + $0x10] sm:$0xff]  }
 0x8c5   : > { %9375 = vmatprep.subr.bf16.mxu1 %v14823_v60 }
 0x8c6   : > { %9072 = vmatmul.mubr.bf16.vlgmr.msra.gmra.mrb[128].mxu0 %v14576_v23  ;;  %v7513_v48 = vpack.c.bf16 %v7497_v0, %v7497_v0 }
 0x8c7   : > { %10814 = vmatpush3.bf16.msra.mxu0 %v12028_v45  ;;  %9660 = vmatprep.mubr.bf16.mxu0 %v7512_v43 }
 0x8c8   : > { %9376 = vmatpush1.bf16.msra.mxu1 %v12027_v51  ;;  %10815 = vmatprep.subr.bf16.mxu0 %v12029_v25 }
 0x8c9   : > { %9377 = vmatprep.subr.bf16.mxu1 %v14823_v60 }
 0x8cb   : > { %10816 = vmatpush3.bf16.msra.mxu0 %v12031_v8 }
 0x8cc   : > { %9378 = vmatpush1.bf16.msra.mxu1 %v12030_v50  ;;  %10817 = vmatprep.subr.bf16.mxu0 %v12032_v12 }
 0x8cd   : > { %9379 = vmatprep.subr.bf16.mxu1 %v14823_v60 }
 0x8cf   : > { %10818 = vmatpush3.bf16.msra.mxu0 %v12034_v21 }
 0x8d0   : > { %9380 = vmatpush1.bf16.msra.mxu1 %v12033_v30  ;;  %10819 = vmatprep.subr.bf16.mxu0 %v12035_v22  ;;  %v12058_v22 = vld [vmem:[%s14759_s9] sm:$0xff]  }
 0x8d1   : > { %9381 = vmatprep.subr.bf16.mxu1 %v14823_v60 }
 0x8d3   : > { %10820 = vmatpush3.bf16.msra.mxu0 %v12037_v39  ;;  %v12061_v39 = vld [vmem:[%s14759_s9 + $0x18] sm:$0xff]  }
 0x8d4   : > { %9382 = vmatpush1.bf16.msra.mxu1 %v12036_v42  ;;  %10821 = vmatprep.subr.bf16.mxu0 %v12038_v5 }
 0x8d5   : > { %10844 = vmatprep.subr.bf16.mxu1 %v14678_v19 }
 0x8d7   : > { %9392 = vmatmul.mubr.bf16.vlgmr.msra.gmra.mrb[132].mxu1 %v9143_v14  ;;  %10822 = vmatpush3.bf16.msra.mxu0 %v12039_v46 }
 0x8d8   : > { %10823 = vmatprep.subr.bf16.mxu0 %v12040_v2  ;;  %10845 = vmatpush3.bf16.msra.mxu1 %v12058_v22  ;;  %v12062_v2 = vld [vmem:[%s14759_s9 + $0x20] sm:$0xff]  }
 0x8d9   : > { %v10697_v38 = vpop.f32.mrb[108].mxu0  ;;  %v7885_v13 = vpop.f32.mrb[112].mxu1  ;;  %10846 = vmatprep.subr.bf16.mxu1 %v14678_v19  ;;  %10860 = vmatprep.mubr.msk.bf16.mxu1 %vm12206_vm0, %v14678_v19 }
 0x8da   : > { %v10698_v40 = vpop.f32.mrb[109].mxu0  ;;  %v7887_v41 = vpop.f32.mrb[113].mxu1 }
 0x8db   : > { %v10699_v49 = vadd.f32 %v10698_v40, %v10697_v38  ;;  %10824 = vmatpush3.bf16.msra.mxu0 %v12041_v58  ;;  %v10700_v36 = vpop.f32.mrb[110].mxu0  ;;  %v7888_v59 = vpop.f32.mrb[114].mxu1 }
 0x8dc   : > { %v10701_v7 = vpop.f32.mrb[111].mxu0  ;;  %v7889_v23 = vpop.f32.mrb[115].mxu1  ;;  %10825 = vmatprep.subr.bf16.mxu0 %v12042_v28  ;;  %v12063_v59 = vld [vmem:[%s14759_s9 + $0x28] sm:$0xff]  }
 0x8dd   : > { %v7886_v53 = vadd.f32 %v10699_v49, %v7885_v13 }
 0x8df   : > { %10826 = vmatpush3.bf16.msra.mxu0 %v12043_v31 }
 0x8e0   : > { %10827 = vmatprep.subr.bf16.mxu0 %v12044_v56 }
 0x8e3   : > { %10828 = vmatpush3.bf16.msra.mxu0 %v12045_v37  ;;  %v12064_v37 = vld [vmem:[%s14759_s9 + $0x30] sm:$0xff]  }
 0x8e4   : > { %9668 = vmatprep.subr.bf16.mxu0 %v14823_v60 }
 0x8e6   : > { %9661 = vmatmul.mubr.bf16.vlgmr.msra.gmra.mrb[132].mxu0 %v7511_v34 }
 0x8e7   : > { %9669 = vmatpush1.bf16.msra.mxu0 %v12046_v44  ;;  %10668 = vmatprep.mubr.msk.bf16.mxu0 %vm7807_vm15, %v7514_v11 }
 0x8e8   : > { %9670 = vmatprep.subr.bf16.mxu0 %v14823_v60 }
 0x8eb   : > { %9671 = vmatpush1.bf16.msra.mxu0 %v12047_v63 }
 0x8ec   : > { %9672 = vmatprep.subr.bf16.mxu0 %v14823_v60 }
 0x8ef   : > { %9673 = vmatpush1.bf16.msra.mxu0 %v12048_v6 }
 0x8f0   : > { %9674 = vmatprep.subr.bf16.mxu0 %v14823_v60 }
 0x8f3   : > { %9675 = vmatpush1.bf16.msra.mxu0 %v12049_v29 }
 0x8f4   : > { %9676 = vmatprep.subr.bf16.mxu0 %v14823_v60 }
 0x8f7   : > { %9677 = vmatpush1.bf16.msra.mxu0 %v12050_v16 }
 0x8f8   : > { %9678 = vmatprep.subr.bf16.mxu0 %v14823_v60 }
 0x8f9   : > { %v10719_v4 = vpop.f32.mrb[112].mxu0 }
 0x8fa   : > { %v10720_v9 = vpop.f32.mrb[113].mxu0 }
 0x8fb   : > { %v10721_v18 = vadd.f32 %v10720_v9, %v10719_v4  ;;  %v10722_v54 = vpop.f32.mrb[114].mxu0  ;;  %9679 = vmatpush1.bf16.msra.mxu0 %v12051_v17 }
 0x8fc   : > { %v10723_v15 = vpop.f32.mrb[115].mxu0  ;;  %9680 = vmatprep.subr.bf16.mxu0 %v14823_v60 }
 0x8fd   : > { %v8097_v52 = vadd.f32 %v10721_v18, %v7886_v53 }
 0x8ff   : > { %9681 = vmatpush1.bf16.msra.mxu0 %v12052_v1 }
 0x900   : > { %9682 = vmatprep.subr.bf16.mxu0 %v14823_v60 }
 0x903   : > { %9683 = vmatpush1.bf16.msra.mxu0 %v12053_v57 }
 0x904   : > { %9684 = vmatprep.subr.bf16.mxu0 %v14823_v60 }
 0x907   : > { %9685 = vmatpush1.bf16.msra.mxu0 %v12054_v55 }
 0x908   : > { %9686 = vmatprep.subr.bf16.mxu0 %v14823_v60 }
 0x909   : > { %v8136_v47 = vpop.f32.mrb[116].mxu1 }
 0x90a   : > { %v8137_v32 = vadd.f32 %v8136_v47, %v8097_v52  ;;  %v8138_v27 = vpop.f32.mrb[117].mxu1 }
 0x90b   : > { %v8139_v35 = vpop.f32.mrb[118].mxu1  ;;  %9687 = vmatpush1.bf16.msra.mxu0 %v12055_v20 }
 0x90c   : > { %v8140_v3 = vpop.f32.mrb[119].mxu1  ;;  %9688 = vmatprep.subr.bf16.mxu0 %v14823_v60 }
 0x90d   : > { %v10669_v3 = vld [vmem:[%s14824_s30] ss:$0 sm:$0xff] }
 0x90f   : > { %9689 = vmatpush1.bf16.msra.mxu0 %v12056_v24 }
 0x910   : > { %9690 = vmatprep.subr.bf16.mxu0 %v14823_v60  ;;  %v12059_v60 = vld [vmem:[%s14759_s9 + $0x8] sm:$0xff]  }
 0x911   : > { %10847 = vmatpush3.bf16.msra.mxu1 %v12059_v60 }
 0x912   : > { %10848 = vmatprep.subr.bf16.mxu1 %v14678_v19 }
 0x913   : > { %9691 = vmatpush1.bf16.msra.mxu0 %v12057_v33 }
 0x915   : > { %10849 = vmatpush3.bf16.msra.mxu1 %v12060_v10 }
 0x916   : > { %9701 = vmatmul.mubr.bf16.vlgmr.msra.gmra.mrb[136].mxu0 %v7513_v48  ;;  %10850 = vmatprep.subr.bf16.mxu1 %v14678_v19 }
 0x919   : > { %v10741_v62 = vpop.f32.mrb[116].mxu0  ;;  %10851 = vmatpush3.bf16.msra.mxu1 %v12061_v39 }
 0x91a   : > { %v10742_v45 = vpop.f32.mrb[117].mxu0  ;;  %10852 = vmatprep.subr.bf16.mxu1 %v14678_v19 }
 0x91b   : > { %v10743_v51 = vadd.f32 %v10742_v45, %v10741_v62  ;;  %v10744_v25 = vpop.f32.mrb[118].mxu0 }
 0x91c   : > { %v10745_v43 = vpop.f32.mrb[119].mxu0  ;;  %v10670_v25 = vld [vmem:[%s14825_s12] ss:$0 sm:$0xff] }
 0x91d   : > { %10853 = vmatpush3.bf16.msra.mxu1 %v12062_v2 }
 0x91e   : > { %10854 = vmatprep.subr.bf16.mxu1 %v14678_v19 }
 0x921   : > { %10855 = vmatpush3.bf16.msra.mxu1 %v12063_v59 }
 0x922   : > { %10856 = vmatprep.subr.bf16.mxu1 %v14678_v19 }
 0x925   : > { %10857 = vmatpush3.bf16.msra.mxu1 %v12064_v37 }
 0x926   : > { %10858 = vmatprep.subr.bf16.mxu1 %v14678_v19 }
 0x929   : > { %10859 = vmatpush3.bf16.msra.mxu1 %v12065_v26 }
 0x92a   : > { %v10763_v8 = vpop.f32.mrb[120].mxu1 }
 0x92b   : > { %v10764_v50 = vpop.f32.mrb[121].mxu1 }
 0x92c   : > { %v10765_v12 = vadd.f32 %v10764_v50, %v10763_v8  ;;  %v10766_v21 = vpop.f32.mrb[122].mxu1 }
 0x92d   : > { %v10767_v30 = vpop.f32.mrb[123].mxu1 }
 0x949   : > { %v8444_v42 = vpop.f32.mrb[120].mxu0 }
 0x94a   : > { %v8445_v5 = vadd.f32 %v10743_v51, %v8444_v42  ;;  %v8446_v46 = vpop.f32.mrb[121].mxu0 }
 0x94b   : > { %v8447_v14 = vpop.f32.mrb[122].mxu0 }
 0x94c   : > { %v8450_v58 = vadd.f32 %v8445_v5, %v8137_v32  ;;  %v8448_v28 = vpop.f32.mrb[123].mxu0 }
 0x95a   : > { %v8764_v38 = vpop.f32.mrb[124].mxu1 }
 0x95b   : > { %v8765_v13 = vadd.f32 %v10765_v12, %v8764_v38  ;;  %v8766_v40 = vpop.f32.mrb[125].mxu1 }
 0x95c   : > { %v8767_v41 = vpop.f32.mrb[126].mxu1 }
 0x95d   : > { %v8770_v49 = vadd.f32 %v8765_v13, %v8450_v58  ;;  %v8768_v36 = vpop.f32.mrb[127].mxu1 }
 0x969   : > { %v10785_v31 = vpop.f32.mrb[124].mxu0 }
 0x96a   : > { %v10786_v7 = vpop.f32.mrb[125].mxu0 }
 0x96b   : > { %v10787_v23 = vadd.f32 %v10786_v7, %v10785_v31  ;;  %v10788_v56 = vpop.f32.mrb[126].mxu0 }
 0x96c   : > { %v10789_v53 = vpop.f32.mrb[127].mxu0 }
 0x97a   : > { %v10807_v61 = vpop.f32.mrb[128].mxu1 }
 0x97b   : > { %v10808_v44 = vpop.f32.mrb[129].mxu1 }
 0x97c   : > { %v10809_v34 = vadd.f32 %v10808_v44, %v10807_v61  ;;  %v10810_v11 = vpop.f32.mrb[130].mxu1 }
 0x97d   : > { %v10811_v63 = vpop.f32.mrb[131].mxu1 }
 0x999   : > { %v9073_v6 = vpop.f32.mrb[128].mxu0 }
 0x99a   : > { %v9074_v29 = vadd.f32 %v10787_v23, %v9073_v6  ;;  %v9075_v16 = vpop.f32.mrb[129].mxu0 }
 0x99b   : > { %v9076_v17 = vpop.f32.mrb[130].mxu0 }
 0x99c   : > { %v9079_v4 = vadd.f32 %v9074_v29, %v8770_v49  ;;  %v9077_v9 = vpop.f32.mrb[131].mxu0 }
 0x9aa   : > { %v9393_v18 = vpop.f32.mrb[132].mxu1 }
 0x9ab   : > { %v9394_v54 = vadd.f32 %v10809_v34, %v9393_v18  ;;  %v9395_v1 = vpop.f32.mrb[133].mxu1 }
 0x9ac   : > { %v9396_v15 = vpop.f32.mrb[134].mxu1 }
 0x9ad   : > { %v9399_v52 = vadd.f32 %v9394_v54, %v9079_v4  ;;  %v9397_v57 = vpop.f32.mrb[135].mxu1 }
 0x9b9   : > { %v10829_v55 = vpop.f32.mrb[132].mxu0 }
 0x9ba   : > { %v10830_v19 = vpop.f32.mrb[133].mxu0 }
 0x9bb   : > { %v10831_v20 = vadd.f32 %v10830_v19, %v10829_v55  ;;  %v10832_v47 = vpop.f32.mrb[134].mxu0 }
 0x9bc   : > { %v10833_v32 = vpop.f32.mrb[135].mxu0 }
 0x9e9   : > { %v9702_v27 = vpop.f32.mrb[136].mxu0 }
 0x9ea   : > { %v9703_v35 = vadd.f32 %v10831_v20, %v9702_v27  ;;  %v9704_v24 = vpop.f32.mrb[137].mxu0 }
 0x9eb   : > { %v9705_v33 = vpop.f32.mrb[138].mxu0 }
 0x9ec   : > { %v9708_v0 = vadd.f32 %v9703_v35, %v9399_v52  ;;  %v9706_v48 = vpop.f32.mrb[139].mxu0 }
 0x9ee   : > { %v9716_v62 = vadd.f32 %v10669_v3, %v9708_v0 }
 0x9f0   : > { %v9717_v45 = vmax.f32 %v9716_v62, 0.0 }
 0x9f2   : > { %v9718_v51 = vpack.c.bf16 %v9717_v45, %v9717_v45 }
 0x9f4   : > { %10861 = vmatmul.mubr.bf16.vlgmr.msra.gmra.mrb[136].mxu1 %v9718_v51 }
 0xac7   : > { %v9824_v43 = vpop.f32.mrb[136].mxu1 }
 0xac8   : > { %v9825_v8 = vadd.f32 %v10670_v25, %v9824_v43  ;;  %v10862_v50 = vpop.f32.mrb[137].mxu1 }
 0xac9   : > { %v9827_v12 = vpop.f32.mrb[138].mxu1 }
 0xaca   : > { %9830 = vst [vmem:[%s570_s24] sm:$0xff] %v9825_v8  ;;  %v10863_v21 = vpop.f32.mrb[139].mxu1 }
 0xacb PF: > { %s14827_s19 = sld [smem:[#allocation13_spill]]  ;;  %s14828_s10 = sld [smem:[#allocation14_spill]] }
 0xacc   : > { %s14829_s17 = smov %s12184_s18 }
 0xad1   : > { %p20_p5 = scmp.ge.s32.totalorder %s14827_s19, 4   ;;  %s14830_s18 = smov %s14828_s10 }
 0xad3   :  { %22 = sbr.rel (!%p20_p5) target bundleno = 7 (0x7), region = 162 }
 0xada   :  { %9850 = vsyncpa [#allocation7], 1 }
 0xadb   :  { %9852 = vsyncpa [#allocation7 + $0x1], 1 }
 0xadc   :  { %9853 = vsyncpa [#allocation9], 1 }

</bundles_post_ra>
